<compile_context>
chip_gen: v7x
topology: tpu7x:2x2x1
jax: 0.10.0
libtpu: 0.0.40
codegen_flags: <defaults>
</compile_context>

<pallas_src>
import jax
import jax.numpy as jnp
from jax import lax
from jax.experimental import pallas as pl
from jax.experimental.pallas import tpu as pltpu

EMBED_DIM = 300
GRU_HIDDEN = 32          # small shape for the test; reference default was 128
NUM_CAPSULE = 10
DIM_CAPSULE = 16
NUM_CLASSES = 30
ROUTINGS = 5
T_EPS = 1e-7

VMEM_TILE_BUDGET = 20 << 20      # bytes used when sizing blocks (double-buffering included)
VMEM_LIMIT = 40 << 20            # explicit scoped-VMEM cap; safe on v5e/v6e/v7x


def _largest_divisor_tile(n, cap):
    """Largest t <= cap with t % 8 == 0 and n % t == 0; falls back to n (full dim)."""
    if n <= cap:
        return n
    t = (cap // 8) * 8
    while t >= 8:
        if n % t == 0:
            return t
        t -= 8
    return n


# --------------------- GRU stage 1: hoisted input projection ------------------
def gi_proj_kernel(x_ref, wih_ref, bih_ref, gi_ref):
    # x_ref:  (Lt, N, E)
    # wih_ref:(E, 6H) columns ordered [r_f r_b z_f z_b n_f n_b]
    # bih_ref:(1, 6H) = b_ih (+ b_hh r/z halves folded in)
    # gi_ref: (Lt, N, 6H)
    lt, n, e = x_ref.shape
    g6 = gi_ref.shape[2]
    x = x_ref[...].reshape(lt * n, e)
    gi = jnp.dot(x, wih_ref[...], preferred_element_type=jnp.float32) + bih_ref[...]
    gi_ref[...] = gi.reshape(lt, n, g6)


def gru_input_projection(x, wih, bih):
    L, N, E = x.shape
    G6 = wih.shape[1]
    per_l = 4 * N * (2 * E + 2 * G6)             # double-buffered x block + gi block
    lt = max(1, min(L, VMEM_TILE_BUDGET // max(per_l, 1)))
    if L >= 8:                                   # keep >=2 grid steps (megacore / pipelining)
        lt = min(lt, L // 2)
    while L % lt:                                # make lt a divisor of L
        lt -= 1
    return pl.pallas_call(
        gi_proj_kernel,
        out_shape=jax.ShapeDtypeStruct((L, N, G6), jnp.float32),
        grid=(L // lt,),
        in_specs=[
            pl.BlockSpec((lt, N, E), lambda i: (i, 0, 0)),
            pl.BlockSpec((E, G6), lambda i: (0, 0)),
            pl.BlockSpec((1, G6), lambda i: (0, 0)),
        ],
        out_specs=pl.BlockSpec((lt, N, G6), lambda i: (i, 0, 0)),
        compiler_params=pltpu.CompilerParams(
            dimension_semantics=("parallel",),
            vmem_limit_bytes=VMEM_LIMIT),
    )(x, wih, bih)


# --------------------- GRU stage 2: fused fwd+bwd recurrence -------------------
def gru_rec_kernel(gi_ref, whh_ref, bhn_ref, out_ref):
    # gi_ref:  (L, Nt, 6H)  columns [r_f r_b z_f z_b n_f n_b] (all at forward time)
    # whh_ref: (2H, 6H)     block-diagonal: rows 0:H act on h_f, rows H:2H on h_b
    # bhn_ref: (1, 2H)      [b_hn_f | b_hn_b] (cannot be folded; PyTorch GRU n-gate)
    # out_ref: (L, Nt, 2H)  [..., :H] forward, [..., H:] backward
    L, N, _ = gi_ref.shape
    H = out_ref.shape[2] // 2
    whh = whh_ref[...]
    bhn = jnp.broadcast_to(bhn_ref[...], (N, 2 * H))     # hoisted, not per-step

    # Lane masks: pick forward-time gates from gi[t], backward-time gates from gi[L-1-t].
    col_rz = lax.broadcasted_iota(jnp.int32, (1, 4 * H), 1)
    fwd_rz = (col_rz % (2 * H)) < H                      # [r_f r_b z_f z_b]
    col_n = lax.broadcasted_iota(jnp.int32, (1, 2 * H), 1)
    fwd_n = col_n < H                                    # [n_f n_b]

    def body(t, h):
        tb = L - 1 - t
        gi_t = gi_ref[t]                                 # (N, 6H)
        gi_tb = gi_ref[tb]
        gh = jnp.dot(h, whh, preferred_element_type=jnp.float32)   # one MXU push / step
        rz_in = jnp.where(fwd_rz, gi_t[:, :4 * H], gi_tb[:, :4 * H])
        rz = jax.nn.sigmoid(rz_in + gh[:, :4 * H])       # one 128-lane sigmoid slab
        r = rz[:, :2 * H]                                # [r_f | r_b]
        z = rz[:, 2 * H:]                                # [z_f | z_b]
        n_in = jnp.where(fwd_n, gi_t[:, 4 * H:], gi_tb[:, 4 * H:])
        n = jnp.tanh(n_in + r * (gh[:, 4 * H:] + bhn))   # one 64-lane tanh slab
        h_new = (1.0 - z) * n + z * h
        out_ref[t, :, 0:H] = h_new[:, 0:H]               # forward output at time t
        out_ref[tb, :, H:2 * H] = h_new[:, H:2 * H]      # backward output at time L-1-t
        return h_new

    h0 = jnp.zeros((N, 2 * H), jnp.float32)
    lax.fori_loop(0, L, body, h0, unroll=2)              # fwd/bwd chains are independent


def gru_recurrence(gi, whh, bhn, hidden):
    L, N, G6 = gi.shape
    H = hidden
    per_row = 4 * L * (2 * G6 + 2 * (2 * H))             # double-buffered gi + out, per seq row
    cap = max(8, VMEM_TILE_BUDGET // max(per_row, 1))
    if N >= 128:
        cap = min(cap, N // 2)                           # >=2 parallel grid steps (v7x megacore)
    tile_n = _largest_divisor_tile(N, cap)
    return pl.pallas_call(
        gru_rec_kernel,
        out_shape=jax.ShapeDtypeStruct((L, N, 2 * H), jnp.float32),
        grid=(N // tile_n,),
        in_specs=[
            pl.BlockSpec((L, tile_n, G6), lambda j: (0, j, 0)),
            pl.BlockSpec((2 * H, G6), lambda j: (0, 0)),
            pl.BlockSpec((1, 2 * H), lambda j: (0, 0)),
        ],
        out_specs=pl.BlockSpec((L, tile_n, 2 * H), lambda j: (0, j, 0)),
        compiler_params=pltpu.CompilerParams(
            dimension_semantics=("parallel",),
            vmem_limit_bytes=VMEM_LIMIT),
    )(gi, whh, bhn)


# -------------------- Fused capsule (u_hat + routing) + dense ------------------
def caps_dense_kernel(x_ref, capsw_ref, fcw_ref, fcb_ref, out_ref):
    # x_ref: (Bt, Nc, Din); capsw: (Din, 160); fcw: (160, 30); fcb: (1, 30); out: (Bt, 30)
    bt, nc, din = x_ref.shape
    NK = NUM_CAPSULE * DIM_CAPSULE

    # Single MXU matmul for u_hat (dominant FLOP of this kernel).
    x = x_ref[...].reshape(bt * nc, din)
    u_flat = jnp.dot(x, capsw_ref[...], preferred_element_type=jnp.float32)   # (Bt*Nc, 160)
    # u4[b, j, i, k] == reference u_hat_vecs[b, i, j, k]  (no transposes needed below).
    u4 = u_flat.reshape(bt, nc, NUM_CAPSULE, DIM_CAPSULE)

    b2 = jnp.zeros((bt, nc, NUM_CAPSULE), jnp.float32)       # == reference b, transposed
    v = jnp.zeros((bt, NUM_CAPSULE, DIM_CAPSULE), jnp.float32)
    for it in range(ROUTINGS):
        c2 = jax.nn.softmax(b2, axis=-1)                     # softmax over the 10 capsules
        s = jnp.sum(c2[..., None] * u4, axis=1)              # (Bt, 10, 16)
        v = s * lax.rsqrt(jnp.sum(s * s, axis=-1, keepdims=True) + T_EPS)   # squash
        if it < ROUTINGS - 1:
            b2 = jnp.sum(v[:, None] * u4, axis=-1)           # (Bt, Nc, 10)  (overwrite, as ref)

    # TODO(synk): nn.Dropout(p=0.25) before the Linear treated as identity (inference).
    flat = v.reshape(bt, NK)
    logits = jnp.dot(flat, fcw_ref[...], preferred_element_type=jnp.float32) + fcb_ref[...]
    out_ref[...] = jax.nn.sigmoid(logits)


def caps_dense(x, caps_w, fc_w, fc_b):
    B, Nc, Din = x.shape
    NK = NUM_CAPSULE * DIM_CAPSULE
    per_row = 4 * (2 * Nc * Din + 3 * Nc * NK + 4 * NUM_CLASSES)
    cap = max(1, min(32, VMEM_TILE_BUDGET // max(per_row, 1)))
    bt = _largest_divisor_tile(B, cap)
    return pl.pallas_call(
        caps_dense_kernel,
        out_shape=jax.ShapeDtypeStruct((B, NUM_CLASSES), jnp.float32),
        grid=(B // bt,),
        in_specs=[
            pl.BlockSpec((bt, Nc, Din), lambda i: (i, 0, 0)),
            pl.BlockSpec((Din, NK), lambda i: (0, 0)),
            pl.BlockSpec((NK, NUM_CLASSES), lambda i: (0, 0)),
            pl.BlockSpec((1, NUM_CLASSES), lambda i: (0, 0)),
        ],
        out_specs=pl.BlockSpec((bt, NUM_CLASSES), lambda i: (i, 0)),
        compiler_params=pltpu.CompilerParams(
            dimension_semantics=("parallel",),
            vmem_limit_bytes=VMEM_LIMIT),
    )(x, caps_w, fc_w, fc_b)


# ------------------------------- Model -----------------------------------------
def model_forward(content, params):
    # Embedding lookup (gather) kept in plain JAX glue.
    emb = jnp.take(params["embed_w"], content, axis=0)               # (B, S, 300)
    # TODO(synk): embedding dropout (p=0.25) treated as identity (inference).
    gi = gru_input_projection(emb, params["wih"], params["bih"])     # (B, S, 6H)
    gru_out = gru_recurrence(gi, params["whh"], params["bhn"], GRU_HIDDEN)   # (B, S, 2H)
    return caps_dense(gru_out, params["caps_w"], params["fc_w"], params["fc_b"])  # (B, 30)


# ------------------------------- Init -------------------------------------------
def init_params(key, vocab_size):
    E, H = EMBED_DIM, GRU_HIDDEN
    NK = NUM_CAPSULE * DIM_CAPSULE
    ks = jax.random.split(key, 8)

    def xavier_uniform(k, shape, fan_in, fan_out):
        lim = (6.0 / (fan_in + fan_out)) ** 0.5
        return jax.random.uniform(k, shape, jnp.float32, -lim, lim)

    def orthogonal(k, shape):
        q, _ = jnp.linalg.qr(jax.random.normal(k, shape, jnp.float32))
        return q

    embed_w = jax.random.normal(ks[0], (vocab_size + 1, E), jnp.float32)

    # Raw GRU weights in PyTorch layout: (3H, E)/(3H, H) with gate rows [r; z; n].
    wih_f = xavier_uniform(ks[1], (3 * H, E), E, 3 * H)
    wih_b = xavier_uniform(ks[2], (3 * H, E), E, 3 * H)
    whh_f = orthogonal(ks[3], (3 * H, H))
    whh_b = orthogonal(ks[4], (3 * H, H))

    # Input projection weights, columns reordered to [r_f r_b z_f z_b n_f n_b].
    wih = jnp.concatenate(
        [wih_f[0:H].T, wih_b[0:H].T,
         wih_f[H:2 * H].T, wih_b[H:2 * H].T,
         wih_f[2 * H:3 * H].T, wih_b[2 * H:3 * H].T], axis=1)        # (E, 6H)

    # Block-diagonal hidden weights (2H, 6H): rows 0:H act on h_f, rows H:2H on h_b.
    Z = jnp.zeros((H, H), jnp.float32)
    top = jnp.concatenate([whh_f[0:H].T, Z, whh_f[H:2 * H].T, Z, whh_f[2 * H:3 * H].T, Z], axis=1)
    bot = jnp.concatenate([Z, whh_b[0:H].T, Z, whh_b[H:2 * H].T, Z, whh_b[2 * H:3 * H].T], axis=1)
    whh = jnp.concatenate([top, bot], axis=0)                        # (2H, 6H)

    # Reference inits all GRU biases to 0.  `bih` = b_ih + (r/z halves of b_hh) folded,
    # `bhn` = n-gate b_hh kept separate (PyTorch GRU n-gate semantics).
    bih = jnp.zeros((1, 6 * H), jnp.float32)
    bhn = jnp.zeros((1, 2 * H), jnp.float32)

    # Caps W (torch shape (1, Din, NK), xavier_normal_), stored squeezed as (Din, NK).
    Din = 2 * H
    std = (2.0 / (Din * NK + NK)) ** 0.5
    caps_w = std * jax.random.normal(ks[5], (Din, NK), jnp.float32)

    bound = 1.0 / (NK ** 0.5)
    fc_w = jax.random.uniform(ks[6], (NK, NUM_CLASSES), jnp.float32, -bound, bound)
    fc_b = jax.random.uniform(ks[7], (1, NUM_CLASSES), jnp.float32, -bound, bound)

    return dict(embed_w=embed_w, wih=wih, whh=whh, bih=bih, bhn=bhn,
                caps_w=caps_w, fc_w=fc_w, fc_b=fc_b)


if __name__ == "__main__":
    key = jax.random.PRNGKey(0)
    pkey, dkey = jax.random.split(key)
    vocab_size = 50
    B, S = 2, 8

    params = init_params(pkey, vocab_size)
    content = jax.random.randint(dkey, (B, S), 0, vocab_size + 1, dtype=jnp.int32)

    out = jax.jit(model_forward)(content, params)
    out = jax.block_until_ready(out)
    assert out.shape == (B, NUM_CLASSES) and out.dtype == jnp.float32
    print("KERNEL_OK")
</pallas_src>

<mosaic_0001>
module attributes {stable_mosaic.version = 11 : i64} {
  func.func @gi_proj_kernel(%arg0: i32, %arg1: memref<2x8x300xf32, #tpu.memory_space<vmem>>, %arg2: memref<300x192xf32, #tpu.memory_space<vmem>>, %arg3: memref<1x192xf32, #tpu.memory_space<vmem>>, %arg4: memref<2x8x192xf32, #tpu.memory_space<vmem>>) attributes {dimension_semantics = [#tpu.dimension_semantics<parallel>], iteration_bounds = array<i64: 1>, scalar_prefetch = 0 : i64, scratch_operands = 0 : i64, tpu.core_type = #tpu.core_type<tc>, window_params = [{transform_indices = @transform_0, window_bounds = array<i64: 2, 8, 300>}, {pipeline_mode = #tpu.pipeline_mode<synchronous>, transform_indices = @transform_1, window_bounds = array<i64: 300, 192>}, {pipeline_mode = #tpu.pipeline_mode<synchronous>, transform_indices = @transform_2, window_bounds = array<i64: 1, 192>}, {transform_indices = @transform_3, window_bounds = array<i64: 2, 8, 192>}]} {
    %c0 = arith.constant 0 : index
    %c0_0 = arith.constant 0 : index
    %c0_1 = arith.constant 0 : index
    %0 = vector.load %arg1[%c0, %c0_0, %c0_1] : memref<2x8x300xf32, #tpu.memory_space<vmem>>, vector<2x8x300xf32>
    %1 = vector.shape_cast %0 : vector<2x8x300xf32> to vector<16x300xf32>
    %c0_2 = arith.constant 0 : index
    %c0_3 = arith.constant 0 : index
    %2 = vector.load %arg2[%c0_2, %c0_3] : memref<300x192xf32, #tpu.memory_space<vmem>>, vector<300x192xf32>
    %cst = arith.constant dense<0.000000e+00> : vector<16x192xf32>
    %3 = tpu.matmul %1, %2, %cst {dimension_numbers = #tpu.dot_dimension_numbers<[1], [0], [0], [1], [0, 0, 1, 1], [], []>} : vector<16x300xf32>, vector<300x192xf32>, vector<16x192xf32> -> vector<16x192xf32>
    %c0_4 = arith.constant 0 : index
    %c0_5 = arith.constant 0 : index
    %4 = vector.load %arg3[%c0_4, %c0_5] : memref<1x192xf32, #tpu.memory_space<vmem>>, vector<1x192xf32>
    %5 = vector.broadcast %4 : vector<1x192xf32> to vector<16x192xf32>
    %6 = arith.addf %3, %5 : vector<16x192xf32>
    %7 = vector.shape_cast %6 : vector<16x192xf32> to vector<2x8x192xf32>
    %c0_6 = arith.constant 0 : index
    %c0_7 = arith.constant 0 : index
    %c0_8 = arith.constant 0 : index
    %8 = vector.load %arg4[%c0_6, %c0_7, %c0_8] : memref<2x8x192xf32, #tpu.memory_space<vmem>>, vector<2x8x192xf32>
    tpu.vector_store %arg4[%c0_6, %c0_7, %c0_8], %7 {strides = array<i32>} : memref<2x8x192xf32, #tpu.memory_space<vmem>>, vector<2x8x192xf32>,
    return
  }
  func.func @transform_0(%arg0: i32) -> (i32, i32, i32) {
    %c0_i32 = arith.constant 0 : i32
    %c0_i32_0 = arith.constant 0 : i32
    %c0_i32_1 = arith.constant 0 : i32
    return %arg0, %c0_i32, %c0_i32_0 : i32, i32, i32
  }
  func.func @transform_1(%arg0: i32) -> (i32, i32) {
    %c0_i32 = arith.constant 0 : i32
    %c0_i32_0 = arith.constant 0 : i32
    %c0_i32_1 = arith.constant 0 : i32
    return %c0_i32, %c0_i32_0 : i32, i32
  }
  func.func @transform_2(%arg0: i32) -> (i32, i32) {
    %c0_i32 = arith.constant 0 : i32
    %c0_i32_0 = arith.constant 0 : i32
    %c0_i32_1 = arith.constant 0 : i32
    return %c0_i32, %c0_i32_0 : i32, i32
  }
  func.func @transform_3(%arg0: i32) -> (i32, i32, i32) {
    %c0_i32 = arith.constant 0 : i32
    %c0_i32_0 = arith.constant 0 : i32
    %c0_i32_1 = arith.constant 0 : i32
    return %arg0, %c0_i32, %c0_i32_0 : i32, i32, i32
  }
}

module attributes {stable_mosaic.version = 11 : i64} {
  func.func @caps_dense_kernel(%arg0: i32, %arg1: memref<2x8x64xf32, #tpu.memory_space<vmem>>, %arg2: memref<64x160xf32, #tpu.memory_space<vmem>>, %arg3: memref<160x30xf32, #tpu.memory_space<vmem>>, %arg4: memref<1x30xf32, #tpu.memory_space<vmem>>, %arg5: memref<2x30xf32, #tpu.memory_space<vmem>>) attributes {dimension_semantics = [#tpu.dimension_semantics<parallel>], iteration_bounds = array<i64: 1>, scalar_prefetch = 0 : i64, scratch_operands = 0 : i64, tpu.core_type = #tpu.core_type<tc>, window_params = [{transform_indices = @transform_0, window_bounds = array<i64: 2, 8, 64>}, {pipeline_mode = #tpu.pipeline_mode<synchronous>, transform_indices = @transform_1, window_bounds = array<i64: 64, 160>}, {pipeline_mode = #tpu.pipeline_mode<synchronous>, transform_indices = @transform_2, window_bounds = array<i64: 160, 30>}, {pipeline_mode = #tpu.pipeline_mode<synchronous>, transform_indices = @transform_3, window_bounds = array<i64: 1, 30>}, {transform_indices = @transform_4, window_bounds = array<i64: 2, 30>}]} {
    %c0 = arith.constant 0 : index
    %c0_0 = arith.constant 0 : index
    %c0_1 = arith.constant 0 : index
    %0 = vector.load %arg1[%c0, %c0_0, %c0_1] : memref<2x8x64xf32, #tpu.memory_space<vmem>>, vector<2x8x64xf32>
    %1 = vector.shape_cast %0 : vector<2x8x64xf32> to vector<16x64xf32>
    %c0_2 = arith.constant 0 : index
    %c0_3 = arith.constant 0 : index
    %2 = vector.load %arg2[%c0_2, %c0_3] : memref<64x160xf32, #tpu.memory_space<vmem>>, vector<64x160xf32>
    %cst = arith.constant dense<0.000000e+00> : vector<16x160xf32>
    %3 = tpu.matmul %1, %2, %cst {dimension_numbers = #tpu.dot_dimension_numbers<[1], [0], [0], [1], [0, 0, 1, 1], [], []>} : vector<16x64xf32>, vector<64x160xf32>, vector<16x160xf32> -> vector<16x160xf32>
    %4 = vector.shape_cast %3 : vector<16x160xf32> to vector<2x8x10x16xf32>
    %cst_4 = arith.constant 0.000000e+00 : f32
    %5 = vector.broadcast %cst_4 : f32 to vector<2x8x10xf32>
    %cst_5 = arith.constant dense<0xFF800000> : vector<2x8xf32>
    %6 = vector.multi_reduction <maximumf>, %5, %cst_5 [2] : vector<2x8x10xf32> to vector<2x8xf32>
    %cst_6 = arith.constant 0xFF800000 : f32
    %7 = vector.broadcast %cst_6 : f32 to vector<2x8xf32>
    %8 = arith.maximumf %7, %6 : vector<2x8xf32>
    %9 = vector.shape_cast %8 : vector<2x8xf32> to vector<2x8x1xf32>
    %10 = vector.broadcast %9 : vector<2x8x1xf32> to vector<2x8x10xf32>
    %11 = arith.subf %5, %10 : vector<2x8x10xf32>
    %12 = math.exp %11 : vector<2x8x10xf32>
    %cst_7 = arith.constant dense<0.000000e+00> : vector<2x8xf32>
    %13 = vector.multi_reduction <add>, %12, %cst_7 [2] : vector<2x8x10xf32> to vector<2x8xf32>
    %14 = vector.shape_cast %13 : vector<2x8xf32> to vector<2x8x1xf32>
    %15 = vector.broadcast %14 : vector<2x8x1xf32> to vector<2x8x10xf32>
    %16 = arith.divf %12, %15 : vector<2x8x10xf32>
    %17 = vector.shape_cast %16 : vector<2x8x10xf32> to vector<2x8x10x1xf32>
    %18 = vector.broadcast %17 : vector<2x8x10x1xf32> to vector<2x8x10x16xf32>
    %19 = arith.mulf %18, %4 : vector<2x8x10x16xf32>
    %cst_8 = arith.constant dense<0.000000e+00> : vector<2x10x16xf32>
    %20 = vector.multi_reduction <add>, %19, %cst_8 [1] : vector<2x8x10x16xf32> to vector<2x10x16xf32>
    %21 = arith.mulf %20, %20 : vector<2x10x16xf32>
    %cst_9 = arith.constant dense<0.000000e+00> : vector<2x10xf32>
    %22 = vector.multi_reduction <add>, %21, %cst_9 [2] : vector<2x10x16xf32> to vector<2x10xf32>
    %23 = vector.shape_cast %22 : vector<2x10xf32> to vector<2x10x1xf32>
    %cst_10 = arith.constant 1.000000e-07 : f32
    %24 = vector.broadcast %cst_10 : f32 to vector<2x10x1xf32>
    %25 = arith.addf %23, %24 : vector<2x10x1xf32>
    %26 = math.rsqrt %25 : vector<2x10x1xf32>
    %27 = vector.broadcast %26 : vector<2x10x1xf32> to vector<2x10x16xf32>
    %28 = arith.mulf %20, %27 : vector<2x10x16xf32>
    %29 = vector.shape_cast %28 : vector<2x10x16xf32> to vector<2x1x10x16xf32>
    %30 = vector.broadcast %29 : vector<2x1x10x16xf32> to vector<2x8x10x16xf32>
    %31 = arith.mulf %30, %4 : vector<2x8x10x16xf32>
    %cst_11 = arith.constant dense<0.000000e+00> : vector<2x8x10xf32>
    %32 = vector.multi_reduction <add>, %31, %cst_11 [3] : vector<2x8x10x16xf32> to vector<2x8x10xf32>
    %cst_12 = arith.constant dense<0xFF800000> : vector<2x8xf32>
    %33 = vector.multi_reduction <maximumf>, %32, %cst_12 [2] : vector<2x8x10xf32> to vector<2x8xf32>
    %cst_13 = arith.constant 0xFF800000 : f32
    %34 = vector.broadcast %cst_13 : f32 to vector<2x8xf32>
    %35 = arith.maximumf %34, %33 : vector<2x8xf32>
    %36 = vector.shape_cast %35 : vector<2x8xf32> to vector<2x8x1xf32>
    %37 = vector.broadcast %36 : vector<2x8x1xf32> to vector<2x8x10xf32>
    %38 = arith.subf %32, %37 : vector<2x8x10xf32>
    %39 = math.exp %38 : vector<2x8x10xf32>
    %cst_14 = arith.constant dense<0.000000e+00> : vector<2x8xf32>
    %40 = vector.multi_reduction <add>, %39, %cst_14 [2] : vector<2x8x10xf32> to vector<2x8xf32>
    %41 = vector.shape_cast %40 : vector<2x8xf32> to vector<2x8x1xf32>
    %42 = vector.broadcast %41 : vector<2x8x1xf32> to vector<2x8x10xf32>
    %43 = arith.divf %39, %42 : vector<2x8x10xf32>
    %44 = vector.shape_cast %43 : vector<2x8x10xf32> to vector<2x8x10x1xf32>
    %45 = vector.broadcast %44 : vector<2x8x10x1xf32> to vector<2x8x10x16xf32>
    %46 = arith.mulf %45, %4 : vector<2x8x10x16xf32>
    %cst_15 = arith.constant dense<0.000000e+00> : vector<2x10x16xf32>
    %47 = vector.multi_reduction <add>, %46, %cst_15 [1] : vector<2x8x10x16xf32> to vector<2x10x16xf32>
    %48 = arith.mulf %47, %47 : vector<2x10x16xf32>
    %cst_16 = arith.constant dense<0.000000e+00> : vector<2x10xf32>
    %49 = vector.multi_reduction <add>, %48, %cst_16 [2] : vector<2x10x16xf32> to vector<2x10xf32>
    %50 = vector.shape_cast %49 : vector<2x10xf32> to vector<2x10x1xf32>
    %cst_17 = arith.constant 1.000000e-07 : f32
    %51 = vector.broadcast %cst_17 : f32 to vector<2x10x1xf32>
    %52 = arith.addf %50, %51 : vector<2x10x1xf32>
    %53 = math.rsqrt %52 : vector<2x10x1xf32>
    %54 = vector.broadcast %53 : vector<2x10x1xf32> to vector<2x10x16xf32>
    %55 = arith.mulf %47, %54 : vector<2x10x16xf32>
    %56 = vector.shape_cast %55 : vector<2x10x16xf32> to vector<2x1x10x16xf32>
    %57 = vector.broadcast %56 : vector<2x1x10x16xf32> to vector<2x8x10x16xf32>
    %58 = arith.mulf %57, %4 : vector<2x8x10x16xf32>
    %cst_18 = arith.constant dense<0.000000e+00> : vector<2x8x10xf32>
    %59 = vector.multi_reduction <add>, %58, %cst_18 [3] : vector<2x8x10x16xf32> to vector<2x8x10xf32>
    %cst_19 = arith.constant dense<0xFF800000> : vector<2x8xf32>
    %60 = vector.multi_reduction <maximumf>, %59, %cst_19 [2] : vector<2x8x10xf32> to vector<2x8xf32>
    %cst_20 = arith.constant 0xFF800000 : f32
    %61 = vector.broadcast %cst_20 : f32 to vector<2x8xf32>
    %62 = arith.maximumf %61, %60 : vector<2x8xf32>
    %63 = vector.shape_cast %62 : vector<2x8xf32> to vector<2x8x1xf32>
    %64 = vector.broadcast %63 : vector<2x8x1xf32> to vector<2x8x10xf32>
    %65 = arith.subf %59, %64 : vector<2x8x10xf32>
    %66 = math.exp %65 : vector<2x8x10xf32>
    %cst_21 = arith.constant dense<0.000000e+00> : vector<2x8xf32>
    %67 = vector.multi_reduction <add>, %66, %cst_21 [2] : vector<2x8x10xf32> to vector<2x8xf32>
    %68 = vector.shape_cast %67 : vector<2x8xf32> to vector<2x8x1xf32>
    %69 = vector.broadcast %68 : vector<2x8x1xf32> to vector<2x8x10xf32>
    %70 = arith.divf %66, %69 : vector<2x8x10xf32>
    %71 = vector.shape_cast %70 : vector<2x8x10xf32> to vector<2x8x10x1xf32>
    %72 = vector.broadcast %71 : vector<2x8x10x1xf32> to vector<2x8x10x16xf32>
    %73 = arith.mulf %72, %4 : vector<2x8x10x16xf32>
    %cst_22 = arith.constant dense<0.000000e+00> : vector<2x10x16xf32>
    %74 = vector.multi_reduction <add>, %73, %cst_22 [1] : vector<2x8x10x16xf32> to vector<2x10x16xf32>
    %75 = arith.mulf %74, %74 : vector<2x10x16xf32>
    %cst_23 = arith.constant dense<0.000000e+00> : vector<2x10xf32>
    %76 = vector.multi_reduction <add>, %75, %cst_23 [2] : vector<2x10x16xf32> to vector<2x10xf32>
    %77 = vector.shape_cast %76 : vector<2x10xf32> to vector<2x10x1xf32>
    %cst_24 = arith.constant 1.000000e-07 : f32
    %78 = vector.broadcast %cst_24 : f32 to vector<2x10x1xf32>
    %79 = arith.addf %77, %78 : vector<2x10x1xf32>
    %80 = math.rsqrt %79 : vector<2x10x1xf32>
    %81 = vector.broadcast %80 : vector<2x10x1xf32> to vector<2x10x16xf32>
    %82 = arith.mulf %74, %81 : vector<2x10x16xf32>
    %83 = vector.shape_cast %82 : vector<2x10x16xf32> to vector<2x1x10x16xf32>
    %84 = vector.broadcast %83 : vector<2x1x10x16xf32> to vector<2x8x10x16xf32>
    %85 = arith.mulf %84, %4 : vector<2x8x10x16xf32>
    %cst_25 = arith.constant dense<0.000000e+00> : vector<2x8x10xf32>
    %86 = vector.multi_reduction <add>, %85, %cst_25 [3] : vector<2x8x10x16xf32> to vector<2x8x10xf32>
    %cst_26 = arith.constant dense<0xFF800000> : vector<2x8xf32>
    %87 = vector.multi_reduction <maximumf>, %86, %cst_26 [2] : vector<2x8x10xf32> to vector<2x8xf32>
    %cst_27 = arith.constant 0xFF800000 : f32
    %88 = vector.broadcast %cst_27 : f32 to vector<2x8xf32>
    %89 = arith.maximumf %88, %87 : vector<2x8xf32>
    %90 = vector.shape_cast %89 : vector<2x8xf32> to vector<2x8x1xf32>
    %91 = vector.broadcast %90 : vector<2x8x1xf32> to vector<2x8x10xf32>
    %92 = arith.subf %86, %91 : vector<2x8x10xf32>
    %93 = math.exp %92 : vector<2x8x10xf32>
    %cst_28 = arith.constant dense<0.000000e+00> : vector<2x8xf32>
    %94 = vector.multi_reduction <add>, %93, %cst_28 [2] : vector<2x8x10xf32> to vector<2x8xf32>
    %95 = vector.shape_cast %94 : vector<2x8xf32> to vector<2x8x1xf32>
    %96 = vector.broadcast %95 : vector<2x8x1xf32> to vector<2x8x10xf32>
    %97 = arith.divf %93, %96 : vector<2x8x10xf32>
    %98 = vector.shape_cast %97 : vector<2x8x10xf32> to vector<2x8x10x1xf32>
    %99 = vector.broadcast %98 : vector<2x8x10x1xf32> to vector<2x8x10x16xf32>
    %100 = arith.mulf %99, %4 : vector<2x8x10x16xf32>
    %cst_29 = arith.constant dense<0.000000e+00> : vector<2x10x16xf32>
    %101 = vector.multi_reduction <add>, %100, %cst_29 [1] : vector<2x8x10x16xf32> to vector<2x10x16xf32>
    %102 = arith.mulf %101, %101 : vector<2x10x16xf32>
    %cst_30 = arith.constant dense<0.000000e+00> : vector<2x10xf32>
    %103 = vector.multi_reduction <add>, %102, %cst_30 [2] : vector<2x10x16xf32> to vector<2x10xf32>
    %104 = vector.shape_cast %103 : vector<2x10xf32> to vector<2x10x1xf32>
    %cst_31 = arith.constant 1.000000e-07 : f32
    %105 = vector.broadcast %cst_31 : f32 to vector<2x10x1xf32>
    %106 = arith.addf %104, %105 : vector<2x10x1xf32>
    %107 = math.rsqrt %106 : vector<2x10x1xf32>
    %108 = vector.broadcast %107 : vector<2x10x1xf32> to vector<2x10x16xf32>
    %109 = arith.mulf %101, %108 : vector<2x10x16xf32>
    %110 = vector.shape_cast %109 : vector<2x10x16xf32> to vector<2x1x10x16xf32>
    %111 = vector.broadcast %110 : vector<2x1x10x16xf32> to vector<2x8x10x16xf32>
    %112 = arith.mulf %111, %4 : vector<2x8x10x16xf32>
    %cst_32 = arith.constant dense<0.000000e+00> : vector<2x8x10xf32>
    %113 = vector.multi_reduction <add>, %112, %cst_32 [3] : vector<2x8x10x16xf32> to vector<2x8x10xf32>
    %cst_33 = arith.constant dense<0xFF800000> : vector<2x8xf32>
    %114 = vector.multi_reduction <maximumf>, %113, %cst_33 [2] : vector<2x8x10xf32> to vector<2x8xf32>
    %cst_34 = arith.constant 0xFF800000 : f32
    %115 = vector.broadcast %cst_34 : f32 to vector<2x8xf32>
    %116 = arith.maximumf %115, %114 : vector<2x8xf32>
    %117 = vector.shape_cast %116 : vector<2x8xf32> to vector<2x8x1xf32>
    %118 = vector.broadcast %117 : vector<2x8x1xf32> to vector<2x8x10xf32>
    %119 = arith.subf %113, %118 : vector<2x8x10xf32>
    %120 = math.exp %119 : vector<2x8x10xf32>
    %cst_35 = arith.constant dense<0.000000e+00> : vector<2x8xf32>
    %121 = vector.multi_reduction <add>, %120, %cst_35 [2] : vector<2x8x10xf32> to vector<2x8xf32>
    %122 = vector.shape_cast %121 : vector<2x8xf32> to vector<2x8x1xf32>
    %123 = vector.broadcast %122 : vector<2x8x1xf32> to vector<2x8x10xf32>
    %124 = arith.divf %120, %123 : vector<2x8x10xf32>
    %125 = vector.shape_cast %124 : vector<2x8x10xf32> to vector<2x8x10x1xf32>
    %126 = vector.broadcast %125 : vector<2x8x10x1xf32> to vector<2x8x10x16xf32>
    %127 = arith.mulf %126, %4 : vector<2x8x10x16xf32>
    %cst_36 = arith.constant dense<0.000000e+00> : vector<2x10x16xf32>
    %128 = vector.multi_reduction <add>, %127, %cst_36 [1] : vector<2x8x10x16xf32> to vector<2x10x16xf32>
    %129 = arith.mulf %128, %128 : vector<2x10x16xf32>
    %cst_37 = arith.constant dense<0.000000e+00> : vector<2x10xf32>
    %130 = vector.multi_reduction <add>, %129, %cst_37 [2] : vector<2x10x16xf32> to vector<2x10xf32>
    %131 = vector.shape_cast %130 : vector<2x10xf32> to vector<2x10x1xf32>
    %cst_38 = arith.constant 1.000000e-07 : f32
    %132 = vector.broadcast %cst_38 : f32 to vector<2x10x1xf32>
    %133 = arith.addf %131, %132 : vector<2x10x1xf32>
    %134 = math.rsqrt %133 : vector<2x10x1xf32>
    %135 = vector.broadcast %134 : vector<2x10x1xf32> to vector<2x10x16xf32>
    %136 = arith.mulf %128, %135 : vector<2x10x16xf32>
    %137 = vector.shape_cast %136 : vector<2x10x16xf32> to vector<2x160xf32>
    %c0_39 = arith.constant 0 : index
    %c0_40 = arith.constant 0 : index
    %138 = vector.load %arg3[%c0_39, %c0_40] : memref<160x30xf32, #tpu.memory_space<vmem>>, vector<160x30xf32>
    %cst_41 = arith.constant dense<0.000000e+00> : vector<2x30xf32>
    %139 = tpu.matmul %137, %138, %cst_41 {dimension_numbers = #tpu.dot_dimension_numbers<[1], [0], [0], [1], [0, 0, 1, 1], [], []>} : vector<2x160xf32>, vector<160x30xf32>, vector<2x30xf32> -> vector<2x30xf32>
    %c0_42 = arith.constant 0 : index
    %c0_43 = arith.constant 0 : index
    %140 = vector.load %arg4[%c0_42, %c0_43] : memref<1x30xf32, #tpu.memory_space<vmem>>, vector<1x30xf32>
    %141 = vector.broadcast %140 : vector<1x30xf32> to vector<2x30xf32>
    %142 = arith.addf %139, %141 : vector<2x30xf32>
    %143 = arith.negf %142 : vector<2x30xf32>
    %144 = math.exp %143 : vector<2x30xf32>
    %cst_44 = arith.constant 1.000000e+00 : f32
    %145 = vector.broadcast %cst_44 : f32 to vector<2x30xf32>
    %146 = arith.addf %145, %144 : vector<2x30xf32>
    %147 = arith.divf %145, %146 : vector<2x30xf32>
    %c0_45 = arith.constant 0 : index
    %c0_46 = arith.constant 0 : index
    %148 = vector.load %arg5[%c0_45, %c0_46] : memref<2x30xf32, #tpu.memory_space<vmem>>, vector<2x30xf32>
    tpu.vector_store %arg5[%c0_45, %c0_46], %147 {strides = array<i32>} : memref<2x30xf32, #tpu.memory_space<vmem>>, vector<2x30xf32>,
    return
  }
  func.func @transform_0(%arg0: i32) -> (i32, i32, i32) {
    %c0_i32 = arith.constant 0 : i32
    %c0_i32_0 = arith.constant 0 : i32
    %c0_i32_1 = arith.constant 0 : i32
    return %arg0, %c0_i32, %c0_i32_0 : i32, i32, i32
  }
  func.func @transform_1(%arg0: i32) -> (i32, i32) {
    %c0_i32 = arith.constant 0 : i32
    %c0_i32_0 = arith.constant 0 : i32
    %c0_i32_1 = arith.constant 0 : i32
    return %c0_i32, %c0_i32_0 : i32, i32
  }
  func.func @transform_2(%arg0: i32) -> (i32, i32) {
    %c0_i32 = arith.constant 0 : i32
    %c0_i32_0 = arith.constant 0 : i32
    %c0_i32_1 = arith.constant 0 : i32
    return %c0_i32, %c0_i32_0 : i32, i32
  }
  func.func @transform_3(%arg0: i32) -> (i32, i32) {
    %c0_i32 = arith.constant 0 : i32
    %c0_i32_0 = arith.constant 0 : i32
    %c0_i32_1 = arith.constant 0 : i32
    return %c0_i32, %c0_i32_0 : i32, i32
  }
  func.func @transform_4(%arg0: i32) -> (i32, i32) {
    %c0_i32 = arith.constant 0 : i32
    %c0_i32_0 = arith.constant 0 : i32
    return %arg0, %c0_i32 : i32, i32
  }
}

module attributes {stable_mosaic.version = 11 : i64} {
  func.func @gru_rec_kernel(%arg0: i32, %arg1: memref<2x8x192xf32, #tpu.memory_space<vmem>>, %arg2: memref<64x192xf32, #tpu.memory_space<vmem>>, %arg3: memref<1x64xf32, #tpu.memory_space<vmem>>, %arg4: memref<2x8x64xf32, #tpu.memory_space<vmem>>) attributes {dimension_semantics = [#tpu.dimension_semantics<parallel>], iteration_bounds = array<i64: 1>, scalar_prefetch = 0 : i64, scratch_operands = 0 : i64, tpu.core_type = #tpu.core_type<tc>, window_params = [{transform_indices = @transform_0, window_bounds = array<i64: 2, 8, 192>}, {pipeline_mode = #tpu.pipeline_mode<synchronous>, transform_indices = @transform_1, window_bounds = array<i64: 64, 192>}, {pipeline_mode = #tpu.pipeline_mode<synchronous>, transform_indices = @transform_2, window_bounds = array<i64: 1, 64>}, {transform_indices = @transform_3, window_bounds = array<i64: 2, 8, 64>}]} {
    %c0 = arith.constant 0 : index
    %c0_0 = arith.constant 0 : index
    %0 = vector.load %arg2[%c0, %c0_0] : memref<64x192xf32, #tpu.memory_space<vmem>>, vector<64x192xf32>
    %c0_1 = arith.constant 0 : index
    %c0_2 = arith.constant 0 : index
    %1 = vector.load %arg3[%c0_1, %c0_2] : memref<1x64xf32, #tpu.memory_space<vmem>>, vector<1x64xf32>
    %2 = vector.shape_cast %1 : vector<1x64xf32> to vector<1x64xf32>
    %3 = vector.broadcast %2 : vector<1x64xf32> to vector<8x64xf32>
    %4 = tpu.iota {dimensions = array<i32: 1>} : vector<1x128xi32>
    %c64_i32 = arith.constant 64 : i32
    %c0_i32 = arith.constant 0 : i32
    %5 = arith.cmpi eq, %c64_i32, %c0_i32 : i32
    %c1_i32 = arith.constant 1 : i32
    %6 = arith.select %5, %c1_i32, %c64_i32 : i32
    %7 = vector.broadcast %6 : i32 to vector<1x128xi32>
    %8 = arith.remsi %4, %7 : vector<1x128xi32>
    %c0_i32_3 = arith.constant 0 : i32
    %9 = vector.broadcast %c0_i32_3 : i32 to vector<1x128xi32>
    %10 = arith.cmpi ne, %8, %9 : vector<1x128xi32>
    %c0_i32_4 = arith.constant 0 : i32
    %11 = vector.broadcast %c0_i32_4 : i32 to vector<1x128xi32>
    %12 = arith.cmpi slt, %8, %11 : vector<1x128xi32>
    %c0_i32_5 = arith.constant 0 : i32
    %13 = arith.cmpi slt, %6, %c0_i32_5 : i32
    %14 = vector.broadcast %13 : i1 to vector<1x128xi1>
    %15 = vector.broadcast %14 : vector<1x128xi1> to vector<1x128xi1>
    %16 = arith.xori %12, %15 : vector<1x128xi1>
    %17 = arith.andi %16, %10 : vector<1x128xi1>
    %18 = vector.broadcast %6 : i32 to vector<1x128xi32>
    %19 = arith.addi %8, %18 : vector<1x128xi32>
    %20 = arith.select %17, %19, %8 : vector<1x128xi1>, vector<1x128xi32>
    %c32_i32 = arith.constant 32 : i32
    %21 = vector.broadcast %c32_i32 : i32 to vector<1x128xi32>
    %22 = arith.cmpi slt, %20, %21 : vector<1x128xi32>
    %23 = tpu.iota {dimensions = array<i32: 1>} : vector<1x64xi32>
    %c32_i32_6 = arith.constant 32 : i32
    %24 = vector.broadcast %c32_i32_6 : i32 to vector<1x64xi32>
    %25 = arith.cmpi slt, %23, %24 : vector<1x64xi32>
    %cst = arith.constant 0.000000e+00 : f32
    %26 = vector.broadcast %cst : f32 to vector<8x64xf32>
    %c0_i32_7 = arith.constant 0 : i32
    %c1_i32_8 = arith.constant 1 : i32
    %27 = arith.subi %c1_i32_8, %c0_i32_7 : i32
    %28 = arith.index_cast %c0_i32_7 : i32 to index
    %c0_9 = arith.constant 0 : index
    %c0_10 = arith.constant 0 : index
    %29 = vector.load %arg1[%28, %c0_9, %c0_10] : memref<2x8x192xf32, #tpu.memory_space<vmem>>, vector<1x8x192xf32>
    %30 = vector.shape_cast %29 : vector<1x8x192xf32> to vector<8x192xf32>
    %31 = arith.index_cast %27 : i32 to index
    %c0_11 = arith.constant 0 : index
    %c0_12 = arith.constant 0 : index
    %32 = vector.load %arg1[%31, %c0_11, %c0_12] : memref<2x8x192xf32, #tpu.memory_space<vmem>>, vector<1x8x192xf32>
    %33 = vector.shape_cast %32 : vector<1x8x192xf32> to vector<8x192xf32>
    %cst_13 = arith.constant dense<0.000000e+00> : vector<8x192xf32>
    %34 = tpu.matmul %26, %0, %cst_13 {dimension_numbers = #tpu.dot_dimension_numbers<[1], [0], [0], [1], [0, 0, 1, 1], [], []>} : vector<8x64xf32>, vector<64x192xf32>, vector<8x192xf32> -> vector<8x192xf32>
    %35 = vector.extract_strided_slice %30 {offsets = [0, 0], sizes = [8, 128], strides = [1, 1]} : vector<8x192xf32> to vector<8x128xf32>
    %36 = vector.extract_strided_slice %33 {offsets = [0, 0], sizes = [8, 128], strides = [1, 1]} : vector<8x192xf32> to vector<8x128xf32>
    %37 = vector.shape_cast %22 : vector<1x128xi1> to vector<1x128xi1>
    %38 = vector.broadcast %37 : vector<1x128xi1> to vector<8x128xi1>
    %39 = arith.select %38, %35, %36 : vector<8x128xi1>, vector<8x128xf32>
    %40 = vector.extract_strided_slice %34 {offsets = [0, 0], sizes = [8, 128], strides = [1, 1]} : vector<8x192xf32> to vector<8x128xf32>
    %41 = arith.addf %39, %40 : vector<8x128xf32>
    %42 = arith.negf %41 : vector<8x128xf32>
    %43 = math.exp %42 : vector<8x128xf32>
    %cst_14 = arith.constant 1.000000e+00 : f32
    %44 = vector.broadcast %cst_14 : f32 to vector<8x128xf32>
    %45 = arith.addf %44, %43 : vector<8x128xf32>
    %46 = arith.divf %44, %45 : vector<8x128xf32>
    %47 = vector.extract_strided_slice %46 {offsets = [0, 0], sizes = [8, 64], strides = [1, 1]} : vector<8x128xf32> to vector<8x64xf32>
    %48 = vector.extract_strided_slice %46 {offsets = [0, 64], sizes = [8, 64], strides = [1, 1]} : vector<8x128xf32> to vector<8x64xf32>
    %49 = vector.extract_strided_slice %30 {offsets = [0, 128], sizes = [8, 64], strides = [1, 1]} : vector<8x192xf32> to vector<8x64xf32>
    %50 = vector.extract_strided_slice %33 {offsets = [0, 128], sizes = [8, 64], strides = [1, 1]} : vector<8x192xf32> to vector<8x64xf32>
    %51 = vector.shape_cast %25 : vector<1x64xi1> to vector<1x64xi1>
    %52 = vector.broadcast %51 : vector<1x64xi1> to vector<8x64xi1>
    %53 = arith.select %52, %49, %50 : vector<8x64xi1>, vector<8x64xf32>
    %54 = vector.extract_strided_slice %34 {offsets = [0, 128], sizes = [8, 64], strides = [1, 1]} : vector<8x192xf32> to vector<8x64xf32>
    %55 = arith.addf %54, %3 : vector<8x64xf32>
    %56 = arith.mulf %47, %55 : vector<8x64xf32>
    %57 = arith.addf %53, %56 : vector<8x64xf32>
    %58 = math.tanh %57 : vector<8x64xf32>
    %cst_15 = arith.constant 1.000000e+00 : f32
    %59 = vector.broadcast %cst_15 : f32 to vector<8x64xf32>
    %60 = arith.subf %59, %48 : vector<8x64xf32>
    %61 = arith.mulf %60, %58 : vector<8x64xf32>
    %62 = arith.mulf %48, %26 : vector<8x64xf32>
    %63 = arith.addf %61, %62 : vector<8x64xf32>
    %64 = vector.extract_strided_slice %63 {offsets = [0, 0], sizes = [8, 32], strides = [1, 1]} : vector<8x64xf32> to vector<8x32xf32>
    %65 = arith.index_cast %c0_i32_7 : i32 to index
    %c0_16 = arith.constant 0 : index
    %c0_17 = arith.constant 0 : index
    %66 = vector.load %arg4[%65, %c0_16, %c0_17] : memref<2x8x64xf32, #tpu.memory_space<vmem>>, vector<1x8x32xf32>
    %67 = vector.shape_cast %66 : vector<1x8x32xf32> to vector<8x32xf32>
    %68 = vector.shape_cast %64 : vector<8x32xf32> to vector<1x8x32xf32>
    tpu.vector_store %arg4[%65, %c0_16, %c0_17], %68 {strides = array<i32>} : memref<2x8x64xf32, #tpu.memory_space<vmem>>, vector<1x8x32xf32>,
    %69 = vector.extract_strided_slice %63 {offsets = [0, 32], sizes = [8, 32], strides = [1, 1]} : vector<8x64xf32> to vector<8x32xf32>
    %70 = arith.index_cast %27 : i32 to index
    %c0_18 = arith.constant 0 : index
    %c32 = arith.constant 32 : index
    %71 = vector.load %arg4[%70, %c0_18, %c32] : memref<2x8x64xf32, #tpu.memory_space<vmem>>, vector<1x8x32xf32>
    %72 = vector.shape_cast %71 : vector<1x8x32xf32> to vector<8x32xf32>
    %73 = vector.shape_cast %69 : vector<8x32xf32> to vector<1x8x32xf32>
    tpu.vector_store %arg4[%70, %c0_18, %c32], %73 {strides = array<i32>} : memref<2x8x64xf32, #tpu.memory_space<vmem>>, vector<1x8x32xf32>,
    %c1_i32_19 = arith.constant 1 : i32
    %c1_i32_20 = arith.constant 1 : i32
    %74 = arith.subi %c1_i32_20, %c1_i32_19 : i32
    %75 = arith.index_cast %c1_i32_19 : i32 to index
    %c0_21 = arith.constant 0 : index
    %c0_22 = arith.constant 0 : index
    %76 = vector.load %arg1[%75, %c0_21, %c0_22] : memref<2x8x192xf32, #tpu.memory_space<vmem>>, vector<1x8x192xf32>
    %77 = vector.shape_cast %76 : vector<1x8x192xf32> to vector<8x192xf32>
    %78 = arith.index_cast %74 : i32 to index
    %c0_23 = arith.constant 0 : index
    %c0_24 = arith.constant 0 : index
    %79 = vector.load %arg1[%78, %c0_23, %c0_24] : memref<2x8x192xf32, #tpu.memory_space<vmem>>, vector<1x8x192xf32>
    %80 = vector.shape_cast %79 : vector<1x8x192xf32> to vector<8x192xf32>
    %cst_25 = arith.constant dense<0.000000e+00> : vector<8x192xf32>
    %81 = tpu.matmul %63, %0, %cst_25 {dimension_numbers = #tpu.dot_dimension_numbers<[1], [0], [0], [1], [0, 0, 1, 1], [], []>} : vector<8x64xf32>, vector<64x192xf32>, vector<8x192xf32> -> vector<8x192xf32>
    %82 = vector.extract_strided_slice %77 {offsets = [0, 0], sizes = [8, 128], strides = [1, 1]} : vector<8x192xf32> to vector<8x128xf32>
    %83 = vector.extract_strided_slice %80 {offsets = [0, 0], sizes = [8, 128], strides = [1, 1]} : vector<8x192xf32> to vector<8x128xf32>
    %84 = vector.shape_cast %22 : vector<1x128xi1> to vector<1x128xi1>
    %85 = vector.broadcast %84 : vector<1x128xi1> to vector<8x128xi1>
    %86 = arith.select %85, %82, %83 : vector<8x128xi1>, vector<8x128xf32>
    %87 = vector.extract_strided_slice %81 {offsets = [0, 0], sizes = [8, 128], strides = [1, 1]} : vector<8x192xf32> to vector<8x128xf32>
    %88 = arith.addf %86, %87 : vector<8x128xf32>
    %89 = arith.negf %88 : vector<8x128xf32>
    %90 = math.exp %89 : vector<8x128xf32>
    %cst_26 = arith.constant 1.000000e+00 : f32
    %91 = vector.broadcast %cst_26 : f32 to vector<8x128xf32>
    %92 = arith.addf %91, %90 : vector<8x128xf32>
    %93 = arith.divf %91, %92 : vector<8x128xf32>
    %94 = vector.extract_strided_slice %93 {offsets = [0, 0], sizes = [8, 64], strides = [1, 1]} : vector<8x128xf32> to vector<8x64xf32>
    %95 = vector.extract_strided_slice %93 {offsets = [0, 64], sizes = [8, 64], strides = [1, 1]} : vector<8x128xf32> to vector<8x64xf32>
    %96 = vector.extract_strided_slice %77 {offsets = [0, 128], sizes = [8, 64], strides = [1, 1]} : vector<8x192xf32> to vector<8x64xf32>
    %97 = vector.extract_strided_slice %80 {offsets = [0, 128], sizes = [8, 64], strides = [1, 1]} : vector<8x192xf32> to vector<8x64xf32>
    %98 = vector.shape_cast %25 : vector<1x64xi1> to vector<1x64xi1>
    %99 = vector.broadcast %98 : vector<1x64xi1> to vector<8x64xi1>
    %100 = arith.select %99, %96, %97 : vector<8x64xi1>, vector<8x64xf32>
    %101 = vector.extract_strided_slice %81 {offsets = [0, 128], sizes = [8, 64], strides = [1, 1]} : vector<8x192xf32> to vector<8x64xf32>
    %102 = arith.addf %101, %3 : vector<8x64xf32>
    %103 = arith.mulf %94, %102 : vector<8x64xf32>
    %104 = arith.addf %100, %103 : vector<8x64xf32>
    %105 = math.tanh %104 : vector<8x64xf32>
    %cst_27 = arith.constant 1.000000e+00 : f32
    %106 = vector.broadcast %cst_27 : f32 to vector<8x64xf32>
    %107 = arith.subf %106, %95 : vector<8x64xf32>
    %108 = arith.mulf %107, %105 : vector<8x64xf32>
    %109 = arith.mulf %95, %63 : vector<8x64xf32>
    %110 = arith.addf %108, %109 : vector<8x64xf32>
    %111 = vector.extract_strided_slice %110 {offsets = [0, 0], sizes = [8, 32], strides = [1, 1]} : vector<8x64xf32> to vector<8x32xf32>
    %112 = arith.index_cast %c1_i32_19 : i32 to index
    %c0_28 = arith.constant 0 : index
    %c0_29 = arith.constant 0 : index
    %113 = vector.load %arg4[%112, %c0_28, %c0_29] : memref<2x8x64xf32, #tpu.memory_space<vmem>>, vector<1x8x32xf32>
    %114 = vector.shape_cast %113 : vector<1x8x32xf32> to vector<8x32xf32>
    %115 = vector.shape_cast %111 : vector<8x32xf32> to vector<1x8x32xf32>
    tpu.vector_store %arg4[%112, %c0_28, %c0_29], %115 {strides = array<i32>} : memref<2x8x64xf32, #tpu.memory_space<vmem>>, vector<1x8x32xf32>,
    %116 = vector.extract_strided_slice %110 {offsets = [0, 32], sizes = [8, 32], strides = [1, 1]} : vector<8x64xf32> to vector<8x32xf32>
    %117 = arith.index_cast %74 : i32 to index
    %c0_30 = arith.constant 0 : index
    %c32_31 = arith.constant 32 : index
    %118 = vector.load %arg4[%117, %c0_30, %c32_31] : memref<2x8x64xf32, #tpu.memory_space<vmem>>, vector<1x8x32xf32>
    %119 = vector.shape_cast %118 : vector<1x8x32xf32> to vector<8x32xf32>
    %120 = vector.shape_cast %116 : vector<8x32xf32> to vector<1x8x32xf32>
    tpu.vector_store %arg4[%117, %c0_30, %c32_31], %120 {strides = array<i32>} : memref<2x8x64xf32, #tpu.memory_space<vmem>>, vector<1x8x32xf32>,
    %c2_i32 = arith.constant 2 : i32
    return
  }
  func.func @transform_0(%arg0: i32) -> (i32, i32, i32) {
    %c0_i32 = arith.constant 0 : i32
    %c0_i32_0 = arith.constant 0 : i32
    %c0_i32_1 = arith.constant 0 : i32
    return %c0_i32, %arg0, %c0_i32_0 : i32, i32, i32
  }
  func.func @transform_1(%arg0: i32) -> (i32, i32) {
    %c0_i32 = arith.constant 0 : i32
    %c0_i32_0 = arith.constant 0 : i32
    %c0_i32_1 = arith.constant 0 : i32
    return %c0_i32, %c0_i32_0 : i32, i32
  }
  func.func @transform_2(%arg0: i32) -> (i32, i32) {
    %c0_i32 = arith.constant 0 : i32
    %c0_i32_0 = arith.constant 0 : i32
    %c0_i32_1 = arith.constant 0 : i32
    return %c0_i32, %c0_i32_0 : i32, i32
  }
  func.func @transform_3(%arg0: i32) -> (i32, i32, i32) {
    %c0_i32 = arith.constant 0 : i32
    %c0_i32_0 = arith.constant 0 : i32
    %c0_i32_1 = arith.constant 0 : i32
    return %c0_i32, %arg0, %c0_i32_0 : i32, i32, i32
  }
}

</mosaic_0001>

<bundles_post_ra>
// kernel: model_forward.4
= control target key start
LH: loop header
LB: loop body
LE: loop exit
PB: predicated region body
PF: predicated region fallthrough
CT: control target
= control target key end

     0   :  { %v331_v3 = vmov 0.0   ;;  %v37_v25 = vlaneseq  ;;  %s332_s26 = smov 64   ;;  %vm162_vm2 = vcmask 261120   ;;  %vm165_vm3 = vcmask 523520   ;;  %s446_s1 = inlined_call_operand.vmem [shape: f32[64,192], index: 1, kind: input, shape index: {}]   ;;  %s447_s0 = inlined_call_operand.vmem [shape: f32[2,8,192], index: 0, kind: input, shape index: {}]   ;;  %s448_s2 = inlined_call_operand.vmem [shape: f32[1,64], index: 2, kind: input, shape index: {}]   ;;  %s449_s3 = inlined_call_operand.vmem [shape: f32[2,8,64], index: 3, kind: output, shape index: {}]  }
   0x1   :  { %v15_v0 = vld [vmem:[%s446_s1 + $0x8] sm:$0xff]  ;;  %v17_v1 = vld [vmem:[%s446_s1 + $0x18] sm:$0xff]  ;;  %v14_v2 = vld [vmem:[%s446_s1] sm:$0xff]  ;;  %126 = vmatprep.mubr.f32.mxu0 %v331_v3  ;;  %237 = vmatprep.mubr.f32.mxu1 %v331_v3  ;;  %vm58_vm4 = vcmask 523264  }
   0x2   :  { %v285_v4 = vpack.c.bf16 %v17_v1, %v15_v0  ;;  %v16_v5 = vld [vmem:[%s446_s1 + $0x10] sm:$0xff]  ;;  %v19_v6 = vld [vmem:[%s446_s1 + $0x28] sm:$0xff]  ;;  %v21_v7 = vld [vmem:[%s446_s1 + $0x38] sm:$0xff]  ;;  %v38_v26 = vand.u32 127, %v37_v25 }
   0x3   :  { %v287_v8 = vpack.c.bf16 %v16_v5, %v14_v2  ;;  %v289_v9 = vpack.c.bf16 %v21_v7, %v19_v6  ;;  %v18_v10 = vld [vmem:[%s446_s1 + $0x20] sm:$0xff]  ;;  %v20_v11 = vld [vmem:[%s446_s1 + $0x30] sm:$0xff]  ;;  %v23_v12 = vld [vmem:[%s446_s1 + $0x48] sm:$0xff] }
   0x4   :  { %286 = vmatprep.subr.bf16.mxu0 %v285_v4  ;;  %v25_v13 = vld [vmem:[%s446_s1 + $0x58] sm:$0xff]  ;;  %302 = vmatprep.subr.bf16.mxu1 %v285_v4  ;;  %v291_v14 = vpack.c.bf16 %v20_v11, %v18_v10  ;;  %v22_v16 = vld [vmem:[%s446_s1 + $0x40] sm:$0xff]  ;;  %v24_v17 = vld [vmem:[%s446_s1 + $0x50] sm:$0xff]  ;;  %v43_v27 = vand.u32 63, %v38_v26  ;;  %vm52_vm1 = vcmp.lt.s32.totalorder %v38_v26, 32 }
   0x5   :  { %288 = vmatpush1.bf16.msra.mxu0 %v287_v8  ;;  %304 = vmatpush1.bf16.msra.mxu1 %v287_v8  ;;  %v293_v15 = vpack.c.bf16 %v25_v13, %v23_v12  ;;  %v27_v18 = vld [vmem:[%s446_s1 + $0x68] sm:$0xff]  ;;  %v29_v19 = vld [vmem:[%s446_s1 + $0x78] sm:$0xff]  ;;  %v295_v20 = vpack.c.bf16 %v24_v17, %v22_v16  ;;  %v26_v22 = vld [vmem:[%s446_s1 + $0x60] sm:$0xff] }
   0x6   :  { %290 = vmatprep.subr.bf16.mxu0 %v289_v9  ;;  %306 = vmatprep.subr.bf16.mxu1 %v289_v9  ;;  %v297_v21 = vpack.c.bf16 %v29_v19, %v27_v18  ;;  %v28_v23 = vld [vmem:[%s446_s1 + $0x70] sm:$0xff]  ;;  %vm401_vm0 = vcmp.lt.s32.totalorder %v43_v27, 32  ;;  %v53_v29 = vld [vmem:[%s447_s0] sm:$0xff]  ;;  %v54_v39 = vld [vmem:[%s447_s0 + $0x8] sm:$0xff] }
   0x7   :  { %v299_v24 = vpack.c.bf16 %v28_v23, %v26_v22  ;;  %v276_v30 = vld [vmem:[%s447_s0 + $0x10] sm:$0xff]  ;;  %v275_v38 = vld [vmem:[%s448_s2] ss:$0 sm:$0xff]  ;;  %v277_v40 = vld [vmem:[%s447_s0 + $0x18] sm:$0xff] }
   0x8   :  { %v135_v31 = vsel %vm401_vm0, %v53_v29, %v276_v30  ;;  %v145_v43 = vsel %vm52_vm1, %v54_v39, %v277_v40  ;;  %v244_v53 = vsel %vm401_vm0, %v276_v30, %v53_v29  ;;  %v252_v62 = vsel %vm52_vm1, %v277_v40, %v54_v39 }
   0x9   :  { %292 = vmatpush1.bf16.msra.mxu0 %v291_v14  ;;  %308 = vmatpush1.bf16.msra.mxu1 %v291_v14 }
   0xa   :  { %294 = vmatprep.subr.bf16.mxu0 %v293_v15  ;;  %310 = vmatprep.subr.bf16.mxu1 %v293_v15 }
   0xd   :  { %296 = vmatpush1.bf16.msra.mxu0 %v295_v20  ;;  %312 = vmatpush1.bf16.msra.mxu1 %v295_v20 }
   0xe   :  { %298 = vmatprep.subr.bf16.mxu0 %v297_v21  ;;  %314 = vmatprep.subr.bf16.mxu1 %v297_v21 }
  0x11   :  { %300 = vmatpush1.bf16.msra.mxu0 %v299_v24  ;;  %316 = vmatpush1.bf16.msra.mxu1 %v299_v24 }
  0x14   :  { %127 = vmatmul.mubr.f32.vlgmr.msra.gmra.mrb[0].mxu0 %v331_v3 }
  0xe7   :  { %v128_v32 = vpop.f32.mrb[0].mxu0 }
  0xe8   :  { %v136_v33 = vadd.f32 %v135_v31, %v128_v32  ;;  %v130_v34 = vpop.f32.mrb[1].mxu0 }
  0xe9   :  { %v146_v41 = vadd.f32 %v275_v38, %v130_v34 }
  0xea   :  { %v278_v35 = vmul.f32 -1.442695, %v136_v33 }
  0xec   :  { %319 = vpow2.f32 %v278_v35 }
  0xf6   :  { %v320_v36 = vpop.eup %319 }
  0xf7   :  { %v140_v37 = vadd.f32 1.0, %v320_v36 }
  0xf9   :  { %321 = vrcp.f32 %v140_v37 }
 0x103   :  { %v322_v42 = vpop.eup %321 }
 0x104   :  { %v147_v44 = vmul.f32 %v322_v42, %v146_v41  ;;  %v150_v47 = vsub.f32 1.0, %v322_v42  ;;  %v156_v49 = vmul.f32 0.0, %v322_v42 }
 0x106   :  { %v148_v45 = vadd.f32 %v147_v44, %v145_v43 }
 0x108   :  { %323 = vtanh.f32 %v148_v45 }
 0x112   :  { %v324_v46 = vpop.eup %323 }
 0x113   :  { %152 = vrot.lane.b32.xlu0 %v324_v46, %s332_s26 }
 0x185   :  { %v153_v48 = vpop.permute.xlu0 %152 }
 0x186   :  { %v155_v50 = vmul.f32 %v153_v48, %v150_v47 }
 0x188   :  { %v157_v51 = vadd.f32 %v156_v49, %v155_v50 }
 0x18a   :  { %159 = vrot.lane.b32.xlu0 %v157_v51, %s332_s26 }
 0x1fc   :  { %v160_v52 = vpop.permute.xlu0 %159 }
 0x1fd   :  { %163 = vst.msk [vmem:[%s449_s3] sm:$0xff] %vm162_vm2, %v160_v52  ;;  %282 = vmatmul.mubr.msk.f32.vlgmr.msra.gmra.mrb[0].mxu1 %vm58_vm4, %v160_v52 }
 0x1fe   :  { %279 = vst.msk [vmem:[%s449_s3 + $0x8] sm:$0xff] %vm165_vm3, %v160_v52 }
 0x2d0   :  { %v239_v54 = vpop.f32.mrb[0].mxu1 }
 0x2d1   :  { %v245_v55 = vadd.f32 %v244_v53, %v239_v54  ;;  %v241_v56 = vpop.f32.mrb[1].mxu1 }
 0x2d2   :  { %v253_v60 = vadd.f32 %v275_v38, %v241_v56 }
 0x2d3   :  { %v283_v57 = vmul.f32 -1.442695, %v245_v55 }
 0x2d5   :  { %325 = vpow2.f32 %v283_v57 }
 0x2df   :  { %v326_v58 = vpop.eup %325 }
 0x2e0   :  { %v249_v59 = vadd.f32 1.0, %v326_v58 }
 0x2e2   :  { %327 = vrcp.f32 %v249_v59 }
 0x2ec   :  { %v328_v61 = vpop.eup %327 }
 0x2ed   :  { %v254_v63 = vmul.f32 %v328_v61, %v253_v60  ;;  %v257_v2 = vsub.f32 1.0, %v328_v61  ;;  %v263_v4 = vmul.f32 %v328_v61, %v157_v51 }
 0x2ef   :  { %v255_v0 = vadd.f32 %v254_v63, %v252_v62 }
 0x2f1   :  { %329 = vtanh.f32 %v255_v0 }
 0x2fb   :  { %v330_v1 = vpop.eup %329 }
 0x2fc   :  { %259 = vrot.lane.b32.xlu1 %v330_v1, %s332_s26 }
 0x36e   :  { %v260_v3 = vpop.permute.xlu1 %259 }
 0x36f   :  { %v262_v5 = vmul.f32 %v260_v3, %v257_v2 }
 0x371   :  { %v264_v6 = vadd.f32 %v263_v4, %v262_v5 }
 0x373   :  { %266 = vrot.lane.b32.xlu1 %v264_v6, %s332_s26 }
 0x3e5   :  { %v267_v7 = vpop.permute.xlu1 %266 }
 0x3e6   :  { %284 = vst.msk [vmem:[%s449_s3 + $0x8] sm:$0xff] %vm162_vm2, %v267_v7 }
 0x3e7   :  { %270 = vst.msk [vmem:[%s449_s3] sm:$0xff] %vm165_vm3, %v267_v7 }

// kernel: model_forward.3
= control target key start
LH: loop header
LB: loop body
LE: loop exit
PB: predicated region body
PF: predicated region fallthrough
CT: control target
= control target key end

     0   :  { %v377_v3 = vmov 0.0   ;;  %vm115_vm0 = vcmask 1043456   ;;  %vm378_vm1 = vmmov 1   ;;  %vm108_vm3 = vcmask 359424   ;;  %s673_s1 = inlined_call_operand.vmem [shape: f32[300,192], index: 1, kind: input, shape index: {}]   ;;  %s674_s0 = inlined_call_operand.vmem [shape: f32[2,8,300], index: 0, kind: input, shape index: {}]   ;;  %s675_s2 = inlined_call_operand.vmem [shape: f32[1,192], index: 2, kind: input, shape index: {}]   ;;  %s676_s3 = inlined_call_operand.vmem [shape: f32[2,8,192], index: 3, kind: output, shape index: {}]  }
   0x1   :  { %v21_v0 = vld [vmem:[%s673_s1 + $0x8] sm:$0xff]  ;;  %v23_v1 = vld [vmem:[%s673_s1 + $0x18] sm:$0xff]  ;;  %v20_v2 = vld [vmem:[%s673_s1] sm:$0xff]  ;;  %263 = vmatprep.mubr.f32.mxu0 %v377_v3  ;;  %vm277_vm4 = vcmask 523264  }
   0x2   :  { %v289_v4 = vpack.c.bf16 %v23_v1, %v21_v0  ;;  %v22_v5 = vld [vmem:[%s673_s1 + $0x10] sm:$0xff]  ;;  %v25_v6 = vld [vmem:[%s673_s1 + $0x28] sm:$0xff]  ;;  %v27_v7 = vld [vmem:[%s673_s1 + $0x38] sm:$0xff] }
   0x3   :  { %v291_v8 = vpack.c.bf16 %v22_v5, %v20_v2  ;;  %v293_v9 = vpack.c.bf16 %v27_v7, %v25_v6  ;;  %v24_v10 = vld [vmem:[%s673_s1 + $0x20] sm:$0xff]  ;;  %v26_v11 = vld [vmem:[%s673_s1 + $0x30] sm:$0xff]  ;;  %v29_v12 = vld [vmem:[%s673_s1 + $0x48] sm:$0xff] }
   0x4   :  { %290 = vmatprep.subr.bf16.mxu1 %v289_v4  ;;  %v31_v13 = vld [vmem:[%s673_s1 + $0x58] sm:$0xff]  ;;  %v295_v14 = vpack.c.bf16 %v26_v11, %v24_v10  ;;  %v28_v16 = vld [vmem:[%s673_s1 + $0x40] sm:$0xff]  ;;  %v30_v17 = vld [vmem:[%s673_s1 + $0x50] sm:$0xff] }
   0x5   :  { %292 = vmatpush1.bf16.msra.mxu1 %v291_v8  ;;  %v297_v15 = vpack.c.bf16 %v31_v13, %v29_v12  ;;  %v33_v18 = vld [vmem:[%s673_s1 + $0x68] sm:$0xff]  ;;  %v35_v19 = vld [vmem:[%s673_s1 + $0x78] sm:$0xff]  ;;  %v299_v20 = vpack.c.bf16 %v30_v17, %v28_v16  ;;  %v32_v22 = vld [vmem:[%s673_s1 + $0x60] sm:$0xff] }
   0x6   :  { %294 = vmatprep.subr.bf16.mxu1 %v293_v9  ;;  %v301_v21 = vpack.c.bf16 %v35_v19, %v33_v18  ;;  %v34_v23 = vld [vmem:[%s673_s1 + $0x70] sm:$0xff]  ;;  %v37_v24 = vld [vmem:[%s673_s1 + $0x88] sm:$0xff]  ;;  %v39_v25 = vld [vmem:[%s673_s1 + $0x98] sm:$0xff] }
   0x7   :  { %v303_v26 = vpack.c.bf16 %v34_v23, %v32_v22  ;;  %v305_v27 = vpack.c.bf16 %v39_v25, %v37_v24  ;;  %v36_v28 = vld [vmem:[%s673_s1 + $0x80] sm:$0xff]  ;;  %v38_v29 = vld [vmem:[%s673_s1 + $0x90] sm:$0xff]  ;;  %v41_v30 = vld [vmem:[%s673_s1 + $0xa8] sm:$0xff] }
   0x8   :  { %v43_v31 = vld [vmem:[%s673_s1 + $0xb8] sm:$0xff]  ;;  %v307_v32 = vpack.c.bf16 %v38_v29, %v36_v28  ;;  %v40_v34 = vld [vmem:[%s673_s1 + $0xa0] sm:$0xff]  ;;  %v42_v35 = vld [vmem:[%s673_s1 + $0xb0] sm:$0xff] }
   0x9   :  { %296 = vmatpush1.bf16.msra.mxu1 %v295_v14  ;;  %v309_v33 = vpack.c.bf16 %v43_v31, %v41_v30  ;;  %v45_v36 = vld [vmem:[%s673_s1 + $0xc8] sm:$0xff]  ;;  %v47_v37 = vld [vmem:[%s673_s1 + $0xd8] sm:$0xff]  ;;  %v84_v40 = vld [vmem:[%s673_s1 + $0x200] sm:$0xff]  ;;  %v311_v42 = vpack.c.bf16 %v42_v35, %v40_v34 }
   0xa   :  { %298 = vmatprep.subr.bf16.mxu1 %v297_v15  ;;  %v85_v38 = vld [vmem:[%s673_s1 + $0x208] sm:$0xff]  ;;  %v87_v39 = vld [vmem:[%s673_s1 + $0x218] sm:$0xff]  ;;  %v86_v41 = vld [vmem:[%s673_s1 + $0x210] sm:$0xff]  ;;  %v313_v47 = vpack.c.bf16 %v47_v37, %v45_v36 }
   0xb   :  { %v44_v43 = vld [vmem:[%s673_s1 + $0xc0] sm:$0xff]  ;;  %v46_v44 = vld [vmem:[%s673_s1 + $0xd0] sm:$0xff]  ;;  %v353_v45 = vpack.c.bf16 %v87_v39, %v85_v38  ;;  %v355_v46 = vpack.c.bf16 %v86_v41, %v84_v40  ;;  %v49_v48 = vld [vmem:[%s673_s1 + $0xe8] sm:$0xff] }
   0xc   :  { %v89_v49 = vld [vmem:[%s673_s1 + $0x228] sm:$0xff]  ;;  %v91_v50 = vld [vmem:[%s673_s1 + $0x238] sm:$0xff]  ;;  %v88_v53 = vld [vmem:[%s673_s1 + $0x220] sm:$0xff]  ;;  %v315_v58 = vpack.c.bf16 %v46_v44, %v44_v43 }
   0xd   :  { %300 = vmatpush1.bf16.msra.mxu1 %v299_v20  ;;  %v51_v51 = vld [vmem:[%s673_s1 + $0xf8] sm:$0xff]  ;;  %354 = vmatprep.subr.bf16.mxu0 %v353_v45  ;;  %v357_v52 = vpack.c.bf16 %v91_v50, %v89_v49  ;;  %v90_v54 = vld [vmem:[%s673_s1 + $0x230] sm:$0xff]  ;;  %v48_v55 = vld [vmem:[%s673_s1 + $0xe0] sm:$0xff] }
   0xe   :  { %302 = vmatprep.subr.bf16.mxu1 %v301_v21  ;;  %v50_v56 = vld [vmem:[%s673_s1 + $0xf0] sm:$0xff]  ;;  %356 = vmatpush1.bf16.msra.mxu0 %v355_v46  ;;  %v359_v57 = vpack.c.bf16 %v90_v54, %v88_v53  ;;  %v93_v59 = vld [vmem:[%s673_s1 + $0x248] sm:$0xff]  ;;  %v95_v60 = vld [vmem:[%s673_s1 + $0x258] sm:$0xf]  ;;  %v317_v62 = vpack.c.bf16 %v51_v51, %v49_v48 }
   0xf   :  { %358 = vmatprep.subr.bf16.mxu0 %v357_v52  ;;  %vm527_vm2 = vmpackc.low %vm115_vm0, %vm378_vm1  ;;  %v361_v63 = vpack.c.bf16 %v95_v60, %v93_v59  ;;  %v92_v0 = vld [vmem:[%s673_s1 + $0x240] sm:$0xff]  ;;  %v94_v1 = vld [vmem:[%s673_s1 + $0x250] sm:$0xf]  ;;  %v319_v7 = vpack.c.bf16 %v50_v56, %v48_v55 }
  0x10   :  { %v15_v2 = vld [vmem:[%s674_s0 + $0x8] sm:$0xff]  ;;  %v55_v5 = vld [vmem:[%s673_s1 + $0x118] sm:$0xff]  ;;  %v364_v6 = vpack.c.bf16 %v94_v1, %v92_v0  ;;  %v52_v9 = vld [vmem:[%s673_s1 + $0x100] sm:$0xff] }
  0x11   :  { %304 = vmatpush1.bf16.msra.mxu1 %v303_v26  ;;  %v53_v4 = vld [vmem:[%s673_s1 + $0x108] sm:$0xff]  ;;  %186 = vmatprep.mubr.f32.mxu1 %v15_v2  ;;  %v54_v10 = vld [vmem:[%s673_s1 + $0x110] sm:$0xff]  ;;  %v59_v12 = vld [vmem:[%s673_s1 + $0x138] sm:$0xff] }
  0x12   :  { %306 = vmatprep.subr.bf16.mxu1 %v305_v27  ;;  %360 = vmatpush1.bf16.msra.mxu0 %v359_v57  ;;  %v321_v8 = vpack.c.bf16 %v55_v5, %v53_v4  ;;  %v57_v11 = vld [vmem:[%s673_s1 + $0x128] sm:$0xff]  ;;  %v16_v13 = vld [vmem:[%s674_s0 + $0x10] sm:$0xff]  ;;  %v323_v14 = vpack.c.bf16 %v54_v10, %v52_v9  ;;  %v56_v16 = vld [vmem:[%s673_s1 + $0x120] sm:$0xff] }
  0x13   :  { %363 = vmatprep.subr.msk.bf16.mxu0 %vm527_vm2, %v361_v63  ;;  %v325_v15 = vpack.c.bf16 %v59_v12, %v57_v11  ;;  %v58_v17 = vld [vmem:[%s673_s1 + $0x130] sm:$0xff]  ;;  %v61_v18 = vld [vmem:[%s673_s1 + $0x148] sm:$0xff]  ;;  %v63_v19 = vld [vmem:[%s673_s1 + $0x158] sm:$0xff] }
  0x14   :  { %v19_v20 = vld [vmem:[%s674_s0 + $0x28] sm:$0xff]  ;;  %v327_v21 = vpack.c.bf16 %v58_v17, %v56_v16  ;;  %v329_v22 = vpack.c.bf16 %v63_v19, %v61_v18  ;;  %v60_v23 = vld [vmem:[%s673_s1 + $0x140] sm:$0xff]  ;;  %v62_v24 = vld [vmem:[%s673_s1 + $0x150] sm:$0xff] }
  0x15   :  { %308 = vmatpush1.bf16.msra.mxu1 %v307_v32  ;;  %v67_v25 = vld [vmem:[%s673_s1 + $0x178] sm:$0xff]  ;;  %v331_v26 = vpack.c.bf16 %v62_v24, %v60_v23  ;;  %v64_v28 = vld [vmem:[%s673_s1 + $0x160] sm:$0xff]  ;;  %v66_v29 = vld [vmem:[%s673_s1 + $0x170] sm:$0xff] }
  0x16   :  { %310 = vmatprep.subr.bf16.mxu1 %v309_v33  ;;  %366 = vmatpush1.bf16.msk.msra.mxu0 %vm527_vm2, %v364_v6  ;;  %v69_v30 = vld [vmem:[%s673_s1 + $0x188] sm:$0xff]  ;;  %v71_v31 = vld [vmem:[%s673_s1 + $0x198] sm:$0xff]  ;;  %v335_v32 = vpack.c.bf16 %v66_v29, %v64_v28  ;;  %v68_v34 = vld [vmem:[%s673_s1 + $0x180] sm:$0xff] }
  0x17   :  { %v337_v33 = vpack.c.bf16 %v71_v31, %v69_v30  ;;  %v70_v35 = vld [vmem:[%s673_s1 + $0x190] sm:$0xff]  ;;  %v73_v36 = vld [vmem:[%s673_s1 + $0x1a8] sm:$0xff]  ;;  %v75_v37 = vld [vmem:[%s673_s1 + $0x1b8] sm:$0xff] }
  0x18   :  { %v339_v38 = vpack.c.bf16 %v70_v35, %v68_v34  ;;  %v341_v39 = vpack.c.bf16 %v75_v37, %v73_v36  ;;  %v72_v40 = vld [vmem:[%s673_s1 + $0x1a0] sm:$0xff]  ;;  %v74_v41 = vld [vmem:[%s673_s1 + $0x1b0] sm:$0xff]  ;;  %v79_v43 = vld [vmem:[%s673_s1 + $0x1d8] sm:$0xff] }
  0x19   :  { %312 = vmatpush1.bf16.msra.mxu1 %v311_v42  ;;  %287 = vmatmul.mubr.msk.f32.vlgmr.msra.gmra.mrb[0].mxu0 %vm108_vm3, %v16_v13  ;;  %v77_v42 = vld [vmem:[%s673_s1 + $0x1c8] sm:$0xff]  ;;  %v343_v44 = vpack.c.bf16 %v74_v41, %v72_v40  ;;  %v76_v46 = vld [vmem:[%s673_s1 + $0x1c0] sm:$0xff]  ;;  %v83_v49 = vld [vmem:[%s673_s1 + $0x1f8] sm:$0xff] }
  0x1a   :  { %314 = vmatprep.subr.bf16.mxu1 %v313_v47  ;;  %269 = vmatprep.mubr.f32.mxu0 %v377_v3  ;;  %v65_v3 = vld [vmem:[%s673_s1 + $0x168] sm:$0xff]  ;;  %v345_v45 = vpack.c.bf16 %v79_v43, %v77_v42  ;;  %v78_v47 = vld [vmem:[%s673_s1 + $0x1d0] sm:$0xff]  ;;  %v80_v52 = vld [vmem:[%s673_s1 + $0x1e0] sm:$0xff] }
  0x1b   :  { %v333_v27 = vpack.c.bf16 %v67_v25, %v65_v3  ;;  %v81_v48 = vld [vmem:[%s673_s1 + $0x1e8] sm:$0xff]  ;;  %v347_v50 = vpack.c.bf16 %v78_v47, %v76_v46  ;;  %v82_v53 = vld [vmem:[%s673_s1 + $0x1f0] sm:$0xff]  ;;  %v14_v55 = vld [vmem:[%s674_s0] sm:$0xff] }
  0x1c   :  { %v349_v51 = vpack.c.bf16 %v83_v49, %v81_v48  ;;  %v351_v54 = vpack.c.bf16 %v82_v53, %v80_v52  ;;  %v18_v56 = vld [vmem:[%s674_s0 + $0x20] sm:$0xff]  ;;  %v17_v57 = vld [vmem:[%s674_s0 + $0x18] sm:$0xff] }
  0x1d   :  { %316 = vmatpush1.bf16.msra.mxu1 %v315_v58  ;;  %288 = vmatmul.mubr.msk.f32.gmra.mrb[2].mxu0 %vm108_vm3, %v19_v20  ;;  %v96_v1 = vld [vmem:[%s675_s2] sm:$0x3] }
  0x1e   :  { %318 = vmatprep.subr.bf16.mxu1 %v317_v62  ;;  %v98_v62 = vlaneseq }
  0x20   :  { %v99_v63 = vshrl.u32 %v98_v62, 7 }
  0x21   :  { %320 = vmatpush1.bf16.msra.mxu1 %v319_v7 }
  0x22   :  { %322 = vmatprep.subr.bf16.mxu1 %v321_v8  ;;  %v100_v0 = vsub.s32 0, %v99_v63  ;;  %v104_v2 = vsub.s32 1, %v99_v63 }
  0x24   :  { %v101_v4 = vrot.slane %v96_v1, %v100_v0  ;;  %v105_v5 = vrot.slane %v96_v1, %v104_v2 }
  0x25   :  { %324 = vmatpush1.bf16.msra.mxu1 %v323_v14 }
  0x26   :  { %326 = vmatprep.subr.bf16.mxu1 %v325_v15 }
  0x29   :  { %328 = vmatpush1.bf16.msra.mxu1 %v327_v21 }
  0x2a   :  { %330 = vmatprep.subr.bf16.mxu1 %v329_v22 }
  0x2d   :  { %332 = vmatpush1.bf16.msra.mxu1 %v331_v26 }
  0x2e   :  { %334 = vmatprep.subr.bf16.mxu1 %v333_v27 }
  0x31   :  { %336 = vmatpush1.bf16.msra.mxu1 %v335_v32 }
  0x32   :  { %338 = vmatprep.subr.bf16.mxu1 %v337_v33 }
  0x35   :  { %340 = vmatpush1.bf16.msra.mxu1 %v339_v38 }
  0x36   :  { %342 = vmatprep.subr.bf16.mxu1 %v341_v39 }
  0x39   :  { %344 = vmatpush1.bf16.msra.mxu1 %v343_v44 }
  0x3a   :  { %346 = vmatprep.subr.bf16.mxu1 %v345_v45 }
  0x3d   :  { %348 = vmatpush1.bf16.msra.mxu1 %v347_v50 }
  0x3e   :  { %350 = vmatprep.subr.bf16.mxu1 %v349_v51 }
  0x41   :  { %352 = vmatpush1.bf16.msra.mxu1 %v351_v54 }
  0x44   :  { %187 = vmatmul.mubr.f32.vlgmr.msra.gmra.mrb[0].mxu1 %v14_v55 }
  0x45   :  { %192 = vmatprep.mubr.f32.mxu1 %v18_v56 }
  0x48   :  { %193 = vmatmul.mubr.f32.gmra.mrb[2].mxu1 %v17_v57 }
  0xec   :  { %v265_v58 = vpop.f32.mrb[0].mxu0 }
  0xed   :  { %v267_v59 = vpop.f32.mrb[1].mxu0 }
  0xf0   :  { %v271_v60 = vpop.f32.mrb[2].mxu0 }
  0xf1   :  { %v273_v61 = vpop.f32.mrb[3].mxu0 }
 0x117   :  { %v188_v6 = vpop.f32.mrb[0].mxu1 }
 0x118   :  { %v189_v7 = vadd.f32 %v188_v6, %v101_v4  ;;  %v190_v8 = vpop.f32.mrb[1].mxu1 }
 0x119   :  { %v191_v9 = vadd.f32 %v190_v8, %v105_v5 }
 0x11a   :  { %v266_v10 = vadd.f32 %v265_v58, %v189_v7 }
 0x11b   :  { %v268_v11 = vadd.f32 %v267_v59, %v191_v9  ;;  %v194_v12 = vpop.f32.mrb[2].mxu1 }
 0x11c   :  { %276 = vst [vmem:[%s676_s3] sm:$0xff] %v266_v10  ;;  %v195_v13 = vadd.f32 %v194_v12, %v101_v4  ;;  %v196_v14 = vpop.f32.mrb[3].mxu1 }
 0x11d   :  { %278 = vst.msk [vmem:[%s676_s3 + $0x8] sm:$0xff] %vm277_vm4, %v268_v11  ;;  %v197_v15 = vadd.f32 %v196_v14, %v105_v5 }
 0x11e   :  { %v272_v16 = vadd.f32 %v271_v60, %v195_v13 }
 0x11f   :  { %v274_v17 = vadd.f32 %v273_v61, %v197_v15 }
 0x120   :  { %279 = vst [vmem:[%s676_s3 + $0x10] sm:$0xff] %v272_v16 }
 0x121   :  { %280 = vst.msk [vmem:[%s676_s3 + $0x18] sm:$0xff] %vm277_vm4, %v274_v17 }

// kernel: model_forward.5
= control target key start
LH: loop header
LB: loop body
LE: loop exit
PB: predicated region body
PF: predicated region fallthrough
CT: control target
= control target key end

     0   :  { %vm576_vm0 = vcmask 80896   ;;  %v9180_v7 = vmov 0.0   ;;  %s9175_s0 = inlined_call_operand.vmem [shape: f32[2,8,64], index: 0, kind: input, shape index: {}]   ;;  %s9176_s1 = inlined_call_operand.vmem [shape: f32[64,160], index: 1, kind: input, shape index: {}]   ;;  %s9177_s2 = inlined_call_operand.vmem [shape: f32[160,30], index: 2, kind: input, shape index: {}]   ;;  %s9178_s3 = inlined_call_operand.vmem [shape: f32[1,30], index: 3, kind: input, shape index: {}]   ;;  %s9179_s4 = inlined_call_operand.hbm [shape: f32[2,30], index: 4, kind: output, shape index: {}]  }
   0x1   :  { %v21_v0 = vld [vmem:[%s9176_s1 + $0x8] sm:$0xff]  ;;  %v23_v1 = vld [vmem:[%s9176_s1 + $0x18] sm:$0xff]  ;;  %v20_v2 = vld [vmem:[%s9176_s1] sm:$0xff]  ;;  %107 = vmatprep.mubr.f32.mxu0 %v9180_v7  ;;  %v577_v8 = vsel %vm576_vm0, 1.0, %v9180_v7 }
   0x2   :  { %v5794_v3 = vpack.c.bf16 %v23_v1, %v21_v0  ;;  %v22_v4 = vld [vmem:[%s9176_s1 + $0x10] sm:$0xff]  ;;  %v25_v5 = vld [vmem:[%s9176_s1 + $0x28] sm:$0xff]  ;;  %v27_v6 = vld [vmem:[%s9176_s1 + $0x38] sm:$0xff]  ;;  %578 = vadd.xlane.f32.xlu0 %v577_v8 }
   0x3   :  { %v5796_v9 = vpack.c.bf16 %v22_v4, %v20_v2  ;;  %v5798_v10 = vpack.c.bf16 %v27_v6, %v25_v5  ;;  %v24_v11 = vld [vmem:[%s9176_s1 + $0x20] sm:$0xff]  ;;  %v26_v12 = vld [vmem:[%s9176_s1 + $0x30] sm:$0xff]  ;;  %v29_v13 = vld [vmem:[%s9176_s1 + $0x48] sm:$0xff] }
   0x4   :  { %5795 = vmatprep.subr.bf16.mxu0 %v5794_v3  ;;  %v31_v14 = vld [vmem:[%s9176_s1 + $0x58] sm:$0xff]  ;;  %v5800_v15 = vpack.c.bf16 %v26_v12, %v24_v11  ;;  %v28_v17 = vld [vmem:[%s9176_s1 + $0x40] sm:$0xff]  ;;  %v30_v18 = vld [vmem:[%s9176_s1 + $0x50] sm:$0xff] }
   0x5   :  { %5797 = vmatpush1.bf16.msra.mxu0 %v5796_v9  ;;  %v5802_v16 = vpack.c.bf16 %v31_v14, %v29_v13  ;;  %v33_v19 = vld [vmem:[%s9176_s1 + $0x68] sm:$0xff]  ;;  %v35_v20 = vld [vmem:[%s9176_s1 + $0x78] sm:$0xff] }
   0x6   :  { %5799 = vmatprep.subr.bf16.mxu0 %v5798_v10 }
   0x7   :  { %9 = vsyncpa [#allocation3], 0  ;;  %v5804_v21 = vpack.c.bf16 %v30_v18, %v28_v17  ;;  %v5806_v22 = vpack.c.bf16 %v35_v20, %v33_v19  ;;  %v32_v23 = vld [vmem:[%s9176_s1 + $0x60] sm:$0xff]  ;;  %v34_v24 = vld [vmem:[%s9176_s1 + $0x70] sm:$0xff]  ;;  %vm36_vm1 = vcmask 523264   ;;  %s6310_s1 = smov 96   ;;  %v177_v35 = vlaneseq }
   0x8   :  { %v5808_v25 = vpack.c.bf16 %v34_v24, %v32_v23  ;;  %v18_v26 = vld [vmem:[%s9175_s0] sm:$0xff]  ;;  %v19_v27 = vld [vmem:[%s9175_s0 + $0x8] sm:$0xff]  ;;  %s6311_s25 = smov 112   ;;  %s6312_s26 = smov 80   ;;  %v6317_v33 = vmov 1983009808  }
   0x9   :  { %5801 = vmatpush1.bf16.msra.mxu0 %v5800_v15  ;;  %s6313_s0 = smov 48   ;;  %s6314_s27 = smov 64   ;;  %v175_v34 = vunpack.c.l.s4 %v6317_v33  ;;  %v6448_v39 = vshrl.u32 %v177_v35, 7  ;;  %v6318_v42 = vmov 1934713408   ;;  %vm614_vm2 = vcmask 130048  }
   0xa   :  { %5803 = vmatprep.subr.bf16.mxu0 %v5802_v16  ;;  %s6315_s28 = smov 32   ;;  %s6316_s29 = smov 16   ;;  %v239_v43 = vunpack.c.l.s4 %v6318_v42  ;;  %vm630_vm3 = vcmask 123904   ;;  %vm875_vm4 = vcmask 130112   ;;  %vm1012_vm5 = vcmask 1041409  }
   0xb   :  { %v176_v38 = vunpack.c.0.s8 %v175_v34  ;;  %vm1014_vm6 = vcmask 1042434   ;;  %vm1016_vm7 = vcmask 1043459   ;;  %vm1018_vm8 = vcmask 1044484  }
   0xc   :  { %v240_v49 = vunpack.c.0.s8 %v239_v43  ;;  %vm1020_vm9 = vcmask 1045509   ;;  %vm1022_vm10 = vcmask 1046534   ;;  %vm1024_vm11 = vcmask 1047559  }
   0xd   :  { %5805 = vmatpush1.bf16.msra.mxu0 %v5804_v21  ;;  %v6451_v45 = vsub.s32 %v176_v38, %v6448_v39  ;;  %vm5655_vm12 = vcmask 261120   ;;  %vm5657_vm13 = vcmask 392192   ;;  %vm5660_vm14 = vcmask 654336  }
   0xe   :  { %5807 = vmatprep.subr.bf16.mxu0 %v5806_v22  ;;  %v6460_v60 = vsub.s32 %v240_v49, %v6448_v39  ;;  %vm5662_vm15 = vcmask 785408  }
   0xf   :  { %9359 = vst [vmem:[#allocation5_spill] sm:$0xff] %v6451_v45 }
  0x10   :  { %9360 = vst [vmem:[#allocation6_spill] sm:$0xff] %v6460_v60 }
  0x11   :  { %5809 = vmatpush1.bf16.msra.mxu0 %v5808_v25 }
  0x14   :  { %5789 = vmatmul.mubr.msk.f32.vlgmr.msra.gmra.mrb[0].mxu0 %vm36_vm1, %v18_v26 }
  0x15   :  { %113 = vmatprep.mubr.f32.mxu0 %v9180_v7 }
  0x18   :  { %5790 = vmatmul.mubr.msk.f32.gmra.mrb[2].mxu0 %vm36_vm1, %v19_v27 }
  0x8f   :  { %v579_v32 = vpop.xlane.xlu0 %578 }
  0x90   :  { %5855 = vrcp.f32 %v579_v32 }
  0xe7   :  { %v6407_v28 = vpop.f32.mrb[0].mxu0 }
  0xe8   :  { %128 = vrot.lane.b32.xlu1 %v6407_v28, %s6310_s1  ;;  %122 = vrot.lane.b32.xlu0 %v6407_v28, %s6311_s25  ;;  %v6413_v29 = vpop.f32.mrb[1].mxu0 }
  0xe9   :  { %v308_v3 = vcombine.high %v6413_v29, %v9180_v7  ;;  %v315_v9 = vrot.slane %v6413_v29, %v6451_v45 }
  0xeb   :  { %v6415_v30 = vpop.f32.mrb[2].mxu0  ;;  %v322_v21 = vrot.slane %v308_v3, %v6451_v45 }
  0xec   :  { %134 = vrot.lane.b32.xlu1 %v6407_v28, %s6312_s26  ;;  %146 = vrot.lane.b32.xlu0 %v6407_v28, %s6313_s0  ;;  %v6421_v31 = vpop.f32.mrb[3].mxu0 }
  0xed   :  { %v510_v4 = vcombine.high %v6421_v31, %v9180_v7  ;;  %v6481_v22 = vrot.slane %v6421_v31, %v6451_v45 }
  0xef   :  { %v6484_v23 = vrot.slane %v510_v4, %v6451_v45 }
  0xf0   :  { %140 = vrot.lane.b32.xlu1 %v6407_v28, %s6314_s27  ;;  %152 = vrot.lane.b32.xlu0 %v6407_v28, %s6315_s28 }
  0xf4   :  { %158 = vrot.lane.b32.xlu0 %v6407_v28, %s6316_s29  ;;  %124 = vrot.lane.b32.xlu1 %v6415_v30, %s6311_s25 }
  0xf8   :  { %166 = vrot.lane.b32.xlu0 %v6413_v29, %s6311_s25  ;;  %130 = vrot.lane.b32.xlu1 %v6415_v30, %s6310_s1 }
  0xfc   :  { %136 = vrot.lane.b32.xlu1 %v6415_v30, %s6312_s26 }
 0x100   :  { %142 = vrot.lane.b32.xlu1 %v6415_v30, %s6314_s27 }
 0x104   :  { %148 = vrot.lane.b32.xlu1 %v6415_v30, %s6313_s0 }
 0x108   :  { %154 = vrot.lane.b32.xlu1 %v6415_v30, %s6315_s28 }
 0x10c   :  { %160 = vrot.lane.b32.xlu1 %v6415_v30, %s6316_s29 }
 0x110   :  { %168 = vrot.lane.b32.xlu1 %v6421_v31, %s6311_s25 }
 0x15a   :  { %v129_v36 = vpop.permute.xlu1 %128  ;;  %v123_v37 = vpop.permute.xlu0 %122 }
 0x15b   :  { %v172_v46 = vcombine.low %v6407_v28, %v129_v36  ;;  %v173_v54 = vcombine.high %v6407_v28, %v129_v36 }
 0x15d   :  { %v180_v55 = vrot.slane %v172_v46, %v6451_v45  ;;  %v187_v5 = vrot.slane %v173_v54, %v6451_v45 }
 0x15e   :  { %v135_v40 = vpop.permute.xlu1 %134  ;;  %v147_v41 = vpop.permute.xlu0 %146 }
 0x15f   :  { %v188_v44 = vcombine.low %v123_v37, %v135_v40  ;;  %v189_v50 = vcombine.high %v123_v37, %v135_v40  ;;  %v6499_v40 = vpop.eup %5855 }
 0x161   :  { %v196_v51 = vrot.slane %v188_v44, %v6451_v45  ;;  %v203_v61 = vrot.slane %v189_v50, %v6451_v45 }
 0x162   :  { %v141_v47 = vpop.permute.xlu1 %140  ;;  %v153_v48 = vpop.permute.xlu0 %152 }
 0x163   :  { %v204_v52 = vcombine.low %v141_v47, %v153_v48  ;;  %v205_v53 = vcombine.high %v141_v47, %v153_v48  ;;  %v236_v62 = vcombine.low %v180_v55, %v196_v51  ;;  %v237_v13 = vcombine.high %v180_v55, %v196_v51 }
 0x164   :  { %v252_v14 = vcombine.low %v187_v5, %v203_v61  ;;  %v253_v18 = vcombine.high %v187_v5, %v203_v61 }
 0x165   :  { %v212_v63 = vrot.slane %v204_v52, %v6451_v45  ;;  %v219_v0 = vrot.slane %v205_v53, %v6451_v45  ;;  %v244_v17 = vrot.slane %v236_v62, %v6460_v60  ;;  %v251_v29 = vrot.slane %v237_v13, %v6460_v60 }
 0x166   :  { %v159_v56 = vpop.permute.xlu0 %158  ;;  %v6457_v57 = vpop.permute.xlu1 %124  ;;  %v260_v32 = vrot.slane %v252_v14, %v6460_v60  ;;  %v267_v34 = vrot.slane %v253_v18, %v6460_v60 }
 0x167   :  { %v220_v58 = vcombine.low %v147_v41, %v159_v56  ;;  %v221_v59 = vcombine.high %v147_v41, %v159_v56 }
 0x169   :  { %v228_v1 = vrot.slane %v220_v58, %v6451_v45  ;;  %v235_v2 = vrot.slane %v221_v59, %v6451_v45 }
 0x16a   :  { %v167_v6 = vpop.permute.xlu0 %166  ;;  %v131_v8 = vpop.permute.xlu1 %130 }
 0x16b   :  { %v268_v10 = vcombine.low %v212_v63, %v228_v1  ;;  %v269_v11 = vcombine.high %v212_v63, %v228_v1  ;;  %v284_v12 = vcombine.low %v219_v0, %v235_v2  ;;  %v323_v15 = vcombine.high %v167_v6, %v9180_v7 }
 0x16c   :  { %v330_v16 = vrot.slane %v167_v6, %v6451_v45  ;;  %v285_v20 = vcombine.high %v219_v0, %v235_v2  ;;  %v374_v37 = vcombine.low %v6415_v30, %v131_v8  ;;  %v375_v38 = vcombine.high %v6415_v30, %v131_v8 }
 0x16d   :  { %v276_v19 = vrot.slane %v268_v10, %v6460_v60  ;;  %v283_v24 = vrot.slane %v269_v11, %v6460_v60  ;;  %v292_v26 = vrot.slane %v284_v12, %v6460_v60  ;;  %v337_v31 = vrot.slane %v323_v15, %v6451_v45 }
 0x16e   :  { %v137_v25 = vpop.permute.xlu1 %136  ;;  %v338_v33 = vcombine.low %v315_v9, %v330_v16  ;;  %v299_v36 = vrot.slane %v285_v20, %v6460_v60  ;;  %v339_v42 = vcombine.high %v315_v9, %v330_v16  ;;  %v382_v56 = vrot.slane %v374_v37, %v6451_v45 }
 0x16f   :  { %v6488_v27 = vcombine.low %v244_v17, %v276_v19  ;;  %v6490_v28 = vcombine.high %v244_v17, %v276_v19  ;;  %v6501_v41 = vcombine.low %v251_v29, %v283_v24  ;;  %v390_v43 = vcombine.low %v6457_v57, %v137_v25 }
 0x170   :  { %v391_v44 = vcombine.high %v6457_v57, %v137_v25  ;;  %v6505_v47 = vcombine.high %v251_v29, %v283_v24  ;;  %v6507_v48 = vcombine.low %v260_v32, %v292_v26  ;;  %v6514_v50 = vrot.slane %v338_v33, %v6460_v60 }
 0x171   :  { %9361 = vst [vmem:[#allocation7_spill] sm:$0xff] %v6488_v27  ;;  %9362 = vst [vmem:[#allocation8_spill] sm:$0xff] %v6490_v28  ;;  %v582_v49 = vmul.f32 %v6499_v40, %v6488_v27  ;;  %v584_v30 = vmul.f32 %v6499_v40, %v6490_v28  ;;  %v354_v51 = vcombine.low %v322_v21, %v337_v31 }
 0x172   :  { %9363 = vst [vmem:[#allocation9_spill] sm:$0xff] %v6501_v41  ;;  %v143_v46 = vpop.permute.xlu1 %142  ;;  %9364 = vst [vmem:[#allocation10_spill] sm:$0xff] %v6505_v47  ;;  %v355_v52 = vcombine.high %v322_v21, %v337_v31  ;;  %v398_v53 = vrot.slane %v390_v43, %v6451_v45  ;;  %v6517_v54 = vcombine.high %v260_v32, %v292_v26 }
 0x173   :  { %9365 = vst [vmem:[#allocation11_spill] sm:$0xff] %v6507_v48  ;;  %9366 = vst [vmem:[#allocation12_spill] sm:$0xff] %v6514_v50  ;;  %v6519_v55 = vcombine.low %v267_v34, %v299_v36  ;;  %v6523_v57 = vrot.slane %v391_v44, %v6451_v45  ;;  %v6525_v58 = vcombine.high %v267_v34, %v299_v36  ;;  %v615_v2 = vsel %vm614_vm2, %v582_v49, 0.0 }
 0x174   :  { %9367 = vst [vmem:[#allocation13_spill] sm:$0xff] %v6517_v54  ;;  %v6528_v59 = vrot.slane %v339_v42, %v6460_v60  ;;  %v6531_v61 = vrot.slane %v375_v38, %v6451_v45  ;;  %v586_v63 = vmul.f32 %v6499_v40, %v6501_v41  ;;  %v438_v0 = vcombine.low %v382_v56, %v398_v53 }
 0x175   :  { %9368 = vst [vmem:[#allocation14_spill] sm:$0xff] %v6519_v55  ;;  %9369 = vst [vmem:[#allocation15_spill] sm:$0xff] %v6525_v58  ;;  %v588_v1 = vmul.f32 %v6499_v40, %v6505_v47  ;;  %v616_v3 = vsel %vm614_vm2, %v584_v30, 0.0  ;;  %v6540_v4 = vrot.slane %v354_v51, %v6460_v60  ;;  %v6543_v5 = vrot.slane %v355_v52, %v6460_v60 }
 0x176   :  { %9370 = vst [vmem:[#allocation16_spill] sm:$0xff] %v6528_v59  ;;  %v149_v62 = vpop.permute.xlu1 %148  ;;  %v6547_v6 = vcombine.high %v6514_v50, %v9180_v7  ;;  %v590_v8 = vmul.f32 %v6499_v40, %v6507_v48  ;;  %v439_v9 = vcombine.high %v382_v56, %v398_v53  ;;  %v454_v10 = vcombine.low %v6531_v61, %v6523_v57 }
 0x177   :  { %9371 = vst [vmem:[#allocation17_spill] sm:$0xff] %v6540_v4  ;;  %9372 = vst [vmem:[#allocation18_spill] sm:$0xff] %v6543_v5  ;;  %v592_v11 = vmul.f32 %v6499_v40, %v6517_v54  ;;  %v617_v12 = vadd.f32 %v616_v3, %v615_v2  ;;  %v455_v13 = vcombine.high %v6531_v61, %v6523_v57  ;;  %v618_v17 = vsel %vm614_vm2, %v586_v63, 0.0 }
 0x178   :  { %9373 = vst [vmem:[#allocation19_spill] sm:$0xff] %v6547_v6  ;;  %v594_v15 = vmul.f32 %v6499_v40, %v6519_v55  ;;  %v596_v16 = vmul.f32 %v6499_v40, %v6525_v58  ;;  %v446_v18 = vrot.slane %v438_v0, %v6460_v60  ;;  %v620_v20 = vsel %vm614_vm2, %v588_v1, 0.0 }
 0x179   :  { %v619_v19 = vadd.f32 %v618_v17, %v617_v12  ;;  %v583_v21 = vmul.f32 %v6499_v40, %v6514_v50  ;;  %v6568_v26 = vcombine.high %v6528_v59, %v9180_v7  ;;  %v585_v29 = vmul.f32 %v6499_v40, %v6547_v6 }
 0x17a   :  { %v155_v14 = vpop.permute.xlu1 %154  ;;  %v453_v32 = vrot.slane %v439_v9, %v6460_v60  ;;  %v6574_v31 = vrot.slane %v454_v10, %v6460_v60  ;;  %v587_v34 = vmul.f32 %v6499_v40, %v6528_v59  ;;  %v622_v37 = vsel %vm614_vm2, %v590_v8, 0.0 }
 0x17b   :  { %v406_v24 = vcombine.low %v143_v46, %v155_v14  ;;  %v407_v25 = vcombine.high %v143_v46, %v155_v14  ;;  %9374 = vst [vmem:[#allocation20_spill] sm:$0xff] %v6568_v26  ;;  %v621_v33 = vadd.f32 %v620_v20, %v619_v19  ;;  %v624_v38 = vsel %vm614_vm2, %v592_v11, 0.0 }
 0x17c   :  { %v631_v42 = vsel %vm630_vm3, %v583_v21, 0.0  ;;  %v632_v43 = vsel %vm630_vm3, %v585_v29, 0.0  ;;  %v6586_v53 = vcombine.high %v6540_v4, %v9180_v7  ;;  %v589_v56 = vmul.f32 %v6499_v40, %v6568_v26 }
 0x17d   :  { %v623_v49 = vadd.f32 %v622_v37, %v621_v33  ;;  %v633_v30 = vadd.f32 %v632_v43, %v631_v42  ;;  %v414_v51 = vrot.slane %v406_v24, %v6451_v45  ;;  %v421_v52 = vrot.slane %v407_v25, %v6451_v45 }
 0x17e   :  { %v161_v36 = vpop.permute.xlu1 %160  ;;  %9375 = vst [vmem:[#allocation21_spill] sm:$0xff] %v6586_v53  ;;  %v626_v1 = vsel %vm614_vm2, %v594_v15, 0.0  ;;  %v628_v2 = vsel %vm614_vm2, %v596_v16, 0.0  ;;  %v6597_v3 = vcombine.high %v6543_v5, %v9180_v7  ;;  %v591_v12 = vmul.f32 %v6499_v40, %v6540_v4 }
 0x17f   :  { %v422_v44 = vcombine.low %v149_v62, %v161_v36  ;;  %v423_v46 = vcombine.high %v149_v62, %v161_v36  ;;  %v625_v63 = vadd.f32 %v624_v38, %v623_v49  ;;  %v634_v62 = vsel %vm630_vm3, %v587_v34, 0.0 }
 0x180   :  { %9376 = vst [vmem:[#allocation22_spill] sm:$0xff] %v6597_v3  ;;  %v635_v8 = vadd.f32 %v634_v62, %v633_v30  ;;  %v593_v15 = vmul.f32 %v6499_v40, %v6586_v53  ;;  %v595_v21 = vmul.f32 %v6499_v40, %v6543_v5  ;;  %v636_v24 = vsel %vm630_vm3, %v589_v56, 0.0 }
 0x181   :  { %v430_v57 = vrot.slane %v422_v44, %v6451_v45  ;;  %v437_v61 = vrot.slane %v423_v46, %v6451_v45  ;;  %v627_v19 = vadd.f32 %v626_v1, %v625_v63  ;;  %v469_v43 = vrot.slane %v455_v13, %v6460_v60 }
 0x182   :  { %v169_v0 = vpop.permute.xlu1 %168  ;;  %v637_v34 = vadd.f32 %v636_v24, %v635_v8  ;;  %v597_v49 = vmul.f32 %v6499_v40, %v6597_v3  ;;  %v642_v62 = vsel %vm630_vm3, %v595_v21, 0.0 }
 0x183   :  { %v470_v9 = vcombine.low %v414_v51, %v430_v57  ;;  %v471_v10 = vcombine.high %v414_v51, %v430_v57  ;;  %v486_v11 = vcombine.low %v421_v52, %v437_v61  ;;  %v525_v14 = vcombine.high %v169_v0, %v9180_v7 }
 0x184   :  { %v532_v17 = vrot.slane %v169_v0, %v6451_v45  ;;  %v487_v25 = vcombine.high %v421_v52, %v437_v61  ;;  %v6611_v33 = vadd.f32 %v628_v2, %v627_v19  ;;  %v638_v52 = vsel %vm630_vm3, %v591_v12, 0.0 }
 0x185   :  { %v478_v16 = vrot.slane %v470_v9, %v6460_v60  ;;  %v485_v20 = vrot.slane %v471_v10, %v6460_v60  ;;  %v494_v36 = vrot.slane %v486_v11, %v6460_v60  ;;  %v539_v42 = vrot.slane %v525_v14, %v6451_v45 }
 0x186   :  { %v540_v29 = vcombine.low %v6481_v22, %v532_v17  ;;  %v541_v46 = vcombine.high %v6481_v22, %v532_v17  ;;  %v676_v56 = vmul.f32 %v6611_v33, %v6611_v33  ;;  %v639_v13 = vadd.f32 %v638_v52, %v637_v34 }
 0x187   :  { %v6614_v37 = vcombine.low %v446_v18, %v478_v16  ;;  %v6616_v38 = vcombine.high %v446_v18, %v478_v16  ;;  %v6620_v44 = vcombine.low %v453_v32, %v485_v20  ;;  %v6625_v30 = vcombine.high %v453_v32, %v485_v20 }
 0x188   :  { %v6628_v51 = vrot.slane %v540_v29, %v6460_v60  ;;  %v640_v18 = vsel %vm630_vm3, %v593_v15, 0.0  ;;  %v501_v32 = vrot.slane %v487_v25, %v6460_v60  ;;  %v6640_v61 = vcombine.low %v6574_v31, %v494_v36 }
 0x189   :  { %9377 = vst [vmem:[#allocation23_spill] sm:$0xff] %v6614_v37  ;;  %9378 = vst [vmem:[#allocation24_spill] sm:$0xff] %v6616_v38  ;;  %v598_v57 = vmul.f32 %v6499_v40, %v6614_v37  ;;  %v600_v22 = vmul.f32 %v6499_v40, %v6616_v38  ;;  %v556_v63 = vcombine.low %v6484_v23, %v539_v42  ;;  %v680_v1 = vsel %vm614_vm2, %v676_v56, 0.0 }
 0x18a   :  { %9379 = vst [vmem:[#allocation25_spill] sm:$0xff] %v6620_v44  ;;  %9380 = vst [vmem:[#allocation26_spill] sm:$0xff] %v6625_v30  ;;  %v6645_v0 = vrot.slane %v541_v46, %v6460_v60  ;;  %v641_v2 = vadd.f32 %v640_v18, %v639_v13  ;;  %v602_v8 = vmul.f32 %v6499_v40, %v6620_v44  ;;  %681 = vadd.xlane.f32.xlu0 %v680_v1 }
 0x18b   :  { %9381 = vst [vmem:[#allocation27_spill] sm:$0xff] %v6628_v51  ;;  %9382 = vst [vmem:[#allocation28_spill] sm:$0xff] %v6640_v61  ;;  %v557_v9 = vcombine.high %v6484_v23, %v539_v42  ;;  %v6653_v10 = vcombine.high %v6628_v51, %v9180_v7  ;;  %v644_v11 = vsel %vm630_vm3, %v597_v49, 0.0  ;;  %v646_v12 = vsel %vm614_vm2, %v598_v57, 0.0 }
 0x18c   :  { %9383 = vst [vmem:[#allocation29_spill] sm:$0xff] %v6645_v0  ;;  %v6658_v14 = vcombine.high %v6574_v31, %v494_v36  ;;  %v643_v17 = vadd.f32 %v642_v62, %v641_v2  ;;  %v604_v19 = vmul.f32 %v6499_v40, %v6625_v30  ;;  %v647_v15 = vsel %vm614_vm2, %v600_v22, 0.0 }
 0x18d   :  { %9384 = vst [vmem:[#allocation30_spill] sm:$0xff] %v6653_v10  ;;  %v6663_v16 = vcombine.low %v469_v43, %v501_v32  ;;  %v6666_v23 = vrot.slane %v556_v63, %v6460_v60  ;;  %v606_v20 = vmul.f32 %v6499_v40, %v6640_v61  ;;  %v648_v21 = vadd.f32 %v647_v15, %v646_v12 }
 0x18e   :  { %9385 = vst [vmem:[#allocation31_spill] sm:$0xff] %v6658_v14  ;;  %v6670_v24 = vcombine.high %v469_v43, %v501_v32  ;;  %v6672_v25 = vadd.f32 %v644_v11, %v643_v17  ;;  %v649_v31 = vsel %vm614_vm2, %v602_v8, 0.0  ;;  %v6677_v29 = vcombine.high %v6645_v0, %v9180_v7 }
 0x18f   :  { %9386 = vst [vmem:[#allocation32_spill] sm:$0xff] %v6663_v16  ;;  %9387 = vst [vmem:[#allocation33_spill] sm:$0xff] %v6666_v23  ;;  %v6680_v34 = vrot.slane %v557_v9, %v6460_v60  ;;  %v650_v36 = vadd.f32 %v649_v31, %v648_v21  ;;  %v599_v42 = vmul.f32 %v6499_v40, %v6628_v51  ;;  %v651_v52 = vsel %vm614_vm2, %v604_v19, 0.0 }
 0x190   :  { %9388 = vst [vmem:[#allocation34_spill] sm:$0xff] %v6670_v24  ;;  %9389 = vst [vmem:[#allocation35_spill] sm:$0xff] %v6677_v29  ;;  %v601_v46 = vmul.f32 %v6499_v40, %v6653_v10  ;;  %v677_v43 = vmul.f32 %v6672_v25, %v6672_v25  ;;  %v608_v49 = vmul.f32 %v6499_v40, %v6658_v14  ;;  %v653_v57 = vsel %vm614_vm2, %v606_v20, 0.0 }
 0x191   :  { %9390 = vst [vmem:[#allocation36_spill] sm:$0xff] %v6680_v34  ;;  %v603_v18 = vmul.f32 %v6499_v40, %v6645_v0  ;;  %v610_v56 = vmul.f32 %v6499_v40, %v6663_v16  ;;  %v652_v13 = vadd.f32 %v651_v52, %v650_v36  ;;  %v6698_v22 = vcombine.high %v6666_v23, %v9180_v7 }
 0x192   :  { %v683_v32 = vsel %vm630_vm3, %v677_v43, 0.0  ;;  %v605_v63 = vmul.f32 %v6499_v40, %v6677_v29  ;;  %v661_v62 = vsel %vm630_vm3, %v599_v42, 0.0  ;;  %v662_v1 = vsel %vm630_vm3, %v601_v46, 0.0 }
 0x193   :  { %9391 = vst [vmem:[#allocation37_spill] sm:$0xff] %v6698_v22  ;;  %684 = vadd.xlane.f32.xlu1 %v683_v32  ;;  %v654_v2 = vadd.f32 %v653_v57, %v652_v13  ;;  %v663_v8 = vadd.f32 %v662_v1, %v661_v62  ;;  %v612_v9 = vmul.f32 %v6499_v40, %v6670_v24  ;;  %v655_v11 = vsel %vm614_vm2, %v608_v49, 0.0 }
 0x194   :  { %v607_v12 = vmul.f32 %v6499_v40, %v6666_v23  ;;  %v664_v17 = vsel %vm630_vm3, %v603_v18, 0.0  ;;  %v657_v20 = vsel %vm614_vm2, %v610_v56, 0.0  ;;  %v6714_v21 = vcombine.high %v6680_v34, %v9180_v7 }
 0x195   :  { %v656_v19 = vadd.f32 %v655_v11, %v654_v2  ;;  %v665_v15 = vadd.f32 %v664_v17, %v663_v8  ;;  %v609_v31 = vmul.f32 %v6499_v40, %v6698_v22  ;;  %v666_v36 = vsel %vm630_vm3, %v605_v63, 0.0 }
 0x196   :  { %9392 = vst [vmem:[#allocation38_spill] sm:$0xff] %v6714_v21  ;;  %v659_v43 = vsel %vm614_vm2, %v612_v9, 0.0  ;;  %v611_v49 = vmul.f32 %v6499_v40, %v6680_v34  ;;  %v668_v52 = vsel %vm630_vm3, %v607_v12, 0.0  ;;  %v613_v13 = vmul.f32 %v6499_v40, %v6714_v21 }
 0x197   :  { %v658_v42 = vadd.f32 %v657_v20, %v656_v19  ;;  %v667_v46 = vadd.f32 %v666_v36, %v665_v15  ;;  %v670_v57 = vsel %vm630_vm3, %v609_v31, 0.0 }
 0x198   :  { %v672_v62 = vsel %vm630_vm3, %v611_v49, 0.0  ;;  %v674_v8 = vsel %vm630_vm3, %v613_v13, 0.0 }
 0x199   :  { %v6723_v18 = vadd.f32 %v659_v43, %v658_v42  ;;  %v669_v56 = vadd.f32 %v668_v52, %v667_v46 }
 0x19b   :  { %v678_v32 = vmul.f32 %v6723_v18, %v6723_v18  ;;  %v671_v63 = vadd.f32 %v670_v57, %v669_v56 }
 0x19d   :  { %v686_v1 = vsel %vm614_vm2, %v678_v32, 0.0  ;;  %v673_v2 = vadd.f32 %v672_v62, %v671_v63 }
 0x19e   :  { %687 = vadd.xlane.f32.xlu0 %v686_v1 }
 0x19f   :  { %v6733_v9 = vadd.f32 %v674_v8, %v673_v2 }
 0x1a1   :  { %v679_v11 = vmul.f32 %v6733_v9, %v6733_v9 }
 0x1a3   :  { %v689_v40 = vsel %vm630_vm3, %v679_v11, 0.0 }
 0x1a4   :  { %690 = vadd.xlane.f32.xlu0 %v689_v40 }
 0x217   :  { %v682_v12 = vpop.xlane.xlu0 %681 }
 0x218   :  { %v692_v17 = vadd.f32 1e-07, %v682_v12 }
 0x21a   :  { %5857 = vrsqrt.f32 %v692_v17 }
 0x220   :  { %v685_v19 = vpop.xlane.xlu1 %684 }
 0x221   :  { %v693_v15 = vadd.f32 1e-07, %v685_v19 }
 0x223   :  { %5859 = vrsqrt.f32 %v693_v15 }
 0x224   :  { %v5858_v20 = vpop.eup %5857 }
 0x225   :  { %v700_v31 = vmul.f32 %v5858_v20, %v6611_v33 }
 0x227   :  { %v704_v36 = vmul.f32 %v700_v31, %v6488_v27  ;;  %v706_v46 = vmul.f32 %v700_v31, %v6490_v28  ;;  %v708_v13 = vmul.f32 %v700_v31, %v6501_v41  ;;  %v710_v1 = vmul.f32 %v700_v31, %v6505_v47 }
 0x228   :  { %v712_v40 = vmul.f32 %v700_v31, %v6507_v48  ;;  %v714_v20 = vmul.f32 %v700_v31, %v6517_v54  ;;  %v7003_v54 = vsub.s32 6, %v6448_v39 }
 0x229   :  { %v736_v42 = vsel %vm614_vm2, %v704_v36, 0.0  ;;  %v742_v52 = vsel %vm614_vm2, %v706_v46, 0.0  ;;  %v748_v62 = vsel %vm614_vm2, %v708_v13, 0.0  ;;  %v754_v11 = vsel %vm614_vm2, %v710_v1, 0.0 }
 0x22a   :  { %737 = vadd.xlane.f32.xlu1 %v736_v42  ;;  %v760_v15 = vsel %vm614_vm2, %v712_v40, 0.0  ;;  %v766_v46 = vsel %vm614_vm2, %v714_v20, 0.0  ;;  %9393 = vst [vmem:[#allocation39_spill] sm:$0xff] %v7003_v54 }
 0x22b   :  { %v688_v56 = vpop.xlane.xlu0 %687 }
 0x22c   :  { %v694_v32 = vadd.f32 1e-07, %v688_v56  ;;  %v718_v56 = vmul.f32 %v700_v31, %v6525_v58 }
 0x22d   :  { %v5860_v43 = vpop.eup %5859 }
 0x22e   :  { %v701_v49 = vmul.f32 %v5860_v43, %v6672_v25  ;;  %743 = vadd.xlane.f32.xlu1 %v742_v52  ;;  %5861 = vrsqrt.f32 %v694_v32  ;;  %v716_v43 = vmul.f32 %v700_v31, %v6519_v55  ;;  %v778_v1 = vsel %vm614_vm2, %v718_v56, 0.0 }
 0x22f   :  { %v6997_v55 = vsub.s32 5, %v6448_v39 }
 0x230   :  { %v705_v57 = vmul.f32 %v701_v49, %v6514_v50  ;;  %v707_v63 = vmul.f32 %v701_v49, %v6547_v6  ;;  %v709_v8 = vmul.f32 %v701_v49, %v6528_v59  ;;  %v711_v19 = vmul.f32 %v701_v49, %v6568_v26 }
 0x231   :  { %v691_v2 = vpop.xlane.xlu0 %690  ;;  %v713_v42 = vmul.f32 %v701_v49, %v6540_v4  ;;  %v715_v32 = vmul.f32 %v701_v49, %v6586_v53 }
 0x232   :  { %v739_v33 = vsel %vm630_vm3, %v705_v57, 0.0  ;;  %749 = vadd.xlane.f32.xlu1 %v748_v62  ;;  %v745_v25 = vsel %vm630_vm3, %v707_v63, 0.0  ;;  %v695_v12 = vadd.f32 1e-07, %v691_v2  ;;  %v751_v17 = vsel %vm630_vm3, %v709_v8, 0.0 }
 0x233   :  { %740 = vadd.xlane.f32.xlu0 %v739_v33  ;;  %v757_v36 = vsel %vm630_vm3, %v711_v19, 0.0  ;;  %v763_v57 = vsel %vm630_vm3, %v713_v42, 0.0  ;;  %v772_v33 = vsel %vm614_vm2, %v716_v43, 0.0  ;;  %v769_v63 = vsel %vm630_vm3, %v715_v32, 0.0 }
 0x234   :  { %5863 = vrsqrt.f32 %v695_v12  ;;  %v717_v62 = vmul.f32 %v701_v49, %v6543_v5 }
 0x236   :  { %755 = vadd.xlane.f32.xlu1 %v754_v11  ;;  %v775_v8 = vsel %vm630_vm3, %v717_v62, 0.0 }
 0x237   :  { %746 = vadd.xlane.f32.xlu0 %v745_v25 }
 0x238   :  { %v5862_v52 = vpop.eup %5861 }
 0x239   :  { %v702_v13 = vmul.f32 %v5862_v52, %v6723_v18  ;;  %v719_v18 = vmul.f32 %v701_v49, %v6597_v3 }
 0x23a   :  { %761 = vadd.xlane.f32.xlu1 %v760_v15 }
 0x23b   :  { %752 = vadd.xlane.f32.xlu0 %v751_v17  ;;  %v720_v25 = vmul.f32 %v702_v13, %v6614_v37  ;;  %v722_v40 = vmul.f32 %v702_v13, %v6616_v38  ;;  %v781_v12 = vsel %vm630_vm3, %v719_v18, 0.0  ;;  %v724_v15 = vmul.f32 %v702_v13, %v6620_v44 }
 0x23c   :  { %v728_v52 = vmul.f32 %v702_v13, %v6640_v61 }
 0x23d   :  { %v784_v11 = vsel %vm614_vm2, %v720_v25, 0.0  ;;  %v790_v19 = vsel %vm614_vm2, %v722_v40, 0.0  ;;  %v796_v20 = vsel %vm614_vm2, %v724_v15, 0.0  ;;  %v732_v25 = vmul.f32 %v702_v13, %v6663_v16 }
 0x23e   :  { %767 = vadd.xlane.f32.xlu1 %v766_v46  ;;  %v5864_v2 = vpop.eup %5863  ;;  %v808_v32 = vsel %vm614_vm2, %v728_v52, 0.0 }
 0x23f   :  { %758 = vadd.xlane.f32.xlu0 %v757_v36  ;;  %v703_v31 = vmul.f32 %v5864_v2, %v6733_v9  ;;  %v726_v36 = vmul.f32 %v702_v13, %v6625_v30 }
 0x241   :  { %v721_v17 = vmul.f32 %v703_v31, %v6628_v51  ;;  %v723_v49 = vmul.f32 %v703_v31, %v6653_v10  ;;  %v725_v46 = vmul.f32 %v703_v31, %v6645_v0  ;;  %v802_v43 = vsel %vm614_vm2, %v726_v36, 0.0 }
 0x242   :  { %773 = vadd.xlane.f32.xlu1 %v772_v33  ;;  %v730_v33 = vmul.f32 %v702_v13, %v6658_v14  ;;  %v729_v62 = vmul.f32 %v703_v31, %v6666_v23  ;;  %v731_v18 = vmul.f32 %v703_v31, %v6698_v22  ;;  %v735_v15 = vmul.f32 %v703_v31, %v6714_v21 }
 0x243   :  { %764 = vadd.xlane.f32.xlu0 %v763_v57  ;;  %v787_v9 = vsel %vm630_vm3, %v721_v17, 0.0  ;;  %v793_v42 = vsel %vm630_vm3, %v723_v49, 0.0  ;;  %v799_v56 = vsel %vm630_vm3, %v725_v46, 0.0  ;;  %v727_v57 = vmul.f32 %v703_v31, %v6677_v29 }
 0x244   :  { %v811_v2 = vsel %vm630_vm3, %v729_v62, 0.0  ;;  %v817_v40 = vsel %vm630_vm3, %v731_v18, 0.0 }
 0x246   :  { %779 = vadd.xlane.f32.xlu1 %v778_v1  ;;  %v814_v1 = vsel %vm614_vm2, %v730_v33, 0.0 }
 0x247   :  { %770 = vadd.xlane.f32.xlu0 %v769_v63  ;;  %v805_v63 = vsel %vm630_vm3, %v727_v57, 0.0 }
 0x24a   :  { %785 = vadd.xlane.f32.xlu1 %v784_v11  ;;  %v734_v11 = vmul.f32 %v702_v13, %v6670_v24 }
 0x24b   :  { %776 = vadd.xlane.f32.xlu0 %v775_v8  ;;  %v820_v8 = vsel %vm614_vm2, %v732_v25, 0.0 }
 0x24c   :  { %v826_v17 = vsel %vm614_vm2, %v734_v11, 0.0 }
 0x24e   :  { %791 = vadd.xlane.f32.xlu1 %v790_v19 }
 0x24f   :  { %782 = vadd.xlane.f32.xlu0 %v781_v12  ;;  %v733_v12 = vmul.f32 %v703_v31, %v6680_v34  ;;  %v865_v31 = vand.u32 127, %v177_v35 }
 0x251   :  { %v823_v19 = vsel %vm630_vm3, %v733_v12, 0.0 }
 0x252   :  { %797 = vadd.xlane.f32.xlu1 %v796_v20 }
 0x253   :  { %788 = vadd.xlane.f32.xlu0 %v787_v9  ;;  %v829_v9 = vsel %vm630_vm3, %v735_v15, 0.0 }
 0x256   :  { %803 = vadd.xlane.f32.xlu1 %v802_v43 }
 0x257   :  { %794 = vadd.xlane.f32.xlu0 %v793_v42 }
 0x25a   :  { %809 = vadd.xlane.f32.xlu1 %v808_v32  ;;  %v870_v32 = vadd.s32 4294967288, %v865_v31 }
 0x25b   :  { %800 = vadd.xlane.f32.xlu0 %v799_v56 }
 0x25c   :  { %v6832_v62 = vsub.s32 %v870_v32, %v6448_v39 }
 0x25e   :  { %815 = vadd.xlane.f32.xlu1 %v814_v1  ;;  %v6835_v1 = vsub.s32 %v865_v31, %v6448_v39 }
 0x25f   :  { %806 = vadd.xlane.f32.xlu0 %v805_v63 }
 0x262   :  { %821 = vadd.xlane.f32.xlu1 %v820_v8 }
 0x263   :  { %812 = vadd.xlane.f32.xlu0 %v811_v2 }
 0x266   :  { %827 = vadd.xlane.f32.xlu1 %v826_v17 }
 0x267   :  { %818 = vadd.xlane.f32.xlu0 %v817_v40 }
 0x26b   :  { %824 = vadd.xlane.f32.xlu0 %v823_v19 }
 0x26f   :  { %830 = vadd.xlane.f32.xlu0 %v829_v9 }
 0x2b7   :  { %v6806_v49 = vpop.xlane.xlu1 %737 }
 0x2b8   :  { %v869_v19 = vrot.slane %v6806_v49, %v6835_v1 }
 0x2bb   :  { %v6808_v13 = vpop.xlane.xlu1 %743 }
 0x2bc   :  { %v880_v11 = vrot.slane %v6808_v13, %v6835_v1 }
 0x2bf   :  { %v6812_v36 = vpop.xlane.xlu1 %749 }
 0x2c0   :  { %v6810_v20 = vpop.xlane.xlu0 %740  ;;  %v889_v12 = vrot.slane %v6812_v36, %v6835_v1 }
 0x2c1   :  { %v874_v8 = vrot.slane %v6810_v20, %v6832_v62 }
 0x2c3   :  { %v6816_v46 = vpop.xlane.xlu1 %755  ;;  %v876_v21 = vsel %vm875_vm4, %v874_v8, %v869_v19 }
 0x2c4   :  { %v6814_v42 = vpop.xlane.xlu0 %746  ;;  %v898_v9 = vrot.slane %v6816_v46, %v6835_v1 }
 0x2c5   :  { %v884_v25 = vrot.slane %v6814_v42, %v6832_v62 }
 0x2c7   :  { %v6820_v52 = vpop.xlane.xlu1 %761  ;;  %v885_v15 = vsel %vm875_vm4, %v884_v25, %v880_v11 }
 0x2c8   :  { %v6818_v43 = vpop.xlane.xlu0 %752  ;;  %v907_v7 = vrot.slane %v6820_v52, %v6835_v1 }
 0x2c9   :  { %v893_v35 = vrot.slane %v6818_v43, %v6832_v62 }
 0x2cb   :  { %v6825_v57 = vpop.xlane.xlu1 %767  ;;  %v894_v32 = vsel %vm875_vm4, %v893_v35, %v889_v12  ;;  %v1013_v35 = vsel %vm1012_vm5, %v885_v15, %v876_v21 }
 0x2cc   :  { %v6823_v56 = vpop.xlane.xlu0 %758  ;;  %v916_v11 = vrot.slane %v6825_v57, %v6835_v1  ;;  %v1015_v16 = vsel %vm1014_vm6, %v894_v32, %v1013_v35 }
 0x2cd   :  { %v902_v40 = vrot.slane %v6823_v56, %v6832_v62 }
 0x2cf   :  { %v6829_v63 = vpop.xlane.xlu1 %773  ;;  %v903_v25 = vsel %vm875_vm4, %v902_v40, %v898_v9 }
 0x2d0   :  { %v6827_v33 = vpop.xlane.xlu0 %764  ;;  %v925_v34 = vrot.slane %v6829_v63, %v6835_v1  ;;  %v1017_v40 = vsel %vm1016_vm7, %v903_v25, %v1015_v16 }
 0x2d1   :  { %v911_v17 = vrot.slane %v6827_v33, %v6832_v62 }
 0x2d3   :  { %v6843_v18 = vpop.xlane.xlu1 %779  ;;  %v912_v12 = vsel %vm875_vm4, %v911_v17, %v907_v7 }
 0x2d4   :  { %v6841_v2 = vpop.xlane.xlu0 %770  ;;  %v934_v7 = vrot.slane %v6843_v18, %v6835_v1  ;;  %v1019_v17 = vsel %vm1018_vm8, %v912_v12, %v1017_v40 }
 0x2d5   :  { %v920_v31 = vrot.slane %v6841_v2, %v6832_v62 }
 0x2d7   :  { %v6867_v45 = vpop.xlane.xlu1 %785  ;;  %v921_v8 = vsel %vm875_vm4, %v920_v31, %v916_v11 }
 0x2d8   :  { %v6865_v60 = vpop.xlane.xlu0 %776  ;;  %v1021_v15 = vsel %vm1020_vm9, %v921_v8, %v1019_v17  ;;  %v943_v61 = vrot.slane %v6867_v45, %v6835_v1 }
 0x2d9   :  { %v929_v24 = vrot.slane %v6865_v60, %v6832_v62 }
 0x2db   :  { %v6884_v9 = vpop.xlane.xlu1 %791  ;;  %v930_v22 = vsel %vm875_vm4, %v929_v24, %v925_v34 }
 0x2dc   :  { %v6882_v19 = vpop.xlane.xlu0 %782  ;;  %v1023_v31 = vsel %vm1022_vm10, %v930_v22, %v1021_v15 }
 0x2dd   :  { %v938_v21 = vrot.slane %v6882_v19, %v6832_v62 }
 0x2df   :  { %v939_v16 = vsel %vm875_vm4, %v938_v21, %v934_v7  ;;  %v6898_v34 = vpop.xlane.xlu1 %797  ;;  %v6319_v21 = vmov 0  }
 0x2e0   :  { %v6895_v32 = vpop.xlane.xlu0 %788  ;;  %v1025_v24 = vsel %vm1024_vm11, %v939_v16, %v1023_v31  ;;  %5854 = vset.pattern.permute.xlu0 %v6319_v21  ;;  %5853 = vset.pattern.permute.xlu1 %v6319_v21  ;;  %v961_v21 = vrot.slane %v6898_v34, %v6835_v1 }
 0x2e1   :  { %v1035_v25 = vsel %vm576_vm0, %v1025_v24, -inf  ;;  %v947_v24 = vrot.slane %v6895_v32, %v6832_v62 }
 0x2e2   :  { %1036 = vmax.xlane.f32.xlu1 %v1035_v25  ;;  %v952_v25 = vrot.slane %v6884_v9, %v6835_v1 }
 0x2e3   :  { %v6903_v35 = vpop.xlane.xlu1 %803  ;;  %v948_v10 = vsel %vm875_vm4, %v947_v24, %v943_v61 }
 0x2e4   :  { %v6901_v11 = vpop.xlane.xlu0 %794  ;;  %v970_v30 = vrot.slane %v6903_v35, %v6835_v1 }
 0x2e5   :  { %v956_v17 = vrot.slane %v6901_v11, %v6832_v62 }
 0x2e7   :  { %v6907_v8 = vpop.xlane.xlu1 %809  ;;  %v957_v29 = vsel %vm875_vm4, %v956_v17, %v952_v25 }
 0x2e8   :  { %v6905_v12 = vpop.xlane.xlu0 %800  ;;  %v979_v51 = vrot.slane %v6907_v8, %v6835_v1  ;;  %v1026_v3 = vsel %vm1012_vm5, %v957_v29, %v948_v10 }
 0x2e9   :  { %v965_v15 = vrot.slane %v6905_v12, %v6832_v62 }
 0x2eb   :  { %v6911_v22 = vpop.xlane.xlu1 %815  ;;  %v966_v44 = vsel %vm875_vm4, %v965_v15, %v961_v21 }
 0x2ec   :  { %v6909_v40 = vpop.xlane.xlu0 %806  ;;  %v988_v17 = vrot.slane %v6911_v22, %v6835_v1  ;;  %v1027_v5 = vsel %vm1014_vm6, %v966_v44, %v1026_v3 }
 0x2ed   :  { %v974_v14 = vrot.slane %v6909_v40, %v6832_v62 }
 0x2ef   :  { %v6921_v31 = vpop.xlane.xlu1 %821  ;;  %v975_v38 = vsel %vm875_vm4, %v974_v14, %v970_v30 }
 0x2f0   :  { %v6913_v7 = vpop.xlane.xlu0 %812  ;;  %v997_v15 = vrot.slane %v6921_v31, %v6835_v1  ;;  %v1028_v30 = vsel %vm1016_vm7, %v975_v38, %v1027_v5 }
 0x2f1   :  { %v983_v23 = vrot.slane %v6913_v7, %v6832_v62 }
 0x2f3   :  { %v984_v58 = vsel %vm875_vm4, %v983_v23, %v979_v51  ;;  %v6955_v21 = vpop.xlane.xlu1 %827 }
 0x2f4   :  { %v6919_v16 = vpop.xlane.xlu0 %818  ;;  %v1006_v10 = vrot.slane %v6955_v21, %v6835_v1  ;;  %v1029_v23 = vsel %vm1018_vm8, %v984_v58, %v1028_v30  ;;  %v6983_v58 = vsub.s32 3, %v6448_v39 }
 0x2f5   :  { %v992_v0 = vrot.slane %v6919_v16, %v6832_v62 }
 0x2f7   :  { %v993_v61 = vsel %vm875_vm4, %v992_v0, %v988_v17  ;;  %v6974_v0 = vsub.s32 0, %v6448_v39  ;;  %v6977_v17 = vsub.s32 1, %v6448_v39 }
 0x2f8   :  { %v6943_v37 = vpop.xlane.xlu0 %824  ;;  %v1030_v29 = vsel %vm1020_vm9, %v993_v61, %v1029_v23 }
 0x2f9   :  { %v1001_v25 = vrot.slane %v6943_v37, %v6832_v62 }
 0x2fb   :  { %v1002_v24 = vsel %vm875_vm4, %v1001_v25, %v997_v15  ;;  %v6980_v25 = vsub.s32 2, %v6448_v39 }
 0x2fc   :  { %v6960_v14 = vpop.xlane.xlu0 %830  ;;  %v1031_v44 = vsel %vm1022_vm10, %v1002_v24, %v1030_v29  ;;  %v6992_v29 = vsub.s32 4, %v6448_v39 }
 0x2fd   :  { %v1010_v51 = vrot.slane %v6960_v14, %v6832_v62 }
 0x2ff   :  { %v1011_v3 = vsel %vm875_vm4, %v1010_v51, %v1006_v10 }
 0x300   :  { %v1032_v5 = vsel %vm1024_vm11, %v1011_v3, %v1031_v44 }
 0x301   :  { %v1038_v38 = vsel %vm576_vm0, %v1032_v5, -inf }
 0x302   :  { %1039 = vmax.xlane.f32.xlu0 %v1038_v38 }
 0x36f   :  { %v1037_v15 = vpop.xlane.xlu1 %1036 }
 0x370   :  { %v1046_v61 = vrot.slane %v1037_v15, %v6974_v0  ;;  %v1050_v30 = vrot.slane %v1037_v15, %v6977_v17  ;;  %v1054_v24 = vrot.slane %v1037_v15, %v6980_v25  ;;  %v1058_v3 = vrot.slane %v1037_v15, %v6983_v58 }
 0x372   :  { %v1123_v10 = vsub.f32 %v6806_v49, %v1046_v61  ;;  %v1124_v51 = vsub.f32 %v6810_v20, %v1046_v61  ;;  %v1125_v23 = vsub.f32 %v6808_v13, %v1050_v30  ;;  %v1128_v44 = vsub.f32 %v6818_v43, %v1054_v24 }
 0x373   :  { %v1126_v49 = vsub.f32 %v6814_v42, %v1050_v30  ;;  %v1062_v20 = vrot.slane %v1037_v15, %v6992_v29  ;;  %v1130_v61 = vsub.f32 %v6823_v56, %v1058_v3  ;;  %v7009_v42 = vsub.s32 7, %v6448_v39 }
 0x374   :  { %v1155_v5 = vmul.f32 1.442695, %v1123_v10  ;;  %v1157_v38 = vmul.f32 1.442695, %v1124_v51  ;;  %v1159_v53 = vmul.f32 1.442695, %v1125_v23  ;;  %v1127_v10 = vsub.f32 %v6812_v36, %v1054_v24 }
 0x375   :  { %v1165_v13 = vmul.f32 1.442695, %v1128_v44  ;;  %v1161_v43 = vmul.f32 1.442695, %v1126_v49  ;;  %v1066_v51 = vrot.slane %v1037_v15, %v6997_v55  ;;  %v1132_v23 = vsub.f32 %v6827_v33, %v1062_v20  ;;  %9394 = vst [vmem:[#allocation40_spill] sm:$0xff] %v7009_v42 }
 0x376   :  { %5865 = vpow2.f32 %v1155_v5  ;;  %v1169_v5 = vmul.f32 1.442695, %v1130_v61  ;;  %v1163_v30 = vmul.f32 1.442695, %v1127_v10  ;;  %v1129_v56 = vsub.f32 %v6816_v46, %v1058_v3 }
 0x377   :  { %5867 = vpow2.f32 %v1157_v38  ;;  %v1070_v44 = vrot.slane %v1037_v15, %v7003_v54  ;;  %v1134_v38 = vsub.f32 %v6841_v2, %v1066_v51  ;;  %v1131_v33 = vsub.f32 %v6820_v52, %v1062_v20 }
 0x378   :  { %5869 = vpow2.f32 %v1159_v53  ;;  %v1173_v53 = vmul.f32 1.442695, %v1132_v23  ;;  %v1167_v39 = vmul.f32 1.442695, %v1129_v56  ;;  %v1074_v46 = vrot.slane %v1037_v15, %v7009_v42 }
 0x379   :  { %5871 = vpow2.f32 %v1165_v13  ;;  %v1177_v3 = vmul.f32 1.442695, %v1134_v38  ;;  %v1136_v49 = vsub.f32 %v6865_v60, %v1070_v44  ;;  %v1171_v61 = vmul.f32 1.442695, %v1131_v33 }
 0x37a   :  { %5873 = vpow2.f32 %v1161_v43  ;;  %v1133_v43 = vsub.f32 %v6825_v57, %v1066_v51  ;;  %v1138_v15 = vsub.f32 %v6882_v19, %v1074_v46  ;;  %v1137_v19 = vsub.f32 %v6843_v18, %v1074_v46 }
 0x37b   :  { %5875 = vpow2.f32 %v1169_v5  ;;  %v1181_v52 = vmul.f32 1.442695, %v1136_v49  ;;  %v1135_v5 = vsub.f32 %v6829_v63, %v1070_v44 }
 0x37c   :  { %5877 = vpow2.f32 %v1163_v30  ;;  %v1175_v60 = vmul.f32 1.442695, %v1133_v43  ;;  %v1185_v23 = vmul.f32 1.442695, %v1138_v15  ;;  %v1183_v18 = vmul.f32 1.442695, %v1137_v19 }
 0x37d   :  { %5879 = vpow2.f32 %v1173_v53  ;;  %v1179_v51 = vmul.f32 1.442695, %v1135_v5 }
 0x37e   :  { %5881 = vpow2.f32 %v1167_v39 }
 0x37f   :  { %5883 = vpow2.f32 %v1177_v3 }
 0x380   :  { %v7014_v36 = vpop.eup %5865  ;;  %5885 = vpow2.f32 %v1171_v61 }
 0x381   :  { %v7016_v24 = vpop.eup %5867  ;;  %1252 = vperm.xlu1 %5853, %v7014_v36   ;;  %5887 = vpow2.f32 %v1181_v52 }
 0x382   :  { %1255 = vperm.xlu0 %5854, %v7016_v24   ;;  %v7023_v13 = vpop.eup %5869  ;;  %5889 = vpow2.f32 %v1175_v60 }
 0x383   :  { %v7025_v2 = vpop.eup %5871  ;;  %5891 = vpow2.f32 %v1185_v23 }
 0x384   :  { %v7031_v20 = vpop.eup %5873  ;;  %5893 = vpow2.f32 %v1179_v51 }
 0x385   :  { %1258 = vperm.xlu1 %5853, %v7023_v13   ;;  %v7033_v10 = vpop.eup %5875  ;;  %5895 = vpow2.f32 %v1183_v18 }
 0x386   :  { %1267 = vperm.xlu0 %5854, %v7025_v2   ;;  %v7038_v30 = vpop.eup %5877 }
 0x387   :  { %v7040_v57 = vpop.eup %5879 }
 0x388   :  { %v7045_v53 = vpop.eup %5881 }
 0x389   :  { %1261 = vperm.xlu1 %5853, %v7031_v20   ;;  %v7052_v39 = vpop.eup %5883 }
 0x38a   :  { %1273 = vperm.xlu0 %5854, %v7033_v10   ;;  %v7063_v61 = vpop.eup %5885 }
 0x38b   :  { %v7065_v52 = vpop.eup %5887 }
 0x38c   :  { %v7076_v23 = vpop.eup %5889 }
 0x38d   :  { %1264 = vperm.xlu1 %5853, %v7038_v30   ;;  %v7078_v19 = vpop.eup %5891 }
 0x38e   :  { %1279 = vperm.xlu0 %5854, %v7040_v57  }
 0x38f   :  { %v1040_v56 = vpop.xlane.xlu0 %1039 }
 0x390   :  { %v1078_v63 = vrot.slane %v1040_v56, %v6974_v0  ;;  %v1086_v44 = vrot.slane %v1040_v56, %v6980_v25  ;;  %v7050_v38 = vrot.slane %v1040_v56, %v6983_v58  ;;  %v7055_v33 = vrot.slane %v1040_v56, %v6992_v29 }
 0x391   :  { %1270 = vperm.xlu1 %5853, %v7045_v53   ;;  %v7068_v15 = vrot.slane %v1040_v56, %v6997_v55  ;;  %v1082_v5 = vrot.slane %v1040_v56, %v6977_v17  ;;  %v7081_v51 = vrot.slane %v1040_v56, %v7003_v54 }
 0x392   :  { %1285 = vperm.xlu0 %5854, %v7052_v39   ;;  %v1144_v46 = vsub.f32 %v6905_v12, %v1086_v44  ;;  %v1146_v3 = vsub.f32 %v6909_v40, %v7050_v38  ;;  %v1139_v49 = vsub.f32 %v6867_v45, %v1078_v63  ;;  %v1148_v12 = vsub.f32 %v6913_v7, %v7055_v33 }
 0x393   :  { %v1140_v40 = vsub.f32 %v6895_v32, %v1078_v63  ;;  %v1150_v7 = vsub.f32 %v6919_v16, %v7068_v15  ;;  %v1141_v32 = vsub.f32 %v6884_v9, %v1082_v5  ;;  %v7088_v63 = vpop.eup %5893  ;;  %v1142_v16 = vsub.f32 %v6901_v11, %v1082_v5 }
 0x394   :  { %v1197_v43 = vmul.f32 1.442695, %v1144_v46  ;;  %v1201_v60 = vmul.f32 1.442695, %v1146_v3  ;;  %v1187_v45 = vmul.f32 1.442695, %v1139_v49  ;;  %v1106_v3 = vrot.slane %v1040_v56, %v7009_v42 }
 0x395   :  { %1276 = vperm.xlu1 %5853, %v7063_v61   ;;  %v1205_v18 = vmul.f32 1.442695, %v1148_v12  ;;  %v1189_v46 = vmul.f32 1.442695, %v1140_v40  ;;  %v1209_v49 = vmul.f32 1.442695, %v1150_v7  ;;  %v7095_v12 = vpop.eup %5895 }
 0x396   :  { %1291 = vperm.xlu0 %5854, %v7065_v52   ;;  %5897 = vpow2.f32 %v1197_v43  ;;  %v1152_v43 = vsub.f32 %v6943_v37, %v7081_v51  ;;  %v1154_v56 = vsub.f32 %v6960_v14, %v1106_v3  ;;  %v1193_v40 = vmul.f32 1.442695, %v1142_v16 }
 0x397   :  { %5899 = vpow2.f32 %v1201_v60  ;;  %v1191_v60 = vmul.f32 1.442695, %v1141_v32  ;;  %v1143_v37 = vsub.f32 %v6898_v34, %v1086_v44  ;;  %v1147_v44 = vsub.f32 %v6907_v8, %v7055_v33 }
 0x398   :  { %5901 = vpow2.f32 %v1187_v45  ;;  %v1213_v9 = vmul.f32 1.442695, %v1152_v43  ;;  %v1217_v11 = vmul.f32 1.442695, %v1154_v56  ;;  %v1151_v33 = vsub.f32 %v6921_v31, %v7081_v51 }
 0x399   :  { %1282 = vperm.xlu1 %5853, %v7076_v23   ;;  %5903 = vpow2.f32 %v1205_v18  ;;  %v1195_v5 = vmul.f32 1.442695, %v1143_v37 }
 0x39a   :  { %1297 = vperm.xlu0 %5854, %v7078_v19   ;;  %5905 = vpow2.f32 %v1189_v46  ;;  %v1145_v46 = vsub.f32 %v6903_v35, %v7050_v38  ;;  %v1203_v35 = vmul.f32 1.442695, %v1147_v44  ;;  %v1149_v38 = vsub.f32 %v6911_v22, %v7068_v15 }
 0x39b   :  { %5907 = vpow2.f32 %v1209_v49  ;;  %v1211_v22 = vmul.f32 1.442695, %v1151_v33  ;;  %v1153_v15 = vsub.f32 %v6955_v21, %v1106_v3 }
 0x39c   :  { %5909 = vpow2.f32 %v1191_v60  ;;  %v1199_v34 = vmul.f32 1.442695, %v1145_v46  ;;  %v1207_v8 = vmul.f32 1.442695, %v1149_v38 }
 0x39d   :  { %1288 = vperm.xlu1 %5853, %v7088_v63   ;;  %5911 = vpow2.f32 %v1213_v9  ;;  %v1215_v37 = vmul.f32 1.442695, %v1153_v15 }
 0x39e   :  { %5913 = vpow2.f32 %v1193_v40 }
 0x39f   :  { %5915 = vpow2.f32 %v1217_v11 }
 0x3a0   :  { %v7097_v45 = vpop.eup %5897  ;;  %5917 = vpow2.f32 %v1195_v5 }
 0x3a1   :  { %1294 = vperm.xlu1 %5853, %v7095_v12   ;;  %1315 = vperm.xlu0 %5854, %v7097_v45   ;;  %v7103_v18 = vpop.eup %5899  ;;  %5919 = vpow2.f32 %v1199_v34 }
 0x3a2   :  { %v7105_v7 = vpop.eup %5901  ;;  %5921 = vpow2.f32 %v1203_v35 }
 0x3a3   :  { %v7111_v14 = vpop.eup %5903  ;;  %5923 = vpow2.f32 %v1207_v8 }
 0x3a4   :  { %v7113_v32 = vpop.eup %5905  ;;  %5925 = vpow2.f32 %v1211_v22 }
 0x3a5   :  { %1321 = vperm.xlu0 %5854, %v7103_v18   ;;  %1300 = vperm.xlu1 %5853, %v7105_v7   ;;  %v7119_v49 = vpop.eup %5907  ;;  %5927 = vpow2.f32 %v1215_v37 }
 0x3a6   :  { %v7121_v43 = vpop.eup %5909 }
 0x3a7   :  { %v7127_v60 = vpop.eup %5911 }
 0x3a8   :  { %v7129_v16 = vpop.eup %5913 }
 0x3a9   :  { %1327 = vperm.xlu0 %5854, %v7111_v14   ;;  %1303 = vperm.xlu1 %5853, %v7113_v32   ;;  %v7135_v9 = vpop.eup %5915 }
 0x3aa   :  { %9395 = vst [vmem:[#allocation41_spill] sm:$0xff] %v7135_v9  ;;  %v7137_v56 = vpop.eup %5917 }
 0x3ab   :  { %v7142_v40 = vpop.eup %5919 }
 0x3ac   :  { %v7145_v11 = vpop.eup %5921 }
 0x3ad   :  { %1333 = vperm.xlu0 %5854, %v7119_v49   ;;  %1306 = vperm.xlu1 %5853, %v7121_v43   ;;  %v7148_v31 = vpop.eup %5923 }
 0x3ae   :  { %v7151_v51 = vpop.eup %5925 }
 0x3af   :  { %v7154_v21 = vpop.eup %5927 }
 0x3b0   :  { %9396 = vst [vmem:[#allocation42_spill] sm:$0xff] %v7154_v21 }
 0x3b1   :  { %1339 = vperm.xlu0 %5854, %v7127_v60   ;;  %1309 = vperm.xlu1 %5853, %v7129_v16  }
 0x3b5   :  { %1345 = vperm.xlu0 %5854, %v7135_v9   ;;  %1312 = vperm.xlu1 %5853, %v7137_v56  }
 0x3b9   :  { %1318 = vperm.xlu1 %5853, %v7142_v40  }
 0x3bd   :  { %1324 = vperm.xlu1 %5853, %v7145_v11  }
 0x3c1   :  { %1330 = vperm.xlu1 %5853, %v7148_v31  }
 0x3c5   :  { %1336 = vperm.xlu1 %5853, %v7151_v51  }
 0x3c9   :  { %1342 = vperm.xlu1 %5853, %v7154_v21  }
 0x400   :  { %v1253_v3 = vpop.permute.xlu1 %1252 }
 0x401   :  { %v1256_v5 = vpop.permute.xlu0 %1255  ;;  %v1350_v47 = vrot.slane %v1253_v3, %v6835_v1 }
 0x402   :  { %v1354_v59 = vrot.slane %v1256_v5, %v6832_v62 }
 0x404   :  { %v1259_v46 = vpop.permute.xlu1 %1258  ;;  %v1355_v5 = vsel %vm875_vm4, %v1354_v59, %v1350_v47 }
 0x405   :  { %v1268_v34 = vpop.permute.xlu0 %1267  ;;  %v1359_v41 = vrot.slane %v1259_v46, %v6835_v1 }
 0x406   :  { %v1372_v50 = vrot.slane %v1268_v34, %v6832_v62 }
 0x408   :  { %v1262_v44 = vpop.permute.xlu1 %1261 }
 0x409   :  { %v1274_v35 = vpop.permute.xlu0 %1273  ;;  %v1363_v37 = vrot.slane %v1262_v44, %v6832_v62 }
 0x40a   :  { %v1381_v44 = vrot.slane %v1274_v35, %v6832_v62 }
 0x40b   :  { %v1364_v28 = vsel %vm875_vm4, %v1363_v37, %v1359_v41 }
 0x40c   :  { %v1265_v38 = vpop.permute.xlu1 %1264 }
 0x40d   :  { %v1280_v8 = vpop.permute.xlu0 %1279  ;;  %v1368_v4 = vrot.slane %v1265_v38, %v6835_v1 }
 0x40e   :  { %v1390_v3 = vrot.slane %v1280_v8, %v6832_v62 }
 0x40f   :  { %v1373_v21 = vsel %vm875_vm4, %v1372_v50, %v1368_v4 }
 0x410   :  { %v1271_v33 = vpop.permute.xlu1 %1270 }
 0x411   :  { %v1286_v22 = vpop.permute.xlu0 %1285  ;;  %v1377_v27 = vrot.slane %v1271_v33, %v6835_v1 }
 0x412   :  { %v1399_v33 = vrot.slane %v1286_v22, %v6832_v62 }
 0x413   :  { %v1382_v46 = vsel %vm875_vm4, %v1381_v44, %v1377_v27 }
 0x414   :  { %v1277_v15 = vpop.permute.xlu1 %1276 }
 0x415   :  { %v1292_v48 = vpop.permute.xlu0 %1291  ;;  %v1386_v6 = vrot.slane %v1277_v15, %v6835_v1  ;;  %v1491_v15 = vsel %vm1012_vm5, %v1364_v28, %v1355_v5 }
 0x416   :  { %v1408_v35 = vrot.slane %v1292_v48, %v6832_v62  ;;  %v1492_v50 = vsel %vm1014_vm6, %v1373_v21, %v1491_v15 }
 0x417   :  { %v1391_v41 = vsel %vm875_vm4, %v1390_v3, %v1386_v6  ;;  %v1493_v8 = vsel %vm1016_vm7, %v1382_v46, %v1492_v50 }
 0x418   :  { %v1283_v26 = vpop.permute.xlu1 %1282  ;;  %v1494_v28 = vsel %vm1018_vm8, %v1391_v41, %v1493_v8 }
 0x419   :  { %v1395_v38 = vrot.slane %v1283_v26, %v6835_v1  ;;  %v1298_v26 = vpop.permute.xlu0 %1297 }
 0x41a   :  { %v1417_v59 = vrot.slane %v1298_v26, %v6832_v62 }
 0x41b   :  { %v1400_v4 = vsel %vm875_vm4, %v1399_v33, %v1395_v38 }
 0x41c   :  { %v1289_v9 = vpop.permute.xlu1 %1288  ;;  %v1495_v6 = vsel %vm1020_vm9, %v1400_v4, %v1494_v28 }
 0x41d   :  { %v1404_v34 = vrot.slane %v1289_v9, %v6835_v1 }
 0x41f   :  { %v1409_v27 = vsel %vm875_vm4, %v1408_v35, %v1404_v34 }
 0x420   :  { %v1295_v47 = vpop.permute.xlu1 %1294  ;;  %v1496_v22 = vsel %vm1022_vm10, %v1409_v27, %v1495_v6  ;;  %v1316_v38 = vpop.permute.xlu0 %1315 }
 0x421   :  { %v1413_v9 = vrot.slane %v1295_v47, %v6835_v1  ;;  %v1444_v28 = vrot.slane %v1316_v38, %v6832_v62 }
 0x423   :  { %v1418_v48 = vsel %vm875_vm4, %v1417_v59, %v1413_v9 }
 0x424   :  { %v1301_v21 = vpop.permute.xlu1 %1300  ;;  %v1497_v37 = vsel %vm1024_vm11, %v1418_v48, %v1496_v22  ;;  %v1322_v46 = vpop.permute.xlu0 %1321 }
 0x425   :  { %v1507_v44 = vsel %vm576_vm0, %v1497_v37, 0.0  ;;  %v1422_v48 = vrot.slane %v1301_v21, %v6835_v1  ;;  %v1453_v22 = vrot.slane %v1322_v46, %v6832_v62 }
 0x426   :  { %1508 = vadd.xlane.f32.xlu1 %v1507_v44 }
 0x428   :  { %v1304_v3 = vpop.permute.xlu1 %1303  ;;  %v1328_v34 = vpop.permute.xlu0 %1327 }
 0x429   :  { %v1426_v27 = vrot.slane %v1304_v3, %v6832_v62 }
 0x42c   :  { %v1307_v5 = vpop.permute.xlu1 %1306  ;;  %v1334_v35 = vpop.permute.xlu0 %1333 }
 0x42d   :  { %v1431_v59 = vrot.slane %v1307_v5, %v6835_v1  ;;  %v1427_v5 = vsel %vm875_vm4, %v1426_v27, %v1422_v48 }
 0x430   :  { %v1310_v33 = vpop.permute.xlu1 %1309  ;;  %v1340_v4 = vpop.permute.xlu0 %1339 }
 0x431   :  { %v1435_v50 = vrot.slane %v1310_v33, %v6832_v62  ;;  %v1462_v33 = vrot.slane %v1328_v34, %v6832_v62  ;;  %v1480_v46 = vrot.slane %v1340_v4, %v6832_v62 }
 0x433   :  { %v1436_v37 = vsel %vm875_vm4, %v1435_v50, %v1431_v59 }
 0x434   :  { %v1313_v15 = vpop.permute.xlu1 %1312  ;;  %v1498_v21 = vsel %vm1012_vm5, %v1436_v37, %v1427_v5  ;;  %v1346_v50 = vpop.permute.xlu0 %1345 }
 0x435   :  { %v1440_v8 = vrot.slane %v1313_v15, %v6835_v1 }
 0x437   :  { %v1445_v3 = vsel %vm875_vm4, %v1444_v28, %v1440_v8 }
 0x438   :  { %v1319_v41 = vpop.permute.xlu1 %1318  ;;  %v1499_v34 = vsel %vm1014_vm6, %v1445_v3, %v1498_v21 }
 0x439   :  { %v1449_v9 = vrot.slane %v1319_v41, %v6835_v1  ;;  %v1471_v41 = vrot.slane %v1334_v35, %v6832_v62 }
 0x43b   :  { %v1454_v38 = vsel %vm875_vm4, %v1453_v22, %v1449_v9  ;;  %v1489_v9 = vrot.slane %v1346_v50, %v6832_v62 }
 0x43c   :  { %v1325_v26 = vpop.permute.xlu1 %1324  ;;  %v1500_v59 = vsel %vm1016_vm7, %v1454_v38, %v1499_v34 }
 0x43d   :  { %v1458_v6 = vrot.slane %v1325_v26, %v6835_v1 }
 0x440   :  { %v1331_v47 = vpop.permute.xlu1 %1330 }
 0x441   :  { %v1467_v44 = vrot.slane %v1331_v47, %v6835_v1  ;;  %v1463_v47 = vsel %vm875_vm4, %v1462_v33, %v1458_v6 }
 0x442   :  { %v1501_v48 = vsel %vm1018_vm8, %v1463_v47, %v1500_v59 }
 0x443   :  { %v1472_v8 = vsel %vm875_vm4, %v1471_v41, %v1467_v44 }
 0x444   :  { %v1337_v15 = vpop.permute.xlu1 %1336  ;;  %v1502_v4 = vsel %vm1020_vm9, %v1472_v8, %v1501_v48 }
 0x445   :  { %v1476_v26 = vrot.slane %v1337_v15, %v6835_v1 }
 0x447   :  { %v1481_v35 = vsel %vm875_vm4, %v1480_v46, %v1476_v26 }
 0x448   :  { %v1343_v27 = vpop.permute.xlu1 %1342  ;;  %v1503_v6 = vsel %vm1022_vm10, %v1481_v35, %v1502_v4 }
 0x449   :  { %v1485_v28 = vrot.slane %v1343_v27, %v6835_v1 }
 0x44b   :  { %v1490_v22 = vsel %vm875_vm4, %v1489_v9, %v1485_v28 }
 0x44c   :  { %v1504_v37 = vsel %vm1024_vm11, %v1490_v22, %v1503_v6 }
 0x44d   :  { %v1510_v44 = vsel %vm576_vm0, %v1504_v37, 0.0 }
 0x44e   :  { %1511 = vadd.xlane.f32.xlu0 %v1510_v44 }
 0x4b3   :  { %v1509_v33 = vpop.xlane.xlu1 %1508 }
 0x4b4   :  { %v1518_v3 = vrot.slane %v1509_v33, %v6974_v0  ;;  %v1522_v15 = vrot.slane %v1509_v33, %v6977_v17  ;;  %v1526_v5 = vrot.slane %v1509_v33, %v6980_v25  ;;  %v1530_v41 = vrot.slane %v1509_v33, %v6983_v58 }
 0x4b5   :  { %v1534_v26 = vrot.slane %v1509_v33, %v6992_v29  ;;  %v1538_v47 = vrot.slane %v1509_v33, %v6997_v55  ;;  %v1542_v27 = vrot.slane %v1509_v33, %v7003_v54  ;;  %v1546_v9 = vrot.slane %v1509_v33, %v7009_v42 }
 0x4b6   :  { %5929 = vrcp.f32 %v1518_v3 }
 0x4b7   :  { %5931 = vrcp.f32 %v1522_v15 }
 0x4b8   :  { %5933 = vrcp.f32 %v1526_v5 }
 0x4b9   :  { %5935 = vrcp.f32 %v1530_v41 }
 0x4ba   :  { %5937 = vrcp.f32 %v1534_v26 }
 0x4bb   :  { %5939 = vrcp.f32 %v1538_v47 }
 0x4bc   :  { %5941 = vrcp.f32 %v1542_v27 }
 0x4bd   :  { %5943 = vrcp.f32 %v1546_v9 }
 0x4c0   :  { %v5930_v38 = vpop.eup %5929 }
 0x4c1   :  { %v1597_v21 = vmul.f32 %v5930_v38, %v7016_v24  ;;  %v1596_v46 = vmul.f32 %v5930_v38, %v7014_v36  ;;  %v5932_v50 = vpop.eup %5931 }
 0x4c2   :  { %v1599_v34 = vmul.f32 %v5932_v50, %v7023_v13  ;;  %v1600_v8 = vmul.f32 %v5932_v50, %v7031_v20  ;;  %v5934_v59 = vpop.eup %5933 }
 0x4c3   :  { %1650 = vperm.xlu1 %5853, %v1597_v21   ;;  %1645 = vperm.xlu0 %5854, %v1596_v46   ;;  %v1602_v24 = vmul.f32 %v5934_v59, %v7038_v30  ;;  %v1603_v36 = vmul.f32 %v5934_v59, %v7025_v2  ;;  %v5936_v35 = vpop.eup %5935 }
 0x4c4   :  { %v1605_v13 = vmul.f32 %v5936_v35, %v7045_v53  ;;  %v1606_v20 = vmul.f32 %v5936_v35, %v7033_v10  ;;  %v5938_v28 = vpop.eup %5937 }
 0x4c5   :  { %v1608_v48 = vmul.f32 %v5938_v28, %v7063_v61  ;;  %v1609_v30 = vmul.f32 %v5938_v28, %v7040_v57  ;;  %v5940_v4 = vpop.eup %5939 }
 0x4c6   :  { %v1611_v2 = vmul.f32 %v5940_v4, %v7076_v23  ;;  %v1612_v22 = vmul.f32 %v5940_v4, %v7052_v39  ;;  %v5942_v6 = vpop.eup %5941 }
 0x4c7   :  { %1655 = vperm.xlu1 %5853, %v1599_v34   ;;  %1660 = vperm.xlu0 %5854, %v1600_v8   ;;  %v1614_v10 = vmul.f32 %v5942_v6, %v7088_v63  ;;  %v1615_v53 = vmul.f32 %v5942_v6, %v7065_v52  ;;  %v5944_v37 = vpop.eup %5943 }
 0x4c8   :  { %v1617_v33 = vmul.f32 %v5944_v37, %v7095_v12  ;;  %v1618_v23 = vmul.f32 %v5944_v37, %v7078_v19  ;;  %v9403_v37 = vld [vmem:[#allocation9_spill] sm:$0xff] }
 0x4cb   :  { %1665 = vperm.xlu1 %5853, %v1602_v24   ;;  %1670 = vperm.xlu0 %5854, %v1603_v36  }
 0x4cf   :  { %1675 = vperm.xlu1 %5853, %v1605_v13   ;;  %1680 = vperm.xlu0 %5854, %v1606_v20  }
 0x4d3   :  { %1685 = vperm.xlu1 %5853, %v1608_v48   ;;  %1690 = vperm.xlu0 %5854, %v1609_v30  }
 0x4d7   :  { %1695 = vperm.xlu1 %5853, %v1611_v2   ;;  %1700 = vperm.xlu0 %5854, %v1612_v22   ;;  %v9401_v22 = vld [vmem:[#allocation12_spill] sm:$0xff] }
 0x4db   :  { %1705 = vperm.xlu1 %5853, %v1614_v10   ;;  %1710 = vperm.xlu0 %5854, %v1615_v53   ;;  %v1512_v61 = vpop.xlane.xlu0 %1511  ;;  %v9402_v10 = vld [vmem:[#allocation7_spill] sm:$0xff] }
 0x4dc   :  { %v1550_v57 = vrot.slane %v1512_v61, %v6974_v0  ;;  %v1554_v44 = vrot.slane %v1512_v61, %v6977_v17  ;;  %v1558_v39 = vrot.slane %v1512_v61, %v6980_v25  ;;  %v1562_v52 = vrot.slane %v1512_v61, %v6983_v58 }
 0x4dd   :  { %v1566_v3 = vrot.slane %v1512_v61, %v6992_v29  ;;  %v1570_v19 = vrot.slane %v1512_v61, %v6997_v55  ;;  %v1574_v21 = vrot.slane %v1512_v61, %v7003_v54  ;;  %v1578_v50 = vrot.slane %v1512_v61, %v7009_v42  ;;  %v9428_v42 = vld [vmem:[#allocation36_spill] sm:$0xff] }
 0x4de   :  { %5945 = vrcp.f32 %v1550_v57  ;;  %v9404_v57 = vld [vmem:[#allocation16_spill] sm:$0xff] }
 0x4df   :  { %1715 = vperm.xlu1 %5853, %v1617_v33   ;;  %1720 = vperm.xlu0 %5854, %v1618_v23   ;;  %5947 = vrcp.f32 %v1554_v44 }
 0x4e0   :  { %5949 = vrcp.f32 %v1558_v39 }
 0x4e1   :  { %5951 = vrcp.f32 %v1562_v52 }
 0x4e2   :  { %5953 = vrcp.f32 %v1566_v3 }
 0x4e3   :  { %5955 = vrcp.f32 %v1570_v19 }
 0x4e4   :  { %5957 = vrcp.f32 %v1574_v21 }
 0x4e5   :  { %5959 = vrcp.f32 %v1578_v50 }
 0x4e8   :  { %v5946_v63 = vpop.eup %5945 }
 0x4e9   :  { %v1621_v15 = vmul.f32 %v5946_v63, %v7113_v32  ;;  %v1620_v5 = vmul.f32 %v5946_v63, %v7105_v7  ;;  %v5948_v12 = vpop.eup %5947  ;;  %v9405_v63 = vld [vmem:[#allocation10_spill] sm:$0xff] }
 0x4ea   :  { %v1624_v41 = vmul.f32 %v5948_v12, %v7129_v16  ;;  %v1623_v38 = vmul.f32 %v5948_v12, %v7121_v43  ;;  %v5950_v26 = vpop.eup %5949 }
 0x4eb   :  { %1730 = vperm.xlu0 %5854, %v1621_v15   ;;  %1725 = vperm.xlu1 %5853, %v1620_v5   ;;  %v1627_v32 = vmul.f32 %v5950_v26, %v7097_v45  ;;  %v1626_v7 = vmul.f32 %v5950_v26, %v7137_v56  ;;  %v5952_v46 = vpop.eup %5951  ;;  %v9406_v15 = vld [vmem:[#allocation20_spill] sm:$0xff]  ;;  %v9407_v26 = vld [vmem:[#allocation11_spill] sm:$0xff] }
 0x4ec   :  { %v1630_v16 = vmul.f32 %v5952_v46, %v7103_v18  ;;  %v1629_v43 = vmul.f32 %v5952_v46, %v7142_v40  ;;  %v5954_v47 = vpop.eup %5953 }
 0x4ed   :  { %v1633_v34 = vmul.f32 %v5954_v47, %v7111_v14  ;;  %v1632_v45 = vmul.f32 %v5954_v47, %v7145_v11  ;;  %v5956_v8 = vpop.eup %5955  ;;  %v9397_v14 = vld [vmem:[#allocation41_spill] sm:$0xff]  ;;  %v9398_v11 = vld [vmem:[#allocation42_spill] sm:$0xff] }
 0x4ee   :  { %v1636_v56 = vmul.f32 %v5956_v8, %v7119_v49  ;;  %v1635_v59 = vmul.f32 %v5956_v8, %v7148_v31  ;;  %v5958_v27 = vpop.eup %5957 }
 0x4ef   :  { %1740 = vperm.xlu0 %5854, %v1624_v41   ;;  %1735 = vperm.xlu1 %5853, %v1623_v38   ;;  %v1639_v18 = vmul.f32 %v5958_v27, %v7127_v60  ;;  %v1638_v40 = vmul.f32 %v5958_v27, %v7151_v51  ;;  %v5960_v24 = vpop.eup %5959  ;;  %v9399_v60 = vld [vmem:[#allocation8_spill] sm:$0xff]  ;;  %v9400_v51 = vld [vmem:[#allocation19_spill] sm:$0xff] }
 0x4f0   :  { %v1642_v36 = vmul.f32 %v5960_v24, %v9397_v14  ;;  %v1641_v35 = vmul.f32 %v5960_v24, %v9398_v11 }
 0x4f3   :  { %1750 = vperm.xlu0 %5854, %v1627_v32   ;;  %1745 = vperm.xlu1 %5853, %v1626_v7   ;;  %v9408_v32 = vld [vmem:[#allocation17_spill] sm:$0xff] }
 0x4f7   :  { %1760 = vperm.xlu0 %5854, %v1630_v16   ;;  %1755 = vperm.xlu1 %5853, %v1629_v43  }
 0x4fb   :  { %1770 = vperm.xlu0 %5854, %v1633_v34   ;;  %1765 = vperm.xlu1 %5853, %v1632_v45   ;;  %v9409_v45 = vld [vmem:[#allocation13_spill] sm:$0xff] }
 0x4ff   :  { %1780 = vperm.xlu0 %5854, %v1636_v56   ;;  %1775 = vperm.xlu1 %5853, %v1635_v59   ;;  %v9410_v56 = vld [vmem:[#allocation21_spill] sm:$0xff] }
 0x503   :  { %1790 = vperm.xlu0 %5854, %v1639_v18   ;;  %1785 = vperm.xlu1 %5853, %v1638_v40  }
 0x507   :  { %1800 = vperm.xlu0 %5854, %v1642_v36   ;;  %1795 = vperm.xlu1 %5853, %v1641_v35  }
 0x542   :  { %v1651_v9 = vpop.permute.xlu1 %1650  ;;  %v1646_v49 = vpop.permute.xlu0 %1645 }
 0x543   :  { %v1804_v6 = vmul.f32 %v1651_v9, %v9401_v22  ;;  %v1803_v53 = vmul.f32 %v1646_v49, %v9402_v10 }
 0x545   :  { %v1850_v12 = vsel %vm630_vm3, %v1804_v6, 0.0  ;;  %v1835_v19 = vsel %vm614_vm2, %v1803_v53, 0.0 }
 0x546   :  { %v1656_v13 = vpop.permute.xlu1 %1655  ;;  %v1661_v31 = vpop.permute.xlu0 %1660 }
 0x547   :  { %v1805_v4 = vmul.f32 %v1656_v13, %v9399_v60  ;;  %v1806_v2 = vmul.f32 %v1661_v31, %v9400_v51  ;;  %v9411_v13 = vld [vmem:[#allocation14_spill] sm:$0xff] }
 0x549   :  { %v1836_v39 = vsel %vm614_vm2, %v1805_v4, 0.0  ;;  %v1851_v52 = vsel %vm630_vm3, %v1806_v2, 0.0 }
 0x54a   :  { %v1666_v20 = vpop.permute.xlu1 %1665  ;;  %v1671_v28 = vpop.permute.xlu0 %1670  ;;  %v1837_v46 = vadd.f32 %v1836_v39, %v1835_v19  ;;  %v1852_v50 = vadd.f32 %v1851_v52, %v1850_v12  ;;  %v9414_v39 = vld [vmem:[#allocation22_spill] sm:$0xff] }
 0x54b   :  { %v1807_v61 = vmul.f32 %v1666_v20, %v9403_v37  ;;  %v1808_v44 = vmul.f32 %v1671_v28, %v9404_v57  ;;  %v9412_v20 = vld [vmem:[#allocation18_spill] sm:$0xff] }
 0x54d   :  { %v1838_v41 = vsel %vm614_vm2, %v1807_v61, 0.0  ;;  %v1853_v38 = vsel %vm630_vm3, %v1808_v44, 0.0 }
 0x54e   :  { %v1676_v48 = vpop.permute.xlu1 %1675  ;;  %v1681_v30 = vpop.permute.xlu0 %1680  ;;  %v1839_v27 = vadd.f32 %v1838_v41, %v1837_v46  ;;  %v1854_v18 = vadd.f32 %v1853_v38, %v1852_v50 }
 0x54f   :  { %v1809_v3 = vmul.f32 %v1676_v48, %v9405_v63  ;;  %v1810_v5 = vmul.f32 %v1681_v30, %v9406_v15 }
 0x551   :  { %v1840_v47 = vsel %vm614_vm2, %v1809_v3, 0.0  ;;  %v1855_v34 = vsel %vm630_vm3, %v1810_v5, 0.0 }
 0x552   :  { %v1686_v33 = vpop.permute.xlu1 %1685  ;;  %v1691_v23 = vpop.permute.xlu0 %1690  ;;  %v1841_v14 = vadd.f32 %v1840_v47, %v1839_v27  ;;  %v1856_v36 = vadd.f32 %v1855_v34, %v1854_v18 }
 0x553   :  { %v1811_v21 = vmul.f32 %v1686_v33, %v9407_v26  ;;  %v1812_v7 = vmul.f32 %v1691_v23, %v9408_v32  ;;  %v9413_v33 = vld [vmem:[#allocation15_spill] sm:$0xff] }
 0x555   :  { %v1842_v40 = vsel %vm614_vm2, %v1811_v21, 0.0  ;;  %v1857_v24 = vsel %vm630_vm3, %v1812_v7, 0.0 }
 0x556   :  { %v1696_v16 = vpop.permute.xlu1 %1695  ;;  %v1701_v43 = vpop.permute.xlu0 %1700  ;;  %v1843_v48 = vadd.f32 %v1842_v40, %v1841_v14  ;;  %v1858_v30 = vadd.f32 %v1857_v24, %v1856_v36  ;;  %v9415_v40 = vld [vmem:[#allocation24_spill] sm:$0xff]  ;;  %v9416_v14 = vld [vmem:[#allocation30_spill] sm:$0xff] }
 0x557   :  { %v1813_v8 = vmul.f32 %v1696_v16, %v9409_v45  ;;  %v1814_v59 = vmul.f32 %v1701_v43, %v9410_v56 }
 0x559   :  { %v1844_v9 = vsel %vm614_vm2, %v1813_v8, 0.0  ;;  %v1859_v49 = vsel %vm630_vm3, %v1814_v59, 0.0 }
 0x55a   :  { %v1706_v11 = vpop.permute.xlu1 %1705  ;;  %v1711_v35 = vpop.permute.xlu0 %1710  ;;  %v1845_v6 = vadd.f32 %v1844_v9, %v1843_v48  ;;  %v1860_v53 = vadd.f32 %v1859_v49, %v1858_v30  ;;  %v9418_v9 = vld [vmem:[#allocation27_spill] sm:$0xff]  ;;  %v9420_v48 = vld [vmem:[#allocation29_spill] sm:$0xff] }
 0x55b   :  { %v1815_v31 = vmul.f32 %v1706_v11, %v9411_v13  ;;  %v1816_v28 = vmul.f32 %v1711_v35, %v9412_v20  ;;  %v9417_v11 = vld [vmem:[#allocation23_spill] sm:$0xff] }
 0x55d   :  { %v1846_v4 = vsel %vm614_vm2, %v1815_v31, 0.0  ;;  %v1861_v2 = vsel %vm630_vm3, %v1816_v28, 0.0  ;;  %v9419_v31 = vld [vmem:[#allocation25_spill] sm:$0xff] }
 0x55e   :  { %v1716_v61 = vpop.permute.xlu1 %1715  ;;  %v1721_v44 = vpop.permute.xlu0 %1720  ;;  %v1847_v3 = vadd.f32 %v1846_v4, %v1845_v6  ;;  %v1862_v5 = vadd.f32 %v1861_v2, %v1860_v53 }
 0x55f   :  { %v1817_v23 = vmul.f32 %v1716_v61, %v9413_v33  ;;  %v1818_v52 = vmul.f32 %v1721_v44, %v9414_v39  ;;  %v9421_v61 = vld [vmem:[#allocation26_spill] sm:$0xff] }
 0x561   :  { %v1848_v12 = vsel %vm614_vm2, %v1817_v23, 0.0  ;;  %v1863_v19 = vsel %vm630_vm3, %v1818_v52, 0.0  ;;  %v9422_v23 = vld [vmem:[#allocation35_spill] sm:$0xff] }
 0x562   :  { %v7301_v41 = vadd.f32 %v1848_v12, %v1847_v3  ;;  %v7303_v38 = vadd.f32 %v1863_v19, %v1862_v5 }
 0x564   :  { %v1895_v21 = vmul.f32 %v7301_v41, %v7301_v41  ;;  %v1896_v7 = vmul.f32 %v7303_v38, %v7303_v38 }
 0x566   :  { %v1899_v46 = vsel %vm614_vm2, %v1895_v21, 0.0  ;;  %v1902_v50 = vsel %vm630_vm3, %v1896_v7, 0.0  ;;  %v9423_v21 = vld [vmem:[#allocation28_spill] sm:$0xff] }
 0x567   :  { %1900 = vadd.xlane.f32.xlu1 %v1899_v46  ;;  %1903 = vadd.xlane.f32.xlu0 %v1902_v50  ;;  %v9424_v46 = vld [vmem:[#allocation33_spill] sm:$0xff] }
 0x56a   :  { %v1726_v16 = vpop.permute.xlu1 %1725  ;;  %v1731_v43 = vpop.permute.xlu0 %1730 }
 0x56b   :  { %v1819_v35 = vmul.f32 %v1726_v16, %v9417_v11  ;;  %v1820_v49 = vmul.f32 %v1731_v43, %v9418_v9 }
 0x56d   :  { %v1865_v3 = vsel %vm614_vm2, %v1819_v35, 0.0  ;;  %v1880_v5 = vsel %vm630_vm3, %v1820_v49, 0.0 }
 0x56e   :  { %v1736_v47 = vpop.permute.xlu1 %1735  ;;  %v1741_v34 = vpop.permute.xlu0 %1740 }
 0x56f   :  { %v1821_v24 = vmul.f32 %v1736_v47, %v9415_v40  ;;  %v1822_v36 = vmul.f32 %v1741_v34, %v9416_v14 }
 0x571   :  { %v1866_v6 = vsel %vm614_vm2, %v1821_v24, 0.0  ;;  %v1881_v53 = vsel %vm630_vm3, %v1822_v36, 0.0  ;;  %v9426_v24 = vld [vmem:[#allocation37_spill] sm:$0xff] }
 0x572   :  { %v1746_v8 = vpop.permute.xlu1 %1745  ;;  %v1751_v59 = vpop.permute.xlu0 %1750  ;;  %v1867_v16 = vadd.f32 %v1866_v6, %v1865_v3  ;;  %v1882_v43 = vadd.f32 %v1881_v53, %v1880_v5  ;;  %v9427_v5 = vld [vmem:[#allocation32_spill] sm:$0xff] }
 0x573   :  { %v1823_v28 = vmul.f32 %v1746_v8, %v9419_v31  ;;  %v1824_v30 = vmul.f32 %v1751_v59, %v9420_v48 }
 0x575   :  { %v1868_v12 = vsel %vm614_vm2, %v1823_v28, 0.0  ;;  %v1883_v19 = vsel %vm630_vm3, %v1824_v30, 0.0 }
 0x576   :  { %v1756_v27 = vpop.permute.xlu1 %1755  ;;  %v1761_v18 = vpop.permute.xlu0 %1760  ;;  %v1869_v35 = vadd.f32 %v1868_v12, %v1867_v16  ;;  %v1884_v49 = vadd.f32 %v1883_v19, %v1882_v43 }
 0x577   :  { %v1825_v44 = vmul.f32 %v1756_v27, %v9421_v61  ;;  %v1826_v52 = vmul.f32 %v1761_v18, %v9422_v23  ;;  %v9425_v27 = vld [vmem:[#allocation31_spill] sm:$0xff] }
 0x579   :  { %v1870_v8 = vsel %vm614_vm2, %v1825_v44, 0.0  ;;  %v1885_v59 = vsel %vm630_vm3, %v1826_v52, 0.0 }
 0x57a   :  { %v1766_v4 = vpop.permute.xlu1 %1765  ;;  %v1771_v2 = vpop.permute.xlu0 %1770 }
 0x57b   :  { %v1827_v7 = vmul.f32 %v1766_v4, %v9423_v21  ;;  %v1828_v50 = vmul.f32 %v1771_v2, %v9424_v46  ;;  %v1871_v4 = vadd.f32 %v1870_v8, %v1869_v35  ;;  %v1886_v2 = vadd.f32 %v1885_v59, %v1884_v49  ;;  %v9429_v8 = vld [vmem:[#allocation34_spill] sm:$0xff] }
 0x57c   :  { %v9430_v35 = vld [vmem:[#allocation38_spill] sm:$0xff] }
 0x57d   :  { %v1872_v28 = vsel %vm614_vm2, %v1827_v7, 0.0  ;;  %v1887_v30 = vsel %vm630_vm3, %v1828_v50, 0.0 }
 0x57e   :  { %v1776_v47 = vpop.permute.xlu1 %1775  ;;  %v1781_v34 = vpop.permute.xlu0 %1780  ;;  %v1873_v54 = vadd.f32 %v1872_v28, %v1871_v4 }
 0x57f   :  { %v1829_v18 = vmul.f32 %v1776_v47, %v9425_v27  ;;  %v1830_v36 = vmul.f32 %v1781_v34, %v9426_v24  ;;  %v1888_v34 = vadd.f32 %v1887_v30, %v1886_v2 }
 0x581   :  { %v1874_v3 = vsel %vm614_vm2, %v1829_v18, 0.0  ;;  %v1889_v44 = vsel %vm630_vm3, %v1830_v36, 0.0 }
 0x582   :  { %v1786_v6 = vpop.permute.xlu1 %1785  ;;  %v1791_v53 = vpop.permute.xlu0 %1790  ;;  %v1875_v7 = vadd.f32 %v1874_v3, %v1873_v54  ;;  %v1890_v50 = vadd.f32 %v1889_v44, %v1888_v34 }
 0x583   :  { %v1831_v52 = vmul.f32 %v1786_v6, %v9427_v5  ;;  %v1832_v47 = vmul.f32 %v1791_v53, %v9428_v42 }
 0x585   :  { %v1876_v12 = vsel %vm614_vm2, %v1831_v52, 0.0  ;;  %v1891_v19 = vsel %vm630_vm3, %v1832_v47, 0.0 }
 0x586   :  { %v1796_v16 = vpop.permute.xlu1 %1795  ;;  %v1801_v43 = vpop.permute.xlu0 %1800  ;;  %v1877_v49 = vadd.f32 %v1876_v12, %v1875_v7  ;;  %v1892_v36 = vadd.f32 %v1891_v19, %v1890_v50 }
 0x587   :  { %v1833_v59 = vmul.f32 %v1796_v16, %v9429_v8  ;;  %v1834_v18 = vmul.f32 %v1801_v43, %v9430_v35 }
 0x589   :  { %v1878_v6 = vsel %vm614_vm2, %v1833_v59, 0.0  ;;  %v1893_v53 = vsel %vm630_vm3, %v1834_v18, 0.0 }
 0x58a   :  { %v7343_v28 = vadd.f32 %v1878_v6, %v1877_v49  ;;  %v7345_v30 = vadd.f32 %v1893_v53, %v1892_v36 }
 0x58c   :  { %v1897_v54 = vmul.f32 %v7343_v28, %v7343_v28  ;;  %v1898_v4 = vmul.f32 %v7345_v30, %v7345_v30 }
 0x58e   :  { %v1905_v2 = vsel %vm614_vm2, %v1897_v54, 0.0  ;;  %v1908_v3 = vsel %vm630_vm3, %v1898_v4, 0.0 }
 0x58f   :  { %1906 = vadd.xlane.f32.xlu0 %v1905_v2  ;;  %1909 = vadd.xlane.f32.xlu1 %v1908_v3 }
 0x5f4   :  { %v1901_v44 = vpop.xlane.xlu1 %1900  ;;  %v1904_v52 = vpop.xlane.xlu0 %1903 }
 0x5f5   :  { %v1911_v47 = vadd.f32 1e-07, %v1901_v44  ;;  %v1912_v34 = vadd.f32 1e-07, %v1904_v52 }
 0x5f7   :  { %5961 = vrsqrt.f32 %v1911_v47 }
 0x5f8   :  { %5963 = vrsqrt.f32 %v1912_v34 }
 0x601   :  { %v5962_v12 = vpop.eup %5961 }
 0x602   :  { %v5964_v19 = vpop.eup %5963  ;;  %v1919_v7 = vmul.f32 %v5962_v12, %v7301_v41 }
 0x603   :  { %v1920_v50 = vmul.f32 %v5964_v19, %v7303_v38 }
 0x604   :  { %v1923_v16 = vmul.f32 %v1919_v7, %v9402_v10  ;;  %v1925_v18 = vmul.f32 %v1919_v7, %v9399_v60  ;;  %v1927_v41 = vmul.f32 %v1919_v7, %v9403_v37  ;;  %v1929_v4 = vmul.f32 %v1919_v7, %v9405_v63 }
 0x605   :  { %v1924_v43 = vmul.f32 %v1920_v50, %v9401_v22  ;;  %v1926_v36 = vmul.f32 %v1920_v50, %v9400_v51  ;;  %v1928_v53 = vmul.f32 %v1920_v50, %v9404_v57  ;;  %v1930_v3 = vmul.f32 %v1920_v50, %v9406_v15 }
 0x606   :  { %v1955_v59 = vsel %vm614_vm2, %v1923_v16, 0.0  ;;  %v1961_v6 = vsel %vm614_vm2, %v1925_v18, 0.0  ;;  %v1967_v54 = vsel %vm614_vm2, %v1927_v41, 0.0  ;;  %v1973_v44 = vsel %vm614_vm2, %v1929_v4, 0.0 }
 0x607   :  { %1956 = vadd.xlane.f32.xlu0 %v1955_v59  ;;  %v1958_v49 = vsel %vm630_vm3, %v1924_v43, 0.0  ;;  %v1964_v38 = vsel %vm630_vm3, %v1926_v36, 0.0  ;;  %v1970_v2 = vsel %vm630_vm3, %v1928_v53, 0.0  ;;  %v1931_v52 = vmul.f32 %v1919_v7, %v9407_v26 }
 0x608   :  { %1959 = vadd.xlane.f32.xlu1 %v1958_v49  ;;  %v1976_v47 = vsel %vm630_vm3, %v1930_v3, 0.0  ;;  %v1932_v34 = vmul.f32 %v1920_v50, %v9408_v32  ;;  %v1933_v19 = vmul.f32 %v1919_v7, %v9409_v45  ;;  %v1934_v43 = vmul.f32 %v1920_v50, %v9410_v56 }
 0x609   :  { %v1979_v12 = vsel %vm614_vm2, %v1931_v52, 0.0  ;;  %v1935_v18 = vmul.f32 %v1919_v7, %v9411_v13  ;;  %v1936_v36 = vmul.f32 %v1920_v50, %v9412_v20  ;;  %v1937_v4 = vmul.f32 %v1919_v7, %v9413_v33 }
 0x60a   :  { %v1982_v16 = vsel %vm630_vm3, %v1932_v34, 0.0  ;;  %v1985_v59 = vsel %vm614_vm2, %v1933_v19, 0.0  ;;  %v1988_v49 = vsel %vm630_vm3, %v1934_v43, 0.0  ;;  %v1938_v3 = vmul.f32 %v1920_v50, %v9414_v39 }
 0x60b   :  { %1962 = vadd.xlane.f32.xlu0 %v1961_v6 }
 0x60c   :  { %1965 = vadd.xlane.f32.xlu1 %v1964_v38  ;;  %v2000_v52 = vsel %vm630_vm3, %v1938_v3, 0.0 }
 0x60f   :  { %1968 = vadd.xlane.f32.xlu0 %v1967_v54  ;;  %v1991_v54 = vsel %vm614_vm2, %v1935_v18, 0.0 }
 0x610   :  { %1971 = vadd.xlane.f32.xlu1 %v1970_v2  ;;  %v1994_v2 = vsel %vm630_vm3, %v1936_v36, 0.0 }
 0x613   :  { %1974 = vadd.xlane.f32.xlu0 %v1973_v44  ;;  %v1997_v44 = vsel %vm614_vm2, %v1937_v4, 0.0 }
 0x614   :  { %1977 = vadd.xlane.f32.xlu1 %v1976_v47 }
 0x617   :  { %1980 = vadd.xlane.f32.xlu0 %v1979_v12 }
 0x618   :  { %1983 = vadd.xlane.f32.xlu1 %v1982_v16 }
 0x61b   :  { %1986 = vadd.xlane.f32.xlu0 %v1985_v59 }
 0x61c   :  { %1989 = vadd.xlane.f32.xlu1 %v1988_v49  ;;  %v1910_v6 = vpop.xlane.xlu1 %1909  ;;  %v1907_v41 = vpop.xlane.xlu0 %1906 }
 0x61d   :  { %v1914_v38 = vadd.f32 1e-07, %v1910_v6  ;;  %v1913_v53 = vadd.f32 1e-07, %v1907_v41 }
 0x61f   :  { %5965 = vrsqrt.f32 %v1914_v38  ;;  %1992 = vadd.xlane.f32.xlu0 %v1991_v54 }
 0x620   :  { %5967 = vrsqrt.f32 %v1913_v53  ;;  %1995 = vadd.xlane.f32.xlu1 %v1994_v2 }
 0x623   :  { %1998 = vadd.xlane.f32.xlu0 %v1997_v44 }
 0x624   :  { %2001 = vadd.xlane.f32.xlu1 %v2000_v52 }
 0x629   :  { %v5966_v47 = vpop.eup %5965 }
 0x62a   :  { %v5968_v34 = vpop.eup %5967  ;;  %v1922_v12 = vmul.f32 %v5966_v47, %v7345_v30 }
 0x62b   :  { %v1921_v7 = vmul.f32 %v5968_v34, %v7343_v28 }
 0x62c   :  { %v1940_v19 = vmul.f32 %v1922_v12, %v9418_v9  ;;  %v1942_v43 = vmul.f32 %v1922_v12, %v9416_v14  ;;  %v1944_v30 = vmul.f32 %v1922_v12, %v9420_v48  ;;  %v1946_v41 = vmul.f32 %v1922_v12, %v9422_v23 }
 0x62d   :  { %v1939_v16 = vmul.f32 %v1921_v7, %v9417_v11  ;;  %v1941_v18 = vmul.f32 %v1921_v7, %v9415_v40  ;;  %v1943_v36 = vmul.f32 %v1921_v7, %v9419_v31  ;;  %v1945_v53 = vmul.f32 %v1921_v7, %v9421_v61 }
 0x62e   :  { %v2006_v50 = vsel %vm630_vm3, %v1940_v19, 0.0  ;;  %v2012_v49 = vsel %vm630_vm3, %v1942_v43, 0.0  ;;  %v2018_v6 = vsel %vm630_vm3, %v1944_v30, 0.0  ;;  %v2024_v54 = vsel %vm630_vm3, %v1946_v41, 0.0 }
 0x62f   :  { %2007 = vadd.xlane.f32.xlu1 %v2006_v50  ;;  %v2003_v59 = vsel %vm614_vm2, %v1939_v16, 0.0  ;;  %v2009_v28 = vsel %vm614_vm2, %v1941_v18, 0.0  ;;  %v2015_v38 = vsel %vm614_vm2, %v1943_v36, 0.0  ;;  %v1948_v4 = vmul.f32 %v1922_v12, %v9424_v46 }
 0x630   :  { %2004 = vadd.xlane.f32.xlu0 %v2003_v59  ;;  %v2021_v2 = vsel %vm614_vm2, %v1945_v53, 0.0  ;;  %v1947_v3 = vmul.f32 %v1921_v7, %v9423_v21  ;;  %v1950_v52 = vmul.f32 %v1922_v12, %v9426_v24  ;;  %v1949_v34 = vmul.f32 %v1921_v7, %v9425_v27 }
 0x631   :  { %v2030_v44 = vsel %vm630_vm3, %v1948_v4, 0.0  ;;  %v1952_v16 = vmul.f32 %v1922_v12, %v9428_v42  ;;  %v1951_v43 = vmul.f32 %v1921_v7, %v9427_v5  ;;  %v1954_v18 = vmul.f32 %v1922_v12, %v9430_v35 }
 0x632   :  { %v2027_v47 = vsel %vm614_vm2, %v1947_v3, 0.0  ;;  %v2036_v19 = vsel %vm630_vm3, %v1950_v52, 0.0  ;;  %v2033_v50 = vsel %vm614_vm2, %v1949_v34, 0.0  ;;  %v1953_v30 = vmul.f32 %v1921_v7, %v9429_v8 }
 0x633   :  { %2013 = vadd.xlane.f32.xlu1 %v2012_v49  ;;  %v2042_v59 = vsel %vm630_vm3, %v1952_v16, 0.0  ;;  %v2039_v49 = vsel %vm614_vm2, %v1951_v43, 0.0 }
 0x634   :  { %2010 = vadd.xlane.f32.xlu0 %v2009_v28  ;;  %v2048_v28 = vsel %vm630_vm3, %v1954_v18, 0.0  ;;  %v2045_v36 = vsel %vm614_vm2, %v1953_v30, 0.0 }
 0x637   :  { %2019 = vadd.xlane.f32.xlu1 %v2018_v6 }
 0x638   :  { %2016 = vadd.xlane.f32.xlu0 %v2015_v38 }
 0x63b   :  { %2025 = vadd.xlane.f32.xlu1 %v2024_v54 }
 0x63c   :  { %2022 = vadd.xlane.f32.xlu0 %v2021_v2 }
 0x63f   :  { %2031 = vadd.xlane.f32.xlu1 %v2030_v44 }
 0x640   :  { %2028 = vadd.xlane.f32.xlu0 %v2027_v47 }
 0x643   :  { %2037 = vadd.xlane.f32.xlu1 %v2036_v19 }
 0x644   :  { %2034 = vadd.xlane.f32.xlu0 %v2033_v50 }
 0x647   :  { %2043 = vadd.xlane.f32.xlu1 %v2042_v59 }
 0x648   :  { %2040 = vadd.xlane.f32.xlu0 %v2039_v49 }
 0x64b   :  { %2049 = vadd.xlane.f32.xlu1 %v2048_v28 }
 0x64c   :  { %2046 = vadd.xlane.f32.xlu0 %v2045_v36 }
 0x694   :  { %v7421_v6 = vpop.xlane.xlu0 %1956 }
 0x695   :  { %v7423_v41 = vpop.xlane.xlu1 %1959  ;;  %v2086_v43 = vrot.slane %v7421_v6, %v6835_v1 }
 0x696   :  { %v2090_v50 = vrot.slane %v7423_v41, %v6832_v62 }
 0x698   :  { %v7425_v38 = vpop.xlane.xlu0 %1962  ;;  %v2091_v27 = vsel %vm875_vm4, %v2090_v50, %v2086_v43 }
 0x699   :  { %v7427_v53 = vpop.xlane.xlu1 %1965  ;;  %v2095_v52 = vrot.slane %v7425_v38, %v6835_v1 }
 0x69a   :  { %v2099_v44 = vrot.slane %v7427_v53, %v6832_v62 }
 0x69c   :  { %v7429_v12 = vpop.xlane.xlu0 %1968  ;;  %v2100_v28 = vsel %vm875_vm4, %v2099_v44, %v2095_v52 }
 0x69d   :  { %v7431_v54 = vpop.xlane.xlu1 %1971  ;;  %v2104_v19 = vrot.slane %v7429_v12, %v6835_v1  ;;  %v2227_v52 = vsel %vm1012_vm5, %v2100_v28, %v2091_v27 }
 0x69e   :  { %v2108_v34 = vrot.slane %v7431_v54, %v6832_v62 }
 0x6a0   :  { %v7433_v7 = vpop.xlane.xlu0 %1974  ;;  %v2109_v42 = vsel %vm875_vm4, %v2108_v34, %v2104_v19 }
 0x6a1   :  { %v7435_v4 = vpop.xlane.xlu1 %1977  ;;  %v2113_v18 = vrot.slane %v7433_v7, %v6835_v1  ;;  %v2228_v23 = vsel %vm1014_vm6, %v2109_v42, %v2227_v52 }
 0x6a2   :  { %v2117_v59 = vrot.slane %v7435_v4, %v6832_v62 }
 0x6a4   :  { %v7437_v2 = vpop.xlane.xlu0 %1980  ;;  %v2118_v46 = vsel %vm875_vm4, %v2117_v59, %v2113_v18 }
 0x6a5   :  { %v7439_v3 = vpop.xlane.xlu1 %1983  ;;  %v2122_v30 = vrot.slane %v7437_v2, %v6835_v1  ;;  %v2229_v61 = vsel %vm1016_vm7, %v2118_v46, %v2228_v23 }
 0x6a6   :  { %v2126_v49 = vrot.slane %v7439_v3, %v6832_v62 }
 0x6a8   :  { %v7445_v47 = vpop.xlane.xlu0 %1986  ;;  %v2127_v21 = vsel %vm875_vm4, %v2126_v49, %v2122_v30 }
 0x6a9   :  { %v7451_v16 = vpop.xlane.xlu1 %1989  ;;  %v2131_v35 = vrot.slane %v7445_v47, %v6835_v1  ;;  %v2230_v59 = vsel %vm1018_vm8, %v2127_v21, %v2229_v61 }
 0x6aa   :  { %v2135_v36 = vrot.slane %v7451_v16, %v6832_v62 }
 0x6ac   :  { %v7470_v8 = vpop.xlane.xlu0 %1992  ;;  %v2136_v34 = vsel %vm875_vm4, %v2135_v36, %v2131_v35 }
 0x6ad   :  { %v7473_v5 = vpop.xlane.xlu1 %1995  ;;  %v2140_v24 = vrot.slane %v7470_v8, %v6835_v1  ;;  %v2231_v42 = vsel %vm1020_vm9, %v2136_v34, %v2230_v59 }
 0x6ae   :  { %v2144_v44 = vrot.slane %v7473_v5, %v6832_v62 }
 0x6b0   :  { %v7485_v19 = vpop.xlane.xlu0 %1998  ;;  %v2145_v43 = vsel %vm875_vm4, %v2144_v44, %v2140_v24 }
 0x6b1   :  { %v7488_v48 = vpop.xlane.xlu1 %2001  ;;  %v2149_v50 = vrot.slane %v7485_v19, %v6835_v1  ;;  %v2232_v18 = vsel %vm1022_vm10, %v2145_v43, %v2231_v42 }
 0x6b2   :  { %v2153_v27 = vrot.slane %v7488_v48, %v6832_v62 }
 0x6b4   :  { %v2154_v35 = vsel %vm875_vm4, %v2153_v27, %v2149_v50 }
 0x6b5   :  { %v2233_v23 = vsel %vm1024_vm11, %v2154_v35, %v2232_v18 }
 0x6b6   :  { %v2243_v46 = vsel %vm576_vm0, %v2233_v23, -inf }
 0x6b7   :  { %2244 = vmax.xlane.f32.xlu0 %v2243_v46 }
 0x6bc   :  { %v7501_v49 = vpop.xlane.xlu1 %2007 }
 0x6bd   :  { %v7503_v30 = vpop.xlane.xlu0 %2004  ;;  %v2162_v18 = vrot.slane %v7501_v49, %v6832_v62 }
 0x6be   :  { %v2158_v23 = vrot.slane %v7503_v30, %v6835_v1 }
 0x6c0   :  { %v7505_v24 = vpop.xlane.xlu1 %2013  ;;  %v2163_v45 = vsel %vm875_vm4, %v2162_v18, %v2158_v23 }
 0x6c1   :  { %v7507_v28 = vpop.xlane.xlu0 %2010  ;;  %v2171_v50 = vrot.slane %v7505_v24, %v6832_v62 }
 0x6c2   :  { %v2167_v43 = vrot.slane %v7507_v28, %v6835_v1 }
 0x6c4   :  { %v7509_v61 = vpop.xlane.xlu1 %2019  ;;  %v2172_v14 = vsel %vm875_vm4, %v2171_v50, %v2167_v43 }
 0x6c5   :  { %v7511_v21 = vpop.xlane.xlu0 %2016  ;;  %v2180_v59 = vrot.slane %v7509_v61, %v6832_v62  ;;  %v2234_v43 = vsel %vm1012_vm5, %v2172_v14, %v2163_v45 }
 0x6c6   :  { %v2176_v42 = vrot.slane %v7511_v21, %v6835_v1 }
 0x6c8   :  { %v7513_v36 = vpop.xlane.xlu1 %2025  ;;  %v2181_v20 = vsel %vm875_vm4, %v2180_v59, %v2176_v42 }
 0x6c9   :  { %v7515_v44 = vpop.xlane.xlu0 %2022  ;;  %v2189_v46 = vrot.slane %v7513_v36, %v6832_v62  ;;  %v2235_v15 = vsel %vm1014_vm6, %v2181_v20, %v2234_v43 }
 0x6ca   :  { %v2185_v31 = vrot.slane %v7515_v44, %v6835_v1 }
 0x6cc   :  { %v7517_v52 = vpop.xlane.xlu1 %2031  ;;  %v2190_v32 = vsel %vm875_vm4, %v2189_v46, %v2185_v31 }
 0x6cd   :  { %v7519_v34 = vpop.xlane.xlu0 %2028  ;;  %v2198_v9 = vrot.slane %v7517_v52, %v6832_v62  ;;  %v2236_v63 = vsel %vm1016_vm7, %v2190_v32, %v2235_v15 }
 0x6ce   :  { %v2194_v11 = vrot.slane %v7519_v34, %v6835_v1 }
 0x6d0   :  { %v7525_v27 = vpop.xlane.xlu1 %2037  ;;  %v2199_v26 = vsel %vm875_vm4, %v2198_v9, %v2194_v11 }
 0x6d1   :  { %v7531_v35 = vpop.xlane.xlu0 %2034  ;;  %v2207_v40 = vrot.slane %v7525_v27, %v6832_v62  ;;  %v2237_v14 = vsel %vm1018_vm8, %v2199_v26, %v2236_v63 }
 0x6d2   :  { %v2203_v39 = vrot.slane %v7531_v35, %v6835_v1 }
 0x6d4   :  { %v7550_v33 = vpop.xlane.xlu1 %2043  ;;  %v2208_v59 = vsel %vm875_vm4, %v2207_v40, %v2203_v39 }
 0x6d5   :  { %v2216_v13 = vrot.slane %v7550_v33, %v6832_v62  ;;  %v7555_v56 = vpop.xlane.xlu0 %2040  ;;  %v2238_v20 = vsel %vm1020_vm9, %v2208_v59, %v2237_v14 }
 0x6d6   :  { %v2212_v50 = vrot.slane %v7555_v56, %v6835_v1 }
 0x6d8   :  { %v7565_v42 = vpop.xlane.xlu1 %2049  ;;  %v2217_v31 = vsel %vm875_vm4, %v2216_v13, %v2212_v50 }
 0x6d9   :  { %v2225_v18 = vrot.slane %v7565_v42, %v6832_v62  ;;  %v7570_v23 = vpop.xlane.xlu0 %2046  ;;  %v2239_v40 = vsel %vm1022_vm10, %v2217_v31, %v2238_v20 }
 0x6da   :  { %v2221_v45 = vrot.slane %v7570_v23, %v6835_v1 }
 0x6dc   :  { %v2226_v39 = vsel %vm875_vm4, %v2225_v18, %v2221_v45 }
 0x6dd   :  { %v2240_v15 = vsel %vm1024_vm11, %v2226_v39, %v2239_v40 }
 0x6de   :  { %v2246_v32 = vsel %vm576_vm0, %v2240_v15, -inf }
 0x6df   :  { %2247 = vmax.xlane.f32.xlu1 %v2246_v32 }
 0x744   :  { %v2245_v11 = vpop.xlane.xlu0 %2244 }
 0x745   :  { %v2254_v9 = vrot.slane %v2245_v11, %v6974_v0  ;;  %v2258_v13 = vrot.slane %v2245_v11, %v6977_v17  ;;  %v2262_v26 = vrot.slane %v2245_v11, %v6980_v25  ;;  %v2266_v31 = vrot.slane %v2245_v11, %v6983_v58 }
 0x746   :  { %v2274_v15 = vrot.slane %v2245_v11, %v6997_v55 }
 0x747   :  { %v2331_v46 = vsub.f32 %v7421_v6, %v2254_v9  ;;  %v2332_v63 = vsub.f32 %v7423_v41, %v2254_v9  ;;  %v2334_v50 = vsub.f32 %v7427_v53, %v2258_v13  ;;  %v2333_v43 = vsub.f32 %v7425_v38, %v2258_v13 }
 0x748   :  { %v2336_v45 = vsub.f32 %v7431_v54, %v2262_v26  ;;  %v2335_v20 = vsub.f32 %v7429_v12, %v2262_v26  ;;  %v2270_v41 = vrot.slane %v2245_v11, %v6992_v29  ;;  %v2338_v39 = vsub.f32 %v7435_v4, %v2266_v31  ;;  %v9431_v4 = vld [vmem:[#allocation39_spill] sm:$0xff] }
 0x749   :  { %v2363_v59 = vmul.f32 1.442695, %v2331_v46  ;;  %v2365_v18 = vmul.f32 1.442695, %v2332_v63  ;;  %v2369_v14 = vmul.f32 1.442695, %v2334_v50  ;;  %v2337_v38 = vsub.f32 %v7433_v7, %v2266_v31 }
 0x74a   :  { %v2367_v6 = vmul.f32 1.442695, %v2333_v43  ;;  %v2373_v53 = vmul.f32 1.442695, %v2336_v45  ;;  %v2371_v40 = vmul.f32 1.442695, %v2335_v20  ;;  %v2340_v54 = vsub.f32 %v7439_v3, %v2270_v41 }
 0x74b   :  { %5969 = vpow2.f32 %v2363_v59  ;;  %v2377_v32 = vmul.f32 1.442695, %v2338_v39  ;;  %v2339_v12 = vsub.f32 %v7437_v2, %v2270_v41  ;;  %v2375_v9 = vmul.f32 1.442695, %v2337_v38  ;;  %v9432_v59 = vld [vmem:[#allocation40_spill] sm:$0xff] }
 0x74c   :  { %5971 = vpow2.f32 %v2365_v18  ;;  %v2278_v7 = vrot.slane %v2245_v11, %v9431_v4  ;;  %v2342_v63 = vsub.f32 %v7451_v16, %v2274_v15  ;;  %v2381_v26 = vmul.f32 1.442695, %v2340_v54 }
 0x74d   :  { %5973 = vpow2.f32 %v2369_v14  ;;  %v2341_v3 = vsub.f32 %v7445_v47, %v2274_v15  ;;  %v2379_v2 = vmul.f32 1.442695, %v2339_v12  ;;  %v2282_v18 = vrot.slane %v2245_v11, %v9432_v59 }
 0x74e   :  { %5975 = vpow2.f32 %v2367_v6  ;;  %v2344_v31 = vsub.f32 %v7473_v5, %v2278_v7  ;;  %v2385_v16 = vmul.f32 1.442695, %v2342_v63  ;;  %v2343_v45 = vsub.f32 %v7470_v8, %v2278_v7 }
 0x74f   :  { %5977 = vpow2.f32 %v2373_v53  ;;  %v2383_v47 = vmul.f32 1.442695, %v2341_v3  ;;  %v2346_v6 = vsub.f32 %v7488_v48, %v2282_v18  ;;  %v2345_v5 = vsub.f32 %v7485_v19, %v2282_v18 }
 0x750   :  { %5979 = vpow2.f32 %v2371_v40  ;;  %v2389_v11 = vmul.f32 1.442695, %v2344_v31  ;;  %v2387_v41 = vmul.f32 1.442695, %v2343_v45 }
 0x751   :  { %5981 = vpow2.f32 %v2377_v32  ;;  %v2393_v53 = vmul.f32 1.442695, %v2346_v6  ;;  %v2391_v48 = vmul.f32 1.442695, %v2345_v5 }
 0x752   :  { %5983 = vpow2.f32 %v2375_v9 }
 0x753   :  { %5985 = vpow2.f32 %v2381_v26 }
 0x754   :  { %5987 = vpow2.f32 %v2379_v2 }
 0x755   :  { %v7597_v13 = vpop.eup %5969  ;;  %5989 = vpow2.f32 %v2385_v16 }
 0x756   :  { %v7599_v46 = vpop.eup %5971  ;;  %2460 = vperm.xlu0 %5854, %v7597_v13   ;;  %5991 = vpow2.f32 %v2383_v47 }
 0x757   :  { %2463 = vperm.xlu1 %5853, %v7599_v46   ;;  %v7606_v50 = vpop.eup %5973  ;;  %5993 = vpow2.f32 %v2389_v11 }
 0x758   :  { %v7608_v43 = vpop.eup %5975  ;;  %5995 = vpow2.f32 %v2387_v41 }
 0x759   :  { %v7615_v14 = vpop.eup %5977  ;;  %5997 = vpow2.f32 %v2393_v53 }
 0x75a   :  { %2469 = vperm.xlu0 %5854, %v7606_v50   ;;  %v7617_v20 = vpop.eup %5979  ;;  %5999 = vpow2.f32 %v2391_v48 }
 0x75b   :  { %2466 = vperm.xlu1 %5853, %v7608_v43   ;;  %v7623_v39 = vpop.eup %5981 }
 0x75c   :  { %v7625_v8 = vpop.eup %5983 }
 0x75d   :  { %v7629_v38 = vpop.eup %5985 }
 0x75e   :  { %2475 = vperm.xlu0 %5854, %v7615_v14   ;;  %v7631_v40 = vpop.eup %5987 }
 0x75f   :  { %2472 = vperm.xlu1 %5853, %v7617_v20   ;;  %v7635_v19 = vpop.eup %5989 }
 0x760   :  { %v7637_v15 = vpop.eup %5991 }
 0x761   :  { %v7643_v9 = vpop.eup %5993 }
 0x762   :  { %2481 = vperm.xlu0 %5854, %v7623_v39   ;;  %v7647_v26 = vpop.eup %5995 }
 0x763   :  { %2478 = vperm.xlu1 %5853, %v7625_v8   ;;  %v7654_v31 = vpop.eup %5997 }
 0x764   :  { %v7656_v47 = vpop.eup %5999 }
 0x766   :  { %2487 = vperm.xlu0 %5854, %v7629_v38  }
 0x767   :  { %2484 = vperm.xlu1 %5853, %v7631_v40  }
 0x76a   :  { %2493 = vperm.xlu0 %5854, %v7635_v19  }
 0x76b   :  { %2490 = vperm.xlu1 %5853, %v7637_v15  }
 0x76c   :  { %v2248_v54 = vpop.xlane.xlu1 %2247 }
 0x76d   :  { %v2286_v32 = vrot.slane %v2248_v54, %v6974_v0  ;;  %v2290_v12 = vrot.slane %v2248_v54, %v6977_v17  ;;  %v2294_v3 = vrot.slane %v2248_v54, %v6980_v25  ;;  %v2302_v11 = vrot.slane %v2248_v54, %v6992_v29 }
 0x76e   :  { %2499 = vperm.xlu0 %5854, %v7643_v9  }
 0x76f   :  { %v2347_v7 = vsub.f32 %v7503_v30, %v2286_v32  ;;  %v2348_v63 = vsub.f32 %v7501_v49, %v2286_v32  ;;  %v2349_v2 = vsub.f32 %v7507_v28, %v2290_v12  ;;  %2496 = vperm.xlu1 %5853, %v7647_v26   ;;  %v2350_v18 = vsub.f32 %v7505_v24, %v2290_v12 }
 0x770   :  { %v2298_v49 = vrot.slane %v2248_v54, %v6983_v58  ;;  %v2351_v30 = vsub.f32 %v7511_v21, %v2294_v3  ;;  %v2352_v28 = vsub.f32 %v7509_v61, %v2294_v3  ;;  %v2306_v21 = vrot.slane %v2248_v54, %v6997_v55 }
 0x771   :  { %v2395_v16 = vmul.f32 1.442695, %v2347_v7  ;;  %v2397_v45 = vmul.f32 1.442695, %v2348_v63  ;;  %v2399_v6 = vmul.f32 1.442695, %v2349_v2  ;;  %v2355_v32 = vsub.f32 %v7519_v34, %v2302_v11 }
 0x772   :  { %2505 = vperm.xlu0 %5854, %v7654_v31   ;;  %v2401_v24 = vmul.f32 1.442695, %v2350_v18  ;;  %v2353_v5 = vsub.f32 %v7515_v44, %v2298_v49  ;;  %v2403_v41 = vmul.f32 1.442695, %v2351_v30  ;;  %v2354_v53 = vsub.f32 %v7513_v36, %v2298_v49 }
 0x773   :  { %6001 = vpow2.f32 %v2395_v16  ;;  %2502 = vperm.xlu1 %5853, %v7656_v47   ;;  %v2405_v48 = vmul.f32 1.442695, %v2352_v28  ;;  %v2356_v61 = vsub.f32 %v7517_v52, %v2302_v11  ;;  %v2310_v36 = vrot.slane %v2248_v54, %v9431_v4 }
 0x774   :  { %6003 = vpow2.f32 %v2397_v45  ;;  %v2407_v12 = vmul.f32 1.442695, %v2353_v5  ;;  %v2409_v7 = vmul.f32 1.442695, %v2354_v53  ;;  %v2357_v44 = vsub.f32 %v7531_v35, %v2306_v21 }
 0x775   :  { %6005 = vpow2.f32 %v2399_v6  ;;  %v2411_v2 = vmul.f32 1.442695, %v2355_v32  ;;  %v2358_v34 = vsub.f32 %v7525_v27, %v2306_v21  ;;  %v2413_v52 = vmul.f32 1.442695, %v2356_v61 }
 0x776   :  { %6007 = vpow2.f32 %v2401_v24  ;;  %v2314_v45 = vrot.slane %v2248_v54, %v9432_v59  ;;  %v2359_v49 = vsub.f32 %v7555_v56, %v2310_v36  ;;  %v2415_v35 = vmul.f32 1.442695, %v2357_v44 }
 0x777   :  { %6009 = vpow2.f32 %v2403_v41  ;;  %v2360_v30 = vsub.f32 %v7550_v33, %v2310_v36  ;;  %v2417_v27 = vmul.f32 1.442695, %v2358_v34 }
 0x778   :  { %6011 = vpow2.f32 %v2405_v48  ;;  %v2361_v24 = vsub.f32 %v7570_v23, %v2314_v45  ;;  %v2419_v54 = vmul.f32 1.442695, %v2359_v49  ;;  %v2362_v56 = vsub.f32 %v7565_v42, %v2314_v45 }
 0x779   :  { %6013 = vpow2.f32 %v2407_v12  ;;  %v2421_v11 = vmul.f32 1.442695, %v2360_v30 }
 0x77a   :  { %6015 = vpow2.f32 %v2409_v7  ;;  %v2423_v41 = vmul.f32 1.442695, %v2361_v24  ;;  %v2425_v23 = vmul.f32 1.442695, %v2362_v56 }
 0x77b   :  { %6017 = vpow2.f32 %v2411_v2 }
 0x77c   :  { %6019 = vpow2.f32 %v2413_v52 }
 0x77d   :  { %v7669_v63 = vpop.eup %6001  ;;  %6021 = vpow2.f32 %v2415_v35 }
 0x77e   :  { %v7671_v3 = vpop.eup %6003  ;;  %2508 = vperm.xlu1 %5853, %v7669_v63   ;;  %6023 = vpow2.f32 %v2417_v27 }
 0x77f   :  { %2511 = vperm.xlu0 %5854, %v7671_v3   ;;  %v7678_v18 = vpop.eup %6005  ;;  %6025 = vpow2.f32 %v2419_v54 }
 0x780   :  { %v7680_v16 = vpop.eup %6007  ;;  %6027 = vpow2.f32 %v2421_v11 }
 0x781   :  { %v7687_v6 = vpop.eup %6009  ;;  %6029 = vpow2.f32 %v2423_v41 }
 0x782   :  { %2514 = vperm.xlu1 %5853, %v7678_v18   ;;  %v7689_v28 = vpop.eup %6011  ;;  %6031 = vpow2.f32 %v2425_v23 }
 0x783   :  { %2517 = vperm.xlu0 %5854, %v7680_v16   ;;  %v7695_v5 = vpop.eup %6013 }
 0x784   :  { %v7697_v33 = vpop.eup %6015 }
 0x785   :  { %v7701_v53 = vpop.eup %6017 }
 0x786   :  { %2520 = vperm.xlu1 %5853, %v7687_v6   ;;  %v7703_v48 = vpop.eup %6019 }
 0x787   :  { %2523 = vperm.xlu0 %5854, %v7689_v28   ;;  %v7707_v42 = vpop.eup %6021 }
 0x788   :  { %v7709_v21 = vpop.eup %6023 }
 0x789   :  { %v7713_v32 = vpop.eup %6025 }
 0x78a   :  { %2526 = vperm.xlu1 %5853, %v7695_v5   ;;  %v7715_v12 = vpop.eup %6027 }
 0x78b   :  { %2529 = vperm.xlu0 %5854, %v7697_v33   ;;  %v7719_v61 = vpop.eup %6029 }
 0x78c   :  { %9433 = vst [vmem:[#allocation41_spill] sm:$0xff] %v7719_v61  ;;  %v7721_v7 = vpop.eup %6031 }
 0x78e   :  { %2532 = vperm.xlu1 %5853, %v7701_v53  }
 0x78f   :  { %2535 = vperm.xlu0 %5854, %v7703_v48  }
 0x792   :  { %2538 = vperm.xlu1 %5853, %v7707_v42  }
 0x793   :  { %2541 = vperm.xlu0 %5854, %v7709_v21  }
 0x796   :  { %2544 = vperm.xlu1 %5853, %v7713_v32  }
 0x797   :  { %2547 = vperm.xlu0 %5854, %v7715_v12  }
 0x79a   :  { %2550 = vperm.xlu1 %5853, %v7719_v61  }
 0x79b   :  { %2553 = vperm.xlu0 %5854, %v7721_v7  }
 0x7d5   :  { %v2461_v36 = vpop.permute.xlu0 %2460 }
 0x7d6   :  { %v2464_v44 = vpop.permute.xlu1 %2463  ;;  %v2558_v37 = vrot.slane %v2461_v36, %v6835_v1 }
 0x7d7   :  { %v2562_v57 = vrot.slane %v2464_v44, %v6832_v62 }
 0x7d9   :  { %v2470_v2 = vpop.permute.xlu0 %2469 }
 0x7da   :  { %v2467_v34 = vpop.permute.xlu1 %2466  ;;  %v2571_v54 = vrot.slane %v2470_v2, %v6832_v62 }
 0x7db   :  { %v2567_v24 = vrot.slane %v2467_v34, %v6835_v1 }
 0x7dd   :  { %v2476_v52 = vpop.permute.xlu0 %2475  ;;  %v2572_v2 = vsel %vm875_vm4, %v2571_v54, %v2567_v24 }
 0x7de   :  { %v2473_v45 = vpop.permute.xlu1 %2472  ;;  %v2580_v41 = vrot.slane %v2476_v52, %v6832_v62 }
 0x7df   :  { %v2576_v11 = vrot.slane %v2473_v45, %v6835_v1 }
 0x7e1   :  { %v2482_v49 = vpop.permute.xlu0 %2481  ;;  %v2581_v61 = vsel %vm875_vm4, %v2580_v41, %v2576_v11 }
 0x7e2   :  { %v2479_v35 = vpop.permute.xlu1 %2478  ;;  %v2589_v22 = vrot.slane %v2482_v49, %v6832_v62 }
 0x7e3   :  { %v2585_v10 = vrot.slane %v2479_v35, %v6835_v1  ;;  %v2563_v35 = vsel %vm875_vm4, %v2562_v57, %v2558_v37 }
 0x7e5   :  { %v2488_v30 = vpop.permute.xlu0 %2487  ;;  %v2590_v49 = vsel %vm875_vm4, %v2589_v22, %v2585_v10 }
 0x7e6   :  { %v2485_v27 = vpop.permute.xlu1 %2484  ;;  %v2598_v34 = vrot.slane %v2488_v30, %v6832_v62  ;;  %v2699_v30 = vsel %vm1012_vm5, %v2572_v2, %v2563_v35 }
 0x7e7   :  { %v2594_v51 = vrot.slane %v2485_v27, %v6835_v1  ;;  %v2700_v54 = vsel %vm1014_vm6, %v2581_v61, %v2699_v30 }
 0x7e8   :  { %v2701_v11 = vsel %vm1016_vm7, %v2590_v49, %v2700_v54 }
 0x7e9   :  { %v2494_v56 = vpop.permute.xlu0 %2493  ;;  %v2599_v24 = vsel %vm875_vm4, %v2598_v34, %v2594_v51 }
 0x7ea   :  { %v2491_v23 = vpop.permute.xlu1 %2490  ;;  %v2607_v45 = vrot.slane %v2494_v56, %v6832_v62  ;;  %v2702_v22 = vsel %vm1018_vm8, %v2599_v24, %v2701_v11 }
 0x7eb   :  { %v2603_v60 = vrot.slane %v2491_v23, %v6835_v1 }
 0x7ed   :  { %v2500_v52 = vpop.permute.xlu0 %2499  ;;  %v2608_v56 = vsel %vm875_vm4, %v2607_v45, %v2603_v60 }
 0x7ee   :  { %v2497_v44 = vpop.permute.xlu1 %2496  ;;  %v2616_v36 = vrot.slane %v2500_v52, %v6832_v62  ;;  %v2703_v57 = vsel %vm1020_vm9, %v2608_v56, %v2702_v22 }
 0x7ef   :  { %v2612_v27 = vrot.slane %v2497_v44, %v6835_v1 }
 0x7f1   :  { %v2506_v23 = vpop.permute.xlu0 %2505  ;;  %v2617_v41 = vsel %vm875_vm4, %v2616_v36, %v2612_v27 }
 0x7f2   :  { %v2503_v52 = vpop.permute.xlu1 %2502  ;;  %v2625_v37 = vrot.slane %v2506_v23, %v6832_v62  ;;  %v2704_v61 = vsel %vm1022_vm10, %v2617_v41, %v2703_v57 }
 0x7f3   :  { %v2621_v10 = vrot.slane %v2503_v52, %v6835_v1 }
 0x7f5   :  { %v2626_v51 = vsel %vm875_vm4, %v2625_v37, %v2621_v10 }
 0x7f6   :  { %v2705_v60 = vsel %vm1024_vm11, %v2626_v51, %v2704_v61 }
 0x7f7   :  { %v2715_v34 = vsel %vm576_vm0, %v2705_v60, 0.0 }
 0x7f8   :  { %2716 = vadd.xlane.f32.xlu1 %v2715_v34 }
 0x7fd   :  { %v2509_v2 = vpop.permute.xlu1 %2508 }
 0x7fe   :  { %v2512_v45 = vpop.permute.xlu0 %2511  ;;  %v2630_v22 = vrot.slane %v2509_v2, %v6835_v1 }
 0x7ff   :  { %v2634_v10 = vrot.slane %v2512_v45, %v6832_v62 }
 0x801   :  { %v2515_v44 = vpop.permute.xlu1 %2514 }
 0x802   :  { %v2518_v36 = vpop.permute.xlu0 %2517  ;;  %v2639_v56 = vrot.slane %v2515_v44, %v6835_v1 }
 0x803   :  { %v2643_v23 = vrot.slane %v2518_v36, %v6832_v62 }
 0x805   :  { %v2521_v35 = vpop.permute.xlu1 %2520  ;;  %v2644_v34 = vsel %vm875_vm4, %v2643_v23, %v2639_v56 }
 0x806   :  { %v2524_v49 = vpop.permute.xlu0 %2523  ;;  %v2648_v41 = vrot.slane %v2521_v35, %v6835_v1 }
 0x807   :  { %v2652_v52 = vrot.slane %v2524_v49, %v6832_v62 }
 0x809   :  { %v2527_v27 = vpop.permute.xlu1 %2526  ;;  %v2653_v49 = vsel %vm875_vm4, %v2652_v52, %v2648_v41 }
 0x80a   :  { %v2530_v30 = vpop.permute.xlu0 %2529  ;;  %v2657_v57 = vrot.slane %v2527_v27, %v6835_v1  ;;  %v2635_v27 = vsel %vm875_vm4, %v2634_v10, %v2630_v22 }
 0x80b   :  { %v2661_v51 = vrot.slane %v2530_v30, %v6832_v62 }
 0x80d   :  { %v2533_v24 = vpop.permute.xlu1 %2532  ;;  %v2662_v30 = vsel %vm875_vm4, %v2661_v51, %v2657_v57 }
 0x80e   :  { %v2536_v54 = vpop.permute.xlu0 %2535  ;;  %v2666_v61 = vrot.slane %v2533_v24, %v6835_v1 }
 0x80f   :  { %v2670_v60 = vrot.slane %v2536_v54, %v6832_v62  ;;  %v2706_v54 = vsel %vm1012_vm5, %v2644_v34, %v2635_v27 }
 0x810   :  { %v2707_v23 = vsel %vm1014_vm6, %v2653_v49, %v2706_v54 }
 0x811   :  { %v2539_v11 = vpop.permute.xlu1 %2538  ;;  %v2671_v56 = vsel %vm875_vm4, %v2670_v60, %v2666_v61  ;;  %v2708_v41 = vsel %vm1016_vm7, %v2662_v30, %v2707_v23 }
 0x812   :  { %v2542_v37 = vpop.permute.xlu0 %2541  ;;  %v2675_v44 = vrot.slane %v2539_v11, %v6835_v1  ;;  %v2709_v10 = vsel %vm1018_vm8, %v2671_v56, %v2708_v41 }
 0x813   :  { %v2679_v36 = vrot.slane %v2542_v37, %v6832_v62 }
 0x815   :  { %v2545_v35 = vpop.permute.xlu1 %2544  ;;  %v2680_v11 = vsel %vm875_vm4, %v2679_v36, %v2675_v44 }
 0x816   :  { %v2684_v2 = vrot.slane %v2545_v35, %v6835_v1  ;;  %v2548_v45 = vpop.permute.xlu0 %2547  ;;  %v2710_v51 = vsel %vm1020_vm9, %v2680_v11, %v2709_v10 }
 0x817   :  { %v2688_v24 = vrot.slane %v2548_v45, %v6832_v62 }
 0x819   :  { %v2551_v37 = vpop.permute.xlu1 %2550  ;;  %v2689_v52 = vsel %vm875_vm4, %v2688_v24, %v2684_v2 }
 0x81a   :  { %v2693_v35 = vrot.slane %v2551_v37, %v6835_v1  ;;  %v2554_v22 = vpop.permute.xlu0 %2553  ;;  %v2711_v60 = vsel %vm1022_vm10, %v2689_v52, %v2710_v51 }
 0x81b   :  { %v2697_v57 = vrot.slane %v2554_v22, %v6832_v62 }
 0x81d   :  { %v2698_v61 = vsel %vm875_vm4, %v2697_v57, %v2693_v35 }
 0x81e   :  { %v2712_v34 = vsel %vm1024_vm11, %v2698_v61, %v2711_v60 }
 0x81f   :  { %v2718_v44 = vsel %vm576_vm0, %v2712_v34, 0.0 }
 0x820   :  { %2719 = vadd.xlane.f32.xlu0 %v2718_v44 }
 0x885   :  { %v2717_v36 = vpop.xlane.xlu1 %2716 }
 0x886   :  { %v2726_v49 = vrot.slane %v2717_v36, %v6974_v0  ;;  %v2730_v2 = vrot.slane %v2717_v36, %v6977_v17  ;;  %v2734_v45 = vrot.slane %v2717_v36, %v6980_v25  ;;  %v2738_v27 = vrot.slane %v2717_v36, %v6983_v58 }
 0x887   :  { %v2742_v24 = vrot.slane %v2717_v36, %v6992_v29  ;;  %v2746_v11 = vrot.slane %v2717_v36, %v6997_v55  ;;  %v2750_v35 = vrot.slane %v2717_v36, %v9431_v4  ;;  %v2754_v10 = vrot.slane %v2717_v36, %v9432_v59 }
 0x888   :  { %6033 = vrcp.f32 %v2726_v49 }
 0x889   :  { %6035 = vrcp.f32 %v2730_v2 }
 0x88a   :  { %6037 = vrcp.f32 %v2734_v45 }
 0x88b   :  { %6039 = vrcp.f32 %v2738_v27 }
 0x88c   :  { %6041 = vrcp.f32 %v2742_v24 }
 0x88d   :  { %6043 = vrcp.f32 %v2746_v11 }
 0x88e   :  { %6045 = vrcp.f32 %v2750_v35 }
 0x88f   :  { %6047 = vrcp.f32 %v2754_v10 }
 0x892   :  { %v6034_v30 = vpop.eup %6033 }
 0x893   :  { %v2805_v54 = vmul.f32 %v6034_v30, %v7599_v46  ;;  %v2804_v56 = vmul.f32 %v6034_v30, %v7597_v13  ;;  %v6036_v23 = vpop.eup %6035 }
 0x894   :  { %v2807_v37 = vmul.f32 %v6036_v23, %v7608_v43  ;;  %v2808_v41 = vmul.f32 %v6036_v23, %v7606_v50  ;;  %v6038_v52 = vpop.eup %6037 }
 0x895   :  { %2858 = vperm.xlu1 %5853, %v2805_v54   ;;  %2853 = vperm.xlu0 %5854, %v2804_v56   ;;  %v2810_v46 = vmul.f32 %v6038_v52, %v7617_v20  ;;  %v2811_v13 = vmul.f32 %v6038_v52, %v7615_v14  ;;  %v6040_v22 = vpop.eup %6039 }
 0x896   :  { %v2813_v43 = vmul.f32 %v6040_v22, %v7625_v8  ;;  %v2814_v50 = vmul.f32 %v6040_v22, %v7623_v39  ;;  %v6042_v57 = vpop.eup %6041 }
 0x897   :  { %v2816_v51 = vmul.f32 %v6042_v57, %v7631_v40  ;;  %v2817_v20 = vmul.f32 %v6042_v57, %v7629_v38  ;;  %v6044_v61 = vpop.eup %6043 }
 0x898   :  { %v2819_v14 = vmul.f32 %v6044_v61, %v7637_v15  ;;  %v2820_v60 = vmul.f32 %v6044_v61, %v7635_v19  ;;  %v6046_v34 = vpop.eup %6045 }
 0x899   :  { %2863 = vperm.xlu1 %5853, %v2807_v37   ;;  %2868 = vperm.xlu0 %5854, %v2808_v41   ;;  %v2822_v39 = vmul.f32 %v6046_v34, %v7647_v26  ;;  %v2823_v8 = vmul.f32 %v6046_v34, %v7643_v9  ;;  %v6048_v44 = vpop.eup %6047 }
 0x89a   :  { %v2825_v49 = vmul.f32 %v6048_v44, %v7656_v47  ;;  %v2826_v15 = vmul.f32 %v6048_v44, %v7654_v31 }
 0x89d   :  { %2873 = vperm.xlu1 %5853, %v2810_v46   ;;  %2878 = vperm.xlu0 %5854, %v2811_v13  }
 0x8a1   :  { %2883 = vperm.xlu1 %5853, %v2813_v43   ;;  %2888 = vperm.xlu0 %5854, %v2814_v50  }
 0x8a5   :  { %2893 = vperm.xlu1 %5853, %v2816_v51   ;;  %2898 = vperm.xlu0 %5854, %v2817_v20  }
 0x8a9   :  { %2903 = vperm.xlu1 %5853, %v2819_v14   ;;  %2908 = vperm.xlu0 %5854, %v2820_v60   ;;  %v9437_v60 = vld [vmem:[#allocation12_spill] sm:$0xff] }
 0x8ad   :  { %2913 = vperm.xlu1 %5853, %v2822_v39   ;;  %2918 = vperm.xlu0 %5854, %v2823_v8   ;;  %v2720_v40 = vpop.xlane.xlu0 %2719  ;;  %v9438_v39 = vld [vmem:[#allocation7_spill] sm:$0xff]  ;;  %v9439_v8 = vld [vmem:[#allocation9_spill] sm:$0xff] }
 0x8ae   :  { %v2758_v38 = vrot.slane %v2720_v40, %v6974_v0  ;;  %v2762_v36 = vrot.slane %v2720_v40, %v6977_v17  ;;  %v2766_v19 = vrot.slane %v2720_v40, %v6980_v25  ;;  %v2770_v9 = vrot.slane %v2720_v40, %v6983_v58 }
 0x8af   :  { %v2774_v2 = vrot.slane %v2720_v40, %v6992_v29  ;;  %v2778_v31 = vrot.slane %v2720_v40, %v6997_v55  ;;  %v2782_v56 = vrot.slane %v2720_v40, %v9431_v4  ;;  %v2786_v11 = vrot.slane %v2720_v40, %v9432_v59  ;;  %v9440_v40 = vld [vmem:[#allocation16_spill] sm:$0xff] }
 0x8b0   :  { %6049 = vrcp.f32 %v2758_v38  ;;  %v9464_v59 = vld [vmem:[#allocation36_spill] sm:$0xff] }
 0x8b1   :  { %2923 = vperm.xlu1 %5853, %v2825_v49   ;;  %2928 = vperm.xlu0 %5854, %v2826_v15   ;;  %6051 = vrcp.f32 %v2762_v36 }
 0x8b2   :  { %6053 = vrcp.f32 %v2766_v19 }
 0x8b3   :  { %6055 = vrcp.f32 %v2770_v9  ;;  %v9441_v9 = vld [vmem:[#allocation10_spill] sm:$0xff] }
 0x8b4   :  { %6057 = vrcp.f32 %v2774_v2  ;;  %v9442_v2 = vld [vmem:[#allocation20_spill] sm:$0xff] }
 0x8b5   :  { %6059 = vrcp.f32 %v2778_v31 }
 0x8b6   :  { %6061 = vrcp.f32 %v2782_v56  ;;  %v9444_v56 = vld [vmem:[#allocation17_spill] sm:$0xff] }
 0x8b7   :  { %6063 = vrcp.f32 %v2786_v11 }
 0x8ba   :  { %v6050_v26 = vpop.eup %6049 }
 0x8bb   :  { %v2829_v45 = vmul.f32 %v6050_v26, %v7671_v3  ;;  %v2828_v27 = vmul.f32 %v6050_v26, %v7669_v63  ;;  %v6052_v47 = vpop.eup %6051 }
 0x8bc   :  { %v2832_v30 = vmul.f32 %v6052_v47, %v7680_v16  ;;  %v2831_v24 = vmul.f32 %v6052_v47, %v7678_v18  ;;  %v6054_v54 = vpop.eup %6053 }
 0x8bd   :  { %2938 = vperm.xlu0 %5854, %v2829_v45   ;;  %2933 = vperm.xlu1 %5853, %v2828_v27   ;;  %v2835_v3 = vmul.f32 %v6054_v54, %v7689_v28  ;;  %v2834_v63 = vmul.f32 %v6054_v54, %v7687_v6  ;;  %v6056_v23 = vpop.eup %6055 }
 0x8be   :  { %v2838_v16 = vmul.f32 %v6056_v23, %v7697_v33  ;;  %v2837_v18 = vmul.f32 %v6056_v23, %v7695_v5  ;;  %v6058_v37 = vpop.eup %6057 }
 0x8bf   :  { %v2841_v41 = vmul.f32 %v6058_v37, %v7703_v48  ;;  %v2840_v28 = vmul.f32 %v6058_v37, %v7701_v53  ;;  %v6060_v52 = vpop.eup %6059  ;;  %v9434_v53 = vld [vmem:[#allocation41_spill] sm:$0xff] }
 0x8c0   :  { %v2844_v6 = vmul.f32 %v6060_v52, %v7709_v21  ;;  %v2843_v35 = vmul.f32 %v6060_v52, %v7707_v42  ;;  %v6062_v46 = vpop.eup %6061  ;;  %v9446_v52 = vld [vmem:[#allocation21_spill] sm:$0xff] }
 0x8c1   :  { %2948 = vperm.xlu0 %5854, %v2832_v30   ;;  %2943 = vperm.xlu1 %5853, %v2831_v24   ;;  %v2847_v5 = vmul.f32 %v6062_v46, %v7715_v12  ;;  %v2846_v33 = vmul.f32 %v6062_v46, %v7713_v32  ;;  %v6064_v13 = vpop.eup %6063  ;;  %v9435_v12 = vld [vmem:[#allocation8_spill] sm:$0xff]  ;;  %v9436_v32 = vld [vmem:[#allocation19_spill] sm:$0xff] }
 0x8c2   :  { %v2850_v48 = vmul.f32 %v6064_v13, %v7721_v7  ;;  %v2849_v22 = vmul.f32 %v6064_v13, %v9434_v53  ;;  %v9443_v24 = vld [vmem:[#allocation11_spill] sm:$0xff] }
 0x8c5   :  { %2958 = vperm.xlu0 %5854, %v2835_v3   ;;  %2953 = vperm.xlu1 %5853, %v2834_v63  }
 0x8c9   :  { %2968 = vperm.xlu0 %5854, %v2838_v16   ;;  %2963 = vperm.xlu1 %5853, %v2837_v18  }
 0x8cd   :  { %2978 = vperm.xlu0 %5854, %v2841_v41   ;;  %2973 = vperm.xlu1 %5853, %v2840_v28   ;;  %v9445_v41 = vld [vmem:[#allocation13_spill] sm:$0xff] }
 0x8d1   :  { %2988 = vperm.xlu0 %5854, %v2844_v6   ;;  %2983 = vperm.xlu1 %5853, %v2843_v35  }
 0x8d5   :  { %2998 = vperm.xlu0 %5854, %v2847_v5   ;;  %2993 = vperm.xlu1 %5853, %v2846_v33  }
 0x8d9   :  { %3008 = vperm.xlu0 %5854, %v2850_v48   ;;  %3003 = vperm.xlu1 %5853, %v2849_v22  }
 0x914   :  { %v2859_v10 = vpop.permute.xlu1 %2858  ;;  %v2854_v21 = vpop.permute.xlu0 %2853 }
 0x915   :  { %v3012_v34 = vmul.f32 %v2859_v10, %v9437_v60  ;;  %v3011_v7 = vmul.f32 %v2854_v21, %v9438_v39 }
 0x917   :  { %v3058_v27 = vsel %vm630_vm3, %v3012_v34, 0.0  ;;  %v3043_v47 = vsel %vm614_vm2, %v3011_v7, 0.0 }
 0x918   :  { %v2864_v43 = vpop.permute.xlu1 %2863  ;;  %v2869_v42 = vpop.permute.xlu0 %2868 }
 0x919   :  { %v3013_v61 = vmul.f32 %v2864_v43, %v9435_v12  ;;  %v3014_v14 = vmul.f32 %v2869_v42, %v9436_v32  ;;  %v9447_v43 = vld [vmem:[#allocation14_spill] sm:$0xff] }
 0x91b   :  { %v3044_v15 = vsel %vm614_vm2, %v3013_v61, 0.0  ;;  %v3059_v19 = vsel %vm630_vm3, %v3014_v14, 0.0 }
 0x91c   :  { %v2874_v50 = vpop.permute.xlu1 %2873  ;;  %v2879_v57 = vpop.permute.xlu0 %2878  ;;  %v3045_v63 = vadd.f32 %v3044_v15, %v3043_v47  ;;  %v3060_v23 = vadd.f32 %v3059_v19, %v3058_v27  ;;  %v9450_v15 = vld [vmem:[#allocation22_spill] sm:$0xff] }
 0x91d   :  { %v3015_v44 = vmul.f32 %v2874_v50, %v9439_v8  ;;  %v3016_v38 = vmul.f32 %v2879_v57, %v9440_v40  ;;  %v9448_v50 = vld [vmem:[#allocation18_spill] sm:$0xff] }
 0x91f   :  { %v3046_v31 = vsel %vm614_vm2, %v3015_v44, 0.0  ;;  %v3061_v30 = vsel %vm630_vm3, %v3016_v38, 0.0 }
 0x920   :  { %v2884_v51 = vpop.permute.xlu1 %2883  ;;  %v2889_v20 = vpop.permute.xlu0 %2888  ;;  %v3047_v35 = vadd.f32 %v3046_v31, %v3045_v63  ;;  %v3062_v46 = vadd.f32 %v3061_v30, %v3060_v23 }
 0x921   :  { %v3017_v26 = vmul.f32 %v2884_v51, %v9441_v9  ;;  %v3018_v45 = vmul.f32 %v2889_v20, %v9442_v2 }
 0x923   :  { %v3048_v18 = vsel %vm614_vm2, %v3017_v26, 0.0  ;;  %v3063_v37 = vsel %vm630_vm3, %v3018_v45, 0.0 }
 0x924   :  { %v2894_v36 = vpop.permute.xlu1 %2893  ;;  %v2899_v49 = vpop.permute.xlu0 %2898  ;;  %v3049_v13 = vadd.f32 %v3048_v18, %v3047_v35  ;;  %v3064_v48 = vadd.f32 %v3063_v37, %v3062_v46 }
 0x925   :  { %v3019_v54 = vmul.f32 %v2894_v36, %v9443_v24  ;;  %v3020_v3 = vmul.f32 %v2899_v49, %v9444_v56  ;;  %v9449_v36 = vld [vmem:[#allocation15_spill] sm:$0xff] }
 0x927   :  { %v3050_v5 = vsel %vm614_vm2, %v3019_v54, 0.0  ;;  %v3065_v33 = vsel %vm630_vm3, %v3020_v3, 0.0 }
 0x928   :  { %v2904_v11 = vpop.permute.xlu1 %2903  ;;  %v2909_v16 = vpop.permute.xlu0 %2908  ;;  %v3051_v51 = vadd.f32 %v3050_v5, %v3049_v13  ;;  %v3066_v20 = vadd.f32 %v3065_v33, %v3064_v48  ;;  %v9451_v5 = vld [vmem:[#allocation24_spill] sm:$0xff]  ;;  %v9452_v13 = vld [vmem:[#allocation30_spill] sm:$0xff] }
 0x929   :  { %v3021_v28 = vmul.f32 %v2904_v11, %v9445_v41  ;;  %v3022_v6 = vmul.f32 %v2909_v16, %v9446_v52 }
 0x92b   :  { %v3052_v10 = vsel %vm614_vm2, %v3021_v28, 0.0  ;;  %v3067_v21 = vsel %vm630_vm3, %v3022_v6, 0.0 }
 0x92c   :  { %v2914_v53 = vpop.permute.xlu1 %2913  ;;  %v2919_v22 = vpop.permute.xlu0 %2918  ;;  %v3053_v34 = vadd.f32 %v3052_v10, %v3051_v51  ;;  %v3068_v7 = vadd.f32 %v3067_v21, %v3066_v20  ;;  %v9454_v10 = vld [vmem:[#allocation27_spill] sm:$0xff]  ;;  %v9456_v51 = vld [vmem:[#allocation29_spill] sm:$0xff] }
 0x92d   :  { %v3023_v42 = vmul.f32 %v2914_v53, %v9447_v43  ;;  %v3024_v57 = vmul.f32 %v2919_v22, %v9448_v50  ;;  %v9453_v53 = vld [vmem:[#allocation23_spill] sm:$0xff] }
 0x92f   :  { %v3054_v61 = vsel %vm614_vm2, %v3023_v42, 0.0  ;;  %v3069_v14 = vsel %vm630_vm3, %v3024_v57, 0.0  ;;  %v9455_v42 = vld [vmem:[#allocation25_spill] sm:$0xff] }
 0x930   :  { %v2924_v44 = vpop.permute.xlu1 %2923  ;;  %v2929_v38 = vpop.permute.xlu0 %2928  ;;  %v3055_v26 = vadd.f32 %v3054_v61, %v3053_v34  ;;  %v3070_v45 = vadd.f32 %v3069_v14, %v3068_v7 }
 0x931   :  { %v3025_v49 = vmul.f32 %v2924_v44, %v9449_v36  ;;  %v3026_v19 = vmul.f32 %v2929_v38, %v9450_v15  ;;  %v9457_v44 = vld [vmem:[#allocation26_spill] sm:$0xff] }
 0x933   :  { %v3056_v27 = vsel %vm614_vm2, %v3025_v49, 0.0  ;;  %v3071_v47 = vsel %vm630_vm3, %v3026_v19, 0.0  ;;  %v9458_v49 = vld [vmem:[#allocation35_spill] sm:$0xff] }
 0x934   :  { %v7869_v31 = vadd.f32 %v3056_v27, %v3055_v26  ;;  %v7871_v30 = vadd.f32 %v3071_v47, %v3070_v45 }
 0x936   :  { %v3103_v54 = vmul.f32 %v7869_v31, %v7869_v31  ;;  %v3104_v3 = vmul.f32 %v7871_v30, %v7871_v30 }
 0x938   :  { %v3107_v63 = vsel %vm614_vm2, %v3103_v54, 0.0  ;;  %v3110_v23 = vsel %vm630_vm3, %v3104_v3, 0.0  ;;  %v9459_v54 = vld [vmem:[#allocation28_spill] sm:$0xff] }
 0x939   :  { %3108 = vadd.xlane.f32.xlu1 %v3107_v63  ;;  %3111 = vadd.xlane.f32.xlu0 %v3110_v23  ;;  %v9460_v63 = vld [vmem:[#allocation33_spill] sm:$0xff] }
 0x93c   :  { %v2934_v11 = vpop.permute.xlu1 %2933  ;;  %v2939_v16 = vpop.permute.xlu0 %2938 }
 0x93d   :  { %v3027_v22 = vmul.f32 %v2934_v11, %v9453_v53  ;;  %v3028_v21 = vmul.f32 %v2939_v16, %v9454_v10 }
 0x93f   :  { %v3073_v26 = vsel %vm614_vm2, %v3027_v22, 0.0  ;;  %v3088_v45 = vsel %vm630_vm3, %v3028_v21, 0.0 }
 0x940   :  { %v2944_v18 = vpop.permute.xlu1 %2943  ;;  %v2949_v37 = vpop.permute.xlu0 %2948 }
 0x941   :  { %v3029_v33 = vmul.f32 %v2944_v18, %v9451_v5  ;;  %v3030_v48 = vmul.f32 %v2949_v37, %v9452_v13 }
 0x943   :  { %v3074_v34 = vsel %vm614_vm2, %v3029_v33, 0.0  ;;  %v3089_v7 = vsel %vm630_vm3, %v3030_v48, 0.0  ;;  %v9462_v33 = vld [vmem:[#allocation37_spill] sm:$0xff] }
 0x944   :  { %v2954_v28 = vpop.permute.xlu1 %2953  ;;  %v2959_v6 = vpop.permute.xlu0 %2958  ;;  %v3075_v11 = vadd.f32 %v3074_v34, %v3073_v26  ;;  %v3090_v16 = vadd.f32 %v3089_v7, %v3088_v45  ;;  %v9463_v45 = vld [vmem:[#allocation32_spill] sm:$0xff] }
 0x945   :  { %v3031_v57 = vmul.f32 %v2954_v28, %v9455_v42  ;;  %v3032_v20 = vmul.f32 %v2959_v6, %v9456_v51 }
 0x947   :  { %v3076_v27 = vsel %vm614_vm2, %v3031_v57, 0.0  ;;  %v3091_v47 = vsel %vm630_vm3, %v3032_v20, 0.0 }
 0x948   :  { %v2964_v35 = vpop.permute.xlu1 %2963  ;;  %v2969_v46 = vpop.permute.xlu0 %2968  ;;  %v3077_v22 = vadd.f32 %v3076_v27, %v3075_v11  ;;  %v3092_v21 = vadd.f32 %v3091_v47, %v3090_v16 }
 0x949   :  { %v3033_v38 = vmul.f32 %v2964_v35, %v9457_v44  ;;  %v3034_v19 = vmul.f32 %v2969_v46, %v9458_v49  ;;  %v9461_v35 = vld [vmem:[#allocation31_spill] sm:$0xff] }
 0x94b   :  { %v3078_v28 = vsel %vm614_vm2, %v3033_v38, 0.0  ;;  %v3093_v6 = vsel %vm630_vm3, %v3034_v19, 0.0 }
 0x94c   :  { %v2974_v61 = vpop.permute.xlu1 %2973  ;;  %v2979_v14 = vpop.permute.xlu0 %2978 }
 0x94d   :  { %v3035_v3 = vmul.f32 %v2974_v61, %v9459_v54  ;;  %v3036_v23 = vmul.f32 %v2979_v14, %v9460_v63  ;;  %v3079_v61 = vadd.f32 %v3078_v28, %v3077_v22  ;;  %v3094_v14 = vadd.f32 %v3093_v6, %v3092_v21  ;;  %v9465_v28 = vld [vmem:[#allocation34_spill] sm:$0xff] }
 0x94e   :  { %v9466_v22 = vld [vmem:[#allocation38_spill] sm:$0xff] }
 0x94f   :  { %v3080_v57 = vsel %vm614_vm2, %v3035_v3, 0.0  ;;  %v3095_v20 = vsel %vm630_vm3, %v3036_v23, 0.0 }
 0x950   :  { %v2984_v18 = vpop.permute.xlu1 %2983  ;;  %v2989_v37 = vpop.permute.xlu0 %2988  ;;  %v3081_v4 = vadd.f32 %v3080_v57, %v3079_v61 }
 0x951   :  { %v3037_v46 = vmul.f32 %v2984_v18, %v9461_v35  ;;  %v3038_v48 = vmul.f32 %v2989_v37, %v9462_v33  ;;  %v3096_v37 = vadd.f32 %v3095_v20, %v3094_v14 }
 0x953   :  { %v3082_v26 = vsel %vm614_vm2, %v3037_v46, 0.0  ;;  %v3097_v38 = vsel %vm630_vm3, %v3038_v48, 0.0 }
 0x954   :  { %v2994_v34 = vpop.permute.xlu1 %2993  ;;  %v2999_v7 = vpop.permute.xlu0 %2998  ;;  %v3083_v3 = vadd.f32 %v3082_v26, %v3081_v4  ;;  %v3098_v23 = vadd.f32 %v3097_v38, %v3096_v37 }
 0x955   :  { %v3039_v19 = vmul.f32 %v2994_v34, %v9463_v45  ;;  %v3040_v18 = vmul.f32 %v2999_v7, %v9464_v59 }
 0x957   :  { %v3084_v27 = vsel %vm614_vm2, %v3039_v19, 0.0  ;;  %v3099_v47 = vsel %vm630_vm3, %v3040_v18, 0.0 }
 0x958   :  { %v3004_v11 = vpop.permute.xlu1 %3003  ;;  %v3009_v16 = vpop.permute.xlu0 %3008  ;;  %v3085_v21 = vadd.f32 %v3084_v27, %v3083_v3  ;;  %v3100_v48 = vadd.f32 %v3099_v47, %v3098_v23 }
 0x959   :  { %v3041_v6 = vmul.f32 %v3004_v11, %v9465_v28  ;;  %v3042_v46 = vmul.f32 %v3009_v16, %v9466_v22 }
 0x95b   :  { %v3086_v34 = vsel %vm614_vm2, %v3041_v6, 0.0  ;;  %v3101_v7 = vsel %vm630_vm3, %v3042_v46, 0.0 }
 0x95c   :  { %v7911_v57 = vadd.f32 %v3086_v34, %v3085_v21  ;;  %v7913_v20 = vadd.f32 %v3101_v7, %v3100_v48 }
 0x95e   :  { %v3105_v4 = vmul.f32 %v7911_v57, %v7911_v57  ;;  %v3106_v61 = vmul.f32 %v7913_v20, %v7913_v20 }
 0x960   :  { %v3113_v14 = vsel %vm614_vm2, %v3105_v4, 0.0  ;;  %v3116_v26 = vsel %vm630_vm3, %v3106_v61, 0.0 }
 0x961   :  { %3114 = vadd.xlane.f32.xlu0 %v3113_v14  ;;  %3117 = vadd.xlane.f32.xlu1 %v3116_v26 }
 0x9c6   :  { %v3109_v38 = vpop.xlane.xlu1 %3108  ;;  %v3112_v19 = vpop.xlane.xlu0 %3111 }
 0x9c7   :  { %v3119_v18 = vadd.f32 1e-07, %v3109_v38  ;;  %v3120_v37 = vadd.f32 1e-07, %v3112_v19 }
 0x9c9   :  { %6065 = vrsqrt.f32 %v3119_v18 }
 0x9ca   :  { %6067 = vrsqrt.f32 %v3120_v37 }
 0x9d3   :  { %v6066_v27 = vpop.eup %6065 }
 0x9d4   :  { %v6068_v47 = vpop.eup %6067  ;;  %v3127_v3 = vmul.f32 %v6066_v27, %v7869_v31 }
 0x9d5   :  { %v3128_v23 = vmul.f32 %v6068_v47, %v7871_v30 }
 0x9d6   :  { %v3131_v11 = vmul.f32 %v3127_v3, %v9438_v39  ;;  %v3133_v46 = vmul.f32 %v3127_v3, %v9435_v12  ;;  %v3135_v31 = vmul.f32 %v3127_v3, %v9439_v8  ;;  %v3137_v61 = vmul.f32 %v3127_v3, %v9441_v9 }
 0x9d7   :  { %v3132_v16 = vmul.f32 %v3128_v23, %v9437_v60  ;;  %v3134_v48 = vmul.f32 %v3128_v23, %v9436_v32  ;;  %v3136_v7 = vmul.f32 %v3128_v23, %v9440_v40  ;;  %v3138_v26 = vmul.f32 %v3128_v23, %v9442_v2 }
 0x9d8   :  { %v3163_v6 = vsel %vm614_vm2, %v3131_v11, 0.0  ;;  %v3169_v34 = vsel %vm614_vm2, %v3133_v46, 0.0  ;;  %v3175_v4 = vsel %vm614_vm2, %v3135_v31, 0.0  ;;  %v3181_v38 = vsel %vm614_vm2, %v3137_v61, 0.0 }
 0x9d9   :  { %3164 = vadd.xlane.f32.xlu0 %v3163_v6  ;;  %v3166_v21 = vsel %vm630_vm3, %v3132_v16, 0.0  ;;  %v3172_v30 = vsel %vm630_vm3, %v3134_v48, 0.0  ;;  %v3178_v14 = vsel %vm630_vm3, %v3136_v7, 0.0  ;;  %v3139_v19 = vmul.f32 %v3127_v3, %v9443_v24 }
 0x9da   :  { %3167 = vadd.xlane.f32.xlu1 %v3166_v21  ;;  %v3184_v18 = vsel %vm630_vm3, %v3138_v26, 0.0  ;;  %v3140_v37 = vmul.f32 %v3128_v23, %v9444_v56  ;;  %v3141_v47 = vmul.f32 %v3127_v3, %v9445_v41  ;;  %v3142_v16 = vmul.f32 %v3128_v23, %v9446_v52 }
 0x9db   :  { %v3187_v27 = vsel %vm614_vm2, %v3139_v19, 0.0  ;;  %v3143_v46 = vmul.f32 %v3127_v3, %v9447_v43  ;;  %v3144_v48 = vmul.f32 %v3128_v23, %v9448_v50  ;;  %v3145_v61 = vmul.f32 %v3127_v3, %v9449_v36 }
 0x9dc   :  { %v3190_v11 = vsel %vm630_vm3, %v3140_v37, 0.0  ;;  %v3193_v6 = vsel %vm614_vm2, %v3141_v47, 0.0  ;;  %v3196_v21 = vsel %vm630_vm3, %v3142_v16, 0.0  ;;  %v3146_v26 = vmul.f32 %v3128_v23, %v9450_v15 }
 0x9dd   :  { %3170 = vadd.xlane.f32.xlu0 %v3169_v34 }
 0x9de   :  { %3173 = vadd.xlane.f32.xlu1 %v3172_v30  ;;  %v3208_v19 = vsel %vm630_vm3, %v3146_v26, 0.0 }
 0x9e1   :  { %3176 = vadd.xlane.f32.xlu0 %v3175_v4  ;;  %v3199_v4 = vsel %vm614_vm2, %v3143_v46, 0.0 }
 0x9e2   :  { %3179 = vadd.xlane.f32.xlu1 %v3178_v14  ;;  %v3202_v14 = vsel %vm630_vm3, %v3144_v48, 0.0 }
 0x9e5   :  { %3182 = vadd.xlane.f32.xlu0 %v3181_v38  ;;  %v3205_v38 = vsel %vm614_vm2, %v3145_v61, 0.0 }
 0x9e6   :  { %3185 = vadd.xlane.f32.xlu1 %v3184_v18 }
 0x9e9   :  { %3188 = vadd.xlane.f32.xlu0 %v3187_v27 }
 0x9ea   :  { %3191 = vadd.xlane.f32.xlu1 %v3190_v11 }
 0x9ed   :  { %3194 = vadd.xlane.f32.xlu0 %v3193_v6 }
 0x9ee   :  { %3197 = vadd.xlane.f32.xlu1 %v3196_v21  ;;  %v3118_v34 = vpop.xlane.xlu1 %3117  ;;  %v3115_v31 = vpop.xlane.xlu0 %3114 }
 0x9ef   :  { %v3122_v30 = vadd.f32 1e-07, %v3118_v34  ;;  %v3121_v7 = vadd.f32 1e-07, %v3115_v31 }
 0x9f1   :  { %6069 = vrsqrt.f32 %v3122_v30  ;;  %3200 = vadd.xlane.f32.xlu0 %v3199_v4 }
 0x9f2   :  { %6071 = vrsqrt.f32 %v3121_v7  ;;  %3203 = vadd.xlane.f32.xlu1 %v3202_v14 }
 0x9f5   :  { %3206 = vadd.xlane.f32.xlu0 %v3205_v38 }
 0x9f6   :  { %3209 = vadd.xlane.f32.xlu1 %v3208_v19 }
 0x9fb   :  { %v6070_v18 = vpop.eup %6069 }
 0x9fc   :  { %v6072_v37 = vpop.eup %6071  ;;  %v3130_v27 = vmul.f32 %v6070_v18, %v7913_v20 }
 0x9fd   :  { %v3129_v3 = vmul.f32 %v6072_v37, %v7911_v57 }
 0x9fe   :  { %v3148_v47 = vmul.f32 %v3130_v27, %v9454_v10  ;;  %v3150_v16 = vmul.f32 %v3130_v27, %v9452_v13  ;;  %v3152_v20 = vmul.f32 %v3130_v27, %v9456_v51  ;;  %v3154_v31 = vmul.f32 %v3130_v27, %v9458_v49 }
 0x9ff   :  { %v3147_v11 = vmul.f32 %v3129_v3, %v9453_v53  ;;  %v3149_v46 = vmul.f32 %v3129_v3, %v9451_v5  ;;  %v3151_v48 = vmul.f32 %v3129_v3, %v9455_v42  ;;  %v3153_v7 = vmul.f32 %v3129_v3, %v9457_v44 }
 0xa00   :  { %v3214_v23 = vsel %vm630_vm3, %v3148_v47, 0.0  ;;  %v3220_v21 = vsel %vm630_vm3, %v3150_v16, 0.0  ;;  %v3226_v34 = vsel %vm630_vm3, %v3152_v20, 0.0  ;;  %v3232_v4 = vsel %vm630_vm3, %v3154_v31, 0.0 }
 0xa01   :  { %3215 = vadd.xlane.f32.xlu1 %v3214_v23  ;;  %v3211_v6 = vsel %vm614_vm2, %v3147_v11, 0.0  ;;  %v3217_v57 = vsel %vm614_vm2, %v3149_v46, 0.0  ;;  %v3223_v30 = vsel %vm614_vm2, %v3151_v48, 0.0  ;;  %v3156_v61 = vmul.f32 %v3130_v27, %v9460_v63 }
 0xa02   :  { %3212 = vadd.xlane.f32.xlu0 %v3211_v6  ;;  %v3229_v14 = vsel %vm614_vm2, %v3153_v7, 0.0  ;;  %v3155_v26 = vmul.f32 %v3129_v3, %v9459_v54  ;;  %v3158_v19 = vmul.f32 %v3130_v27, %v9462_v33  ;;  %v3157_v37 = vmul.f32 %v3129_v3, %v9461_v35 }
 0xa03   :  { %v3238_v38 = vsel %vm630_vm3, %v3156_v61, 0.0  ;;  %v3160_v11 = vmul.f32 %v3130_v27, %v9464_v59  ;;  %v3159_v16 = vmul.f32 %v3129_v3, %v9463_v45  ;;  %v3162_v46 = vmul.f32 %v3130_v27, %v9466_v22 }
 0xa04   :  { %v3235_v18 = vsel %vm614_vm2, %v3155_v26, 0.0  ;;  %v3244_v47 = vsel %vm630_vm3, %v3158_v19, 0.0  ;;  %v3241_v23 = vsel %vm614_vm2, %v3157_v37, 0.0  ;;  %v3161_v20 = vmul.f32 %v3129_v3, %v9465_v28 }
 0xa05   :  { %3221 = vadd.xlane.f32.xlu1 %v3220_v21  ;;  %v3250_v6 = vsel %vm630_vm3, %v3160_v11, 0.0  ;;  %v3247_v21 = vsel %vm614_vm2, %v3159_v16, 0.0 }
 0xa06   :  { %3218 = vadd.xlane.f32.xlu0 %v3217_v57  ;;  %v3256_v57 = vsel %vm630_vm3, %v3162_v46, 0.0  ;;  %v3253_v48 = vsel %vm614_vm2, %v3161_v20, 0.0 }
 0xa09   :  { %3227 = vadd.xlane.f32.xlu1 %v3226_v34 }
 0xa0a   :  { %3224 = vadd.xlane.f32.xlu0 %v3223_v30 }
 0xa0d   :  { %3233 = vadd.xlane.f32.xlu1 %v3232_v4 }
 0xa0e   :  { %3230 = vadd.xlane.f32.xlu0 %v3229_v14 }
 0xa11   :  { %3239 = vadd.xlane.f32.xlu1 %v3238_v38 }
 0xa12   :  { %3236 = vadd.xlane.f32.xlu0 %v3235_v18 }
 0xa15   :  { %3245 = vadd.xlane.f32.xlu1 %v3244_v47 }
 0xa16   :  { %3242 = vadd.xlane.f32.xlu0 %v3241_v23 }
 0xa19   :  { %3251 = vadd.xlane.f32.xlu1 %v3250_v6 }
 0xa1a   :  { %3248 = vadd.xlane.f32.xlu0 %v3247_v21 }
 0xa1d   :  { %3257 = vadd.xlane.f32.xlu1 %v3256_v57 }
 0xa1e   :  { %3254 = vadd.xlane.f32.xlu0 %v3253_v48 }
 0xa66   :  { %v7989_v34 = vpop.xlane.xlu0 %3164 }
 0xa67   :  { %v7991_v31 = vpop.xlane.xlu1 %3167  ;;  %v3294_v16 = vrot.slane %v7989_v34, %v6835_v1 }
 0xa68   :  { %v3298_v23 = vrot.slane %v7991_v31, %v6832_v62 }
 0xa6a   :  { %v7993_v30 = vpop.xlane.xlu0 %3170  ;;  %v3299_v35 = vsel %vm875_vm4, %v3298_v23, %v3294_v16 }
 0xa6b   :  { %v7995_v7 = vpop.xlane.xlu1 %3173  ;;  %v3303_v19 = vrot.slane %v7993_v30, %v6835_v1 }
 0xa6c   :  { %v3307_v38 = vrot.slane %v7995_v7, %v6832_v62 }
 0xa6e   :  { %v7997_v27 = vpop.xlane.xlu0 %3176  ;;  %v3308_v57 = vsel %vm875_vm4, %v3307_v38, %v3303_v19 }
 0xa6f   :  { %v7999_v4 = vpop.xlane.xlu1 %3179  ;;  %v3312_v47 = vrot.slane %v7997_v27, %v6835_v1  ;;  %v3435_v19 = vsel %vm1012_vm5, %v3308_v57, %v3299_v35 }
 0xa70   :  { %v3316_v37 = vrot.slane %v7999_v4, %v6832_v62 }
 0xa72   :  { %v8001_v3 = vpop.xlane.xlu0 %3182  ;;  %v3317_v59 = vsel %vm875_vm4, %v3316_v37, %v3312_v47 }
 0xa73   :  { %v8003_v61 = vpop.xlane.xlu1 %3185  ;;  %v3321_v46 = vrot.slane %v8001_v3, %v6835_v1  ;;  %v3436_v49 = vsel %vm1014_vm6, %v3317_v59, %v3435_v19 }
 0xa74   :  { %v3325_v6 = vrot.slane %v8003_v61, %v6832_v62 }
 0xa76   :  { %v8005_v14 = vpop.xlane.xlu0 %3188  ;;  %v3326_v63 = vsel %vm875_vm4, %v3325_v6, %v3321_v46 }
 0xa77   :  { %v8007_v26 = vpop.xlane.xlu1 %3191  ;;  %v3330_v20 = vrot.slane %v8005_v14, %v6835_v1  ;;  %v3437_v44 = vsel %vm1016_vm7, %v3326_v63, %v3436_v49 }
 0xa78   :  { %v3334_v21 = vrot.slane %v8007_v26, %v6832_v62 }
 0xa7a   :  { %v8013_v18 = vpop.xlane.xlu0 %3194  ;;  %v3335_v54 = vsel %vm875_vm4, %v3334_v21, %v3330_v20 }
 0xa7b   :  { %v8019_v11 = vpop.xlane.xlu1 %3197  ;;  %v3339_v22 = vrot.slane %v8013_v18, %v6835_v1  ;;  %v3438_v6 = vsel %vm1018_vm8, %v3335_v54, %v3437_v44 }
 0xa7c   :  { %v3343_v48 = vrot.slane %v8019_v11, %v6832_v62 }
 0xa7e   :  { %v8038_v28 = vpop.xlane.xlu0 %3200  ;;  %v3344_v37 = vsel %vm875_vm4, %v3343_v48, %v3339_v22 }
 0xa7f   :  { %v8041_v45 = vpop.xlane.xlu1 %3203  ;;  %v3348_v33 = vrot.slane %v8038_v28, %v6835_v1  ;;  %v3439_v59 = vsel %vm1020_vm9, %v3344_v37, %v3438_v6 }
 0xa80   :  { %v3352_v38 = vrot.slane %v8041_v45, %v6832_v62 }
 0xa82   :  { %v8053_v47 = vpop.xlane.xlu0 %3206  ;;  %v3353_v16 = vsel %vm875_vm4, %v3352_v38, %v3348_v33 }
 0xa83   :  { %v8056_v51 = vpop.xlane.xlu1 %3209  ;;  %v3357_v23 = vrot.slane %v8053_v47, %v6835_v1  ;;  %v3440_v46 = vsel %vm1022_vm10, %v3353_v16, %v3439_v59 }
 0xa84   :  { %v3361_v35 = vrot.slane %v8056_v51, %v6832_v62 }
 0xa86   :  { %v3362_v22 = vsel %vm875_vm4, %v3361_v35, %v3357_v23 }
 0xa87   :  { %v3441_v49 = vsel %vm1024_vm11, %v3362_v22, %v3440_v46 }
 0xa88   :  { %v3451_v63 = vsel %vm576_vm0, %v3441_v49, -inf }
 0xa89   :  { %3452 = vmax.xlane.f32.xlu0 %v3451_v63 }
 0xa8e   :  { %v8069_v21 = vpop.xlane.xlu1 %3215 }
 0xa8f   :  { %v8071_v20 = vpop.xlane.xlu0 %3212  ;;  %v3370_v46 = vrot.slane %v8069_v21, %v6832_v62 }
 0xa90   :  { %v3366_v49 = vrot.slane %v8071_v20, %v6835_v1 }
 0xa92   :  { %v8073_v33 = vpop.xlane.xlu1 %3221  ;;  %v3371_v41 = vsel %vm875_vm4, %v3370_v46, %v3366_v49 }
 0xa93   :  { %v8075_v57 = vpop.xlane.xlu0 %3218  ;;  %v3379_v23 = vrot.slane %v8073_v33, %v6832_v62 }
 0xa94   :  { %v3375_v16 = vrot.slane %v8075_v57, %v6835_v1 }
 0xa96   :  { %v8077_v44 = vpop.xlane.xlu1 %3227  ;;  %v3380_v13 = vsel %vm875_vm4, %v3379_v23, %v3375_v16 }
 0xa97   :  { %v8079_v54 = vpop.xlane.xlu0 %3224  ;;  %v3388_v6 = vrot.slane %v8077_v44, %v6832_v62  ;;  %v3442_v16 = vsel %vm1012_vm5, %v3380_v13, %v3371_v41 }
 0xa98   :  { %v3384_v59 = vrot.slane %v8079_v54, %v6835_v1 }
 0xa9a   :  { %v8081_v48 = vpop.xlane.xlu1 %3233  ;;  %v3389_v50 = vsel %vm875_vm4, %v3388_v6, %v3384_v59 }
 0xa9b   :  { %v8083_v38 = vpop.xlane.xlu0 %3230  ;;  %v3397_v63 = vrot.slane %v8081_v48, %v6832_v62  ;;  %v3443_v2 = vsel %vm1014_vm6, %v3389_v50, %v3442_v16 }
 0xa9c   :  { %v3393_v42 = vrot.slane %v8083_v38, %v6835_v1 }
 0xa9e   :  { %v8085_v19 = vpop.xlane.xlu1 %3239  ;;  %v3398_v56 = vsel %vm875_vm4, %v3397_v63, %v3393_v42 }
 0xa9f   :  { %v8087_v37 = vpop.xlane.xlu0 %3236  ;;  %v3406_v10 = vrot.slane %v8085_v19, %v6832_v62  ;;  %v3444_v9 = vsel %vm1016_vm7, %v3398_v56, %v3443_v2 }
 0xaa0   :  { %v3402_v53 = vrot.slane %v8087_v37, %v6835_v1 }
 0xaa2   :  { %v8093_v35 = vpop.xlane.xlu1 %3245  ;;  %v3407_v24 = vsel %vm875_vm4, %v3406_v10, %v3402_v53 }
 0xaa3   :  { %v8099_v22 = vpop.xlane.xlu0 %3242  ;;  %v3415_v5 = vrot.slane %v8093_v35, %v6832_v62  ;;  %v3445_v13 = vsel %vm1018_vm8, %v3407_v24, %v3444_v9 }
 0xaa4   :  { %v3411_v15 = vrot.slane %v8099_v22, %v6835_v1 }
 0xaa6   :  { %v8118_v36 = vpop.xlane.xlu1 %3251  ;;  %v3416_v6 = vsel %vm875_vm4, %v3415_v5, %v3411_v15 }
 0xaa7   :  { %v3424_v43 = vrot.slane %v8118_v36, %v6832_v62  ;;  %v8123_v52 = vpop.xlane.xlu0 %3248  ;;  %v3446_v50 = vsel %vm1020_vm9, %v3416_v6, %v3445_v13 }
 0xaa8   :  { %v3420_v23 = vrot.slane %v8123_v52, %v6835_v1 }
 0xaaa   :  { %v8133_v59 = vpop.xlane.xlu1 %3257  ;;  %v3425_v42 = vsel %vm875_vm4, %v3424_v43, %v3420_v23 }
 0xaab   :  { %v3433_v46 = vrot.slane %v8133_v59, %v6832_v62  ;;  %v8138_v49 = vpop.xlane.xlu0 %3254  ;;  %v3447_v5 = vsel %vm1022_vm10, %v3425_v42, %v3446_v50 }
 0xaac   :  { %v3429_v41 = vrot.slane %v8138_v49, %v6835_v1 }
 0xaae   :  { %v3434_v15 = vsel %vm875_vm4, %v3433_v46, %v3429_v41 }
 0xaaf   :  { %v3448_v2 = vsel %vm1024_vm11, %v3434_v15, %v3447_v5 }
 0xab0   :  { %v3454_v56 = vsel %vm576_vm0, %v3448_v2, -inf }
 0xab1   :  { %3455 = vmax.xlane.f32.xlu1 %v3454_v56 }
 0xb16   :  { %v3453_v53 = vpop.xlane.xlu0 %3452 }
 0xb17   :  { %v3462_v10 = vrot.slane %v3453_v53, %v6974_v0  ;;  %v3466_v43 = vrot.slane %v3453_v53, %v6977_v17  ;;  %v3470_v24 = vrot.slane %v3453_v53, %v6980_v25  ;;  %v3474_v42 = vrot.slane %v3453_v53, %v6983_v58 }
 0xb18   :  { %v3482_v2 = vrot.slane %v3453_v53, %v6997_v55 }
 0xb19   :  { %v3539_v63 = vsub.f32 %v7989_v34, %v3462_v10  ;;  %v3540_v9 = vsub.f32 %v7991_v31, %v3462_v10  ;;  %v3542_v23 = vsub.f32 %v7995_v7, %v3466_v43  ;;  %v3541_v16 = vsub.f32 %v7993_v30, %v3466_v43 }
 0xb1a   :  { %v3544_v41 = vsub.f32 %v7999_v4, %v3470_v24  ;;  %v3543_v50 = vsub.f32 %v7997_v27, %v3470_v24  ;;  %v3478_v31 = vrot.slane %v3453_v53, %v6992_v29  ;;  %v3546_v15 = vsub.f32 %v8003_v61, %v3474_v42  ;;  %v9467_v61 = vld [vmem:[#allocation39_spill] sm:$0xff] }
 0xb1b   :  { %v3571_v6 = vmul.f32 1.442695, %v3539_v63  ;;  %v3573_v46 = vmul.f32 1.442695, %v3540_v9  ;;  %v3577_v13 = vmul.f32 1.442695, %v3542_v23  ;;  %v3545_v30 = vsub.f32 %v8001_v3, %v3474_v42 }
 0xb1c   :  { %v3575_v34 = vmul.f32 1.442695, %v3541_v16  ;;  %v3581_v7 = vmul.f32 1.442695, %v3544_v41  ;;  %v3579_v5 = vmul.f32 1.442695, %v3543_v50  ;;  %v3548_v4 = vsub.f32 %v8007_v26, %v3478_v31 }
 0xb1d   :  { %6073 = vpow2.f32 %v3571_v6  ;;  %v3585_v56 = vmul.f32 1.442695, %v3546_v15  ;;  %v3547_v27 = vsub.f32 %v8005_v14, %v3478_v31  ;;  %v3583_v10 = vmul.f32 1.442695, %v3545_v30  ;;  %v9468_v6 = vld [vmem:[#allocation40_spill] sm:$0xff] }
 0xb1e   :  { %6075 = vpow2.f32 %v3573_v46  ;;  %v3486_v3 = vrot.slane %v3453_v53, %v9467_v61  ;;  %v3550_v9 = vsub.f32 %v8019_v11, %v3482_v2  ;;  %v3589_v24 = vmul.f32 1.442695, %v3548_v4 }
 0xb1f   :  { %6077 = vpow2.f32 %v3577_v13  ;;  %v3549_v26 = vsub.f32 %v8013_v18, %v3482_v2  ;;  %v3587_v14 = vmul.f32 1.442695, %v3547_v27  ;;  %v3490_v46 = vrot.slane %v3453_v53, %v9468_v6 }
 0xb20   :  { %6079 = vpow2.f32 %v3575_v34  ;;  %v3552_v42 = vsub.f32 %v8041_v45, %v3486_v3  ;;  %v3593_v11 = vmul.f32 1.442695, %v3550_v9  ;;  %v3551_v41 = vsub.f32 %v8038_v28, %v3486_v3 }
 0xb21   :  { %6081 = vpow2.f32 %v3581_v7  ;;  %v3591_v18 = vmul.f32 1.442695, %v3549_v26  ;;  %v3554_v34 = vsub.f32 %v8056_v51, %v3490_v46  ;;  %v3553_v45 = vsub.f32 %v8053_v47, %v3490_v46 }
 0xb22   :  { %6083 = vpow2.f32 %v3579_v5  ;;  %v3597_v53 = vmul.f32 1.442695, %v3552_v42  ;;  %v3595_v31 = vmul.f32 1.442695, %v3551_v41 }
 0xb23   :  { %6085 = vpow2.f32 %v3585_v56  ;;  %v3601_v7 = vmul.f32 1.442695, %v3554_v34  ;;  %v3599_v51 = vmul.f32 1.442695, %v3553_v45 }
 0xb24   :  { %6087 = vpow2.f32 %v3583_v10 }
 0xb25   :  { %6089 = vpow2.f32 %v3589_v24 }
 0xb26   :  { %6091 = vpow2.f32 %v3587_v14 }
 0xb27   :  { %v8165_v43 = vpop.eup %6073  ;;  %6093 = vpow2.f32 %v3593_v11 }
 0xb28   :  { %v8167_v63 = vpop.eup %6075  ;;  %3668 = vperm.xlu0 %5854, %v8165_v43   ;;  %6095 = vpow2.f32 %v3591_v18 }
 0xb29   :  { %3671 = vperm.xlu1 %5853, %v8167_v63   ;;  %v8174_v23 = vpop.eup %6077  ;;  %6097 = vpow2.f32 %v3597_v53 }
 0xb2a   :  { %v8176_v16 = vpop.eup %6079  ;;  %6099 = vpow2.f32 %v3595_v31 }
 0xb2b   :  { %v8183_v13 = vpop.eup %6081  ;;  %6101 = vpow2.f32 %v3601_v7 }
 0xb2c   :  { %3677 = vperm.xlu0 %5854, %v8174_v23   ;;  %v8185_v50 = vpop.eup %6083  ;;  %6103 = vpow2.f32 %v3599_v51 }
 0xb2d   :  { %3674 = vperm.xlu1 %5853, %v8176_v16   ;;  %v8191_v15 = vpop.eup %6085 }
 0xb2e   :  { %v8193_v28 = vpop.eup %6087 }
 0xb2f   :  { %v8197_v30 = vpop.eup %6089 }
 0xb30   :  { %3683 = vperm.xlu0 %5854, %v8183_v13   ;;  %v8199_v5 = vpop.eup %6091 }
 0xb31   :  { %3680 = vperm.xlu1 %5853, %v8185_v50   ;;  %v8203_v47 = vpop.eup %6093 }
 0xb32   :  { %v8205_v2 = vpop.eup %6095 }
 0xb33   :  { %v8211_v10 = vpop.eup %6097 }
 0xb34   :  { %3689 = vperm.xlu0 %5854, %v8191_v15   ;;  %v8215_v24 = vpop.eup %6099 }
 0xb35   :  { %3686 = vperm.xlu1 %5853, %v8193_v28   ;;  %v8222_v42 = vpop.eup %6101 }
 0xb36   :  { %v8224_v18 = vpop.eup %6103 }
 0xb38   :  { %3695 = vperm.xlu0 %5854, %v8197_v30  }
 0xb39   :  { %3692 = vperm.xlu1 %5853, %v8199_v5  }
 0xb3c   :  { %3701 = vperm.xlu0 %5854, %v8203_v47  }
 0xb3d   :  { %3698 = vperm.xlu1 %5853, %v8205_v2  }
 0xb3e   :  { %v3456_v4 = vpop.xlane.xlu1 %3455 }
 0xb3f   :  { %v3494_v56 = vrot.slane %v3456_v4, %v6974_v0  ;;  %v3498_v27 = vrot.slane %v3456_v4, %v6977_v17  ;;  %v3502_v26 = vrot.slane %v3456_v4, %v6980_v25  ;;  %v3510_v53 = vrot.slane %v3456_v4, %v6992_v29 }
 0xb40   :  { %3707 = vperm.xlu0 %5854, %v8211_v10  }
 0xb41   :  { %v3555_v3 = vsub.f32 %v8071_v20, %v3494_v56  ;;  %v3556_v9 = vsub.f32 %v8069_v21, %v3494_v56  ;;  %v3557_v14 = vsub.f32 %v8075_v57, %v3498_v27  ;;  %3704 = vperm.xlu1 %5853, %v8215_v24   ;;  %v3558_v46 = vsub.f32 %v8073_v33, %v3498_v27 }
 0xb42   :  { %v3506_v21 = vrot.slane %v3456_v4, %v6983_v58  ;;  %v3559_v20 = vsub.f32 %v8079_v54, %v3502_v26  ;;  %v3560_v57 = vsub.f32 %v8077_v44, %v3502_v26  ;;  %v3514_v54 = vrot.slane %v3456_v4, %v6997_v55 }
 0xb43   :  { %v3603_v11 = vmul.f32 1.442695, %v3555_v3  ;;  %v3605_v41 = vmul.f32 1.442695, %v3556_v9  ;;  %v3607_v34 = vmul.f32 1.442695, %v3557_v14  ;;  %v3563_v56 = vsub.f32 %v8087_v37, %v3510_v53 }
 0xb44   :  { %3713 = vperm.xlu0 %5854, %v8222_v42   ;;  %v3609_v33 = vmul.f32 1.442695, %v3558_v46  ;;  %v3561_v45 = vsub.f32 %v8083_v38, %v3506_v21  ;;  %v3611_v31 = vmul.f32 1.442695, %v3559_v20  ;;  %v3562_v7 = vsub.f32 %v8081_v48, %v3506_v21 }
 0xb45   :  { %6105 = vpow2.f32 %v3603_v11  ;;  %3710 = vperm.xlu1 %5853, %v8224_v18   ;;  %v3613_v51 = vmul.f32 1.442695, %v3560_v57  ;;  %v3564_v44 = vsub.f32 %v8085_v19, %v3510_v53  ;;  %v3518_v48 = vrot.slane %v3456_v4, %v9467_v61 }
 0xb46   :  { %6107 = vpow2.f32 %v3605_v41  ;;  %v3615_v27 = vmul.f32 1.442695, %v3561_v45  ;;  %v3617_v3 = vmul.f32 1.442695, %v3562_v7  ;;  %v3565_v38 = vsub.f32 %v8099_v22, %v3514_v54 }
 0xb47   :  { %6109 = vpow2.f32 %v3607_v34  ;;  %v3619_v14 = vmul.f32 1.442695, %v3563_v56  ;;  %v3566_v37 = vsub.f32 %v8093_v35, %v3514_v54  ;;  %v3621_v19 = vmul.f32 1.442695, %v3564_v44 }
 0xb48   :  { %6111 = vpow2.f32 %v3609_v33  ;;  %v3522_v41 = vrot.slane %v3456_v4, %v9468_v6  ;;  %v3567_v21 = vsub.f32 %v8123_v52, %v3518_v48  ;;  %v3623_v22 = vmul.f32 1.442695, %v3565_v38 }
 0xb49   :  { %6113 = vpow2.f32 %v3611_v31  ;;  %v3568_v20 = vsub.f32 %v8118_v36, %v3518_v48  ;;  %v3625_v35 = vmul.f32 1.442695, %v3566_v37 }
 0xb4a   :  { %6115 = vpow2.f32 %v3613_v51  ;;  %v3569_v33 = vsub.f32 %v8138_v49, %v3522_v41  ;;  %v3627_v4 = vmul.f32 1.442695, %v3567_v21  ;;  %v3570_v52 = vsub.f32 %v8133_v59, %v3522_v41 }
 0xb4b   :  { %6117 = vpow2.f32 %v3615_v27  ;;  %v3629_v53 = vmul.f32 1.442695, %v3568_v20 }
 0xb4c   :  { %6119 = vpow2.f32 %v3617_v3  ;;  %v3631_v31 = vmul.f32 1.442695, %v3569_v33  ;;  %v3633_v49 = vmul.f32 1.442695, %v3570_v52 }
 0xb4d   :  { %6121 = vpow2.f32 %v3619_v14 }
 0xb4e   :  { %6123 = vpow2.f32 %v3621_v19 }
 0xb4f   :  { %v8237_v9 = vpop.eup %6105  ;;  %6125 = vpow2.f32 %v3623_v22 }
 0xb50   :  { %v8239_v26 = vpop.eup %6107  ;;  %3716 = vperm.xlu1 %5853, %v8237_v9   ;;  %6127 = vpow2.f32 %v3625_v35 }
 0xb51   :  { %3719 = vperm.xlu0 %5854, %v8239_v26   ;;  %v8246_v46 = vpop.eup %6109  ;;  %6129 = vpow2.f32 %v3627_v4 }
 0xb52   :  { %v8248_v11 = vpop.eup %6111  ;;  %6131 = vpow2.f32 %v3629_v53 }
 0xb53   :  { %v8255_v34 = vpop.eup %6113  ;;  %6133 = vpow2.f32 %v3631_v31 }
 0xb54   :  { %3722 = vperm.xlu1 %5853, %v8246_v46   ;;  %v8257_v57 = vpop.eup %6115  ;;  %6135 = vpow2.f32 %v3633_v49 }
 0xb55   :  { %3725 = vperm.xlu0 %5854, %v8248_v11   ;;  %v8263_v45 = vpop.eup %6117 }
 0xb56   :  { %v8265_v36 = vpop.eup %6119 }
 0xb57   :  { %v8269_v7 = vpop.eup %6121 }
 0xb58   :  { %3728 = vperm.xlu1 %5853, %v8255_v34   ;;  %v8271_v51 = vpop.eup %6123 }
 0xb59   :  { %3731 = vperm.xlu0 %5854, %v8257_v57   ;;  %v8275_v59 = vpop.eup %6125 }
 0xb5a   :  { %v8277_v54 = vpop.eup %6127 }
 0xb5b   :  { %v8281_v56 = vpop.eup %6129 }
 0xb5c   :  { %3734 = vperm.xlu1 %5853, %v8263_v45   ;;  %v8283_v27 = vpop.eup %6131 }
 0xb5d   :  { %3737 = vperm.xlu0 %5854, %v8265_v36   ;;  %v8287_v44 = vpop.eup %6133 }
 0xb5e   :  { %9469 = vst [vmem:[#allocation42_spill] sm:$0xff] %v8287_v44  ;;  %v8289_v3 = vpop.eup %6135 }
 0xb60   :  { %3740 = vperm.xlu1 %5853, %v8269_v7  }
 0xb61   :  { %3743 = vperm.xlu0 %5854, %v8271_v51  }
 0xb64   :  { %3746 = vperm.xlu1 %5853, %v8275_v59  }
 0xb65   :  { %3749 = vperm.xlu0 %5854, %v8277_v54  }
 0xb68   :  { %3752 = vperm.xlu1 %5853, %v8281_v56  }
 0xb69   :  { %3755 = vperm.xlu0 %5854, %v8283_v27  }
 0xb6c   :  { %3758 = vperm.xlu1 %5853, %v8287_v44  }
 0xb6d   :  { %3761 = vperm.xlu0 %5854, %v8289_v3  }
 0xba7   :  { %v3669_v48 = vpop.permute.xlu0 %3668 }
 0xba8   :  { %v3672_v38 = vpop.permute.xlu1 %3671  ;;  %v3766_v8 = vrot.slane %v3669_v48, %v6835_v1 }
 0xba9   :  { %v3770_v40 = vrot.slane %v3672_v38, %v6832_v62 }
 0xbab   :  { %v3678_v14 = vpop.permute.xlu0 %3677 }
 0xbac   :  { %v3675_v37 = vpop.permute.xlu1 %3674  ;;  %v3779_v4 = vrot.slane %v3678_v14, %v6832_v62 }
 0xbad   :  { %v3775_v33 = vrot.slane %v3675_v37, %v6835_v1 }
 0xbaf   :  { %v3684_v19 = vpop.permute.xlu0 %3683  ;;  %v3780_v14 = vsel %vm875_vm4, %v3779_v4, %v3775_v33 }
 0xbb0   :  { %v3681_v41 = vpop.permute.xlu1 %3680  ;;  %v3788_v31 = vrot.slane %v3684_v19, %v6832_v62 }
 0xbb1   :  { %v3784_v53 = vrot.slane %v3681_v41, %v6835_v1 }
 0xbb3   :  { %v3690_v21 = vpop.permute.xlu0 %3689  ;;  %v3789_v44 = vsel %vm875_vm4, %v3788_v31, %v3784_v53 }
 0xbb4   :  { %v3687_v22 = vpop.permute.xlu1 %3686  ;;  %v3797_v60 = vrot.slane %v3690_v21, %v6832_v62 }
 0xbb5   :  { %v3793_v39 = vrot.slane %v3687_v22, %v6835_v1  ;;  %v3771_v22 = vsel %vm875_vm4, %v3770_v40, %v3766_v8 }
 0xbb7   :  { %v3696_v20 = vpop.permute.xlu0 %3695  ;;  %v3798_v21 = vsel %vm875_vm4, %v3797_v60, %v3793_v39 }
 0xbb8   :  { %v3693_v35 = vpop.permute.xlu1 %3692  ;;  %v3806_v37 = vrot.slane %v3696_v20, %v6832_v62  ;;  %v3907_v20 = vsel %vm1012_vm5, %v3780_v14, %v3771_v22 }
 0xbb9   :  { %v3802_v32 = vrot.slane %v3693_v35, %v6835_v1  ;;  %v3908_v4 = vsel %vm1014_vm6, %v3789_v44, %v3907_v20 }
 0xbba   :  { %v3909_v53 = vsel %vm1016_vm7, %v3798_v21, %v3908_v4 }
 0xbbb   :  { %v3702_v52 = vpop.permute.xlu0 %3701  ;;  %v3807_v33 = vsel %vm875_vm4, %v3806_v37, %v3802_v32 }
 0xbbc   :  { %v3699_v49 = vpop.permute.xlu1 %3698  ;;  %v3815_v41 = vrot.slane %v3702_v52, %v6832_v62  ;;  %v3910_v60 = vsel %vm1018_vm8, %v3807_v33, %v3909_v53 }
 0xbbd   :  { %v3811_v12 = vrot.slane %v3699_v49, %v6835_v1 }
 0xbbf   :  { %v3708_v19 = vpop.permute.xlu0 %3707  ;;  %v3816_v52 = vsel %vm875_vm4, %v3815_v41, %v3811_v12 }
 0xbc0   :  { %v3705_v38 = vpop.permute.xlu1 %3704  ;;  %v3824_v48 = vrot.slane %v3708_v19, %v6832_v62  ;;  %v3911_v40 = vsel %vm1020_vm9, %v3816_v52, %v3910_v60 }
 0xbc1   :  { %v3820_v35 = vrot.slane %v3705_v38, %v6835_v1 }
 0xbc3   :  { %v3714_v49 = vpop.permute.xlu0 %3713  ;;  %v3825_v31 = vsel %vm875_vm4, %v3824_v48, %v3820_v35 }
 0xbc4   :  { %v3711_v19 = vpop.permute.xlu1 %3710  ;;  %v3833_v8 = vrot.slane %v3714_v49, %v6832_v62  ;;  %v3912_v44 = vsel %vm1022_vm10, %v3825_v31, %v3911_v40 }
 0xbc5   :  { %v3829_v39 = vrot.slane %v3711_v19, %v6835_v1 }
 0xbc7   :  { %v3834_v32 = vsel %vm875_vm4, %v3833_v8, %v3829_v39 }
 0xbc8   :  { %v3913_v12 = vsel %vm1024_vm11, %v3834_v32, %v3912_v44 }
 0xbc9   :  { %v3923_v37 = vsel %vm576_vm0, %v3913_v12, 0.0 }
 0xbca   :  { %3924 = vadd.xlane.f32.xlu1 %v3923_v37 }
 0xbcf   :  { %v3717_v14 = vpop.permute.xlu1 %3716 }
 0xbd0   :  { %v3720_v41 = vpop.permute.xlu0 %3719  ;;  %v3838_v60 = vrot.slane %v3717_v14, %v6835_v1 }
 0xbd1   :  { %v3842_v39 = vrot.slane %v3720_v41, %v6832_v62 }
 0xbd3   :  { %v3723_v38 = vpop.permute.xlu1 %3722 }
 0xbd4   :  { %v3726_v48 = vpop.permute.xlu0 %3725  ;;  %v3847_v52 = vrot.slane %v3723_v38, %v6835_v1 }
 0xbd5   :  { %v3851_v49 = vrot.slane %v3726_v48, %v6832_v62 }
 0xbd7   :  { %v3729_v22 = vpop.permute.xlu1 %3728  ;;  %v3852_v37 = vsel %vm875_vm4, %v3851_v49, %v3847_v52 }
 0xbd8   :  { %v3732_v21 = vpop.permute.xlu0 %3731  ;;  %v3856_v31 = vrot.slane %v3729_v22, %v6835_v1 }
 0xbd9   :  { %v3860_v19 = vrot.slane %v3732_v21, %v6832_v62 }
 0xbdb   :  { %v3735_v35 = vpop.permute.xlu1 %3734  ;;  %v3861_v21 = vsel %vm875_vm4, %v3860_v19, %v3856_v31 }
 0xbdc   :  { %v3738_v20 = vpop.permute.xlu0 %3737  ;;  %v3865_v40 = vrot.slane %v3735_v35, %v6835_v1  ;;  %v3843_v35 = vsel %vm875_vm4, %v3842_v39, %v3838_v60 }
 0xbdd   :  { %v3869_v32 = vrot.slane %v3738_v20, %v6832_v62 }
 0xbdf   :  { %v3741_v33 = vpop.permute.xlu1 %3740  ;;  %v3870_v20 = vsel %vm875_vm4, %v3869_v32, %v3865_v40 }
 0xbe0   :  { %v3744_v4 = vpop.permute.xlu0 %3743  ;;  %v3874_v44 = vrot.slane %v3741_v33, %v6835_v1 }
 0xbe1   :  { %v3878_v12 = vrot.slane %v3744_v4, %v6832_v62  ;;  %v3914_v4 = vsel %vm1012_vm5, %v3852_v37, %v3843_v35 }
 0xbe2   :  { %v3915_v49 = vsel %vm1014_vm6, %v3861_v21, %v3914_v4 }
 0xbe3   :  { %v3747_v53 = vpop.permute.xlu1 %3746  ;;  %v3879_v52 = vsel %vm875_vm4, %v3878_v12, %v3874_v44  ;;  %v3916_v31 = vsel %vm1016_vm7, %v3870_v20, %v3915_v49 }
 0xbe4   :  { %v3750_v8 = vpop.permute.xlu0 %3749  ;;  %v3883_v38 = vrot.slane %v3747_v53, %v6835_v1  ;;  %v3917_v39 = vsel %vm1018_vm8, %v3879_v52, %v3916_v31 }
 0xbe5   :  { %v3887_v48 = vrot.slane %v3750_v8, %v6832_v62 }
 0xbe7   :  { %v3753_v22 = vpop.permute.xlu1 %3752  ;;  %v3888_v53 = vsel %vm875_vm4, %v3887_v48, %v3883_v38 }
 0xbe8   :  { %v3892_v14 = vrot.slane %v3753_v22, %v6835_v1  ;;  %v3756_v41 = vpop.permute.xlu0 %3755  ;;  %v3918_v32 = vsel %vm1020_vm9, %v3888_v53, %v3917_v39 }
 0xbe9   :  { %v3896_v33 = vrot.slane %v3756_v41, %v6832_v62 }
 0xbeb   :  { %v3759_v8 = vpop.permute.xlu1 %3758  ;;  %v3897_v19 = vsel %vm875_vm4, %v3896_v33, %v3892_v14 }
 0xbec   :  { %v3901_v22 = vrot.slane %v3759_v8, %v6835_v1  ;;  %v3762_v60 = vpop.permute.xlu0 %3761  ;;  %v3919_v12 = vsel %vm1022_vm10, %v3897_v19, %v3918_v32 }
 0xbed   :  { %v3905_v40 = vrot.slane %v3762_v60, %v6832_v62 }
 0xbef   :  { %v3906_v44 = vsel %vm875_vm4, %v3905_v40, %v3901_v22 }
 0xbf0   :  { %v3920_v37 = vsel %vm1024_vm11, %v3906_v44, %v3919_v12 }
 0xbf1   :  { %v3926_v38 = vsel %vm576_vm0, %v3920_v37, 0.0 }
 0xbf2   :  { %3927 = vadd.xlane.f32.xlu0 %v3926_v38 }
 0xc57   :  { %v3925_v48 = vpop.xlane.xlu1 %3924 }
 0xc58   :  { %v3934_v21 = vrot.slane %v3925_v48, %v6974_v0  ;;  %v3938_v14 = vrot.slane %v3925_v48, %v6977_v17  ;;  %v3942_v41 = vrot.slane %v3925_v48, %v6980_v25  ;;  %v3946_v35 = vrot.slane %v3925_v48, %v6983_v58 }
 0xc59   :  { %v3950_v33 = vrot.slane %v3925_v48, %v6992_v29  ;;  %v3954_v53 = vrot.slane %v3925_v48, %v6997_v55  ;;  %v3958_v22 = vrot.slane %v3925_v48, %v9467_v61  ;;  %v3962_v39 = vrot.slane %v3925_v48, %v9468_v6 }
 0xc5a   :  { %6137 = vrcp.f32 %v3934_v21 }
 0xc5b   :  { %6139 = vrcp.f32 %v3938_v14 }
 0xc5c   :  { %6141 = vrcp.f32 %v3942_v41 }
 0xc5d   :  { %6143 = vrcp.f32 %v3946_v35 }
 0xc5e   :  { %6145 = vrcp.f32 %v3950_v33 }
 0xc5f   :  { %6147 = vrcp.f32 %v3954_v53 }
 0xc60   :  { %6149 = vrcp.f32 %v3958_v22 }
 0xc61   :  { %6151 = vrcp.f32 %v3962_v39 }
 0xc64   :  { %v6138_v20 = vpop.eup %6137 }
 0xc65   :  { %v4013_v4 = vmul.f32 %v6138_v20, %v8167_v63  ;;  %v4012_v52 = vmul.f32 %v6138_v20, %v8165_v43  ;;  %v6140_v49 = vpop.eup %6139 }
 0xc66   :  { %v4015_v8 = vmul.f32 %v6140_v49, %v8176_v16  ;;  %v4016_v31 = vmul.f32 %v6140_v49, %v8174_v23  ;;  %v6142_v19 = vpop.eup %6141 }
 0xc67   :  { %4066 = vperm.xlu1 %5853, %v4013_v4   ;;  %4061 = vperm.xlu0 %5854, %v4012_v52   ;;  %v4018_v63 = vmul.f32 %v6142_v19, %v8185_v50  ;;  %v4019_v43 = vmul.f32 %v6142_v19, %v8183_v13  ;;  %v6144_v60 = vpop.eup %6143 }
 0xc68   :  { %v4021_v16 = vmul.f32 %v6144_v60, %v8193_v28  ;;  %v4022_v23 = vmul.f32 %v6144_v60, %v8191_v15  ;;  %v6146_v40 = vpop.eup %6145 }
 0xc69   :  { %v4024_v32 = vmul.f32 %v6146_v40, %v8199_v5  ;;  %v4025_v50 = vmul.f32 %v6146_v40, %v8197_v30  ;;  %v6148_v44 = vpop.eup %6147 }
 0xc6a   :  { %v4027_v13 = vmul.f32 %v6148_v44, %v8205_v2  ;;  %v4028_v12 = vmul.f32 %v6148_v44, %v8203_v47  ;;  %v6150_v37 = vpop.eup %6149 }
 0xc6b   :  { %4071 = vperm.xlu1 %5853, %v4015_v8   ;;  %4076 = vperm.xlu0 %5854, %v4016_v31   ;;  %v4030_v15 = vmul.f32 %v6150_v37, %v8215_v24  ;;  %v4031_v28 = vmul.f32 %v6150_v37, %v8211_v10  ;;  %v6152_v38 = vpop.eup %6151 }
 0xc6c   :  { %v4033_v21 = vmul.f32 %v6152_v38, %v8224_v18  ;;  %v4034_v2 = vmul.f32 %v6152_v38, %v8222_v42 }
 0xc6f   :  { %4081 = vperm.xlu1 %5853, %v4018_v63   ;;  %4086 = vperm.xlu0 %5854, %v4019_v43  }
 0xc73   :  { %4091 = vperm.xlu1 %5853, %v4021_v16   ;;  %4096 = vperm.xlu0 %5854, %v4022_v23  }
 0xc77   :  { %4101 = vperm.xlu1 %5853, %v4024_v32   ;;  %4106 = vperm.xlu0 %5854, %v4025_v50  }
 0xc7b   :  { %4111 = vperm.xlu1 %5853, %v4027_v13   ;;  %4116 = vperm.xlu0 %5854, %v4028_v12   ;;  %v9473_v12 = vld [vmem:[#allocation12_spill] sm:$0xff] }
 0xc7f   :  { %4121 = vperm.xlu1 %5853, %v4030_v15   ;;  %4126 = vperm.xlu0 %5854, %v4031_v28   ;;  %v3928_v5 = vpop.xlane.xlu0 %3927  ;;  %v9474_v15 = vld [vmem:[#allocation7_spill] sm:$0xff]  ;;  %v9475_v28 = vld [vmem:[#allocation9_spill] sm:$0xff] }
 0xc80   :  { %v3966_v30 = vrot.slane %v3928_v5, %v6974_v0  ;;  %v3970_v48 = vrot.slane %v3928_v5, %v6977_v17  ;;  %v3974_v47 = vrot.slane %v3928_v5, %v6980_v25  ;;  %v3978_v10 = vrot.slane %v3928_v5, %v6983_v58 }
 0xc81   :  { %v3982_v14 = vrot.slane %v3928_v5, %v6992_v29  ;;  %v3986_v42 = vrot.slane %v3928_v5, %v6997_v55  ;;  %v3990_v52 = vrot.slane %v3928_v5, %v9467_v61  ;;  %v3994_v53 = vrot.slane %v3928_v5, %v9468_v6  ;;  %v9476_v5 = vld [vmem:[#allocation16_spill] sm:$0xff] }
 0xc82   :  { %6153 = vrcp.f32 %v3966_v30  ;;  %v9500_v6 = vld [vmem:[#allocation36_spill] sm:$0xff] }
 0xc83   :  { %4131 = vperm.xlu1 %5853, %v4033_v21   ;;  %4136 = vperm.xlu0 %5854, %v4034_v2   ;;  %6155 = vrcp.f32 %v3970_v48 }
 0xc84   :  { %6157 = vrcp.f32 %v3974_v47 }
 0xc85   :  { %6159 = vrcp.f32 %v3978_v10  ;;  %v9477_v10 = vld [vmem:[#allocation10_spill] sm:$0xff] }
 0xc86   :  { %6161 = vrcp.f32 %v3982_v14  ;;  %v9478_v14 = vld [vmem:[#allocation20_spill] sm:$0xff] }
 0xc87   :  { %6163 = vrcp.f32 %v3986_v42 }
 0xc88   :  { %6165 = vrcp.f32 %v3990_v52  ;;  %v9480_v52 = vld [vmem:[#allocation17_spill] sm:$0xff] }
 0xc89   :  { %6167 = vrcp.f32 %v3994_v53 }
 0xc8c   :  { %v6154_v24 = vpop.eup %6153 }
 0xc8d   :  { %v4037_v41 = vmul.f32 %v6154_v24, %v8239_v26  ;;  %v4036_v35 = vmul.f32 %v6154_v24, %v8237_v9  ;;  %v6156_v18 = vpop.eup %6155 }
 0xc8e   :  { %v4040_v20 = vmul.f32 %v6156_v18, %v8248_v11  ;;  %v4039_v33 = vmul.f32 %v6156_v18, %v8246_v46  ;;  %v6158_v4 = vpop.eup %6157 }
 0xc8f   :  { %4146 = vperm.xlu0 %5854, %v4037_v41   ;;  %4141 = vperm.xlu1 %5853, %v4036_v35   ;;  %v4043_v26 = vmul.f32 %v6158_v4, %v8257_v57  ;;  %v4042_v9 = vmul.f32 %v6158_v4, %v8255_v34  ;;  %v6160_v49 = vpop.eup %6159 }
 0xc90   :  { %v4046_v11 = vmul.f32 %v6160_v49, %v8265_v36  ;;  %v4045_v46 = vmul.f32 %v6160_v49, %v8263_v45  ;;  %v6162_v8 = vpop.eup %6161 }
 0xc91   :  { %v4049_v31 = vmul.f32 %v6162_v8, %v8271_v51  ;;  %v4048_v57 = vmul.f32 %v6162_v8, %v8269_v7  ;;  %v6164_v19 = vpop.eup %6163  ;;  %v9470_v7 = vld [vmem:[#allocation42_spill] sm:$0xff] }
 0xc92   :  { %v4052_v34 = vmul.f32 %v6164_v19, %v8277_v54  ;;  %v4051_v22 = vmul.f32 %v6164_v19, %v8275_v59  ;;  %v6166_v63 = vpop.eup %6165  ;;  %v9482_v19 = vld [vmem:[#allocation21_spill] sm:$0xff] }
 0xc93   :  { %4156 = vperm.xlu0 %5854, %v4040_v20   ;;  %4151 = vperm.xlu1 %5853, %v4039_v33   ;;  %v4055_v45 = vmul.f32 %v6166_v63, %v8283_v27  ;;  %v4054_v36 = vmul.f32 %v6166_v63, %v8281_v56  ;;  %v6168_v43 = vpop.eup %6167  ;;  %v9471_v27 = vld [vmem:[#allocation8_spill] sm:$0xff]  ;;  %v9472_v56 = vld [vmem:[#allocation19_spill] sm:$0xff] }
 0xc94   :  { %v4058_v51 = vmul.f32 %v6168_v43, %v8289_v3  ;;  %v4057_v60 = vmul.f32 %v6168_v43, %v9470_v7  ;;  %v9479_v33 = vld [vmem:[#allocation11_spill] sm:$0xff] }
 0xc97   :  { %4166 = vperm.xlu0 %5854, %v4043_v26   ;;  %4161 = vperm.xlu1 %5853, %v4042_v9  }
 0xc9b   :  { %4176 = vperm.xlu0 %5854, %v4046_v11   ;;  %4171 = vperm.xlu1 %5853, %v4045_v46  }
 0xc9f   :  { %4186 = vperm.xlu0 %5854, %v4049_v31   ;;  %4181 = vperm.xlu1 %5853, %v4048_v57   ;;  %v9481_v31 = vld [vmem:[#allocation13_spill] sm:$0xff] }
 0xca3   :  { %4196 = vperm.xlu0 %5854, %v4052_v34   ;;  %4191 = vperm.xlu1 %5853, %v4051_v22  }
 0xca7   :  { %4206 = vperm.xlu0 %5854, %v4055_v45   ;;  %4201 = vperm.xlu1 %5853, %v4054_v36  }
 0xcab   :  { %4216 = vperm.xlu0 %5854, %v4058_v51   ;;  %4211 = vperm.xlu1 %5853, %v4057_v60  }
 0xce6   :  { %v4067_v39 = vpop.permute.xlu1 %4066  ;;  %v4062_v54 = vpop.permute.xlu0 %4061 }
 0xce7   :  { %v4220_v37 = vmul.f32 %v4067_v39, %v9473_v12  ;;  %v4219_v3 = vmul.f32 %v4062_v54, %v9474_v15 }
 0xce9   :  { %v4266_v35 = vsel %vm630_vm3, %v4220_v37, 0.0  ;;  %v4251_v18 = vsel %vm614_vm2, %v4219_v3, 0.0 }
 0xcea   :  { %v4072_v16 = vpop.permute.xlu1 %4071  ;;  %v4077_v59 = vpop.permute.xlu0 %4076 }
 0xceb   :  { %v4221_v44 = vmul.f32 %v4072_v16, %v9471_v27  ;;  %v4222_v13 = vmul.f32 %v4077_v59, %v9472_v56  ;;  %v9483_v16 = vld [vmem:[#allocation14_spill] sm:$0xff] }
 0xced   :  { %v4252_v2 = vsel %vm614_vm2, %v4221_v44, 0.0  ;;  %v4267_v47 = vsel %vm630_vm3, %v4222_v13, 0.0 }
 0xcee   :  { %v4082_v23 = vpop.permute.xlu1 %4081  ;;  %v4087_v40 = vpop.permute.xlu0 %4086  ;;  %v4253_v9 = vadd.f32 %v4252_v2, %v4251_v18  ;;  %v4268_v49 = vadd.f32 %v4267_v47, %v4266_v35  ;;  %v9486_v2 = vld [vmem:[#allocation22_spill] sm:$0xff] }
 0xcef   :  { %v4223_v38 = vmul.f32 %v4082_v23, %v9475_v28  ;;  %v4224_v30 = vmul.f32 %v4087_v40, %v9476_v5  ;;  %v9484_v23 = vld [vmem:[#allocation18_spill] sm:$0xff] }
 0xcf1   :  { %v4254_v42 = vsel %vm614_vm2, %v4223_v38, 0.0  ;;  %v4269_v20 = vsel %vm630_vm3, %v4224_v30, 0.0 }
 0xcf2   :  { %v4092_v32 = vpop.permute.xlu1 %4091  ;;  %v4097_v50 = vpop.permute.xlu0 %4096  ;;  %v4255_v22 = vadd.f32 %v4254_v42, %v4253_v9  ;;  %v4270_v63 = vadd.f32 %v4269_v20, %v4268_v49 }
 0xcf3   :  { %v4225_v24 = vmul.f32 %v4092_v32, %v9477_v10  ;;  %v4226_v41 = vmul.f32 %v4097_v50, %v9478_v14 }
 0xcf5   :  { %v4256_v46 = vsel %vm614_vm2, %v4225_v24, 0.0  ;;  %v4271_v8 = vsel %vm630_vm3, %v4226_v41, 0.0 }
 0xcf6   :  { %v4102_v48 = vpop.permute.xlu1 %4101  ;;  %v4107_v21 = vpop.permute.xlu0 %4106  ;;  %v4257_v43 = vadd.f32 %v4256_v46, %v4255_v22  ;;  %v4272_v51 = vadd.f32 %v4271_v8, %v4270_v63 }
 0xcf7   :  { %v4227_v4 = vmul.f32 %v4102_v48, %v9479_v33  ;;  %v4228_v26 = vmul.f32 %v4107_v21, %v9480_v52  ;;  %v9485_v48 = vld [vmem:[#allocation15_spill] sm:$0xff] }
 0xcf9   :  { %v4258_v45 = vsel %vm614_vm2, %v4227_v4, 0.0  ;;  %v4273_v36 = vsel %vm630_vm3, %v4228_v26, 0.0 }
 0xcfa   :  { %v4112_v53 = vpop.permute.xlu1 %4111  ;;  %v4117_v11 = vpop.permute.xlu0 %4116  ;;  %v4259_v32 = vadd.f32 %v4258_v45, %v4257_v43  ;;  %v4274_v50 = vadd.f32 %v4273_v36, %v4272_v51  ;;  %v9487_v45 = vld [vmem:[#allocation24_spill] sm:$0xff]  ;;  %v9488_v43 = vld [vmem:[#allocation30_spill] sm:$0xff] }
 0xcfb   :  { %v4229_v57 = vmul.f32 %v4112_v53, %v9481_v31  ;;  %v4230_v34 = vmul.f32 %v4117_v11, %v9482_v19 }
 0xcfd   :  { %v4260_v39 = vsel %vm614_vm2, %v4229_v57, 0.0  ;;  %v4275_v54 = vsel %vm630_vm3, %v4230_v34, 0.0 }
 0xcfe   :  { %v4122_v7 = vpop.permute.xlu1 %4121  ;;  %v4127_v60 = vpop.permute.xlu0 %4126  ;;  %v4261_v37 = vadd.f32 %v4260_v39, %v4259_v32  ;;  %v4276_v3 = vadd.f32 %v4275_v54, %v4274_v50  ;;  %v9490_v39 = vld [vmem:[#allocation27_spill] sm:$0xff]  ;;  %v9492_v32 = vld [vmem:[#allocation29_spill] sm:$0xff] }
 0xcff   :  { %v4231_v59 = vmul.f32 %v4122_v7, %v9483_v16  ;;  %v4232_v40 = vmul.f32 %v4127_v60, %v9484_v23  ;;  %v9489_v7 = vld [vmem:[#allocation23_spill] sm:$0xff] }
 0xd01   :  { %v4262_v44 = vsel %vm614_vm2, %v4231_v59, 0.0  ;;  %v4277_v13 = vsel %vm630_vm3, %v4232_v40, 0.0  ;;  %v9491_v59 = vld [vmem:[#allocation25_spill] sm:$0xff] }
 0xd02   :  { %v4132_v38 = vpop.permute.xlu1 %4131  ;;  %v4137_v30 = vpop.permute.xlu0 %4136  ;;  %v4263_v24 = vadd.f32 %v4262_v44, %v4261_v37  ;;  %v4278_v41 = vadd.f32 %v4277_v13, %v4276_v3 }
 0xd03   :  { %v4233_v21 = vmul.f32 %v4132_v38, %v9485_v48  ;;  %v4234_v47 = vmul.f32 %v4137_v30, %v9486_v2  ;;  %v9493_v38 = vld [vmem:[#allocation26_spill] sm:$0xff] }
 0xd05   :  { %v4264_v35 = vsel %vm614_vm2, %v4233_v21, 0.0  ;;  %v4279_v18 = vsel %vm630_vm3, %v4234_v47, 0.0  ;;  %v9494_v21 = vld [vmem:[#allocation35_spill] sm:$0xff] }
 0xd06   :  { %v8437_v42 = vadd.f32 %v4264_v35, %v4263_v24  ;;  %v8439_v20 = vadd.f32 %v4279_v18, %v4278_v41 }
 0xd08   :  { %v4311_v4 = vmul.f32 %v8437_v42, %v8437_v42  ;;  %v4312_v26 = vmul.f32 %v8439_v20, %v8439_v20 }
 0xd0a   :  { %v4315_v9 = vsel %vm614_vm2, %v4311_v4, 0.0  ;;  %v4318_v49 = vsel %vm630_vm3, %v4312_v26, 0.0  ;;  %v9495_v4 = vld [vmem:[#allocation28_spill] sm:$0xff] }
 0xd0b   :  { %4316 = vadd.xlane.f32.xlu1 %v4315_v9  ;;  %4319 = vadd.xlane.f32.xlu0 %v4318_v49  ;;  %v9496_v9 = vld [vmem:[#allocation33_spill] sm:$0xff] }
 0xd0e   :  { %v4142_v53 = vpop.permute.xlu1 %4141  ;;  %v4147_v11 = vpop.permute.xlu0 %4146 }
 0xd0f   :  { %v4235_v60 = vmul.f32 %v4142_v53, %v9489_v7  ;;  %v4236_v54 = vmul.f32 %v4147_v11, %v9490_v39 }
 0xd11   :  { %v4281_v24 = vsel %vm614_vm2, %v4235_v60, 0.0  ;;  %v4296_v41 = vsel %vm630_vm3, %v4236_v54, 0.0 }
 0xd12   :  { %v4152_v46 = vpop.permute.xlu1 %4151  ;;  %v4157_v8 = vpop.permute.xlu0 %4156 }
 0xd13   :  { %v4237_v36 = vmul.f32 %v4152_v46, %v9487_v45  ;;  %v4238_v51 = vmul.f32 %v4157_v8, %v9488_v43 }
 0xd15   :  { %v4282_v37 = vsel %vm614_vm2, %v4237_v36, 0.0  ;;  %v4297_v3 = vsel %vm630_vm3, %v4238_v51, 0.0  ;;  %v9498_v36 = vld [vmem:[#allocation37_spill] sm:$0xff] }
 0xd16   :  { %v4162_v57 = vpop.permute.xlu1 %4161  ;;  %v4167_v34 = vpop.permute.xlu0 %4166  ;;  %v4283_v53 = vadd.f32 %v4282_v37, %v4281_v24  ;;  %v4298_v11 = vadd.f32 %v4297_v3, %v4296_v41  ;;  %v9499_v41 = vld [vmem:[#allocation32_spill] sm:$0xff] }
 0xd17   :  { %v4239_v40 = vmul.f32 %v4162_v57, %v9491_v59  ;;  %v4240_v50 = vmul.f32 %v4167_v34, %v9492_v32 }
 0xd19   :  { %v4284_v35 = vsel %vm614_vm2, %v4239_v40, 0.0  ;;  %v4299_v18 = vsel %vm630_vm3, %v4240_v50, 0.0 }
 0xd1a   :  { %v4172_v22 = vpop.permute.xlu1 %4171  ;;  %v4177_v63 = vpop.permute.xlu0 %4176  ;;  %v4285_v60 = vadd.f32 %v4284_v35, %v4283_v53  ;;  %v4300_v54 = vadd.f32 %v4299_v18, %v4298_v11 }
 0xd1b   :  { %v4241_v30 = vmul.f32 %v4172_v22, %v9493_v38  ;;  %v4242_v47 = vmul.f32 %v4177_v63, %v9494_v21  ;;  %v9497_v22 = vld [vmem:[#allocation31_spill] sm:$0xff] }
 0xd1d   :  { %v4286_v57 = vsel %vm614_vm2, %v4241_v30, 0.0  ;;  %v4301_v34 = vsel %vm630_vm3, %v4242_v47, 0.0 }
 0xd1e   :  { %v4182_v44 = vpop.permute.xlu1 %4181  ;;  %v4187_v13 = vpop.permute.xlu0 %4186 }
 0xd1f   :  { %v4243_v26 = vmul.f32 %v4182_v44, %v9495_v4  ;;  %v4244_v49 = vmul.f32 %v4187_v13, %v9496_v9  ;;  %v4287_v44 = vadd.f32 %v4286_v57, %v4285_v60  ;;  %v4302_v13 = vadd.f32 %v4301_v34, %v4300_v54  ;;  %v9501_v57 = vld [vmem:[#allocation34_spill] sm:$0xff] }
 0xd20   :  { %v9502_v60 = vld [vmem:[#allocation38_spill] sm:$0xff] }
 0xd21   :  { %v4288_v40 = vsel %vm614_vm2, %v4243_v26, 0.0  ;;  %v4303_v50 = vsel %vm630_vm3, %v4244_v49, 0.0 }
 0xd22   :  { %v4192_v46 = vpop.permute.xlu1 %4191  ;;  %v4197_v8 = vpop.permute.xlu0 %4196  ;;  %v4289_v61 = vadd.f32 %v4288_v40, %v4287_v44 }
 0xd23   :  { %v4245_v63 = vmul.f32 %v4192_v46, %v9497_v22  ;;  %v4246_v51 = vmul.f32 %v4197_v8, %v9498_v36  ;;  %v4304_v8 = vadd.f32 %v4303_v50, %v4302_v13 }
 0xd25   :  { %v4290_v24 = vsel %vm614_vm2, %v4245_v63, 0.0  ;;  %v4305_v30 = vsel %vm630_vm3, %v4246_v51, 0.0 }
 0xd26   :  { %v4202_v37 = vpop.permute.xlu1 %4201  ;;  %v4207_v3 = vpop.permute.xlu0 %4206  ;;  %v4291_v26 = vadd.f32 %v4290_v24, %v4289_v61  ;;  %v4306_v49 = vadd.f32 %v4305_v30, %v4304_v8 }
 0xd27   :  { %v4247_v47 = vmul.f32 %v4202_v37, %v9499_v41  ;;  %v4248_v46 = vmul.f32 %v4207_v3, %v9500_v6 }
 0xd29   :  { %v4292_v35 = vsel %vm614_vm2, %v4247_v47, 0.0  ;;  %v4307_v18 = vsel %vm630_vm3, %v4248_v46, 0.0 }
 0xd2a   :  { %v4212_v53 = vpop.permute.xlu1 %4211  ;;  %v4217_v11 = vpop.permute.xlu0 %4216  ;;  %v4293_v54 = vadd.f32 %v4292_v35, %v4291_v26  ;;  %v4308_v51 = vadd.f32 %v4307_v18, %v4306_v49 }
 0xd2b   :  { %v4249_v34 = vmul.f32 %v4212_v53, %v9501_v57  ;;  %v4250_v63 = vmul.f32 %v4217_v11, %v9502_v60 }
 0xd2d   :  { %v4294_v37 = vsel %vm614_vm2, %v4249_v34, 0.0  ;;  %v4309_v3 = vsel %vm630_vm3, %v4250_v63, 0.0 }
 0xd2e   :  { %v8479_v40 = vadd.f32 %v4294_v37, %v4293_v54  ;;  %v8481_v50 = vadd.f32 %v4309_v3, %v4308_v51 }
 0xd30   :  { %v4313_v61 = vmul.f32 %v8479_v40, %v8479_v40  ;;  %v4314_v44 = vmul.f32 %v8481_v50, %v8481_v50 }
 0xd32   :  { %v4321_v13 = vsel %vm614_vm2, %v4313_v61, 0.0  ;;  %v4324_v24 = vsel %vm630_vm3, %v4314_v44, 0.0 }
 0xd33   :  { %4322 = vadd.xlane.f32.xlu0 %v4321_v13  ;;  %4325 = vadd.xlane.f32.xlu1 %v4324_v24 }
 0xd98   :  { %v4317_v30 = vpop.xlane.xlu1 %4316  ;;  %v4320_v47 = vpop.xlane.xlu0 %4319 }
 0xd99   :  { %v4327_v46 = vadd.f32 1e-07, %v4317_v30  ;;  %v4328_v8 = vadd.f32 1e-07, %v4320_v47 }
 0xd9b   :  { %6169 = vrsqrt.f32 %v4327_v46 }
 0xd9c   :  { %6171 = vrsqrt.f32 %v4328_v8 }
 0xda5   :  { %v6170_v35 = vpop.eup %6169 }
 0xda6   :  { %v6172_v18 = vpop.eup %6171  ;;  %v4335_v26 = vmul.f32 %v6170_v35, %v8437_v42 }
 0xda7   :  { %v4336_v49 = vmul.f32 %v6172_v18, %v8439_v20 }
 0xda8   :  { %v4339_v53 = vmul.f32 %v4335_v26, %v9474_v15  ;;  %v4341_v63 = vmul.f32 %v4335_v26, %v9471_v27  ;;  %v4343_v42 = vmul.f32 %v4335_v26, %v9475_v28  ;;  %v4345_v44 = vmul.f32 %v4335_v26, %v9477_v10 }
 0xda9   :  { %v4340_v11 = vmul.f32 %v4336_v49, %v9473_v12  ;;  %v4342_v51 = vmul.f32 %v4336_v49, %v9472_v56  ;;  %v4344_v3 = vmul.f32 %v4336_v49, %v9476_v5  ;;  %v4346_v24 = vmul.f32 %v4336_v49, %v9478_v14 }
 0xdaa   :  { %v4371_v34 = vsel %vm614_vm2, %v4339_v53, 0.0  ;;  %v4377_v37 = vsel %vm614_vm2, %v4341_v63, 0.0  ;;  %v4383_v61 = vsel %vm614_vm2, %v4343_v42, 0.0  ;;  %v4389_v30 = vsel %vm614_vm2, %v4345_v44, 0.0 }
 0xdab   :  { %4372 = vadd.xlane.f32.xlu0 %v4371_v34  ;;  %v4374_v54 = vsel %vm630_vm3, %v4340_v11, 0.0  ;;  %v4380_v20 = vsel %vm630_vm3, %v4342_v51, 0.0  ;;  %v4386_v13 = vsel %vm630_vm3, %v4344_v3, 0.0  ;;  %v4347_v47 = vmul.f32 %v4335_v26, %v9479_v33 }
 0xdac   :  { %4375 = vadd.xlane.f32.xlu1 %v4374_v54  ;;  %v4392_v46 = vsel %vm630_vm3, %v4346_v24, 0.0  ;;  %v4348_v8 = vmul.f32 %v4336_v49, %v9480_v52  ;;  %v4349_v18 = vmul.f32 %v4335_v26, %v9481_v31  ;;  %v4350_v11 = vmul.f32 %v4336_v49, %v9482_v19 }
 0xdad   :  { %v4395_v35 = vsel %vm614_vm2, %v4347_v47, 0.0  ;;  %v4351_v63 = vmul.f32 %v4335_v26, %v9483_v16  ;;  %v4352_v51 = vmul.f32 %v4336_v49, %v9484_v23  ;;  %v4353_v44 = vmul.f32 %v4335_v26, %v9485_v48 }
 0xdae   :  { %v4398_v53 = vsel %vm630_vm3, %v4348_v8, 0.0  ;;  %v4401_v34 = vsel %vm614_vm2, %v4349_v18, 0.0  ;;  %v4404_v54 = vsel %vm630_vm3, %v4350_v11, 0.0  ;;  %v4354_v24 = vmul.f32 %v4336_v49, %v9486_v2 }
 0xdaf   :  { %4378 = vadd.xlane.f32.xlu0 %v4377_v37 }
 0xdb0   :  { %4381 = vadd.xlane.f32.xlu1 %v4380_v20  ;;  %v4416_v47 = vsel %vm630_vm3, %v4354_v24, 0.0 }
 0xdb3   :  { %4384 = vadd.xlane.f32.xlu0 %v4383_v61  ;;  %v4407_v61 = vsel %vm614_vm2, %v4351_v63, 0.0 }
 0xdb4   :  { %4387 = vadd.xlane.f32.xlu1 %v4386_v13  ;;  %v4410_v13 = vsel %vm630_vm3, %v4352_v51, 0.0 }
 0xdb7   :  { %4390 = vadd.xlane.f32.xlu0 %v4389_v30  ;;  %v4413_v30 = vsel %vm614_vm2, %v4353_v44, 0.0 }
 0xdb8   :  { %4393 = vadd.xlane.f32.xlu1 %v4392_v46 }
 0xdbb   :  { %4396 = vadd.xlane.f32.xlu0 %v4395_v35 }
 0xdbc   :  { %4399 = vadd.xlane.f32.xlu1 %v4398_v53 }
 0xdbf   :  { %4402 = vadd.xlane.f32.xlu0 %v4401_v34 }
 0xdc0   :  { %4405 = vadd.xlane.f32.xlu1 %v4404_v54  ;;  %v4326_v37 = vpop.xlane.xlu1 %4325  ;;  %v4323_v42 = vpop.xlane.xlu0 %4322 }
 0xdc1   :  { %v4330_v20 = vadd.f32 1e-07, %v4326_v37  ;;  %v4329_v3 = vadd.f32 1e-07, %v4323_v42 }
 0xdc3   :  { %6173 = vrsqrt.f32 %v4330_v20  ;;  %4408 = vadd.xlane.f32.xlu0 %v4407_v61 }
 0xdc4   :  { %6175 = vrsqrt.f32 %v4329_v3  ;;  %4411 = vadd.xlane.f32.xlu1 %v4410_v13 }
 0xdc7   :  { %4414 = vadd.xlane.f32.xlu0 %v4413_v30 }
 0xdc8   :  { %4417 = vadd.xlane.f32.xlu1 %v4416_v47 }
 0xdcd   :  { %v6174_v46 = vpop.eup %6173 }
 0xdce   :  { %v6176_v8 = vpop.eup %6175  ;;  %v4338_v35 = vmul.f32 %v6174_v46, %v8481_v50 }
 0xdcf   :  { %v4337_v26 = vmul.f32 %v6176_v8, %v8479_v40 }
 0xdd0   :  { %v4356_v18 = vmul.f32 %v4338_v35, %v9490_v39  ;;  %v4358_v11 = vmul.f32 %v4338_v35, %v9488_v43  ;;  %v4360_v50 = vmul.f32 %v4338_v35, %v9492_v32  ;;  %v4362_v42 = vmul.f32 %v4338_v35, %v9494_v21 }
 0xdd1   :  { %v4355_v53 = vmul.f32 %v4337_v26, %v9489_v7  ;;  %v4357_v63 = vmul.f32 %v4337_v26, %v9487_v45  ;;  %v4359_v51 = vmul.f32 %v4337_v26, %v9491_v59  ;;  %v4361_v3 = vmul.f32 %v4337_v26, %v9493_v38 }
 0xdd2   :  { %v4422_v49 = vsel %vm630_vm3, %v4356_v18, 0.0  ;;  %v4428_v54 = vsel %vm630_vm3, %v4358_v11, 0.0  ;;  %v4434_v37 = vsel %vm630_vm3, %v4360_v50, 0.0  ;;  %v4440_v61 = vsel %vm630_vm3, %v4362_v42, 0.0 }
 0xdd3   :  { %4423 = vadd.xlane.f32.xlu1 %v4422_v49  ;;  %v4419_v34 = vsel %vm614_vm2, %v4355_v53, 0.0  ;;  %v4425_v40 = vsel %vm614_vm2, %v4357_v63, 0.0  ;;  %v4431_v20 = vsel %vm614_vm2, %v4359_v51, 0.0  ;;  %v4364_v44 = vmul.f32 %v4338_v35, %v9496_v9 }
 0xdd4   :  { %4420 = vadd.xlane.f32.xlu0 %v4419_v34  ;;  %v4437_v13 = vsel %vm614_vm2, %v4361_v3, 0.0  ;;  %v4363_v24 = vmul.f32 %v4337_v26, %v9495_v4  ;;  %v4366_v47 = vmul.f32 %v4338_v35, %v9498_v36  ;;  %v4365_v8 = vmul.f32 %v4337_v26, %v9497_v22 }
 0xdd5   :  { %v4446_v30 = vsel %vm630_vm3, %v4364_v44, 0.0  ;;  %v4368_v53 = vmul.f32 %v4338_v35, %v9500_v6  ;;  %v4367_v11 = vmul.f32 %v4337_v26, %v9499_v41  ;;  %v4370_v63 = vmul.f32 %v4338_v35, %v9502_v60 }
 0xdd6   :  { %v4443_v46 = vsel %vm614_vm2, %v4363_v24, 0.0  ;;  %v4452_v18 = vsel %vm630_vm3, %v4366_v47, 0.0  ;;  %v4449_v49 = vsel %vm614_vm2, %v4365_v8, 0.0  ;;  %v4369_v50 = vmul.f32 %v4337_v26, %v9501_v57 }
 0xdd7   :  { %4429 = vadd.xlane.f32.xlu1 %v4428_v54  ;;  %v4458_v34 = vsel %vm630_vm3, %v4368_v53, 0.0  ;;  %v4455_v54 = vsel %vm614_vm2, %v4367_v11, 0.0 }
 0xdd8   :  { %4426 = vadd.xlane.f32.xlu0 %v4425_v40  ;;  %v4464_v40 = vsel %vm630_vm3, %v4370_v63, 0.0  ;;  %v4461_v51 = vsel %vm614_vm2, %v4369_v50, 0.0 }
 0xddb   :  { %4435 = vadd.xlane.f32.xlu1 %v4434_v37 }
 0xddc   :  { %4432 = vadd.xlane.f32.xlu0 %v4431_v20 }
 0xddf   :  { %4441 = vadd.xlane.f32.xlu1 %v4440_v61 }
 0xde0   :  { %4438 = vadd.xlane.f32.xlu0 %v4437_v13 }
 0xde3   :  { %4447 = vadd.xlane.f32.xlu1 %v4446_v30 }
 0xde4   :  { %4444 = vadd.xlane.f32.xlu0 %v4443_v46 }
 0xde7   :  { %4453 = vadd.xlane.f32.xlu1 %v4452_v18 }
 0xde8   :  { %4450 = vadd.xlane.f32.xlu0 %v4449_v49 }
 0xdeb   :  { %4459 = vadd.xlane.f32.xlu1 %v4458_v34 }
 0xdec   :  { %4456 = vadd.xlane.f32.xlu0 %v4455_v54 }
 0xdef   :  { %4465 = vadd.xlane.f32.xlu1 %v4464_v40 }
 0xdf0   :  { %4462 = vadd.xlane.f32.xlu0 %v4461_v51 }
 0xe38   :  { %v8557_v37 = vpop.xlane.xlu0 %4372 }
 0xe39   :  { %v8559_v42 = vpop.xlane.xlu1 %4375  ;;  %v4502_v11 = vrot.slane %v8557_v37, %v6835_v1 }
 0xe3a   :  { %v4506_v49 = vrot.slane %v8559_v42, %v6832_v62 }
 0xe3c   :  { %v8561_v20 = vpop.xlane.xlu0 %4378  ;;  %v4507_v32 = vsel %vm875_vm4, %v4506_v49, %v4502_v11 }
 0xe3d   :  { %v8563_v3 = vpop.xlane.xlu1 %4381  ;;  %v4511_v47 = vrot.slane %v8561_v20, %v6835_v1 }
 0xe3e   :  { %v4515_v30 = vrot.slane %v8563_v3, %v6832_v62 }
 0xe40   :  { %v8565_v35 = vpop.xlane.xlu0 %4384  ;;  %v4516_v40 = vsel %vm875_vm4, %v4515_v30, %v4511_v47 }
 0xe41   :  { %v8567_v61 = vpop.xlane.xlu1 %4387  ;;  %v4520_v18 = vrot.slane %v8565_v35, %v6835_v1  ;;  %v4643_v47 = vsel %vm1012_vm5, %v4516_v40, %v4507_v32 }
 0xe42   :  { %v4524_v8 = vrot.slane %v8567_v61, %v6832_v62 }
 0xe44   :  { %v8569_v26 = vpop.xlane.xlu0 %4390  ;;  %v4525_v36 = vsel %vm875_vm4, %v4524_v8, %v4520_v18 }
 0xe45   :  { %v8571_v44 = vpop.xlane.xlu1 %4393  ;;  %v4529_v63 = vrot.slane %v8569_v26, %v6835_v1  ;;  %v4644_v43 = vsel %vm1014_vm6, %v4525_v36, %v4643_v47 }
 0xe46   :  { %v4533_v34 = vrot.slane %v8571_v44, %v6832_v62 }
 0xe48   :  { %v8573_v13 = vpop.xlane.xlu0 %4396  ;;  %v4534_v39 = vsel %vm875_vm4, %v4533_v34, %v4529_v63 }
 0xe49   :  { %v8575_v24 = vpop.xlane.xlu1 %4399  ;;  %v4538_v50 = vrot.slane %v8573_v13, %v6835_v1  ;;  %v4645_v2 = vsel %vm1016_vm7, %v4534_v39, %v4644_v43 }
 0xe4a   :  { %v4542_v54 = vrot.slane %v8575_v24, %v6832_v62 }
 0xe4c   :  { %v8581_v46 = vpop.xlane.xlu0 %4402  ;;  %v4543_v57 = vsel %vm875_vm4, %v4542_v54, %v4538_v50 }
 0xe4d   :  { %v8587_v53 = vpop.xlane.xlu1 %4405  ;;  %v4547_v60 = vrot.slane %v8581_v46, %v6835_v1  ;;  %v4646_v34 = vsel %vm1018_vm8, %v4543_v57, %v4645_v2 }
 0xe4e   :  { %v4551_v51 = vrot.slane %v8587_v53, %v6832_v62 }
 0xe50   :  { %v8606_v6 = vpop.xlane.xlu0 %4408  ;;  %v4552_v8 = vsel %vm875_vm4, %v4551_v51, %v4547_v60 }
 0xe51   :  { %v8609_v9 = vpop.xlane.xlu1 %4411  ;;  %v4556_v21 = vrot.slane %v8606_v6, %v6835_v1  ;;  %v4647_v36 = vsel %vm1020_vm9, %v4552_v8, %v4646_v34 }
 0xe52   :  { %v4560_v30 = vrot.slane %v8609_v9, %v6832_v62 }
 0xe54   :  { %v8621_v18 = vpop.xlane.xlu0 %4414  ;;  %v4561_v11 = vsel %vm875_vm4, %v4560_v30, %v4556_v21 }
 0xe55   :  { %v8624_v41 = vpop.xlane.xlu1 %4417  ;;  %v4565_v49 = vrot.slane %v8621_v18, %v6835_v1  ;;  %v4648_v63 = vsel %vm1022_vm10, %v4561_v11, %v4647_v36 }
 0xe56   :  { %v4569_v32 = vrot.slane %v8624_v41, %v6832_v62 }
 0xe58   :  { %v4570_v60 = vsel %vm875_vm4, %v4569_v32, %v4565_v49 }
 0xe59   :  { %v4649_v43 = vsel %vm1024_vm11, %v4570_v60, %v4648_v63 }
 0xe5a   :  { %v4659_v39 = vsel %vm576_vm0, %v4649_v43, -inf }
 0xe5b   :  { %4660 = vmax.xlane.f32.xlu0 %v4659_v39 }
 0xe60   :  { %v8637_v54 = vpop.xlane.xlu1 %4423 }
 0xe61   :  { %v8639_v50 = vpop.xlane.xlu0 %4420  ;;  %v4578_v63 = vrot.slane %v8637_v54, %v6832_v62 }
 0xe62   :  { %v4574_v43 = vrot.slane %v8639_v50, %v6835_v1 }
 0xe64   :  { %v8641_v21 = vpop.xlane.xlu1 %4429  ;;  %v4579_v45 = vsel %vm875_vm4, %v4578_v63, %v4574_v43 }
 0xe65   :  { %v8643_v40 = vpop.xlane.xlu0 %4426  ;;  %v4587_v49 = vrot.slane %v8641_v21, %v6832_v62 }
 0xe66   :  { %v4583_v11 = vrot.slane %v8643_v40, %v6835_v1 }
 0xe68   :  { %v8645_v2 = vpop.xlane.xlu1 %4435  ;;  %v4588_v4 = vsel %vm875_vm4, %v4587_v49, %v4583_v11 }
 0xe69   :  { %v8647_v57 = vpop.xlane.xlu0 %4432  ;;  %v4596_v34 = vrot.slane %v8645_v2, %v6832_v62  ;;  %v4650_v11 = vsel %vm1012_vm5, %v4588_v4, %v4579_v45 }
 0xe6a   :  { %v4592_v36 = vrot.slane %v8647_v57, %v6835_v1 }
 0xe6c   :  { %v8649_v51 = vpop.xlane.xlu1 %4441  ;;  %v4597_v59 = vsel %vm875_vm4, %v4596_v34, %v4592_v36 }
 0xe6d   :  { %v8651_v30 = vpop.xlane.xlu0 %4438  ;;  %v4605_v39 = vrot.slane %v8649_v51, %v6832_v62  ;;  %v4651_v48 = vsel %vm1014_vm6, %v4597_v59, %v4650_v11 }
 0xe6e   :  { %v4601_v23 = vrot.slane %v8651_v30, %v6835_v1 }
 0xe70   :  { %v8653_v47 = vpop.xlane.xlu1 %4447  ;;  %v4606_v7 = vsel %vm875_vm4, %v4605_v39, %v4601_v23 }
 0xe71   :  { %v8655_v8 = vpop.xlane.xlu0 %4444  ;;  %v4614_v22 = vrot.slane %v8653_v47, %v6832_v62  ;;  %v4652_v16 = vsel %vm1016_vm7, %v4606_v7, %v4651_v48 }
 0xe72   :  { %v4610_v19 = vrot.slane %v8655_v8, %v6835_v1 }
 0xe74   :  { %v8661_v32 = vpop.xlane.xlu1 %4453  ;;  %v4615_v12 = vsel %vm875_vm4, %v4614_v22, %v4610_v19 }
 0xe75   :  { %v8667_v60 = vpop.xlane.xlu0 %4450  ;;  %v4623_v52 = vrot.slane %v8661_v32, %v6832_v62  ;;  %v4653_v43 = vsel %vm1018_vm8, %v4615_v12, %v4652_v16 }
 0xe76   :  { %v4619_v38 = vrot.slane %v8667_v60, %v6835_v1 }
 0xe78   :  { %v8686_v14 = vpop.xlane.xlu1 %4459  ;;  %v4624_v34 = vsel %vm875_vm4, %v4623_v52, %v4619_v38 }
 0xe79   :  { %v4632_v5 = vrot.slane %v8686_v14, %v6832_v62  ;;  %v8691_v56 = vpop.xlane.xlu0 %4456  ;;  %v4654_v45 = vsel %vm1020_vm9, %v4624_v34, %v4653_v43 }
 0xe7a   :  { %v4628_v49 = vrot.slane %v8691_v56, %v6835_v1 }
 0xe7c   :  { %v8701_v36 = vpop.xlane.xlu1 %4465  ;;  %v4633_v31 = vsel %vm875_vm4, %v4632_v5, %v4628_v49 }
 0xe7d   :  { %v4641_v23 = vrot.slane %v8701_v36, %v6832_v62  ;;  %v8707_v63 = vpop.xlane.xlu0 %4462  ;;  %v4655_v59 = vsel %vm1022_vm10, %v4633_v31, %v4654_v45 }
 0xe7e   :  { %v4637_v19 = vrot.slane %v8707_v63, %v6835_v1 }
 0xe80   :  { %v4642_v52 = vsel %vm875_vm4, %v4641_v23, %v4637_v19 }
 0xe81   :  { %v4656_v48 = vsel %vm1024_vm11, %v4642_v52, %v4655_v59 }
 0xe82   :  { %v4662_v5 = vsel %vm576_vm0, %v4656_v48, -inf }
 0xe83   :  { %4663 = vmax.xlane.f32.xlu1 %v4662_v5 }
 0xee8   :  { %v4661_v7 = vpop.xlane.xlu0 %4660 }
 0xee9   :  { %v4670_v38 = vrot.slane %v4661_v7, %v6974_v0  ;;  %v4674_v4 = vrot.slane %v4661_v7, %v6977_v17  ;;  %v4678_v22 = vrot.slane %v4661_v7, %v6980_v25  ;;  %v4682_v34 = vrot.slane %v4661_v7, %v6983_v58 }
 0xeea   :  { %v4690_v59 = vrot.slane %v4661_v7, %v6997_v55 }
 0xeeb   :  { %v4747_v12 = vsub.f32 %v8557_v37, %v4670_v38  ;;  %v4748_v16 = vsub.f32 %v8559_v42, %v4670_v38  ;;  %v4750_v39 = vsub.f32 %v8563_v3, %v4674_v4  ;;  %v4749_v31 = vsub.f32 %v8561_v20, %v4674_v4 }
 0xeec   :  { %v4752_v23 = vsub.f32 %v8567_v61, %v4678_v22  ;;  %v4751_v19 = vsub.f32 %v8565_v35, %v4678_v22  ;;  %v4686_v42 = vrot.slane %v4661_v7, %v6992_v29  ;;  %v4754_v45 = vsub.f32 %v8571_v44, %v4682_v34  ;;  %v9503_v44 = vld [vmem:[#allocation39_spill] sm:$0xff] }
 0xeed   :  { %v4779_v49 = vmul.f32 1.442695, %v4747_v12  ;;  %v4781_v11 = vmul.f32 1.442695, %v4748_v16  ;;  %v4785_v43 = vmul.f32 1.442695, %v4750_v39  ;;  %v4753_v20 = vsub.f32 %v8569_v26, %v4682_v34 }
 0xeee   :  { %v4783_v37 = vmul.f32 1.442695, %v4749_v31  ;;  %v4789_v3 = vmul.f32 1.442695, %v4752_v23  ;;  %v4787_v52 = vmul.f32 1.442695, %v4751_v19  ;;  %v4756_v61 = vsub.f32 %v8575_v24, %v4686_v42 }
 0xeef   :  { %6177 = vpow2.f32 %v4779_v49  ;;  %v4793_v48 = vmul.f32 1.442695, %v4754_v45  ;;  %v4755_v35 = vsub.f32 %v8573_v13, %v4686_v42  ;;  %v4791_v5 = vmul.f32 1.442695, %v4753_v20  ;;  %v9504_v31 = vld [vmem:[#allocation40_spill] sm:$0xff] }
 0xef0   :  { %6179 = vpow2.f32 %v4781_v11  ;;  %v4694_v26 = vrot.slane %v4661_v7, %v9503_v44  ;;  %v4758_v12 = vsub.f32 %v8587_v53, %v4690_v59  ;;  %v4797_v16 = vmul.f32 1.442695, %v4756_v61 }
 0xef1   :  { %6181 = vpow2.f32 %v4785_v43  ;;  %v4757_v24 = vsub.f32 %v8581_v46, %v4690_v59  ;;  %v4795_v13 = vmul.f32 1.442695, %v4755_v35  ;;  %v4698_v49 = vrot.slane %v4661_v7, %v9504_v31 }
 0xef2   :  { %6183 = vpow2.f32 %v4783_v37  ;;  %v4760_v11 = vsub.f32 %v8609_v9, %v4694_v26  ;;  %v4801_v53 = vmul.f32 1.442695, %v4758_v12  ;;  %v4759_v34 = vsub.f32 %v8606_v6, %v4694_v26 }
 0xef3   :  { %6185 = vpow2.f32 %v4789_v3  ;;  %v4799_v46 = vmul.f32 1.442695, %v4757_v24  ;;  %v4762_v19 = vsub.f32 %v8624_v41, %v4698_v49  ;;  %v4761_v9 = vsub.f32 %v8621_v18, %v4698_v49 }
 0xef4   :  { %6187 = vpow2.f32 %v4787_v52  ;;  %v4805_v7 = vmul.f32 1.442695, %v4760_v11  ;;  %v4803_v37 = vmul.f32 1.442695, %v4759_v34 }
 0xef5   :  { %6189 = vpow2.f32 %v4793_v48  ;;  %v4809_v45 = vmul.f32 1.442695, %v4762_v19  ;;  %v4807_v41 = vmul.f32 1.442695, %v4761_v9 }
 0xef6   :  { %6191 = vpow2.f32 %v4791_v5 }
 0xef7   :  { %6193 = vpow2.f32 %v4797_v16 }
 0xef8   :  { %6195 = vpow2.f32 %v4795_v13 }
 0xef9   :  { %v8733_v38 = vpop.eup %6177  ;;  %6197 = vpow2.f32 %v4801_v53 }
 0xefa   :  { %v8735_v4 = vpop.eup %6179  ;;  %4876 = vperm.xlu0 %5854, %v8733_v38   ;;  %6199 = vpow2.f32 %v4799_v46 }
 0xefb   :  { %4879 = vperm.xlu1 %5853, %v8735_v4   ;;  %v8742_v22 = vpop.eup %6181  ;;  %6201 = vpow2.f32 %v4805_v7 }
 0xefc   :  { %v8744_v39 = vpop.eup %6183  ;;  %6203 = vpow2.f32 %v4803_v37 }
 0xefd   :  { %v8751_v23 = vpop.eup %6185  ;;  %6205 = vpow2.f32 %v4809_v45 }
 0xefe   :  { %4885 = vperm.xlu0 %5854, %v8742_v22   ;;  %v8753_v43 = vpop.eup %6187  ;;  %6207 = vpow2.f32 %v4807_v41 }
 0xeff   :  { %4882 = vperm.xlu1 %5853, %v8744_v39   ;;  %v8759_v42 = vpop.eup %6189 }
 0xf00   :  { %v8761_v6 = vpop.eup %6191 }
 0xf01   :  { %v8765_v3 = vpop.eup %6193 }
 0xf02   :  { %4891 = vperm.xlu0 %5854, %v8751_v23   ;;  %v8767_v20 = vpop.eup %6195 }
 0xf03   :  { %4888 = vperm.xlu1 %5853, %v8753_v43   ;;  %v8771_v18 = vpop.eup %6197 }
 0xf04   :  { %v8773_v52 = vpop.eup %6199 }
 0xf05   :  { %v8779_v35 = vpop.eup %6201 }
 0xf06   :  { %4897 = vperm.xlu0 %5854, %v8759_v42   ;;  %v8783_v12 = vpop.eup %6203 }
 0xf07   :  { %4894 = vperm.xlu1 %5853, %v8761_v6   ;;  %v8790_v49 = vpop.eup %6205 }
 0xf08   :  { %v8792_v34 = vpop.eup %6207 }
 0xf0a   :  { %4903 = vperm.xlu0 %5854, %v8765_v3  }
 0xf0b   :  { %4900 = vperm.xlu1 %5853, %v8767_v20  }
 0xf0e   :  { %4909 = vperm.xlu0 %5854, %v8771_v18  }
 0xf0f   :  { %4906 = vperm.xlu1 %5853, %v8773_v52  }
 0xf10   :  { %v4664_v59 = vpop.xlane.xlu1 %4663 }
 0xf11   :  { %v4702_v61 = vrot.slane %v4664_v59, %v6974_v0  ;;  %v4706_v48 = vrot.slane %v4664_v59, %v6977_v17  ;;  %v4710_v16 = vrot.slane %v4664_v59, %v6980_v25  ;;  %v4718_v19 = vrot.slane %v4664_v59, %v6992_v29 }
 0xf12   :  { %4915 = vperm.xlu0 %5854, %v8779_v35  }
 0xf13   :  { %v4763_v5 = vsub.f32 %v8639_v50, %v4702_v61  ;;  %v4764_v26 = vsub.f32 %v8637_v54, %v4702_v61  ;;  %v4765_v24 = vsub.f32 %v8643_v40, %v4706_v48  ;;  %4912 = vperm.xlu1 %5853, %v8783_v12   ;;  %v4766_v13 = vsub.f32 %v8641_v21, %v4706_v48 }
 0xf14   :  { %v4714_v54 = vrot.slane %v4664_v59, %v6983_v58  ;;  %v4767_v50 = vsub.f32 %v8647_v57, %v4710_v16  ;;  %v4768_v40 = vsub.f32 %v8645_v2, %v4710_v16  ;;  %v4722_v57 = vrot.slane %v4664_v59, %v6997_v55 }
 0xf15   :  { %v4811_v11 = vmul.f32 1.442695, %v4763_v5  ;;  %v4813_v53 = vmul.f32 1.442695, %v4764_v26  ;;  %v4815_v46 = vmul.f32 1.442695, %v4765_v24  ;;  %v4771_v41 = vsub.f32 %v8655_v8, %v4718_v19 }
 0xf16   :  { %4921 = vperm.xlu0 %5854, %v8790_v49   ;;  %v4817_v21 = vmul.f32 1.442695, %v4766_v13  ;;  %v4769_v7 = vsub.f32 %v8651_v30, %v4714_v54  ;;  %v4819_v9 = vmul.f32 1.442695, %v4767_v50  ;;  %v4770_v37 = vsub.f32 %v8649_v51, %v4714_v54 }
 0xf17   :  { %6209 = vpow2.f32 %v4811_v11  ;;  %4918 = vperm.xlu1 %5853, %v8792_v34   ;;  %v4821_v45 = vmul.f32 1.442695, %v4768_v40  ;;  %v4772_v2 = vsub.f32 %v8653_v47, %v4718_v19  ;;  %v4726_v51 = vrot.slane %v4664_v59, %v9503_v44 }
 0xf18   :  { %6211 = vpow2.f32 %v4813_v53  ;;  %v4823_v61 = vmul.f32 1.442695, %v4769_v7  ;;  %v4825_v48 = vmul.f32 1.442695, %v4770_v37  ;;  %v4773_v30 = vsub.f32 %v8667_v60, %v4722_v57 }
 0xf19   :  { %6213 = vpow2.f32 %v4815_v46  ;;  %v4827_v16 = vmul.f32 1.442695, %v4771_v41  ;;  %v4774_v8 = vsub.f32 %v8661_v32, %v4722_v57  ;;  %v4829_v47 = vmul.f32 1.442695, %v4772_v2 }
 0xf1a   :  { %6215 = vpow2.f32 %v4817_v21  ;;  %v4730_v11 = vrot.slane %v4664_v59, %v9504_v31  ;;  %v4775_v53 = vsub.f32 %v8691_v56, %v4726_v51  ;;  %v4831_v60 = vmul.f32 1.442695, %v4773_v30 }
 0xf1b   :  { %6217 = vpow2.f32 %v4819_v9  ;;  %v4776_v54 = vsub.f32 %v8686_v14, %v4726_v51  ;;  %v4833_v32 = vmul.f32 1.442695, %v4774_v8 }
 0xf1c   :  { %6219 = vpow2.f32 %v4821_v45  ;;  %v4777_v40 = vsub.f32 %v8707_v63, %v4730_v11  ;;  %v4835_v59 = vmul.f32 1.442695, %v4775_v53  ;;  %v4778_v56 = vsub.f32 %v8701_v36, %v4730_v11 }
 0xf1d   :  { %6221 = vpow2.f32 %v4823_v61  ;;  %v4837_v21 = vmul.f32 1.442695, %v4776_v54 }
 0xf1e   :  { %6223 = vpow2.f32 %v4825_v48  ;;  %v4839_v7 = vmul.f32 1.442695, %v4777_v40  ;;  %v4841_v63 = vmul.f32 1.442695, %v4778_v56 }
 0xf1f   :  { %6225 = vpow2.f32 %v4827_v16 }
 0xf20   :  { %6227 = vpow2.f32 %v4829_v47 }
 0xf21   :  { %v8805_v5 = vpop.eup %6209  ;;  %6229 = vpow2.f32 %v4831_v60 }
 0xf22   :  { %v8807_v26 = vpop.eup %6211  ;;  %4924 = vperm.xlu1 %5853, %v8805_v5   ;;  %6231 = vpow2.f32 %v4833_v32 }
 0xf23   :  { %4927 = vperm.xlu0 %5854, %v8807_v26   ;;  %v8814_v24 = vpop.eup %6213  ;;  %6233 = vpow2.f32 %v4835_v59 }
 0xf24   :  { %v8816_v13 = vpop.eup %6215  ;;  %6235 = vpow2.f32 %v4837_v21 }
 0xf25   :  { %v8823_v50 = vpop.eup %6217  ;;  %6237 = vpow2.f32 %v4839_v7 }
 0xf26   :  { %4930 = vperm.xlu1 %5853, %v8814_v24   ;;  %v8825_v46 = vpop.eup %6219  ;;  %6239 = vpow2.f32 %v4841_v63 }
 0xf27   :  { %4933 = vperm.xlu0 %5854, %v8816_v13   ;;  %v8831_v19 = vpop.eup %6221 }
 0xf28   :  { %v8833_v14 = vpop.eup %6223 }
 0xf29   :  { %v8837_v9 = vpop.eup %6225 }
 0xf2a   :  { %4936 = vperm.xlu1 %5853, %v8823_v50   ;;  %v8839_v37 = vpop.eup %6227 }
 0xf2b   :  { %4939 = vperm.xlu0 %5854, %v8825_v46   ;;  %v8843_v36 = vpop.eup %6229 }
 0xf2c   :  { %v8845_v45 = vpop.eup %6231 }
 0xf2d   :  { %v8849_v57 = vpop.eup %6233 }
 0xf2e   :  { %4942 = vperm.xlu1 %5853, %v8831_v19   ;;  %v8851_v41 = vpop.eup %6235 }
 0xf2f   :  { %4945 = vperm.xlu0 %5854, %v8833_v14   ;;  %v8855_v61 = vpop.eup %6237 }
 0xf30   :  { %v8857_v2 = vpop.eup %6239 }
 0xf31   :  { %9505 = vst [vmem:[#allocation41_spill] sm:$0xff] %v8857_v2 }
 0xf32   :  { %4948 = vperm.xlu1 %5853, %v8837_v9  }
 0xf33   :  { %4951 = vperm.xlu0 %5854, %v8839_v37  }
 0xf36   :  { %4954 = vperm.xlu1 %5853, %v8843_v36  }
 0xf37   :  { %4957 = vperm.xlu0 %5854, %v8845_v45  }
 0xf3a   :  { %4960 = vperm.xlu1 %5853, %v8849_v57  }
 0xf3b   :  { %4963 = vperm.xlu0 %5854, %v8851_v41  }
 0xf3e   :  { %4966 = vperm.xlu1 %5853, %v8855_v61  }
 0xf3f   :  { %4969 = vperm.xlu0 %5854, %v8857_v2  }
 0xf79   :  { %v4877_v48 = vpop.permute.xlu0 %4876 }
 0xf7a   :  { %v4880_v51 = vpop.permute.xlu1 %4879  ;;  %v4974_v33 = vrot.slane %v4877_v48, %v6835_v1 }
 0xf7b   :  { %v4978_v63 = vrot.slane %v4880_v51, %v6832_v62 }
 0xf7d   :  { %v4886_v30 = vpop.permute.xlu0 %4885 }
 0xf7e   :  { %v4883_v16 = vpop.permute.xlu1 %4882  ;;  %v4987_v40 = vrot.slane %v4886_v30, %v6832_v62 }
 0xf7f   :  { %v4983_v32 = vrot.slane %v4883_v16, %v6835_v1 }
 0xf81   :  { %v4892_v8 = vpop.permute.xlu0 %4891  ;;  %v4988_v30 = vsel %vm875_vm4, %v4987_v40, %v4983_v32 }
 0xf82   :  { %v4889_v47 = vpop.permute.xlu1 %4888  ;;  %v4996_v21 = vrot.slane %v4892_v8, %v6832_v62 }
 0xf83   :  { %v4992_v56 = vrot.slane %v4889_v47, %v6835_v1 }
 0xf85   :  { %v4898_v11 = vpop.permute.xlu0 %4897  ;;  %v4997_v2 = vsel %vm875_vm4, %v4996_v21, %v4992_v56 }
 0xf86   :  { %v4895_v53 = vpop.permute.xlu1 %4894  ;;  %v5005_v28 = vrot.slane %v4898_v11, %v6832_v62 }
 0xf87   :  { %v5001_v10 = vrot.slane %v4895_v53, %v6835_v1  ;;  %v4979_v53 = vsel %vm875_vm4, %v4978_v63, %v4974_v33 }
 0xf89   :  { %v4904_v60 = vpop.permute.xlu0 %4903  ;;  %v5006_v11 = vsel %vm875_vm4, %v5005_v28, %v5001_v10 }
 0xf8a   :  { %v4901_v54 = vpop.permute.xlu1 %4900  ;;  %v5014_v16 = vrot.slane %v4904_v60, %v6832_v62  ;;  %v5115_v60 = vsel %vm1012_vm5, %v4988_v30, %v4979_v53 }
 0xf8b   :  { %v5010_v15 = vrot.slane %v4901_v54, %v6835_v1  ;;  %v5116_v40 = vsel %vm1014_vm6, %v4997_v2, %v5115_v60 }
 0xf8c   :  { %v5117_v56 = vsel %vm1016_vm7, %v5006_v11, %v5116_v40 }
 0xf8d   :  { %v4910_v59 = vpop.permute.xlu0 %4909  ;;  %v5015_v32 = vsel %vm875_vm4, %v5014_v16, %v5010_v15 }
 0xf8e   :  { %v4907_v7 = vpop.permute.xlu1 %4906  ;;  %v5023_v47 = vrot.slane %v4910_v59, %v6832_v62  ;;  %v5118_v28 = vsel %vm1018_vm8, %v5015_v32, %v5117_v56 }
 0xf8f   :  { %v5019_v27 = vrot.slane %v4907_v7, %v6835_v1 }
 0xf91   :  { %v4916_v8 = vpop.permute.xlu0 %4915  ;;  %v5024_v59 = vsel %vm875_vm4, %v5023_v47, %v5019_v27 }
 0xf92   :  { %v4913_v51 = vpop.permute.xlu1 %4912  ;;  %v5032_v48 = vrot.slane %v4916_v8, %v6832_v62  ;;  %v5119_v63 = vsel %vm1020_vm9, %v5024_v59, %v5118_v28 }
 0xf93   :  { %v5028_v54 = vrot.slane %v4913_v51, %v6835_v1 }
 0xf95   :  { %v4922_v7 = vpop.permute.xlu0 %4921  ;;  %v5033_v21 = vsel %vm875_vm4, %v5032_v48, %v5028_v54 }
 0xf96   :  { %v4919_v8 = vpop.permute.xlu1 %4918  ;;  %v5041_v33 = vrot.slane %v4922_v7, %v6832_v62  ;;  %v5120_v2 = vsel %vm1022_vm10, %v5033_v21, %v5119_v63 }
 0xf97   :  { %v5037_v10 = vrot.slane %v4919_v8, %v6835_v1 }
 0xf99   :  { %v5042_v15 = vsel %vm875_vm4, %v5041_v33, %v5037_v10 }
 0xf9a   :  { %v5121_v27 = vsel %vm1024_vm11, %v5042_v15, %v5120_v2 }
 0xf9b   :  { %v5131_v16 = vsel %vm576_vm0, %v5121_v27, 0.0 }
 0xf9c   :  { %5132 = vadd.xlane.f32.xlu1 %v5131_v16 }
 0xfa1   :  { %v4925_v30 = vpop.permute.xlu1 %4924 }
 0xfa2   :  { %v4928_v47 = vpop.permute.xlu0 %4927  ;;  %v5046_v28 = vrot.slane %v4925_v30, %v6835_v1 }
 0xfa3   :  { %v5050_v10 = vrot.slane %v4928_v47, %v6832_v62 }
 0xfa5   :  { %v4931_v51 = vpop.permute.xlu1 %4930 }
 0xfa6   :  { %v4934_v48 = vpop.permute.xlu0 %4933  ;;  %v5055_v59 = vrot.slane %v4931_v51, %v6835_v1 }
 0xfa7   :  { %v5059_v7 = vrot.slane %v4934_v48, %v6832_v62 }
 0xfa9   :  { %v4937_v53 = vpop.permute.xlu1 %4936  ;;  %v5060_v16 = vsel %vm875_vm4, %v5059_v7, %v5055_v59 }
 0xfaa   :  { %v4940_v11 = vpop.permute.xlu0 %4939  ;;  %v5064_v21 = vrot.slane %v4937_v53, %v6835_v1 }
 0xfab   :  { %v5068_v8 = vrot.slane %v4940_v11, %v6832_v62 }
 0xfad   :  { %v4943_v54 = vpop.permute.xlu1 %4942  ;;  %v5069_v11 = vsel %vm875_vm4, %v5068_v8, %v5064_v21 }
 0xfae   :  { %v4946_v60 = vpop.permute.xlu0 %4945  ;;  %v5073_v63 = vrot.slane %v4943_v54, %v6835_v1  ;;  %v5051_v54 = vsel %vm875_vm4, %v5050_v10, %v5046_v28 }
 0xfaf   :  { %v5077_v15 = vrot.slane %v4946_v60, %v6832_v62 }
 0xfb1   :  { %v4949_v32 = vpop.permute.xlu1 %4948  ;;  %v5078_v60 = vsel %vm875_vm4, %v5077_v15, %v5073_v63 }
 0xfb2   :  { %v4952_v40 = vpop.permute.xlu0 %4951  ;;  %v5082_v2 = vrot.slane %v4949_v32, %v6835_v1 }
 0xfb3   :  { %v5086_v27 = vrot.slane %v4952_v40, %v6832_v62  ;;  %v5122_v40 = vsel %vm1012_vm5, %v5060_v16, %v5051_v54 }
 0xfb4   :  { %v5123_v7 = vsel %vm1014_vm6, %v5069_v11, %v5122_v40 }
 0xfb5   :  { %v4955_v56 = vpop.permute.xlu1 %4954  ;;  %v5087_v59 = vsel %vm875_vm4, %v5086_v27, %v5082_v2  ;;  %v5124_v21 = vsel %vm1016_vm7, %v5078_v60, %v5123_v7 }
 0xfb6   :  { %v4958_v33 = vpop.permute.xlu0 %4957  ;;  %v5091_v51 = vrot.slane %v4955_v56, %v6835_v1  ;;  %v5125_v10 = vsel %vm1018_vm8, %v5087_v59, %v5124_v21 }
 0xfb7   :  { %v5095_v48 = vrot.slane %v4958_v33, %v6832_v62 }
 0xfb9   :  { %v4961_v53 = vpop.permute.xlu1 %4960  ;;  %v5096_v56 = vsel %vm875_vm4, %v5095_v48, %v5091_v51 }
 0xfba   :  { %v5100_v30 = vrot.slane %v4961_v53, %v6835_v1  ;;  %v4964_v47 = vpop.permute.xlu0 %4963  ;;  %v5126_v15 = vsel %vm1020_vm9, %v5096_v56, %v5125_v10 }
 0xfbb   :  { %v5104_v32 = vrot.slane %v4964_v47, %v6832_v62 }
 0xfbd   :  { %v4967_v33 = vpop.permute.xlu1 %4966  ;;  %v5105_v8 = vsel %vm875_vm4, %v5104_v32, %v5100_v30 }
 0xfbe   :  { %v5109_v53 = vrot.slane %v4967_v33, %v6835_v1  ;;  %v4970_v28 = vpop.permute.xlu0 %4969  ;;  %v5127_v27 = vsel %vm1022_vm10, %v5105_v8, %v5126_v15 }
 0xfbf   :  { %v5113_v63 = vrot.slane %v4970_v28, %v6832_v62 }
 0xfc1   :  { %v5114_v2 = vsel %vm875_vm4, %v5113_v63, %v5109_v53 }
 0xfc2   :  { %v5128_v16 = vsel %vm1024_vm11, %v5114_v2, %v5127_v27 }
 0xfc3   :  { %v5134_v51 = vsel %vm576_vm0, %v5128_v16, 0.0  ;;  %vm5664_vm0 = vcmask 916480  }
 0xfc4   :  { %5135 = vadd.xlane.f32.xlu0 %v5134_v51 }
0x1029   :  { %v5133_v48 = vpop.xlane.xlu1 %5132 }
0x102a   :  { %v5146_v11 = vrot.slane %v5133_v48, %v6977_v17  ;;  %v5142_v1 = vrot.slane %v5133_v48, %v6974_v0  ;;  %v5150_v30 = vrot.slane %v5133_v48, %v6980_v25  ;;  %v5154_v62 = vrot.slane %v5133_v48, %v6983_v58 }
0x102b   :  { %v5158_v47 = vrot.slane %v5133_v48, %v6992_v29  ;;  %v5162_v7 = vrot.slane %v5133_v48, %v6997_v55 }
0x102c   :  { %6241 = vrcp.f32 %v5146_v11 }
0x102d   :  { %6243 = vrcp.f32 %v5142_v1 }
0x102e   :  { %6245 = vrcp.f32 %v5150_v30 }
0x102f   :  { %6247 = vrcp.f32 %v5154_v62 }
0x1030   :  { %6249 = vrcp.f32 %v5158_v47 }
0x1031   :  { %6251 = vrcp.f32 %v5162_v7 }
0x1036   :  { %v6242_v54 = vpop.eup %6241 }
0x1037   :  { %v6244_v60 = vpop.eup %6243  ;;  %v5223_v32 = vmul.f32 %v6242_v54, %v8744_v39  ;;  %v5224_v21 = vmul.f32 %v6242_v54, %v8742_v22  ;;  %v5166_v39 = vrot.slane %v5133_v48, %v9503_v44 }
0x1038   :  { %v6246_v40 = vpop.eup %6245  ;;  %v5220_v59 = vmul.f32 %v6244_v60, %v8733_v38  ;;  %v5221_v28 = vmul.f32 %v6244_v60, %v8735_v4  ;;  %v9506_v60 = vld [vmem:[#allocation41_spill] sm:$0xff] }
0x1039   :  { %5279 = vperm.xlu1 %5853, %v5223_v32   ;;  %v5226_v56 = vmul.f32 %v6246_v40, %v8753_v43  ;;  %v6248_v33 = vpop.eup %6247  ;;  %6253 = vrcp.f32 %v5166_v39  ;;  %v5170_v43 = vrot.slane %v5133_v48, %v9504_v31 }
0x103a   :  { %5269 = vperm.xlu0 %5854, %v5220_v59   ;;  %v5229_v8 = vmul.f32 %v6248_v33, %v8761_v6  ;;  %v6250_v53 = vpop.eup %6249  ;;  %v5227_v6 = vmul.f32 %v6246_v40, %v8751_v23  ;;  %v5230_v16 = vmul.f32 %v6248_v33, %v8759_v42  ;;  %v9507_v33 = vld [vmem:[#allocation8_spill] sm:$0xff] }
0x103b   :  { %v5232_v38 = vmul.f32 %v6250_v53, %v8767_v20  ;;  %v6252_v10 = vpop.eup %6251  ;;  %6255 = vrcp.f32 %v5170_v43 }
0x103c   :  { %v5235_v22 = vmul.f32 %v6252_v10, %v8773_v52 }
0x103d   :  { %5289 = vperm.xlu1 %5853, %v5226_v56  }
0x103e   :  { %5284 = vperm.xlu0 %5854, %v5224_v21  }
0x1041   :  { %5299 = vperm.xlu1 %5853, %v5229_v8  }
0x1043   :  { %v6254_v63 = vpop.eup %6253 }
0x1044   :  { %v5238_v4 = vmul.f32 %v6254_v63, %v8783_v12  ;;  %v5239_v47 = vmul.f32 %v6254_v63, %v8779_v35 }
0x1045   :  { %5309 = vperm.xlu1 %5853, %v5232_v38   ;;  %v6256_v23 = vpop.eup %6255 }
0x1049   :  { %5274 = vperm.xlu1 %5853, %v5221_v28   ;;  %v9510_v28 = vld [vmem:[#allocation10_spill] sm:$0xff] }
0x104d   :  { %5319 = vperm.xlu1 %5853, %v5235_v22   ;;  %v9511_v22 = vld [vmem:[#allocation11_spill] sm:$0xff] }
0x1051   :  { %5294 = vperm.xlu1 %5853, %v5227_v6   ;;  %v5136_v15 = vpop.xlane.xlu0 %5135 }
0x1052   :  { %v5178_v2 = vrot.slane %v5136_v15, %v6977_v17  ;;  %v5174_v20 = vrot.slane %v5136_v15, %v6974_v0  ;;  %v5182_v27 = vrot.slane %v5136_v15, %v6980_v25  ;;  %v5186_v52 = vrot.slane %v5136_v15, %v6983_v58 }
0x1053   :  { %v5190_v51 = vrot.slane %v5136_v15, %v6992_v29  ;;  %v5241_v17 = vmul.f32 %v6256_v23, %v8792_v34  ;;  %v5194_v58 = vrot.slane %v5136_v15, %v6997_v55  ;;  %v5233_v29 = vmul.f32 %v6250_v53, %v8765_v3  ;;  %v9509_v53 = vld [vmem:[#allocation9_spill] sm:$0xff] }
0x1054   :  { %6257 = vrcp.f32 %v5178_v2  ;;  %v5236_v55 = vmul.f32 %v6252_v10, %v8771_v18 }
0x1055   :  { %5329 = vperm.xlu1 %5853, %v5238_v4   ;;  %6259 = vrcp.f32 %v5174_v20  ;;  %v9512_v20 = vld [vmem:[#allocation13_spill] sm:$0xff] }
0x1056   :  { %6261 = vrcp.f32 %v5182_v27 }
0x1057   :  { %6263 = vrcp.f32 %v5186_v52 }
0x1058   :  { %6265 = vrcp.f32 %v5190_v51 }
0x1059   :  { %5304 = vperm.xlu1 %5853, %v5230_v16   ;;  %6267 = vrcp.f32 %v5194_v58  ;;  %v9513_v16 = vld [vmem:[#allocation14_spill] sm:$0xff] }
0x105d   :  { %5339 = vperm.xlu1 %5853, %v5241_v17  }
0x105e   :  { %v6258_v0 = vpop.eup %6257 }
0x105f   :  { %v6260_v25 = vpop.eup %6259  ;;  %v5247_v12 = vmul.f32 %v6258_v0, %v8814_v24  ;;  %v5248_v3 = vmul.f32 %v6258_v0, %v8816_v13 }
0x1060   :  { %v6262_v48 = vpop.eup %6261  ;;  %v5244_v11 = vmul.f32 %v6260_v25, %v8805_v5  ;;  %v5245_v24 = vmul.f32 %v6260_v25, %v8807_v26  ;;  %v5198_v5 = vrot.slane %v5136_v15, %v9503_v44  ;;  %v5202_v26 = vrot.slane %v5136_v15, %v9504_v31 }
0x1061   :  { %5359 = vperm.xlu0 %5854, %v5247_v12   ;;  %v5250_v42 = vmul.f32 %v6262_v48, %v8823_v50  ;;  %v6264_v1 = vpop.eup %6263  ;;  %v5242_v44 = vmul.f32 %v6256_v23, %v8790_v49  ;;  %v5251_v18 = vmul.f32 %v6262_v48, %v8825_v46 }
0x1062   :  { %5349 = vperm.xlu1 %5853, %v5244_v11   ;;  %v5253_v34 = vmul.f32 %v6264_v1, %v8831_v19  ;;  %v6266_v30 = vpop.eup %6265  ;;  %6269 = vrcp.f32 %v5198_v5  ;;  %v5254_v35 = vmul.f32 %v6264_v1, %v8833_v14 }
0x1063   :  { %v5256_v62 = vmul.f32 %v6266_v30, %v8837_v9  ;;  %v6268_v50 = vpop.eup %6267  ;;  %6271 = vrcp.f32 %v5202_v26 }
0x1064   :  { %v5259_v19 = vmul.f32 %v6268_v50, %v8843_v36  ;;  %v5257_v36 = vmul.f32 %v6266_v30, %v8839_v37  ;;  %v5260_v49 = vmul.f32 %v6268_v50, %v8845_v45  ;;  %v9508_v37 = vld [vmem:[#allocation7_spill] sm:$0xff] }
0x1065   :  { %5369 = vperm.xlu0 %5854, %v5250_v42   ;;  %v9514_v42 = vld [vmem:[#allocation15_spill] sm:$0xff] }
0x1066   :  { %5314 = vperm.xlu1 %5853, %v5233_v29  }
0x1069   :  { %5379 = vperm.xlu0 %5854, %v5253_v34  }
0x106a   :  { %5354 = vperm.xlu1 %5853, %v5245_v24  }
0x106c   :  { %v6270_v9 = vpop.eup %6269 }
0x106d   :  { %5389 = vperm.xlu0 %5854, %v5256_v62   ;;  %v5262_v13 = vmul.f32 %v6270_v9, %v8849_v57  ;;  %v6272_v54 = vpop.eup %6271  ;;  %v5263_v46 = vmul.f32 %v6270_v9, %v8851_v41  ;;  %v9515_v9 = vld [vmem:[#allocation12_spill] sm:$0xff] }
0x106e   :  { %5324 = vperm.xlu1 %5853, %v5236_v55   ;;  %v5265_v31 = vmul.f32 %v6272_v54, %v8855_v61  ;;  %v5266_v32 = vmul.f32 %v6272_v54, %v9506_v60  ;;  %v9516_v54 = vld [vmem:[#allocation23_spill] sm:$0xff] }
0x1071   :  { %5364 = vperm.xlu0 %5854, %v5248_v3  }
0x1072   :  { %5334 = vperm.xlu1 %5853, %v5239_v47  }
0x1075   :  { %5399 = vperm.xlu0 %5854, %v5259_v19  }
0x1076   :  { %5344 = vperm.xlu1 %5853, %v5242_v44  }
0x1079   :  { %5374 = vperm.xlu0 %5854, %v5251_v18  }
0x107d   :  { %5409 = vperm.xlu0 %5854, %v5262_v13  }
0x1081   :  { %5384 = vperm.xlu0 %5854, %v5254_v35  }
0x1085   :  { %5419 = vperm.xlu0 %5854, %v5265_v31  }
0x1089   :  { %5394 = vperm.xlu0 %5854, %v5257_v36   ;;  %v9517_v36 = vld [vmem:[#allocation24_spill] sm:$0xff] }
0x108d   :  { %5404 = vperm.xlu0 %5854, %v5260_v49  }
0x1091   :  { %5414 = vperm.xlu0 %5854, %v5263_v46   ;;  %v9518_v46 = vld [vmem:[#allocation19_spill] sm:$0xff] }
0x1095   :  { %5424 = vperm.xlu0 %5854, %v5266_v32   ;;  %v9519_v32 = vld [vmem:[#allocation16_spill] sm:$0xff] }
0x10b8   :  { %v5280_v57 = vpop.permute.xlu1 %5279 }
0x10b9   :  { %v5270_v56 = vpop.permute.xlu0 %5269  ;;  %v5429_v21 = vmul.f32 %v5280_v57, %v9507_v33  ;;  %v9521_v33 = vld [vmem:[#allocation20_spill] sm:$0xff] }
0x10ba   :  { %v5427_v8 = vmul.f32 %v5270_v56, %v9508_v37 }
0x10bb   :  { %v5460_v41 = vsel %vm614_vm2, %v5429_v21, 0.0 }
0x10bc   :  { %v5290_v40 = vpop.permute.xlu1 %5289  ;;  %v5459_v38 = vsel %vm614_vm2, %v5427_v8, 0.0  ;;  %v9522_v8 = vld [vmem:[#allocation26_spill] sm:$0xff] }
0x10bd   :  { %v5431_v45 = vmul.f32 %v5290_v40, %v9509_v53  ;;  %v5461_v63 = vadd.f32 %v5460_v41, %v5459_v38  ;;  %v5285_v48 = vpop.permute.xlu0 %5284  ;;  %v9520_v40 = vld [vmem:[#allocation25_spill] sm:$0xff] }
0x10be   :  { %v5430_v60 = vmul.f32 %v5285_v48, %v9518_v46  ;;  %v9523_v38 = vld [vmem:[#allocation17_spill] sm:$0xff]  ;;  %v9528_v48 = vld [vmem:[#allocation32_spill] sm:$0xff]  ;;  %v9532_v46 = vld [vmem:[#allocation27_spill] sm:$0xff] }
0x10bf   :  { %v5462_v43 = vsel %vm614_vm2, %v5431_v45, 0.0 }
0x10c0   :  { %v5300_v14 = vpop.permute.xlu1 %5299  ;;  %v5463_v4 = vadd.f32 %v5462_v43, %v5461_v63  ;;  %v5475_v45 = vsel %vm630_vm3, %v5430_v60, 0.0 }
0x10c1   :  { %v5433_v10 = vmul.f32 %v5300_v14, %v9510_v28 }
0x10c3   :  { %v5464_v2 = vsel %vm614_vm2, %v5433_v10, 0.0  ;;  %v9524_v10 = vld [vmem:[#allocation28_spill] sm:$0xff] }
0x10c4   :  { %v5310_v59 = vpop.permute.xlu1 %5309  ;;  %v5465_v51 = vadd.f32 %v5464_v2, %v5463_v4  ;;  %v9526_v4 = vld [vmem:[#allocation31_spill] sm:$0xff] }
0x10c5   :  { %v5435_v6 = vmul.f32 %v5310_v59, %v9511_v22 }
0x10c7   :  { %v5466_v52 = vsel %vm614_vm2, %v5435_v6, 0.0 }
0x10c8   :  { %v5275_v7 = vpop.permute.xlu1 %5274  ;;  %v5467_v25 = vadd.f32 %v5466_v52, %v5465_v51 }
0x10c9   :  { %v5428_v13 = vmul.f32 %v5275_v7, %v9515_v9  ;;  %v9530_v9 = vld [vmem:[#allocation30_spill] sm:$0xff] }
0x10cb   :  { %v5474_v59 = vsel %vm630_vm3, %v5428_v13, 0.0 }
0x10cc   :  { %v5320_v61 = vpop.permute.xlu1 %5319  ;;  %v5476_v22 = vadd.f32 %v5475_v45, %v5474_v59 }
0x10cd   :  { %v5437_v27 = vmul.f32 %v5320_v61, %v9512_v20  ;;  %v9525_v20 = vld [vmem:[#allocation21_spill] sm:$0xff] }
0x10cf   :  { %v5468_v0 = vsel %vm614_vm2, %v5437_v27, 0.0 }
0x10d0   :  { %v5295_v39 = vpop.permute.xlu1 %5294  ;;  %v5469_v11 = vadd.f32 %v5468_v0, %v5467_v25  ;;  %v9527_v25 = vld [vmem:[#allocation18_spill] sm:$0xff] }
0x10d1   :  { %v5432_v57 = vmul.f32 %v5295_v39, %v9519_v32  ;;  %v9533_v32 = vld [vmem:[#allocation29_spill] sm:$0xff] }
0x10d3   :  { %v5477_v41 = vsel %vm630_vm3, %v5432_v57, 0.0 }
0x10d4   :  { %v5330_v15 = vpop.permute.xlu1 %5329 }
0x10d5   :  { %v5439_v23 = vmul.f32 %v5330_v15, %v9513_v16  ;;  %v5478_v16 = vadd.f32 %v5477_v41, %v5476_v22 }
0x10d7   :  { %v5470_v12 = vsel %vm614_vm2, %v5439_v23, 0.0 }
0x10d8   :  { %v5305_v17 = vpop.permute.xlu1 %5304  ;;  %v5471_v29 = vadd.f32 %v5470_v12, %v5469_v11 }
0x10d9   :  { %v5434_v21 = vmul.f32 %v5305_v17, %v9521_v33 }
0x10db   :  { %v5479_v15 = vsel %vm630_vm3, %v5434_v21, 0.0 }
0x10dc   :  { %v5340_v58 = vpop.permute.xlu1 %5339 }
0x10dd   :  { %v5441_v1 = vmul.f32 %v5340_v58, %v9514_v42  ;;  %v5480_v58 = vadd.f32 %v5479_v15, %v5478_v16 }
0x10df   :  { %v5472_v34 = vsel %vm614_vm2, %v5441_v1, 0.0 }
0x10e0   :  { %v8989_v30 = vadd.f32 %v5472_v34, %v5471_v29  ;;  %v5360_v24 = vpop.permute.xlu0 %5359  ;;  %v9529_v34 = vld [vmem:[#allocation22_spill] sm:$0xff] }
0x10e1   :  { %v5350_v5 = vpop.permute.xlu1 %5349  ;;  %v5445_v49 = vmul.f32 %v5360_v24, %v9517_v36 }
0x10e2   :  { %v5519_v62 = vmul.f32 %v8989_v30, %v8989_v30  ;;  %v5443_v31 = vmul.f32 %v5350_v5, %v9516_v54  ;;  %v9531_v54 = vld [vmem:[#allocation34_spill] sm:$0xff] }
0x10e3   :  { %v5490_v7 = vsel %vm614_vm2, %v5445_v49, 0.0 }
0x10e4   :  { %v5370_v55 = vpop.permute.xlu0 %5369  ;;  %v5523_v3 = vsel %vm614_vm2, %v5519_v62, 0.0  ;;  %v5489_v37 = vsel %vm614_vm2, %v5443_v31, 0.0 }
0x10e5   :  { %5524 = vadd.xlane.f32.xlu1 %v5523_v3  ;;  %v5315_v50 = vpop.permute.xlu1 %5314  ;;  %v5447_v14 = vmul.f32 %v5370_v55, %v9520_v40  ;;  %v5491_v6 = vadd.f32 %v5490_v7, %v5489_v37 }
0x10e6   :  { %v5436_v39 = vmul.f32 %v5315_v50, %v9523_v38 }
0x10e7   :  { %v5492_v28 = vsel %vm614_vm2, %v5447_v14, 0.0 }
0x10e8   :  { %v5380_v47 = vpop.permute.xlu0 %5379  ;;  %v5493_v23 = vadd.f32 %v5492_v28, %v5491_v6  ;;  %v5481_v17 = vsel %vm630_vm3, %v5436_v39, 0.0  ;;  %v9536_v28 = vld [vmem:[#allocation37_spill] sm:$0xff] }
0x10e9   :  { %v5355_v26 = vpop.permute.xlu1 %5354  ;;  %v5449_v53 = vmul.f32 %v5380_v47, %v9522_v8  ;;  %v5482_v62 = vadd.f32 %v5481_v17, %v5480_v58  ;;  %v9535_v8 = vld [vmem:[#allocation33_spill] sm:$0xff] }
0x10ea   :  { %v5444_v60 = vmul.f32 %v5355_v26, %v9532_v46  ;;  %v5667_v58 = vld [vmem:[%s9177_s2] sm:$0xff] }
0x10eb   :  { %v5494_v2 = vsel %vm614_vm2, %v5449_v53, 0.0 }
0x10ec   :  { %v5390_v19 = vpop.permute.xlu0 %5389  ;;  %v5495_v42 = vadd.f32 %v5494_v2, %v5493_v23  ;;  %v5504_v7 = vsel %vm630_vm3, %v5444_v60, 0.0 }
0x10ed   :  { %v5325_v18 = vpop.permute.xlu1 %5324  ;;  %v5451_v43 = vmul.f32 %v5390_v19, %v9524_v10 }
0x10ee   :  { %v5438_v27 = vmul.f32 %v5325_v18, %v9525_v20  ;;  %v9537_v20 = vld [vmem:[#allocation36_spill] sm:$0xff] }
0x10ef   :  { %v5496_v0 = vsel %vm614_vm2, %v5451_v43, 0.0 }
0x10f0   :  { %v5365_v44 = vpop.permute.xlu0 %5364  ;;  %v5483_v29 = vsel %vm630_vm3, %v5438_v27, 0.0  ;;  %v5497_v55 = vadd.f32 %v5496_v0, %v5495_v42  ;;  %v5668_v42 = vld [vmem:[%s9177_s2 + $0x8] sm:$0xff] }
0x10f1   :  { %v5335_v56 = vpop.permute.xlu1 %5334  ;;  %v5484_v47 = vadd.f32 %v5483_v29, %v5482_v62  ;;  %v5446_v13 = vmul.f32 %v5365_v44, %v9530_v9  ;;  %v9534_v44 = vld [vmem:[#allocation35_spill] sm:$0xff]  ;;  %v6320_v29 = vmov 0.0|0.0   ;;  %v5671_v62 = vld [vmem:[%s9177_s2 + $0x20] sm:$0xff]  ;;  %v5676_v9 = vld [vmem:[%s9177_s2 + $0x48] sm:$0xff] }
0x10f2   :  { %v5440_v12 = vmul.f32 %v5335_v56, %v9527_v25  ;;  %5810 = vmatprep.subr.bf16.mxu1 %v6320_v29 }
0x10f3   :  { %v5505_v33 = vsel %vm630_vm3, %v5446_v13, 0.0 }
0x10f4   :  { %v5400_v35 = vpop.permute.xlu0 %5399  ;;  %v5485_v3 = vsel %vm630_vm3, %v5440_v12, 0.0  ;;  %v5506_v53 = vadd.f32 %v5505_v33, %v5504_v7  ;;  %v5680_v33 = vld [vmem:[%s9177_s2 + $0x68] sm:$0xff] }
0x10f5   :  { %v5453_v52 = vmul.f32 %v5400_v35, %v9526_v4  ;;  %v5345_v51 = vpop.permute.xlu1 %5344  ;;  %v5486_v36 = vadd.f32 %v5485_v3, %v5484_v47  ;;  %v5674_v47 = vld [vmem:[%s9177_s2 + $0x38] sm:$0xff] }
0x10f6   :  { %v5442_v24 = vmul.f32 %v5345_v51, %v9529_v34  ;;  %v9538_v51 = vld [vmem:[#allocation38_spill] sm:$0xff]  ;;  %v5811_v34 = vpack.c.bf16 %v5668_v42, %v5667_v58 }
0x10f7   :  { %v5498_v5 = vsel %vm614_vm2, %v5453_v52, 0.0 }
0x10f8   :  { %v5375_v61 = vpop.permute.xlu0 %5374  ;;  %v5499_v19 = vadd.f32 %v5498_v5, %v5497_v55  ;;  %v5487_v35 = vsel %vm630_vm3, %v5442_v24, 0.0  ;;  %v5670_v24 = vld [vmem:[%s9177_s2 + $0x18] sm:$0xff]  ;;  %5812 = vmatpush1.bf16.msra.mxu1 %v5811_v34  ;;  %v5672_v55 = vld [vmem:[%s9177_s2 + $0x28] sm:$0xff] }
0x10f9   :  { %v5448_v57 = vmul.f32 %v5375_v61, %v9533_v32  ;;  %v9029_v14 = vadd.f32 %v5487_v35, %v5486_v36  ;;  %5813 = vmatprep.subr.bf16.mxu1 %v6320_v29  ;;  %v5817_v3 = vpack.c.bf16 %v5672_v55, %v5671_v62  ;;  %v5677_v35 = vld [vmem:[%s9177_s2 + $0x50] sm:$0xff] }
0x10fb   :  { %v5507_v26 = vsel %vm630_vm3, %v5448_v57, 0.0  ;;  %v5520_v38 = vmul.f32 %v9029_v14, %v9029_v14 }
0x10fc   :  { %v5410_v63 = vpop.permute.xlu0 %5409  ;;  %v5508_v43 = vadd.f32 %v5507_v26, %v5506_v53  ;;  %v9539_v26 = vmov 0.0  }
0x10fd   :  { %v5455_v11 = vmul.f32 %v5410_v63, %v9528_v48  ;;  %v5526_v15 = vsel %vm630_vm3, %v5520_v38, 0.0 }
0x10ff   :  { %v5500_v50 = vsel %vm614_vm2, %v5455_v11, 0.0 }
0x1100   :  { %v5385_v1 = vpop.permute.xlu0 %5384  ;;  %v5501_v49 = vadd.f32 %v5500_v50, %v5499_v19  ;;  %v5673_v50 = vld [vmem:[%s9177_s2 + $0x30] sm:$0xff] }
0x1101   :  { %v5450_v21 = vmul.f32 %v5385_v1, %v9534_v44  ;;  %v5669_v1 = vld [vmem:[%s9177_s2 + $0x10] sm:$0xff]  ;;  %v5820_v19 = vpack.c.bf16 %v5674_v47, %v5673_v50 }
0x1102   :  { %v5814_v5 = vpack.c.bf16 %v5670_v24, %v5669_v1 }
0x1103   :  { %v5509_v39 = vsel %vm630_vm3, %v5450_v21, 0.0 }
0x1104   :  { %v5420_v18 = vpop.permute.xlu0 %5419  ;;  %v5510_v6 = vadd.f32 %v5509_v39, %v5508_v43  ;;  %5815 = vmatpush1.bf16.msra.mxu1 %v5814_v5 }
0x1105   :  { %v5457_v31 = vmul.f32 %v5420_v18, %v9531_v54  ;;  %5816 = vmatprep.subr.bf16.mxu1 %v6320_v29  ;;  %v5675_v18 = vld [vmem:[%s9177_s2 + $0x40] sm:$0xff]  ;;  %v5678_v54 = vld [vmem:[%s9177_s2 + $0x58] sm:$0xff] }
0x1106   :  { %v5823_v13 = vpack.c.bf16 %v5676_v9, %v5675_v18 }
0x1107   :  { %v5502_v40 = vsel %vm614_vm2, %v5457_v31, 0.0  ;;  %v5826_v31 = vpack.c.bf16 %v5678_v54, %v5677_v35 }
0x1108   :  { %v9031_v59 = vadd.f32 %v5502_v40, %v5501_v49  ;;  %v5395_v56 = vpop.permute.xlu0 %5394  ;;  %5818 = vmatpush1.bf16.msra.mxu1 %v5817_v3 }
0x1109   :  { %v5452_v61 = vmul.f32 %v5395_v56, %v9535_v8  ;;  %5819 = vmatprep.subr.bf16.mxu1 %v6320_v29  ;;  %v5679_v56 = vld [vmem:[%s9177_s2 + $0x60] sm:$0xff] }
0x110a   :  { %v5521_v37 = vmul.f32 %v9031_v59, %v9031_v59  ;;  %v5829_v44 = vpack.c.bf16 %v5680_v33, %v5679_v56 }
0x110b   :  { %v5511_v22 = vsel %vm630_vm3, %v5452_v61, 0.0  ;;  %v5682_v61 = vld [vmem:[%s9177_s2 + $0x78] sm:$0xff] }
0x110c   :  { %v5405_v45 = vpop.permute.xlu0 %5404  ;;  %v5529_v41 = vsel %vm614_vm2, %v5521_v37, 0.0  ;;  %v5512_v4 = vadd.f32 %v5511_v22, %v5510_v6  ;;  %5821 = vmatpush1.bf16.msra.mxu1 %v5820_v19 }
0x110d   :  { %v5454_v10 = vmul.f32 %v5405_v45, %v9536_v28  ;;  %5530 = vadd.xlane.f32.xlu0 %v5529_v41  ;;  %5822 = vmatprep.subr.bf16.mxu1 %v6320_v29  ;;  %v9540_v41 = vld [vmem:[#allocation5_spill] sm:$0xff] }
0x110f   :  { %v5513_v2 = vsel %vm630_vm3, %v5454_v10, 0.0 }
0x1110   :  { %v5415_v63 = vpop.permute.xlu0 %5414  ;;  %v5514_v16 = vadd.f32 %v5513_v2, %v5512_v4  ;;  %5824 = vmatpush1.bf16.msra.mxu1 %v5823_v13 }
0x1111   :  { %v5456_v27 = vmul.f32 %v5415_v63, %v9537_v20  ;;  %5527 = vadd.xlane.f32.xlu0 %v5526_v15  ;;  %5825 = vmatprep.subr.bf16.mxu1 %v6320_v29  ;;  %v5683_v63 = vld [vmem:[%s9177_s2 + $0x80] sm:$0xff]  ;;  %v5684_v15 = vld [vmem:[%s9177_s2 + $0x88] sm:$0xff] }
0x1112   :  { %v5835_v2 = vpack.c.bf16 %v5684_v15, %v5683_v63  ;;  %v9541_v20 = vld [vmem:[#allocation6_spill] sm:$0xff] }
0x1113   :  { %v5515_v52 = vsel %vm630_vm3, %v5456_v27, 0.0 }
0x1114   :  { %v5425_v23 = vpop.permute.xlu0 %5424  ;;  %v5516_v0 = vadd.f32 %v5515_v52, %v5514_v16  ;;  %5827 = vmatpush1.bf16.msra.mxu1 %v5826_v31 }
0x1115   :  { %v5458_v17 = vmul.f32 %v5425_v23, %v9538_v51  ;;  %5828 = vmatprep.subr.bf16.mxu1 %v6320_v29  ;;  %v5685_v23 = vld [vmem:[%s9177_s2 + $0x90] sm:$0xff]  ;;  %v5686_v51 = vld [vmem:[%s9177_s2 + $0x98] sm:$0xff] }
0x1117   :  { %v5517_v25 = vsel %vm630_vm3, %v5458_v17, 0.0  ;;  %v5838_v17 = vpack.c.bf16 %v5686_v51, %v5685_v23 }
0x1118   :  { %v9052_v12 = vadd.f32 %v5517_v25, %v5516_v0  ;;  %5830 = vmatpush1.bf16.msra.mxu1 %v5829_v44 }
0x1119   :  { %5831 = vmatprep.subr.bf16.mxu1 %v6320_v29 }
0x111a   :  { %v5522_v48 = vmul.f32 %v9052_v12, %v9052_v12 }
0x111c   :  { %v5532_v11 = vsel %vm630_vm3, %v5522_v48, 0.0 }
0x111d   :  { %5533 = vadd.xlane.f32.xlu1 %v5532_v11 }
0x1172   :  { %v5525_v36 = vpop.xlane.xlu1 %5524 }
0x1173   :  { %v5535_v49 = vadd.f32 1e-07, %v5525_v36 }
0x1175   :  { %6273 = vrsqrt.f32 %v5535_v49 }
0x117f   :  { %v6274_v32 = vpop.eup %6273 }
0x1180   :  { %v5543_v57 = vmul.f32 %v6274_v32, %v8989_v30  ;;  %v5681_v30 = vld [vmem:[%s9177_s2 + $0x70] sm:$0xff]  ;;  %v5791_v32 = vld [vmem:[%s9178_s3] ss:$0 sm:$0xff] }
0x1181   :  { %v5832_v53 = vpack.c.bf16 %v5682_v61, %v5681_v30 }
0x1182   :  { %v5545_v8 = vcombine.high %v5543_v57, %v9539_v26  ;;  %v5552_v38 = vrot.slane %v5543_v57, %v9540_v41 }
0x1183   :  { %5833 = vmatpush1.bf16.msra.mxu1 %v5832_v53 }
0x1184   :  { %v5559_v22 = vrot.slane %v5545_v8, %v9540_v41  ;;  %5834 = vmatprep.subr.bf16.mxu1 %v6320_v29 }
0x1187   :  { %5836 = vmatpush1.bf16.msra.mxu1 %v5835_v2 }
0x1188   :  { %5837 = vmatprep.subr.bf16.mxu1 %v6320_v29 }
0x118b   :  { %5839 = vmatpush1.bf16.msra.mxu1 %v5838_v17 }
0x119a   :  { %v5531_v46 = vpop.xlane.xlu0 %5530 }
0x119b   :  { %v5537_v60 = vadd.f32 1e-07, %v5531_v46 }
0x119d   :  { %6275 = vrsqrt.f32 %v5537_v60 }
0x119e   :  { %v5528_v40 = vpop.xlane.xlu0 %5527 }
0x119f   :  { %v5536_v37 = vadd.f32 1e-07, %v5528_v40 }
0x11a1   :  { %6277 = vrsqrt.f32 %v5536_v37 }
0x11a7   :  { %v6276_v21 = vpop.eup %6275 }
0x11a8   :  { %v5544_v7 = vmul.f32 %v6276_v21, %v9031_v59 }
0x11aa   :  { %v5534_v45 = vpop.xlane.xlu1 %5533  ;;  %v5567_v39 = vrot.slane %v5544_v7, %v9540_v41  ;;  %v5560_v59 = vcombine.high %v5544_v7, %v9539_v26 }
0x11ab   :  { %v5538_v28 = vadd.f32 1e-07, %v5534_v45  ;;  %v6278_v11 = vpop.eup %6277 }
0x11ac   :  { %v5576_v10 = vcombine.high %v5552_v38, %v5567_v39  ;;  %v5575_v43 = vcombine.low %v5552_v38, %v5567_v39  ;;  %v5574_v6 = vrot.slane %v5560_v59, %v9540_v41  ;;  %v5611_v1 = vmul.f32 %v6278_v11, %v9029_v14 }
0x11ad   :  { %6279 = vrsqrt.f32 %v5538_v28 }
0x11ae   :  { %v5590_v27 = vrot.slane %v5576_v10, %v9541_v20  ;;  %v5583_v4 = vrot.slane %v5575_v43, %v9541_v20  ;;  %v5591_v52 = vcombine.low %v5559_v22, %v5574_v6  ;;  %v5592_v48 = vcombine.high %v5559_v22, %v5574_v6 }
0x11b0   :  { %5627 = vrot.lane.b32.xlu1 %v5590_v27, %s6315_s28  ;;  %v5607_v16 = vcombine.high %v5583_v4, %v9539_v26  ;;  %v5608_v0 = vcombine.high %v5590_v27, %v9539_v26  ;;  %v5599_v25 = vrot.slane %v5591_v52, %v9541_v20  ;;  %v5606_v24 = vrot.slane %v5592_v48, %v9541_v20 }
0x11b2   :  { %5623 = vrot.lane.b32.xlu0 %v5607_v16, %s6316_s29  ;;  %v5609_v58 = vcombine.high %v5599_v25, %v9539_v26  ;;  %v5610_v5 = vcombine.high %v5606_v24, %v9539_v26 }
0x11b4   :  { %5631 = vrot.lane.b32.xlu1 %v5608_v0, %s6313_s0 }
0x11b6   :  { %5635 = vrot.lane.b32.xlu0 %v5599_v25, %s6314_s27 }
0x11b7   :  { %v6280_v42 = vpop.eup %6279 }
0x11b8   :  { %v5612_v34 = vmul.f32 %v6280_v42, %v9052_v12  ;;  %5639 = vrot.lane.b32.xlu1 %v5609_v58, %s6312_s26 }
0x11ba   :  { %5643 = vrot.lane.b32.xlu0 %v5606_v24, %s6310_s1  ;;  %v5613_v29 = vcombine.low %v5611_v1, %v5612_v34 }
0x11bc   :  { %v5620_v62 = vrot.slane %v5613_v29, %v9541_v20 }
0x11be   :  { %5647 = vrot.lane.b32.xlu0 %v5610_v5, %s6311_s25  ;;  %v5621_v55 = vcombine.high %v5620_v62, %v9539_v26  ;;  %s6321_s25 = smov [#allocation2]  }
0x11bf   :  { %s5781_s26 = sshll.u32 %s6321_s25, 4  ;;  %s5782_s26 = int_to_ptr.vmem [resolvable:$true] %s5781_s26 }
0x11c0   :  { %5651 = vrot.lane.b32.xlu1 %v5621_v55, %s6316_s29  ;;  %s6285_s0 = scalar_lea.vmem %s5782_s26, 32  ;;  %p6290_p1 = scmp.lt.s32.totalorder %s5782_s26, %s5782_s26 }
0x11c1   :  { %p6286_p0 = scmp.ne.s32.totalorder %s5782_s26, %s6285_s0  ;;  %p6291_p2 = scmp.lt.s32.totalorder %s6285_s0, %s6285_s0 }
0x11c3   :  { %p6292_p3 = por %p6291_p2, %p6290_p1 }
0x11c5   :  { %p6293_p4 = pnand %p6292_p3, %p6286_p0 }
0x1222   :  { %v5628_v14 = vpop.permute.xlu1 %5627 }
0x1224   :  { %v5624_v3 = vpop.permute.xlu0 %5623 }
0x1225   :  { %v5654_v12 = vsel %vm614_vm2, %v5583_v4, %v5624_v3 }
0x1226   :  { %v5632_v50 = vpop.permute.xlu1 %5631  ;;  %v5656_v47 = vsel %vm5655_vm12, %v5654_v12, %v5628_v14 }
0x1227   :  { %v5658_v18 = vsel %vm5657_vm13, %v5656_v47, %v5632_v50 }
0x1228   :  { %v5636_v19 = vpop.permute.xlu0 %5635 }
0x1229   :  { %v5659_v35 = vsel %vm36_vm1, %v5658_v18, %v5636_v19  ;;  %vm5773_vm1 = vcmask 238592  }
0x122a   :  { %v5640_v13 = vpop.permute.xlu1 %5639 }
0x122b   :  { %v5661_v54 = vsel %vm5660_vm14, %v5659_v35, %v5640_v13 }
0x122c   :  { %v5644_v9 = vpop.permute.xlu0 %5643 }
0x122d   :  { %v5663_v46 = vsel %vm5662_vm15, %v5661_v54, %v5644_v9 }
0x1230   :  { %v5648_v31 = vpop.permute.xlu0 %5647 }
0x1231   :  { %v5665_v60 = vsel %vm5664_vm0, %v5663_v46, %v5648_v31 }
0x1232   :  { %v5652_v36 = vpop.permute.xlu1 %5651 }
0x1233   :  { %v5666_v49 = vsel %vm614_vm2, %v5620_v62, %v5652_v36 }
0x1234   :  { %5792 = vmatprep.mubr.msk.f32.mxu1 %vm5655_vm12, %v5666_v49 }
0x1235   :  { %5762 = vmatmul.mubr.f32.vlgmr.msra.gmra.mrb[0].mxu1 %v5665_v60 }
0x1308   :  { %v5763_v57 = vpop.f32.mrb[0].mxu1 }
0x1309   :  { %v5764_v40 = vadd.f32 %v5791_v32, %v5763_v57  ;;  %v5765_v56 = vpop.f32.mrb[1].mxu1 }
0x130b   :  { %v5793_v33 = vmul.f32 -1.442695, %v5764_v40 }
0x130d   :  { %6281 = vpow2.f32 %v5793_v33 }
0x1317   :  { %v6282_v44 = vpop.eup %6281 }
0x1318   :  { %v5770_v21 = vadd.f32 1.0, %v6282_v44 }
0x131a   :  { %6283 = vrcp.f32 %v5770_v21 }
0x1324   :  { %v6284_v37 = vpop.eup %6283 }
0x1325   :  { %5774 = vst.msk [vmem:[#allocation2] sm:$0x3] %vm5773_vm1, %v6284_v37 }
0x1326   :  { %6296 = shalt.err (!%p6293_p4)
}
0x1327   :  { %s6297_s28 = scalar_lea.hbm %s9179_s4, 32 }
0x1328   :  { %p6298_p5 = scmp.ne.s32.totalorder %s9179_s4, %s6297_s28  ;;  %p6301_p6 = scmp.lt.u32.totalorder %s6297_s28, %s9179_s4 }
0x132a   :  { %p6303_p7 = pnand %p6301_p6, %p6298_p5 }
0x132c   :  { %6306 = shalt.err (!%p6303_p7)
}
0x132d   :  { %5784 = dma.vmem_to_hbm [thread:$0]  %s5782_s26, 32, %s9179_s4, [#allocation3]  }
0x132e   :  { %6307 = dma.done.wait [#allocation3], 32  }
0x132f   :  { %6308 = vsyncadd [#allocation3], 4294967264 }
0x1330   :  { %5788 = vsyncpa [#allocation3], 1 }

</bundles_post_ra>
